<compile_context>
chip_gen: v5e
topology: v5e:2x2
jax: 0.10.0
libtpu: 0.0.40
codegen_flags: <defaults>
</compile_context>

<pallas_src>
import functools

import jax
import jax.numpy as jnp
from jax.experimental import pallas as pl
from jax.experimental.pallas import tpu as pltpu

KSIZE = 5
PAD = 2          # 'same' padding for k=5
EPS = 1e-5       # PyTorch BatchNorm default eps


def mycnn_fused_kernel(img_w, p_ref, wt_ref, bc_ref, g2_ref, b2_ref,
                       wf_ref, bf_ref, g1_ref, b1_ref, o_ref, ye_ref):
    # p_ref  : (N*H*W, T)     im2col patches, row = n*H*W + h*W + w (T zero-padded)
    # wt_ref : (T, C)         conv taps, row = (kh*K + kw)*Cin + ci
    # bc/g2/b2_ref : (1, C)   conv bias, BN2d gamma / beta
    # wf_ref : (O, H*W, C)    FC weight in pooled row/lane layout, zero rows at
    #                         pool-invalid positions (h == H-1 or w == W-1)
    # bf/g1/b1_ref : (1, O)   FC bias, BN1d gamma / beta
    # o_ref  : (N, O)
    # ye_ref : (N*H*W + img_w + 8, C) scratch for the pooling row shifts
    nhw = p_ref.shape[0]
    c = wt_ref.shape[1]
    n, n_out = o_ref.shape
    hw = nhw // n
    ext = ye_ref.shape[0] - nhw

    # 1) Conv2d(k=5, 'same') as one im2col matmul on the MXU.
    acc = jnp.dot(p_ref[...], wt_ref[...], preferred_element_type=jnp.float32)
    acc = acc + bc_ref[...]

    # 2) BatchNorm2d: training-mode batch stats over all N*H*W rows,
    #    biased two-pass variance.  Fold gamma into the rsqrt on the (1, C)
    #    row so the broadcasted epilogue is a single multiply-add.
    mean = jnp.mean(acc, axis=0, keepdims=True)
    d = acc - mean
    var = jnp.mean(d * d, axis=0, keepdims=True)
    scale2 = jax.lax.rsqrt(var + EPS) * g2_ref[...]
    y = d * scale2 + b2_ref[...]

    # 3) ReLU
    y = jnp.maximum(y, 0.0)

    # 4) MaxPool2d(2, stride=1): row r = n*H*W + h*W + w, window = rows
    #    {r, r+1, r+W, r+W+1}.  Rows with h == H-1 or w == W-1 are junk but
    #    carry zero FC weight.  Shifts come from a zero-extended scratch.
    ye_ref[nhw:nhw + ext, :] = jnp.zeros((ext, c), jnp.float32)
    ye_ref[0:nhw, :] = y
    yx = ye_ref[...]
    pooled = jnp.maximum(
        jnp.maximum(yx[0:nhw, :], yx[1:nhw + 1, :]),
        jnp.maximum(yx[img_w:nhw + img_w, :], yx[img_w + 1:nhw + img_w + 1, :]))

    # 5) Linear: contract pooled (N, H*W, C) with the permuted, zero-masked FC
    #    weight (O, H*W, C); per-output multiply + lane/sublane reduce, no
    #    activation relayout.  O = 10, so compute here is negligible.
    pooled3 = pooled.reshape(n, hw, c)
    lane = jax.lax.broadcasted_iota(jnp.int32, (1, n_out), 1)
    z = jnp.zeros((n, n_out), jnp.float32)
    for o in range(n_out):
        t = pooled3 * wf_ref[o]                      # (N, H*W, C)
        s = jnp.sum(t, axis=2, keepdims=True)        # lane reduce
        s = jnp.sum(s, axis=1, keepdims=True)        # sublane reduce
        z = z + s[:, 0, :] * (lane == o).astype(jnp.float32)
    z = z + bf_ref[...]

    # 6) BatchNorm1d over the batch, biased two-pass variance.
    mu = jnp.mean(z, axis=0, keepdims=True)
    dz = z - mu
    vz = jnp.mean(dz * dz, axis=0, keepdims=True)
    scale1 = jax.lax.rsqrt(vz + EPS) * g1_ref[...]
    o_ref[...] = dz * scale1 + b1_ref[...]


def mycnn_forward(x_nchw, params):
    """params are PyTorch-native shapes; layout prep happens once here."""
    (w_conv, b_conv, g2d, be2d, w_fc, b_fc, g1d, be1d) = params
    n, cin, h, w = x_nchw.shape
    cout = w_conv.shape[0]
    n_out = w_fc.shape[0]
    n_fc = h - 1                       # pooled spatial size after MaxPool2d(2, 1)
    kkc = KSIZE * KSIZE * cin
    t_pad = ((kkc + 7) // 8) * 8       # pad tap dim for clean MXU tiles

    xf = x_nchw.astype(jnp.float32)
    xp = jnp.pad(xf, ((0, 0), (0, 0), (PAD, PAD), (PAD, PAD)))

    # im2col patches: rows = n*H*W + h*W + w, cols = (kh*K + kw)*Cin + ci.
    cols = []
    for kh in range(KSIZE):
        for kw in range(KSIZE):
            cols.append(xp[:, :, kh:kh + h, kw:kw + w])       # (N, Cin, H, W)
    patches = jnp.stack(cols, axis=-1)                        # (N, Cin, H, W, K*K)
    patches = jnp.transpose(patches, (0, 2, 3, 4, 1))         # (N, H, W, K*K, Cin)
    patches = patches.reshape(n * h * w, kkc)
    patches = jnp.pad(patches, ((0, 0), (0, t_pad - kkc)))

    # Conv taps: row = (kh*K + kw)*Cin + ci.
    wt = jnp.transpose(w_conv.astype(jnp.float32), (2, 3, 1, 0)).reshape(kkc, cout)
    wt = jnp.pad(wt, ((0, t_pad - kkc), (0, 0)))

    # FC weight: torch flatten index f = c*n_fc^2 + ph*n_fc + pw  ->  layout
    # (O, h*W + w, C) over the full HxW grid, zero where h==H-1 or w==W-1.
    wf = w_fc.astype(jnp.float32).reshape(n_out, cout, n_fc, n_fc)
    wf = jnp.transpose(wf, (0, 2, 3, 1))                      # (O, ph, pw, C)
    wf = jnp.pad(wf, ((0, 0), (0, h - n_fc), (0, w - n_fc), (0, 0)))
    wf = wf.reshape(n_out, h * w, cout)

    row = lambda v: v.astype(jnp.float32).reshape(1, -1)

    kernel = functools.partial(mycnn_fused_kernel, w)
    return pl.pallas_call(
        kernel,
        out_shape=jax.ShapeDtypeStruct((n, n_out), jnp.float32),
        in_specs=[pl.BlockSpec(memory_space=pltpu.MemorySpace.VMEM)] * 9,
        out_specs=pl.BlockSpec(memory_space=pltpu.MemorySpace.VMEM),
        scratch_shapes=[pltpu.VMEM((n * h * w + w + 8, cout), jnp.float32)],
    )(patches, wt, row(b_conv), row(g2d), row(be2d),
      wf, row(b_fc), row(g1d), row(be1d))


def mycnn_reference(x, params):
    """Pure-JAX reference of the PyTorch forward (training-mode BN)."""
    (w_conv, b_conv, g2d, be2d, w_fc, b_fc, g1d, be1d) = params
    conv = jax.lax.conv_general_dilated(
        x.astype(jnp.float32), w_conv.astype(jnp.float32),
        window_strides=(1, 1), padding="SAME",
        dimension_numbers=("NCHW", "OIHW", "NCHW"),
        precision=jax.lax.Precision.HIGHEST)
    conv = conv + b_conv[None, :, None, None]
    mean = jnp.mean(conv, axis=(0, 2, 3), keepdims=True)
    var = jnp.mean((conv - mean) ** 2, axis=(0, 2, 3), keepdims=True)
    y = (conv - mean) / jnp.sqrt(var + EPS)
    y = y * g2d[None, :, None, None] + be2d[None, :, None, None]
    y = jnp.maximum(y, 0.0)
    p = jnp.maximum(jnp.maximum(y[:, :, :-1, :-1], y[:, :, 1:, :-1]),
                    jnp.maximum(y[:, :, :-1, 1:], y[:, :, 1:, 1:]))
    flat = p.reshape(p.shape[0], -1)                          # NCHW flatten order
    z = jnp.dot(flat, w_fc.T, precision=jax.lax.Precision.HIGHEST) + b_fc
    mu = jnp.mean(z, axis=0, keepdims=True)
    vz = jnp.mean((z - mu) ** 2, axis=0, keepdims=True)
    return (z - mu) / jnp.sqrt(vz + EPS) * g1d + be1d


if __name__ == "__main__":
    # Default MyCNN(): args = [1, 32, 10]; n_fc = 15 -> needs 16x16 spatial input
    # so the Linear sees 32 * 15 * 15 = 7200 features.
    N, C_IN, H, W = 2, 1, 16, 16
    C_MID, N_OUT = 32, 10
    feat_dim = C_MID * (H - 1) * (W - 1)   # 7200

    key = jax.random.PRNGKey(0)
    ks = jax.random.split(key, 9)
    x = jax.random.normal(ks[0], (N, C_IN, H, W), jnp.float32)

    # Parameters in PyTorch-native shapes.
    w_conv = 0.1 * jax.random.normal(ks[1], (C_MID, C_IN, KSIZE, KSIZE), jnp.float32)
    b_conv = 0.1 * jax.random.normal(ks[2], (C_MID,), jnp.float32)
    g2d = 1.0 + 0.1 * jax.random.normal(ks[3], (C_MID,), jnp.float32)
    be2d = 0.1 * jax.random.normal(ks[4], (C_MID,), jnp.float32)
    w_fc = 0.02 * jax.random.normal(ks[5], (N_OUT, feat_dim), jnp.float32)
    b_fc = 0.1 * jax.random.normal(ks[6], (N_OUT,), jnp.float32)
    g1d = 1.0 + 0.1 * jax.random.normal(ks[7], (N_OUT,), jnp.float32)
    be1d = 0.1 * jax.random.normal(ks[8], (N_OUT,), jnp.float32)

    params = (w_conv, b_conv, g2d, be2d, w_fc, b_fc, g1d, be1d)

    out = jax.block_until_ready(mycnn_forward(x, params))
    assert out.shape == (N, N_OUT), out.shape
    assert bool(jnp.all(jnp.isfinite(out)))

    ref = jax.block_until_ready(mycnn_reference(x, params))
    assert bool(jnp.allclose(out, ref, atol=1e-2, rtol=1e-2))

    print("KERNEL_OK")
</pallas_src>

<mosaic_0001>
module attributes {stable_mosaic.version = 11 : i64} {
  func.func @mycnn_fused_kernel(%arg0: memref<512x32xf32, #tpu.memory_space<vmem>>, %arg1: memref<32x32xf32, #tpu.memory_space<vmem>>, %arg2: memref<1x32xf32, #tpu.memory_space<vmem>>, %arg3: memref<1x32xf32, #tpu.memory_space<vmem>>, %arg4: memref<1x32xf32, #tpu.memory_space<vmem>>, %arg5: memref<10x256x32xf32, #tpu.memory_space<vmem>>, %arg6: memref<1x10xf32, #tpu.memory_space<vmem>>, %arg7: memref<1x10xf32, #tpu.memory_space<vmem>>, %arg8: memref<1x10xf32, #tpu.memory_space<vmem>>, %arg9: memref<2x10xf32, #tpu.memory_space<vmem>>, %arg10: memref<536x32xf32, #tpu.memory_space<vmem>>) attributes {dimension_semantics = [], scalar_prefetch = 0 : i64, scratch_operands = 1 : i64, tpu.core_type = #tpu.core_type<tc>} {
    %c0 = arith.constant 0 : index
    %c0_0 = arith.constant 0 : index
    %0 = vector.load %arg0[%c0, %c0_0] : memref<512x32xf32, #tpu.memory_space<vmem>>, vector<512x32xf32>
    %c0_1 = arith.constant 0 : index
    %c0_2 = arith.constant 0 : index
    %1 = vector.load %arg1[%c0_1, %c0_2] : memref<32x32xf32, #tpu.memory_space<vmem>>, vector<32x32xf32>
    %cst = arith.constant dense<0.000000e+00> : vector<512x32xf32>
    %2 = tpu.matmul %0, %1, %cst {dimension_numbers = #tpu.dot_dimension_numbers<[1], [0], [0], [1], [0, 0, 1, 1], [], []>} : vector<512x32xf32>, vector<32x32xf32>, vector<512x32xf32> -> vector<512x32xf32>
    %c0_3 = arith.constant 0 : index
    %c0_4 = arith.constant 0 : index
    %3 = vector.load %arg2[%c0_3, %c0_4] : memref<1x32xf32, #tpu.memory_space<vmem>>, vector<1x32xf32>
    %4 = vector.broadcast %3 : vector<1x32xf32> to vector<512x32xf32>
    %5 = arith.addf %2, %4 : vector<512x32xf32>
    %cst_5 = arith.constant dense<0.000000e+00> : vector<32xf32>
    %6 = vector.multi_reduction <add>, %5, %cst_5 [0] : vector<512x32xf32> to vector<32xf32>
    %7 = vector.shape_cast %6 : vector<32xf32> to vector<1x32xf32>
    %cst_6 = arith.constant 5.120000e+02 : f32
    %8 = vector.broadcast %cst_6 : f32 to vector<1x32xf32>
    %9 = arith.divf %7, %8 : vector<1x32xf32>
    %10 = vector.broadcast %9 : vector<1x32xf32> to vector<512x32xf32>
    %11 = arith.subf %5, %10 : vector<512x32xf32>
    %12 = arith.mulf %11, %11 : vector<512x32xf32>
    %cst_7 = arith.constant dense<0.000000e+00> : vector<32xf32>
    %13 = vector.multi_reduction <add>, %12, %cst_7 [0] : vector<512x32xf32> to vector<32xf32>
    %14 = vector.shape_cast %13 : vector<32xf32> to vector<1x32xf32>
    %cst_8 = arith.constant 5.120000e+02 : f32
    %15 = vector.broadcast %cst_8 : f32 to vector<1x32xf32>
    %16 = arith.divf %14, %15 : vector<1x32xf32>
    %cst_9 = arith.constant 9.99999974E-6 : f32
    %17 = vector.broadcast %cst_9 : f32 to vector<1x32xf32>
    %18 = arith.addf %16, %17 : vector<1x32xf32>
    %19 = math.rsqrt %18 : vector<1x32xf32>
    %c0_10 = arith.constant 0 : index
    %c0_11 = arith.constant 0 : index
    %20 = vector.load %arg3[%c0_10, %c0_11] : memref<1x32xf32, #tpu.memory_space<vmem>>, vector<1x32xf32>
    %21 = arith.mulf %19, %20 : vector<1x32xf32>
    %22 = vector.broadcast %21 : vector<1x32xf32> to vector<512x32xf32>
    %23 = arith.mulf %11, %22 : vector<512x32xf32>
    %c0_12 = arith.constant 0 : index
    %c0_13 = arith.constant 0 : index
    %24 = vector.load %arg4[%c0_12, %c0_13] : memref<1x32xf32, #tpu.memory_space<vmem>>, vector<1x32xf32>
    %25 = vector.broadcast %24 : vector<1x32xf32> to vector<512x32xf32>
    %26 = arith.addf %23, %25 : vector<512x32xf32>
    %cst_14 = arith.constant 0.000000e+00 : f32
    %27 = vector.broadcast %cst_14 : f32 to vector<512x32xf32>
    %28 = arith.maximumf %26, %27 : vector<512x32xf32>
    %cst_15 = arith.constant 0.000000e+00 : f32
    %29 = vector.broadcast %cst_15 : f32 to vector<24x32xf32>
    %c512 = arith.constant 512 : index
    %c0_16 = arith.constant 0 : index
    %30 = vector.load %arg10[%c512, %c0_16] : memref<536x32xf32, #tpu.memory_space<vmem>>, vector<24x32xf32>
    tpu.vector_store %arg10[%c512, %c0_16], %29 {strides = array<i32>} : memref<536x32xf32, #tpu.memory_space<vmem>>, vector<24x32xf32>,
    %c0_17 = arith.constant 0 : index
    %c0_18 = arith.constant 0 : index
    %31 = vector.load %arg10[%c0_17, %c0_18] : memref<536x32xf32, #tpu.memory_space<vmem>>, vector<512x32xf32>
    tpu.vector_store %arg10[%c0_17, %c0_18], %28 {strides = array<i32>} : memref<536x32xf32, #tpu.memory_space<vmem>>, vector<512x32xf32>,
    %c0_19 = arith.constant 0 : index
    %c0_20 = arith.constant 0 : index
    %32 = vector.load %arg10[%c0_19, %c0_20] : memref<536x32xf32, #tpu.memory_space<vmem>>, vector<536x32xf32>
    %33 = vector.extract_strided_slice %32 {offsets = [0, 0], sizes = [512, 32], strides = [1, 1]} : vector<536x32xf32> to vector<512x32xf32>
    %34 = vector.extract_strided_slice %32 {offsets = [1, 0], sizes = [512, 32], strides = [1, 1]} : vector<536x32xf32> to vector<512x32xf32>
    %35 = arith.maximumf %33, %34 : vector<512x32xf32>
    %36 = vector.extract_strided_slice %32 {offsets = [16, 0], sizes = [512, 32], strides = [1, 1]} : vector<536x32xf32> to vector<512x32xf32>
    %37 = vector.extract_strided_slice %32 {offsets = [17, 0], sizes = [512, 32], strides = [1, 1]} : vector<536x32xf32> to vector<512x32xf32>
    %38 = arith.maximumf %36, %37 : vector<512x32xf32>
    %39 = arith.maximumf %35, %38 : vector<512x32xf32>
    %40 = vector.shape_cast %39 : vector<512x32xf32> to vector<2x256x32xf32>
    %41 = tpu.iota {dimensions = array<i32: 1>} : vector<1x10xi32>
    %cst_21 = arith.constant 0.000000e+00 : f32
    %42 = vector.broadcast %cst_21 : f32 to vector<2x10xf32>
    %c0_22 = arith.constant 0 : index
    %c0_23 = arith.constant 0 : index
    %c0_24 = arith.constant 0 : index
    %43 = vector.load %arg5[%c0_22, %c0_23, %c0_24] : memref<10x256x32xf32, #tpu.memory_space<vmem>>, vector<1x256x32xf32>
    %44 = vector.shape_cast %43 : vector<1x256x32xf32> to vector<256x32xf32>
    %45 = vector.shape_cast %44 : vector<256x32xf32> to vector<1x256x32xf32>
    %46 = vector.broadcast %45 : vector<1x256x32xf32> to vector<2x256x32xf32>
    %47 = arith.mulf %40, %46 : vector<2x256x32xf32>
    %cst_25 = arith.constant dense<0.000000e+00> : vector<2x256xf32>
    %48 = vector.multi_reduction <add>, %47, %cst_25 [2] : vector<2x256x32xf32> to vector<2x256xf32>
    %49 = vector.shape_cast %48 : vector<2x256xf32> to vector<2x256x1xf32>
    %cst_26 = arith.constant dense<0.000000e+00> : vector<2x1xf32>
    %50 = vector.multi_reduction <add>, %49, %cst_26 [1] : vector<2x256x1xf32> to vector<2x1xf32>
    %51 = vector.shape_cast %50 : vector<2x1xf32> to vector<2x1x1xf32>
    %52 = vector.shape_cast %51 : vector<2x1x1xf32> to vector<2x1xf32>
    %c0_i32 = arith.constant 0 : i32
    %53 = vector.broadcast %c0_i32 : i32 to vector<1x10xi32>
    %54 = arith.cmpi eq, %41, %53 : vector<1x10xi32>
    %55 = arith.extui %54 : vector<1x10xi1> to vector<1x10xi32>
    %56 = arith.sitofp %55 : vector<1x10xi32> to vector<1x10xf32>
    %57 = vector.broadcast %52 : vector<2x1xf32> to vector<2x10xf32>
    %58 = vector.broadcast %56 : vector<1x10xf32> to vector<2x10xf32>
    %59 = arith.mulf %57, %58 : vector<2x10xf32>
    %60 = arith.addf %42, %59 : vector<2x10xf32>
    %c1 = arith.constant 1 : index
    %c0_27 = arith.constant 0 : index
    %c0_28 = arith.constant 0 : index
    %61 = vector.load %arg5[%c1, %c0_27, %c0_28] : memref<10x256x32xf32, #tpu.memory_space<vmem>>, vector<1x256x32xf32>
    %62 = vector.shape_cast %61 : vector<1x256x32xf32> to vector<256x32xf32>
    %63 = vector.shape_cast %62 : vector<256x32xf32> to vector<1x256x32xf32>
    %64 = vector.broadcast %63 : vector<1x256x32xf32> to vector<2x256x32xf32>
    %65 = arith.mulf %40, %64 : vector<2x256x32xf32>
    %cst_29 = arith.constant dense<0.000000e+00> : vector<2x256xf32>
    %66 = vector.multi_reduction <add>, %65, %cst_29 [2] : vector<2x256x32xf32> to vector<2x256xf32>
    %67 = vector.shape_cast %66 : vector<2x256xf32> to vector<2x256x1xf32>
    %cst_30 = arith.constant dense<0.000000e+00> : vector<2x1xf32>
    %68 = vector.multi_reduction <add>, %67, %cst_30 [1] : vector<2x256x1xf32> to vector<2x1xf32>
    %69 = vector.shape_cast %68 : vector<2x1xf32> to vector<2x1x1xf32>
    %70 = vector.shape_cast %69 : vector<2x1x1xf32> to vector<2x1xf32>
    %c1_i32 = arith.constant 1 : i32
    %71 = vector.broadcast %c1_i32 : i32 to vector<1x10xi32>
    %72 = arith.cmpi eq, %41, %71 : vector<1x10xi32>
    %73 = arith.extui %72 : vector<1x10xi1> to vector<1x10xi32>
    %74 = arith.sitofp %73 : vector<1x10xi32> to vector<1x10xf32>
    %75 = vector.broadcast %70 : vector<2x1xf32> to vector<2x10xf32>
    %76 = vector.broadcast %74 : vector<1x10xf32> to vector<2x10xf32>
    %77 = arith.mulf %75, %76 : vector<2x10xf32>
    %78 = arith.addf %60, %77 : vector<2x10xf32>
    %c2 = arith.constant 2 : index
    %c0_31 = arith.constant 0 : index
    %c0_32 = arith.constant 0 : index
    %79 = vector.load %arg5[%c2, %c0_31, %c0_32] : memref<10x256x32xf32, #tpu.memory_space<vmem>>, vector<1x256x32xf32>
    %80 = vector.shape_cast %79 : vector<1x256x32xf32> to vector<256x32xf32>
    %81 = vector.shape_cast %80 : vector<256x32xf32> to vector<1x256x32xf32>
    %82 = vector.broadcast %81 : vector<1x256x32xf32> to vector<2x256x32xf32>
    %83 = arith.mulf %40, %82 : vector<2x256x32xf32>
    %cst_33 = arith.constant dense<0.000000e+00> : vector<2x256xf32>
    %84 = vector.multi_reduction <add>, %83, %cst_33 [2] : vector<2x256x32xf32> to vector<2x256xf32>
    %85 = vector.shape_cast %84 : vector<2x256xf32> to vector<2x256x1xf32>
    %cst_34 = arith.constant dense<0.000000e+00> : vector<2x1xf32>
    %86 = vector.multi_reduction <add>, %85, %cst_34 [1] : vector<2x256x1xf32> to vector<2x1xf32>
    %87 = vector.shape_cast %86 : vector<2x1xf32> to vector<2x1x1xf32>
    %88 = vector.shape_cast %87 : vector<2x1x1xf32> to vector<2x1xf32>
    %c2_i32 = arith.constant 2 : i32
    %89 = vector.broadcast %c2_i32 : i32 to vector<1x10xi32>
    %90 = arith.cmpi eq, %41, %89 : vector<1x10xi32>
    %91 = arith.extui %90 : vector<1x10xi1> to vector<1x10xi32>
    %92 = arith.sitofp %91 : vector<1x10xi32> to vector<1x10xf32>
    %93 = vector.broadcast %88 : vector<2x1xf32> to vector<2x10xf32>
    %94 = vector.broadcast %92 : vector<1x10xf32> to vector<2x10xf32>
    %95 = arith.mulf %93, %94 : vector<2x10xf32>
    %96 = arith.addf %78, %95 : vector<2x10xf32>
    %c3 = arith.constant 3 : index
    %c0_35 = arith.constant 0 : index
    %c0_36 = arith.constant 0 : index
    %97 = vector.load %arg5[%c3, %c0_35, %c0_36] : memref<10x256x32xf32, #tpu.memory_space<vmem>>, vector<1x256x32xf32>
    %98 = vector.shape_cast %97 : vector<1x256x32xf32> to vector<256x32xf32>
    %99 = vector.shape_cast %98 : vector<256x32xf32> to vector<1x256x32xf32>
    %100 = vector.broadcast %99 : vector<1x256x32xf32> to vector<2x256x32xf32>
    %101 = arith.mulf %40, %100 : vector<2x256x32xf32>
    %cst_37 = arith.constant dense<0.000000e+00> : vector<2x256xf32>
    %102 = vector.multi_reduction <add>, %101, %cst_37 [2] : vector<2x256x32xf32> to vector<2x256xf32>
    %103 = vector.shape_cast %102 : vector<2x256xf32> to vector<2x256x1xf32>
    %cst_38 = arith.constant dense<0.000000e+00> : vector<2x1xf32>
    %104 = vector.multi_reduction <add>, %103, %cst_38 [1] : vector<2x256x1xf32> to vector<2x1xf32>
    %105 = vector.shape_cast %104 : vector<2x1xf32> to vector<2x1x1xf32>
    %106 = vector.shape_cast %105 : vector<2x1x1xf32> to vector<2x1xf32>
    %c3_i32 = arith.constant 3 : i32
    %107 = vector.broadcast %c3_i32 : i32 to vector<1x10xi32>
    %108 = arith.cmpi eq, %41, %107 : vector<1x10xi32>
    %109 = arith.extui %108 : vector<1x10xi1> to vector<1x10xi32>
    %110 = arith.sitofp %109 : vector<1x10xi32> to vector<1x10xf32>
    %111 = vector.broadcast %106 : vector<2x1xf32> to vector<2x10xf32>
    %112 = vector.broadcast %110 : vector<1x10xf32> to vector<2x10xf32>
    %113 = arith.mulf %111, %112 : vector<2x10xf32>
    %114 = arith.addf %96, %113 : vector<2x10xf32>
    %c4 = arith.constant 4 : index
    %c0_39 = arith.constant 0 : index
    %c0_40 = arith.constant 0 : index
    %115 = vector.load %arg5[%c4, %c0_39, %c0_40] : memref<10x256x32xf32, #tpu.memory_space<vmem>>, vector<1x256x32xf32>
    %116 = vector.shape_cast %115 : vector<1x256x32xf32> to vector<256x32xf32>
    %117 = vector.shape_cast %116 : vector<256x32xf32> to vector<1x256x32xf32>
    %118 = vector.broadcast %117 : vector<1x256x32xf32> to vector<2x256x32xf32>
    %119 = arith.mulf %40, %118 : vector<2x256x32xf32>
    %cst_41 = arith.constant dense<0.000000e+00> : vector<2x256xf32>
    %120 = vector.multi_reduction <add>, %119, %cst_41 [2] : vector<2x256x32xf32> to vector<2x256xf32>
    %121 = vector.shape_cast %120 : vector<2x256xf32> to vector<2x256x1xf32>
    %cst_42 = arith.constant dense<0.000000e+00> : vector<2x1xf32>
    %122 = vector.multi_reduction <add>, %121, %cst_42 [1] : vector<2x256x1xf32> to vector<2x1xf32>
    %123 = vector.shape_cast %122 : vector<2x1xf32> to vector<2x1x1xf32>
    %124 = vector.shape_cast %123 : vector<2x1x1xf32> to vector<2x1xf32>
    %c4_i32 = arith.constant 4 : i32
    %125 = vector.broadcast %c4_i32 : i32 to vector<1x10xi32>
    %126 = arith.cmpi eq, %41, %125 : vector<1x10xi32>
    %127 = arith.extui %126 : vector<1x10xi1> to vector<1x10xi32>
    %128 = arith.sitofp %127 : vector<1x10xi32> to vector<1x10xf32>
    %129 = vector.broadcast %124 : vector<2x1xf32> to vector<2x10xf32>
    %130 = vector.broadcast %128 : vector<1x10xf32> to vector<2x10xf32>
    %131 = arith.mulf %129, %130 : vector<2x10xf32>
    %132 = arith.addf %114, %131 : vector<2x10xf32>
    %c5 = arith.constant 5 : index
    %c0_43 = arith.constant 0 : index
    %c0_44 = arith.constant 0 : index
    %133 = vector.load %arg5[%c5, %c0_43, %c0_44] : memref<10x256x32xf32, #tpu.memory_space<vmem>>, vector<1x256x32xf32>
    %134 = vector.shape_cast %133 : vector<1x256x32xf32> to vector<256x32xf32>
    %135 = vector.shape_cast %134 : vector<256x32xf32> to vector<1x256x32xf32>
    %136 = vector.broadcast %135 : vector<1x256x32xf32> to vector<2x256x32xf32>
    %137 = arith.mulf %40, %136 : vector<2x256x32xf32>
    %cst_45 = arith.constant dense<0.000000e+00> : vector<2x256xf32>
    %138 = vector.multi_reduction <add>, %137, %cst_45 [2] : vector<2x256x32xf32> to vector<2x256xf32>
    %139 = vector.shape_cast %138 : vector<2x256xf32> to vector<2x256x1xf32>
    %cst_46 = arith.constant dense<0.000000e+00> : vector<2x1xf32>
    %140 = vector.multi_reduction <add>, %139, %cst_46 [1] : vector<2x256x1xf32> to vector<2x1xf32>
    %141 = vector.shape_cast %140 : vector<2x1xf32> to vector<2x1x1xf32>
    %142 = vector.shape_cast %141 : vector<2x1x1xf32> to vector<2x1xf32>
    %c5_i32 = arith.constant 5 : i32
    %143 = vector.broadcast %c5_i32 : i32 to vector<1x10xi32>
    %144 = arith.cmpi eq, %41, %143 : vector<1x10xi32>
    %145 = arith.extui %144 : vector<1x10xi1> to vector<1x10xi32>
    %146 = arith.sitofp %145 : vector<1x10xi32> to vector<1x10xf32>
    %147 = vector.broadcast %142 : vector<2x1xf32> to vector<2x10xf32>
    %148 = vector.broadcast %146 : vector<1x10xf32> to vector<2x10xf32>
    %149 = arith.mulf %147, %148 : vector<2x10xf32>
    %150 = arith.addf %132, %149 : vector<2x10xf32>
    %c6 = arith.constant 6 : index
    %c0_47 = arith.constant 0 : index
    %c0_48 = arith.constant 0 : index
    %151 = vector.load %arg5[%c6, %c0_47, %c0_48] : memref<10x256x32xf32, #tpu.memory_space<vmem>>, vector<1x256x32xf32>
    %152 = vector.shape_cast %151 : vector<1x256x32xf32> to vector<256x32xf32>
    %153 = vector.shape_cast %152 : vector<256x32xf32> to vector<1x256x32xf32>
    %154 = vector.broadcast %153 : vector<1x256x32xf32> to vector<2x256x32xf32>
    %155 = arith.mulf %40, %154 : vector<2x256x32xf32>
    %cst_49 = arith.constant dense<0.000000e+00> : vector<2x256xf32>
    %156 = vector.multi_reduction <add>, %155, %cst_49 [2] : vector<2x256x32xf32> to vector<2x256xf32>
    %157 = vector.shape_cast %156 : vector<2x256xf32> to vector<2x256x1xf32>
    %cst_50 = arith.constant dense<0.000000e+00> : vector<2x1xf32>
    %158 = vector.multi_reduction <add>, %157, %cst_50 [1] : vector<2x256x1xf32> to vector<2x1xf32>
    %159 = vector.shape_cast %158 : vector<2x1xf32> to vector<2x1x1xf32>
    %160 = vector.shape_cast %159 : vector<2x1x1xf32> to vector<2x1xf32>
    %c6_i32 = arith.constant 6 : i32
    %161 = vector.broadcast %c6_i32 : i32 to vector<1x10xi32>
    %162 = arith.cmpi eq, %41, %161 : vector<1x10xi32>
    %163 = arith.extui %162 : vector<1x10xi1> to vector<1x10xi32>
    %164 = arith.sitofp %163 : vector<1x10xi32> to vector<1x10xf32>
    %165 = vector.broadcast %160 : vector<2x1xf32> to vector<2x10xf32>
    %166 = vector.broadcast %164 : vector<1x10xf32> to vector<2x10xf32>
    %167 = arith.mulf %165, %166 : vector<2x10xf32>
    %168 = arith.addf %150, %167 : vector<2x10xf32>
    %c7 = arith.constant 7 : index
    %c0_51 = arith.constant 0 : index
    %c0_52 = arith.constant 0 : index
    %169 = vector.load %arg5[%c7, %c0_51, %c0_52] : memref<10x256x32xf32, #tpu.memory_space<vmem>>, vector<1x256x32xf32>
    %170 = vector.shape_cast %169 : vector<1x256x32xf32> to vector<256x32xf32>
    %171 = vector.shape_cast %170 : vector<256x32xf32> to vector<1x256x32xf32>
    %172 = vector.broadcast %171 : vector<1x256x32xf32> to vector<2x256x32xf32>
    %173 = arith.mulf %40, %172 : vector<2x256x32xf32>
    %cst_53 = arith.constant dense<0.000000e+00> : vector<2x256xf32>
    %174 = vector.multi_reduction <add>, %173, %cst_53 [2] : vector<2x256x32xf32> to vector<2x256xf32>
    %175 = vector.shape_cast %174 : vector<2x256xf32> to vector<2x256x1xf32>
    %cst_54 = arith.constant dense<0.000000e+00> : vector<2x1xf32>
    %176 = vector.multi_reduction <add>, %175, %cst_54 [1] : vector<2x256x1xf32> to vector<2x1xf32>
    %177 = vector.shape_cast %176 : vector<2x1xf32> to vector<2x1x1xf32>
    %178 = vector.shape_cast %177 : vector<2x1x1xf32> to vector<2x1xf32>
    %c7_i32 = arith.constant 7 : i32
    %179 = vector.broadcast %c7_i32 : i32 to vector<1x10xi32>
    %180 = arith.cmpi eq, %41, %179 : vector<1x10xi32>
    %181 = arith.extui %180 : vector<1x10xi1> to vector<1x10xi32>
    %182 = arith.sitofp %181 : vector<1x10xi32> to vector<1x10xf32>
    %183 = vector.broadcast %178 : vector<2x1xf32> to vector<2x10xf32>
    %184 = vector.broadcast %182 : vector<1x10xf32> to vector<2x10xf32>
    %185 = arith.mulf %183, %184 : vector<2x10xf32>
    %186 = arith.addf %168, %185 : vector<2x10xf32>
    %c8 = arith.constant 8 : index
    %c0_55 = arith.constant 0 : index
    %c0_56 = arith.constant 0 : index
    %187 = vector.load %arg5[%c8, %c0_55, %c0_56] : memref<10x256x32xf32, #tpu.memory_space<vmem>>, vector<1x256x32xf32>
    %188 = vector.shape_cast %187 : vector<1x256x32xf32> to vector<256x32xf32>
    %189 = vector.shape_cast %188 : vector<256x32xf32> to vector<1x256x32xf32>
    %190 = vector.broadcast %189 : vector<1x256x32xf32> to vector<2x256x32xf32>
    %191 = arith.mulf %40, %190 : vector<2x256x32xf32>
    %cst_57 = arith.constant dense<0.000000e+00> : vector<2x256xf32>
    %192 = vector.multi_reduction <add>, %191, %cst_57 [2] : vector<2x256x32xf32> to vector<2x256xf32>
    %193 = vector.shape_cast %192 : vector<2x256xf32> to vector<2x256x1xf32>
    %cst_58 = arith.constant dense<0.000000e+00> : vector<2x1xf32>
    %194 = vector.multi_reduction <add>, %193, %cst_58 [1] : vector<2x256x1xf32> to vector<2x1xf32>
    %195 = vector.shape_cast %194 : vector<2x1xf32> to vector<2x1x1xf32>
    %196 = vector.shape_cast %195 : vector<2x1x1xf32> to vector<2x1xf32>
    %c8_i32 = arith.constant 8 : i32
    %197 = vector.broadcast %c8_i32 : i32 to vector<1x10xi32>
    %198 = arith.cmpi eq, %41, %197 : vector<1x10xi32>
    %199 = arith.extui %198 : vector<1x10xi1> to vector<1x10xi32>
    %200 = arith.sitofp %199 : vector<1x10xi32> to vector<1x10xf32>
    %201 = vector.broadcast %196 : vector<2x1xf32> to vector<2x10xf32>
    %202 = vector.broadcast %200 : vector<1x10xf32> to vector<2x10xf32>
    %203 = arith.mulf %201, %202 : vector<2x10xf32>
    %204 = arith.addf %186, %203 : vector<2x10xf32>
    %c9 = arith.constant 9 : index
    %c0_59 = arith.constant 0 : index
    %c0_60 = arith.constant 0 : index
    %205 = vector.load %arg5[%c9, %c0_59, %c0_60] : memref<10x256x32xf32, #tpu.memory_space<vmem>>, vector<1x256x32xf32>
    %206 = vector.shape_cast %205 : vector<1x256x32xf32> to vector<256x32xf32>
    %207 = vector.shape_cast %206 : vector<256x32xf32> to vector<1x256x32xf32>
    %208 = vector.broadcast %207 : vector<1x256x32xf32> to vector<2x256x32xf32>
    %209 = arith.mulf %40, %208 : vector<2x256x32xf32>
    %cst_61 = arith.constant dense<0.000000e+00> : vector<2x256xf32>
    %210 = vector.multi_reduction <add>, %209, %cst_61 [2] : vector<2x256x32xf32> to vector<2x256xf32>
    %211 = vector.shape_cast %210 : vector<2x256xf32> to vector<2x256x1xf32>
    %cst_62 = arith.constant dense<0.000000e+00> : vector<2x1xf32>
    %212 = vector.multi_reduction <add>, %211, %cst_62 [1] : vector<2x256x1xf32> to vector<2x1xf32>
    %213 = vector.shape_cast %212 : vector<2x1xf32> to vector<2x1x1xf32>
    %214 = vector.shape_cast %213 : vector<2x1x1xf32> to vector<2x1xf32>
    %c9_i32 = arith.constant 9 : i32
    %215 = vector.broadcast %c9_i32 : i32 to vector<1x10xi32>
    %216 = arith.cmpi eq, %41, %215 : vector<1x10xi32>
    %217 = arith.extui %216 : vector<1x10xi1> to vector<1x10xi32>
    %218 = arith.sitofp %217 : vector<1x10xi32> to vector<1x10xf32>
    %219 = vector.broadcast %214 : vector<2x1xf32> to vector<2x10xf32>
    %220 = vector.broadcast %218 : vector<1x10xf32> to vector<2x10xf32>
    %221 = arith.mulf %219, %220 : vector<2x10xf32>
    %222 = arith.addf %204, %221 : vector<2x10xf32>
    %c0_63 = arith.constant 0 : index
    %c0_64 = arith.constant 0 : index
    %223 = vector.load %arg6[%c0_63, %c0_64] : memref<1x10xf32, #tpu.memory_space<vmem>>, vector<1x10xf32>
    %224 = vector.broadcast %223 : vector<1x10xf32> to vector<2x10xf32>
    %225 = arith.addf %222, %224 : vector<2x10xf32>
    %cst_65 = arith.constant dense<0.000000e+00> : vector<10xf32>
    %226 = vector.multi_reduction <add>, %225, %cst_65 [0] : vector<2x10xf32> to vector<10xf32>
    %227 = vector.shape_cast %226 : vector<10xf32> to vector<1x10xf32>
    %cst_66 = arith.constant 2.000000e+00 : f32
    %228 = vector.broadcast %cst_66 : f32 to vector<1x10xf32>
    %229 = arith.divf %227, %228 : vector<1x10xf32>
    %230 = vector.broadcast %229 : vector<1x10xf32> to vector<2x10xf32>
    %231 = arith.subf %225, %230 : vector<2x10xf32>
    %232 = arith.mulf %231, %231 : vector<2x10xf32>
    %cst_67 = arith.constant dense<0.000000e+00> : vector<10xf32>
    %233 = vector.multi_reduction <add>, %232, %cst_67 [0] : vector<2x10xf32> to vector<10xf32>
    %234 = vector.shape_cast %233 : vector<10xf32> to vector<1x10xf32>
    %cst_68 = arith.constant 2.000000e+00 : f32
    %235 = vector.broadcast %cst_68 : f32 to vector<1x10xf32>
    %236 = arith.divf %234, %235 : vector<1x10xf32>
    %cst_69 = arith.constant 9.99999974E-6 : f32
    %237 = vector.broadcast %cst_69 : f32 to vector<1x10xf32>
    %238 = arith.addf %236, %237 : vector<1x10xf32>
    %239 = math.rsqrt %238 : vector<1x10xf32>
    %c0_70 = arith.constant 0 : index
    %c0_71 = arith.constant 0 : index
    %240 = vector.load %arg7[%c0_70, %c0_71] : memref<1x10xf32, #tpu.memory_space<vmem>>, vector<1x10xf32>
    %241 = arith.mulf %239, %240 : vector<1x10xf32>
    %242 = vector.broadcast %241 : vector<1x10xf32> to vector<2x10xf32>
    %243 = arith.mulf %231, %242 : vector<2x10xf32>
    %c0_72 = arith.constant 0 : index
    %c0_73 = arith.constant 0 : index
    %244 = vector.load %arg8[%c0_72, %c0_73] : memref<1x10xf32, #tpu.memory_space<vmem>>, vector<1x10xf32>
    %245 = vector.broadcast %244 : vector<1x10xf32> to vector<2x10xf32>
    %246 = arith.addf %243, %245 : vector<2x10xf32>
    %c0_74 = arith.constant 0 : index
    %c0_75 = arith.constant 0 : index
    %247 = vector.load %arg9[%c0_74, %c0_75] : memref<2x10xf32, #tpu.memory_space<vmem>>, vector<2x10xf32>
    tpu.vector_store %arg9[%c0_74, %c0_75], %246 {strides = array<i32>} : memref<2x10xf32, #tpu.memory_space<vmem>>, vector<2x10xf32>,
    return
  }
}

</mosaic_0001>

<bundles_post_ra>
// kernel: tpu_custom_call.1
= control target key start
LH: loop header
LB: loop body
LE: loop exit
PB: predicated region body
PF: predicated region fallthrough
CT: control target
= control target key end

     0   :  { %s12760_s0 = inlined_call_operand.vmem [shape: f32[512,32], index: 0, kind: input, shape index: {}]   ;;  %s12761_s1 = inlined_call_operand.vmem [shape: f32[32,32], index: 1, kind: input, shape index: {}]   ;;  %s12762_s2 = inlined_call_operand.vmem [shape: f32[1,32], index: 2, kind: input, shape index: {}]   ;;  %s12763_s3 = inlined_call_operand.vmem [shape: f32[1,32], index: 3, kind: input, shape index: {}]   ;;  %s12764_s4 = inlined_call_operand.vmem [shape: f32[1,32], index: 4, kind: input, shape index: {}]   ;;  %s12765_s5 = inlined_call_operand.vmem [shape: f32[10,256,32], index: 5, kind: input, shape index: {}]   ;;  %s12766_s6 = inlined_call_operand.vmem [shape: f32[1,10], index: 6, kind: input, shape index: {}]   ;;  %s12767_s7 = inlined_call_operand.vmem [shape: f32[1,10], index: 7, kind: input, shape index: {}]   ;;  %s12768_s8 = inlined_call_operand.vmem [shape: f32[1,10], index: 8, kind: input, shape index: {}]   ;;  %s12769_s9 = inlined_call_operand.hbm [shape: f32[2,10], index: 9, kind: output, shape index: {}]  }
   0x1   :  { %v100_v0 = vld [vmem:[%s12761_s1 + $0x18] sm:$0xff]  ;;  %v99_v1 = vld [vmem:[%s12761_s1 + $0x10] sm:$0xff]  ;;  %v98_v2 = vld [vmem:[%s12761_s1 + $0x8] sm:$0xff] }
   0x2   :  { %310 = vmatpush.msra.mxu0 %v100_v0  ;;  %5804 = vmatpush.msra.mxu1 %v100_v0  ;;  %v97_v3 = vld [vmem:[%s12761_s1] sm:$0xff] }
   0x3   :  { %5805 = vmatpush.msra.mxu2 %v100_v0  ;;  %5806 = vmatpush.msra.mxu3 %v100_v0 }
   0x4   :  { %311 = vmatpush.msra.mxu0 %v99_v1  ;;  %5807 = vmatpush.msra.mxu1 %v99_v1 }
   0x5   :  { %5808 = vmatpush.msra.mxu2 %v99_v1  ;;  %5809 = vmatpush.msra.mxu3 %v99_v1 }
   0x6   :  { %14 = vsyncpa [#allocation4], 0  ;;  %312 = vmatpush.msra.mxu0 %v98_v2  ;;  %v33_v4 = vld [vmem:[%s12760_s0] sm:$0xff]  ;;  %vm105_vm0 = vcmask 261120   ;;  %5810 = vmatpush.msra.mxu1 %v98_v2  ;;  %v34_v6 = vld [vmem:[%s12760_s0 + $0x8] sm:$0xff]  ;;  %vm1319_vm5 = vcmask 1046528  }
   0x7   :  { %5811 = vmatpush.msra.mxu2 %v98_v2  ;;  %5812 = vmatpush.msra.mxu3 %v98_v2  ;;  %v49_v5 = vld [vmem:[%s12760_s0 + $0x80] sm:$0xff]  ;;  %v50_v7 = vld [vmem:[%s12760_s0 + $0x88] sm:$0xff]  ;;  %v35_v8 = vld [vmem:[%s12760_s0 + $0x10] sm:$0xff] }
   0x8   :  { %313 = vmatpush.msra.mxu0 %v97_v3  ;;  %5813 = vmatpush.msra.mxu1 %v97_v3  ;;  %v51_v9 = vld [vmem:[%s12760_s0 + $0x90] sm:$0xff]  ;;  %v36_v10 = vld [vmem:[%s12760_s0 + $0x18] sm:$0xff]  ;;  %v65_v12 = vld [vmem:[%s12760_s0 + $0x100] sm:$0xff] }
   0x9   :  { %5442 = vmatmul.msk.f32.vlgmr.msra.gmra.mxu0 %vm105_vm0, %v33_v4  ;;  %5458 = vmatmul.msk.f32.vlgmr.msra.gmra.mxu1 %vm105_vm0, %v49_v5  ;;  %v52_v11 = vld [vmem:[%s12760_s0 + $0x98] sm:$0xff]  ;;  %v37_v13 = vld [vmem:[%s12760_s0 + $0x20] sm:$0xff]  ;;  %v66_v15 = vld [vmem:[%s12760_s0 + $0x108] sm:$0xff] }
   0xa   :  { %5814 = vmatpush.msra.mxu2 %v97_v3  ;;  %5815 = vmatpush.msra.mxu3 %v97_v3  ;;  %v53_v14 = vld [vmem:[%s12760_s0 + $0xa0] sm:$0xff]  ;;  %v38_v16 = vld [vmem:[%s12760_s0 + $0x28] sm:$0xff]  ;;  %v67_v18 = vld [vmem:[%s12760_s0 + $0x110] sm:$0xff] }
   0xb   :  { %5474 = vmatmul.msk.f32.vlgmr.msra.gmra.mxu2 %vm105_vm0, %v65_v12  ;;  %v54_v17 = vld [vmem:[%s12760_s0 + $0xa8] sm:$0xff]  ;;  %v39_v19 = vld [vmem:[%s12760_s0 + $0x30] sm:$0xff]  ;;  %v68_v21 = vld [vmem:[%s12760_s0 + $0x118] sm:$0xff] }
   0xc   :  { %v55_v20 = vld [vmem:[%s12760_s0 + $0xb0] sm:$0xff]  ;;  %v40_v22 = vld [vmem:[%s12760_s0 + $0x38] sm:$0xff]  ;;  %v69_v24 = vld [vmem:[%s12760_s0 + $0x120] sm:$0xff] }
   0xd   :  { %v56_v23 = vld [vmem:[%s12760_s0 + $0xb8] sm:$0xff]  ;;  %v81_v25 = vld [vmem:[%s12760_s0 + $0x180] sm:$0xff]  ;;  %v70_v28 = vld [vmem:[%s12760_s0 + $0x128] sm:$0xff] }
   0xe   :  { %5490 = vmatmul.msk.f32.vlgmr.msra.gmra.mxu3 %vm105_vm0, %v81_v25  ;;  %v41_v26 = vld [vmem:[%s12760_s0 + $0x40] sm:$0xff]  ;;  %v82_v29 = vld [vmem:[%s12760_s0 + $0x188] sm:$0xff]  ;;  %v71_v32 = vld [vmem:[%s12760_s0 + $0x130] sm:$0xff] }
   0xf   :  { %v57_v27 = vld [vmem:[%s12760_s0 + $0xc0] sm:$0xff]  ;;  %v42_v30 = vld [vmem:[%s12760_s0 + $0x48] sm:$0xff]  ;;  %v83_v33 = vld [vmem:[%s12760_s0 + $0x190] sm:$0xff] }
  0x10   :  { %v58_v31 = vld [vmem:[%s12760_s0 + $0xc8] sm:$0xff]  ;;  %v43_v34 = vld [vmem:[%s12760_s0 + $0x50] sm:$0xff]  ;;  %v72_v36 = vld [vmem:[%s12760_s0 + $0x138] sm:$0xff] }
  0x11   :  { %5443 = vmatmul.msk.f32.gmra.mxu0 %vm105_vm0, %v34_v6  ;;  %5459 = vmatmul.msk.f32.gmra.mxu1 %vm105_vm0, %v50_v7  ;;  %v59_v35 = vld [vmem:[%s12760_s0 + $0xd0] sm:$0xff]  ;;  %v84_v37 = vld [vmem:[%s12760_s0 + $0x198] sm:$0xff]  ;;  %v73_v40 = vld [vmem:[%s12760_s0 + $0x140] sm:$0xff] }
  0x12   :  { %v44_v38 = vld [vmem:[%s12760_s0 + $0x58] sm:$0xff]  ;;  %v85_v41 = vld [vmem:[%s12760_s0 + $0x1a0] sm:$0xff]  ;;  %v74_v44 = vld [vmem:[%s12760_s0 + $0x148] sm:$0xff] }
  0x13   :  { %5475 = vmatmul.msk.f32.gmra.mxu2 %vm105_vm0, %v66_v15  ;;  %v60_v39 = vld [vmem:[%s12760_s0 + $0xd8] sm:$0xff]  ;;  %v45_v42 = vld [vmem:[%s12760_s0 + $0x60] sm:$0xff]  ;;  %v86_v45 = vld [vmem:[%s12760_s0 + $0x1a8] sm:$0xff] }
  0x14   :  { %v61_v43 = vld [vmem:[%s12760_s0 + $0xe0] sm:$0xff]  ;;  %v46_v46 = vld [vmem:[%s12760_s0 + $0x68] sm:$0xff]  ;;  %v75_v48 = vld [vmem:[%s12760_s0 + $0x150] sm:$0xff] }
  0x15   :  { %v62_v47 = vld [vmem:[%s12760_s0 + $0xe8] sm:$0xff]  ;;  %v87_v49 = vld [vmem:[%s12760_s0 + $0x1b0] sm:$0xff]  ;;  %v76_v52 = vld [vmem:[%s12760_s0 + $0x158] sm:$0xff] }
  0x16   :  { %5491 = vmatmul.msk.f32.gmra.mxu3 %vm105_vm0, %v82_v29  ;;  %v47_v50 = vld [vmem:[%s12760_s0 + $0x70] sm:$0xff]  ;;  %v88_v53 = vld [vmem:[%s12760_s0 + $0x1b8] sm:$0xff]  ;;  %v77_v56 = vld [vmem:[%s12760_s0 + $0x160] sm:$0xff] }
  0x17   :  { %v63_v51 = vld [vmem:[%s12760_s0 + $0xf0] sm:$0xff]  ;;  %v48_v54 = vld [vmem:[%s12760_s0 + $0x78] sm:$0xff]  ;;  %v89_v57 = vld [vmem:[%s12760_s0 + $0x1c0] sm:$0xff] }
  0x18   :  { %v64_v55 = vld [vmem:[%s12760_s0 + $0xf8] sm:$0xff]  ;;  %v78_v60 = vld [vmem:[%s12760_s0 + $0x168] sm:$0xff]  ;;  %v79_v0 = vld [vmem:[%s12760_s0 + $0x170] sm:$0xff] }
  0x19   :  { %5444 = vmatmul.msk.f32.gmra.mxu0 %vm105_vm0, %v35_v8  ;;  %5460 = vmatmul.msk.f32.gmra.mxu1 %vm105_vm0, %v51_v9  ;;  %v90_v61 = vld [vmem:[%s12760_s0 + $0x1c8] sm:$0xff]  ;;  %v91_v1 = vld [vmem:[%s12760_s0 + $0x1d0] sm:$0xff]  ;;  %v80_v4 = vld [vmem:[%s12760_s0 + $0x178] sm:$0xff] }
  0x1a   :  { %v92_v5 = vld [vmem:[%s12760_s0 + $0x1d8] sm:$0xff]  ;;  %v93_v8 = vld [vmem:[%s12760_s0 + $0x1e0] sm:$0xff]  ;;  %v94_v12 = vld [vmem:[%s12760_s0 + $0x1e8] sm:$0xff] }
  0x1b   :  { %5476 = vmatmul.msk.f32.gmra.mxu2 %vm105_vm0, %v67_v18  ;;  %v95_v15 = vld [vmem:[%s12760_s0 + $0x1f0] sm:$0xff] }
  0x1e   :  { %5492 = vmatmul.msk.f32.gmra.mxu3 %vm105_vm0, %v83_v33 }
  0x21   :  { %5445 = vmatmul.msk.f32.gmra.mxu0 %vm105_vm0, %v36_v10  ;;  %5461 = vmatmul.msk.f32.gmra.mxu1 %vm105_vm0, %v52_v11 }
  0x23   :  { %5477 = vmatmul.msk.f32.gmra.mxu2 %vm105_vm0, %v68_v21 }
  0x26   :  { %5493 = vmatmul.msk.f32.gmra.mxu3 %vm105_vm0, %v84_v37 }
  0x29   :  { %5446 = vmatmul.msk.f32.gmra.mxu0 %vm105_vm0, %v37_v13  ;;  %5462 = vmatmul.msk.f32.gmra.mxu1 %vm105_vm0, %v53_v14 }
  0x2b   :  { %5478 = vmatmul.msk.f32.gmra.mxu2 %vm105_vm0, %v69_v24 }
  0x2e   :  { %5494 = vmatmul.msk.f32.gmra.mxu3 %vm105_vm0, %v85_v41 }
  0x31   :  { %5447 = vmatmul.msk.f32.gmra.mxu0 %vm105_vm0, %v38_v16  ;;  %5463 = vmatmul.msk.f32.gmra.mxu1 %vm105_vm0, %v54_v17 }
  0x33   :  { %5479 = vmatmul.msk.f32.gmra.mxu2 %vm105_vm0, %v70_v28 }
  0x36   :  { %5495 = vmatmul.msk.f32.gmra.mxu3 %vm105_vm0, %v86_v45 }
  0x39   :  { %5448 = vmatmul.msk.f32.gmra.mxu0 %vm105_vm0, %v39_v19  ;;  %5464 = vmatmul.msk.f32.gmra.mxu1 %vm105_vm0, %v55_v20  ;;  %v96_v19 = vld [vmem:[%s12760_s0 + $0x1f8] sm:$0xff] }
  0x3b   :  { %5480 = vmatmul.msk.f32.gmra.mxu2 %vm105_vm0, %v71_v32 }
  0x3e   :  { %5496 = vmatmul.msk.f32.gmra.mxu3 %vm105_vm0, %v87_v49 }
  0x41   :  { %5449 = vmatmul.msk.f32.gmra.mxu0 %vm105_vm0, %v40_v22  ;;  %5465 = vmatmul.msk.f32.gmra.mxu1 %vm105_vm0, %v56_v23 }
  0x43   :  { %5481 = vmatmul.msk.f32.gmra.mxu2 %vm105_vm0, %v72_v36 }
  0x46   :  { %5497 = vmatmul.msk.f32.gmra.mxu3 %vm105_vm0, %v88_v53 }
  0x49   :  { %5450 = vmatmul.msk.f32.gmra.mxu0 %vm105_vm0, %v41_v26  ;;  %5466 = vmatmul.msk.f32.gmra.mxu1 %vm105_vm0, %v57_v27 }
  0x4b   :  { %5482 = vmatmul.msk.f32.gmra.mxu2 %vm105_vm0, %v73_v40 }
  0x4e   :  { %5498 = vmatmul.msk.f32.gmra.mxu3 %vm105_vm0, %v89_v57 }
  0x51   :  { %5451 = vmatmul.msk.f32.gmra.mxu0 %vm105_vm0, %v42_v30  ;;  %5467 = vmatmul.msk.f32.gmra.mxu1 %vm105_vm0, %v58_v31 }
  0x53   :  { %5483 = vmatmul.msk.f32.gmra.mxu2 %vm105_vm0, %v74_v44 }
  0x56   :  { %5499 = vmatmul.msk.f32.gmra.mxu3 %vm105_vm0, %v90_v61 }
  0x59   :  { %5452 = vmatmul.msk.f32.gmra.mxu0 %vm105_vm0, %v43_v34  ;;  %5468 = vmatmul.msk.f32.gmra.mxu1 %vm105_vm0, %v59_v35  ;;  %v6222_v34 = vld [vmem:[%s12762_s2] ss:$0 sm:$0xff]  ;;  %s5862_s2 = smov [#allocation3]  }
  0x5a   :  { %s5431_s14 = sshll.u32 %s5862_s2, 4  ;;  %s5432_s14 = int_to_ptr.vmem [resolvable:$true] %s5431_s14 }
  0x5b   :  { %5484 = vmatmul.msk.f32.gmra.mxu2 %vm105_vm0, %v75_v48 }
  0x5e   :  { %5500 = vmatmul.msk.f32.gmra.mxu3 %vm105_vm0, %v91_v1 }
  0x61   :  { %5453 = vmatmul.msk.f32.gmra.mxu0 %vm105_vm0, %v44_v38  ;;  %5469 = vmatmul.msk.f32.gmra.mxu1 %vm105_vm0, %v60_v39 }
  0x63   :  { %5485 = vmatmul.msk.f32.gmra.mxu2 %vm105_vm0, %v76_v52 }
  0x66   :  { %5501 = vmatmul.msk.f32.gmra.mxu3 %vm105_vm0, %v92_v5 }
  0x69   :  { %5454 = vmatmul.msk.f32.gmra.mxu0 %vm105_vm0, %v45_v42  ;;  %5470 = vmatmul.msk.f32.gmra.mxu1 %vm105_vm0, %v61_v43 }
  0x6b   :  { %5486 = vmatmul.msk.f32.gmra.mxu2 %vm105_vm0, %v77_v56 }
  0x6e   :  { %5502 = vmatmul.msk.f32.gmra.mxu3 %vm105_vm0, %v93_v8 }
  0x71   :  { %5455 = vmatmul.msk.f32.gmra.mxu0 %vm105_vm0, %v46_v46  ;;  %5471 = vmatmul.msk.f32.gmra.mxu1 %vm105_vm0, %v62_v47 }
  0x73   :  { %5487 = vmatmul.msk.f32.gmra.mxu2 %vm105_vm0, %v78_v60 }
  0x76   :  { %5503 = vmatmul.msk.f32.gmra.mxu3 %vm105_vm0, %v94_v12 }
  0x79   :  { %5456 = vmatmul.msk.f32.gmra.mxu0 %vm105_vm0, %v47_v50  ;;  %5472 = vmatmul.msk.f32.gmra.mxu1 %vm105_vm0, %v63_v51 }
  0x7b   :  { %5488 = vmatmul.msk.f32.gmra.mxu2 %vm105_vm0, %v79_v0 }
  0x7e   :  { %5504 = vmatmul.msk.f32.gmra.mxu3 %vm105_vm0, %v95_v15 }
  0x81   :  { %5457 = vmatmul.msk.f32.gmra.mxu0 %vm105_vm0, %v48_v54  ;;  %5473 = vmatmul.msk.f32.gmra.mxu1 %vm105_vm0, %v64_v55 }
  0x83   :  { %5489 = vmatmul.msk.f32.gmra.mxu2 %vm105_vm0, %v80_v4 }
  0x86   :  { %v315_v58 = vpop.f32.mrf.mxu0  ;;  %v6141_v59 = vpop.f32.mrf.mxu1  ;;  %5505 = vmatmul.msk.f32.gmra.mxu3 %vm105_vm0, %v96_v19 }
  0x87   :  { %v6232_v39 = vadd.f32 %v6222_v34, %v315_v58 }
  0x89   :  { %v507_v43 = vsel %vm105_vm0, %v6232_v39, 0.0 }
  0x8e   :  { %v318_v62 = vpop.f32.mrf.mxu0  ;;  %v6151_v63 = vpop.f32.mrf.mxu1 }
  0x8f   :  { %v6177_v10 = vpop.f32.mrf.mxu2  ;;  %v6227_v37 = vadd.f32 %v6222_v34, %v318_v62 }
  0x91   :  { %v6203_v24 = vpop.f32.mrf.mxu3  ;;  %v508_v41 = vsel %vm105_vm0, %v6227_v37, 0.0 }
  0x92   :  { %v509_v46 = vadd.f32 %v508_v41, %v507_v43 }
  0x96   :  { %v321_v2 = vpop.f32.mrf.mxu0  ;;  %v6161_v3 = vpop.f32.mrf.mxu1 }
  0x97   :  { %v6185_v14 = vpop.f32.mrf.mxu2  ;;  %v6235_v40 = vadd.f32 %v6222_v34, %v321_v2 }
  0x99   :  { %v6209_v28 = vpop.f32.mrf.mxu3  ;;  %v510_v44 = vsel %vm105_vm0, %v6235_v40, 0.0 }
  0x9a   :  { %v511_v51 = vadd.f32 %v510_v44, %v509_v46 }
  0x9e   :  { %v324_v6 = vpop.f32.mrf.mxu0  ;;  %v6171_v7 = vpop.f32.mrf.mxu1 }
  0x9f   :  { %v6193_v18 = vpop.f32.mrf.mxu2  ;;  %v6240_v42 = vadd.f32 %v6222_v34, %v324_v6 }
  0xa1   :  { %v6215_v32 = vpop.f32.mrf.mxu3  ;;  %v512_v49 = vsel %vm105_vm0, %v6240_v42, 0.0 }
  0xa2   :  { %v513_v55 = vadd.f32 %v512_v49, %v511_v51 }
  0xa6   :  { %v327_v9 = vpop.f32.mrf.mxu0  ;;  %v6179_v11 = vpop.f32.mrf.mxu1 }
  0xa7   :  { %v6201_v22 = vpop.f32.mrf.mxu2  ;;  %v6247_v45 = vadd.f32 %v6222_v34, %v327_v9 }
  0xa9   :  { %v6229_v38 = vpop.f32.mrf.mxu3  ;;  %v514_v53 = vsel %vm105_vm0, %v6247_v45, 0.0 }
  0xaa   :  { %v515_v60 = vadd.f32 %v514_v53, %v513_v55 }
  0xae   :  { %v330_v13 = vpop.f32.mrf.mxu0  ;;  %v6191_v16 = vpop.f32.mrf.mxu1 }
  0xaf   :  { %v6207_v26 = vpop.f32.mrf.mxu2  ;;  %v6254_v50 = vadd.f32 %v6222_v34, %v330_v13 }
  0xb1   :  { %v6263_v56 = vpop.f32.mrf.mxu3  ;;  %v516_v57 = vsel %vm105_vm0, %v6254_v50, 0.0 }
  0xb2   :  { %v517_v0 = vadd.f32 %v516_v57, %v515_v60 }
  0xb6   :  { %v333_v17 = vpop.f32.mrf.mxu0  ;;  %v6199_v21 = vpop.f32.mrf.mxu1 }
  0xb7   :  { %v6213_v30 = vpop.f32.mrf.mxu2  ;;  %v6261_v54 = vadd.f32 %v6222_v34, %v333_v17 }
  0xb9   :  { %v518_v61 = vsel %vm105_vm0, %v6261_v54, 0.0 }
  0xba   :  { %v519_v5 = vadd.f32 %v518_v61, %v517_v0 }
  0xbe   :  { %v336_v20 = vpop.f32.mrf.mxu0  ;;  %v6205_v25 = vpop.f32.mrf.mxu1 }
  0xbf   :  { %v6224_v36 = vpop.f32.mrf.mxu2  ;;  %v6268_v58 = vadd.f32 %v6222_v34, %v336_v20  ;;  %v6294_v20 = vpop.f32.mrf.mxu3 }
  0xc1   :  { %v520_v2 = vsel %vm105_vm0, %v6268_v58, 0.0 }
  0xc2   :  { %v521_v12 = vadd.f32 %v520_v2, %v519_v5  ;;  %v6321_v2 = vadd.f32 %v6222_v34, %v6141_v59 }
  0xc6   :  { %v339_v23 = vpop.f32.mrf.mxu0  ;;  %v6211_v29 = vpop.f32.mrf.mxu1 }
  0xc7   :  { %v6256_v52 = vpop.f32.mrf.mxu2  ;;  %v6273_v62 = vadd.f32 %v6222_v34, %v339_v23 }
  0xc9   :  { %v522_v8 = vsel %vm105_vm0, %v6273_v62, 0.0 }
  0xca   :  { %v523_v19 = vadd.f32 %v522_v8, %v521_v12  ;;  %v6328_v12 = vadd.f32 %v6222_v34, %v6151_v63  ;;  %v6342_v63 = vadd.f32 %v6222_v34, %v6171_v7  ;;  %v6358_v7 = vadd.f32 %v6222_v34, %v6191_v16 }
  0xce   :  { %v342_v27 = vpop.f32.mrf.mxu0  ;;  %v6217_v33 = vpop.f32.mrf.mxu1 }
  0xcf   :  { %v6278_v4 = vadd.f32 %v6222_v34, %v342_v27  ;;  %v6287_v13 = vpop.f32.mrf.mxu2 }
  0xd1   :  { %v524_v15 = vsel %vm105_vm0, %v6278_v4, 0.0 }
  0xd6   :  { %v345_v31 = vpop.f32.mrf.mxu0  ;;  %v6249_v48 = vpop.f32.mrf.mxu1 }
  0xd7   :  { %v6285_v9 = vadd.f32 %v6222_v34, %v345_v31  ;;  %v525_v31 = vadd.f32 %v524_v15, %v523_v19  ;;  %v6313_v57 = vpop.f32.mrf.mxu2 }
  0xd9   :  { %v526_v23 = vsel %vm105_vm0, %v6285_v9, 0.0 }
  0xda   :  { %v527_v46 = vadd.f32 %v526_v23, %v525_v31  ;;  %v538_v23 = vsel %vm105_vm0, %v6321_v2, 0.0  ;;  %v6336_v31 = vadd.f32 %v6222_v34, %v6161_v3 }
  0xde   :  { %v348_v35 = vpop.f32.mrf.mxu0  ;;  %v6280_v6 = vpop.f32.mrf.mxu1 }
  0xdf   :  { %v6292_v17 = vadd.f32 %v6222_v34, %v348_v35 }
  0xe1   :  { %v528_v43 = vsel %vm105_vm0, %v6292_v17, 0.0 }
  0xe2   :  { %v529_v51 = vadd.f32 %v528_v43, %v527_v46  ;;  %v540_v43 = vsel %vm105_vm0, %v6328_v12, 0.0 }
  0xe6   :  { %v351_v47 = vpop.f32.mrf.mxu0  ;;  %v399_v53 = vpop.f32.mrf.mxu1 }
  0xe7   :  { %v6299_v27 = vadd.f32 %v6222_v34, %v351_v47 }
  0xe9   :  { %v530_v35 = vsel %vm105_vm0, %v6299_v27, 0.0 }
  0xea   :  { %v531_v55 = vadd.f32 %v530_v35, %v529_v51  ;;  %v6344_v35 = vpop.f32.mrf.mxu2  ;;  %v542_v51 = vsel %vm105_vm0, %v6336_v31, 0.0 }
  0xee   :  { %v354_v1 = vpop.f32.mrf.mxu0 }
  0xef   :  { %v6304_v44 = vadd.f32 %v6222_v34, %v354_v1  ;;  %v6317_v1 = vpop.f32.mrf.mxu3 }
  0xf1   :  { %v532_v47 = vsel %vm105_vm0, %v6304_v44, 0.0 }
  0xf2   :  { %v533_v61 = vadd.f32 %v532_v47, %v531_v55  ;;  %v6350_v47 = vadd.f32 %v6222_v34, %v6179_v11 }
  0xf6   :  { %v357_v41 = vpop.f32.mrf.mxu0 }
  0xf7   :  { %v6309_v49 = vadd.f32 %v6222_v34, %v357_v41  ;;  %v402_v41 = vpop.f32.mrf.mxu1  ;;  %v6352_v55 = vpop.f32.mrf.mxu3 }
  0xf9   :  { %v534_v60 = vsel %vm105_vm0, %v6309_v49, 0.0 }
  0xfa   :  { %v535_v8 = vadd.f32 %v534_v60, %v533_v61  ;;  %v544_v60 = vsel %vm105_vm0, %v6342_v63, 0.0 }
  0xfe   :  { %v360_v0 = vpop.f32.mrf.mxu0 }
  0xff   :  { %v6324_v5 = vadd.f32 %v6222_v34, %v360_v0  ;;  %v546_v0 = vsel %vm105_vm0, %v6350_v47, 0.0 }
 0x101   :  { %v536_v15 = vsel %vm105_vm0, %v6324_v5, 0.0 }
 0x102   :  { %v537_v19 = vadd.f32 %v536_v15, %v535_v8  ;;  %v6364_v8 = vadd.f32 %v6222_v34, %v6199_v21  ;;  %v548_v15 = vsel %vm105_vm0, %v6358_v7, 0.0  ;;  %v6378_v21 = vpop.f32.mrf.mxu2 }
 0x104   :  { %v539_v59 = vadd.f32 %v538_v23, %v537_v19  ;;  %v6370_v19 = vadd.f32 %v6222_v34, %v6205_v25  ;;  %v550_v16 = vsel %vm105_vm0, %v6364_v8, 0.0 }
 0x106   :  { %v541_v46 = vadd.f32 %v540_v43, %v539_v59  ;;  %v405_v59 = vpop.f32.mrf.mxu1  ;;  %v6376_v43 = vadd.f32 %v6222_v34, %v6211_v29  ;;  %v6392_v29 = vadd.f32 %v6222_v34, %v6249_v48 }
 0x108   :  { %v543_v3 = vadd.f32 %v542_v51, %v541_v46  ;;  %v552_v51 = vsel %vm105_vm0, %v6370_v19, 0.0 }
 0x10a   :  { %v545_v61 = vadd.f32 %v544_v60, %v543_v3  ;;  %v6384_v3 = vadd.f32 %v6222_v34, %v6217_v33  ;;  %v6386_v60 = vpop.f32.mrf.mxu3 }
 0x10c   :  { %v547_v11 = vadd.f32 %v546_v0, %v545_v61  ;;  %12949 = vst [vmem:[#allocation6_spill] sm:$0xff] %v6384_v3  ;;  %v554_v61 = vsel %vm105_vm0, %v6376_v43, 0.0 }
 0x10e   :  { %v549_v23 = vadd.f32 %v548_v15, %v547_v11  ;;  %v556_v11 = vsel %vm105_vm0, %v6384_v3, 0.0  ;;  %v6398_v15 = vadd.f32 %v6222_v34, %v6280_v6  ;;  %v447_v3 = vpop.f32.mrf.mxu2 }
 0x110   :  { %v551_v46 = vadd.f32 %v550_v16, %v549_v23  ;;  %12950 = vst [vmem:[#allocation7_spill] sm:$0xff] %v6398_v15  ;;  %v558_v23 = vsel %vm105_vm0, %v6392_v29, 0.0  ;;  %v6403_v16 = vadd.f32 %v6222_v34, %v399_v53  ;;  %v560_v48 = vsel %vm105_vm0, %v6398_v15, 0.0 }
 0x112   :  { %v553_v25 = vadd.f32 %v552_v51, %v551_v46  ;;  %v408_v51 = vpop.f32.mrf.mxu1  ;;  %v562_v6 = vsel %vm105_vm0, %v6403_v16, 0.0 }
 0x114   :  { %v555_v0 = vadd.f32 %v554_v61, %v553_v25  ;;  %v6408_v25 = vadd.f32 %v6222_v34, %v402_v41  ;;  %v6424_v41 = vadd.f32 %v6222_v34, %v6177_v10 }
 0x116   :  { %v557_v33 = vadd.f32 %v556_v11, %v555_v0  ;;  %v6413_v0 = vadd.f32 %v6222_v34, %v405_v59  ;;  %v6416_v11 = vadd.f32 %v6222_v34, %v408_v51  ;;  %v6432_v51 = vadd.f32 %v6222_v34, %v6185_v14 }
 0x118   :  { %v559_v46 = vadd.f32 %v558_v23, %v557_v33  ;;  %12951 = vst [vmem:[#allocation8_spill] sm:$0xff] %v6413_v0  ;;  %v6418_v33 = vpop.f32.mrf.mxu3  ;;  %v564_v23 = vsel %vm105_vm0, %v6408_v25, 0.0  ;;  %v568_v59 = vsel %vm105_vm0, %v6416_v11, 0.0 }
 0x11a   :  { %v561_v61 = vadd.f32 %v560_v48, %v559_v46  ;;  %v566_v46 = vsel %vm105_vm0, %v6413_v0, 0.0  ;;  %v572_v0 = vsel %vm105_vm0, %v6432_v51, 0.0 }
 0x11c   :  { %v563_v53 = vadd.f32 %v562_v6, %v561_v61  ;;  %v570_v6 = vsel %vm105_vm0, %v6424_v41, 0.0 }
 0x11e   :  { %v565_v15 = vadd.f32 %v564_v23, %v563_v53  ;;  %v6438_v53 = vadd.f32 %v6222_v34, %v6193_v18  ;;  %v450_v23 = vpop.f32.mrf.mxu2 }
 0x120   :  { %v567_v48 = vadd.f32 %v566_v46, %v565_v15  ;;  %12952 = vst [vmem:[#allocation9_spill] sm:$0xff] %v6438_v53  ;;  %v6444_v15 = vadd.f32 %v6222_v34, %v6201_v22  ;;  %v6446_v14 = vpop.f32.mrf.mxu3 }
 0x122   :  { %v569_v61 = vadd.f32 %v568_v59, %v567_v48  ;;  %12953 = vst [vmem:[#allocation10_spill] sm:$0xff] %v6444_v15  ;;  %v574_v59 = vsel %vm105_vm0, %v6438_v53, 0.0  ;;  %v6452_v48 = vadd.f32 %v6222_v34, %v6207_v26 }
 0x124   :  { %v571_v10 = vadd.f32 %v570_v6, %v569_v61  ;;  %v576_v61 = vsel %vm105_vm0, %v6444_v15, 0.0  ;;  %v6458_v6 = vadd.f32 %v6222_v34, %v6213_v30 }
 0x126   :  { %v573_v46 = vadd.f32 %v572_v0, %v571_v10  ;;  %v578_v0 = vsel %vm105_vm0, %v6452_v48, 0.0  ;;  %v6464_v10 = vadd.f32 %v6222_v34, %v6224_v36  ;;  %v580_v26 = vsel %vm105_vm0, %v6458_v6, 0.0  ;;  %v453_v15 = vpop.f32.mrf.mxu2 }
 0x128   :  { %v575_v18 = vadd.f32 %v574_v59, %v573_v46  ;;  %12954 = vst [vmem:[#allocation11_spill] sm:$0xff] %v6464_v10  ;;  %v6470_v46 = vadd.f32 %v6222_v34, %v6256_v52  ;;  %v582_v30 = vsel %vm105_vm0, %v6464_v10, 0.0  ;;  %v492_v36 = vpop.f32.mrf.mxu3 }
 0x12a   :  { %v577_v22 = vadd.f32 %v576_v61, %v575_v18  ;;  %v6476_v18 = vadd.f32 %v6222_v34, %v6287_v13 }
 0x12c   :  { %v579_v53 = vadd.f32 %v578_v0, %v577_v22  ;;  %12955 = vst [vmem:[#allocation12_spill] sm:$0xff] %v6476_v18  ;;  %v584_v22 = vsel %vm105_vm0, %v6470_v46, 0.0  ;;  %v6482_v0 = vadd.f32 %v6222_v34, %v6313_v57 }
 0x12e   :  { %v581_v59 = vadd.f32 %v580_v26, %v579_v53  ;;  %12956 = vst [vmem:[#allocation13_spill] sm:$0xff] %v6482_v0  ;;  %v586_v53 = vsel %vm105_vm0, %v6476_v18, 0.0  ;;  %v6488_v26 = vadd.f32 %v6222_v34, %v6344_v35  ;;  %v588_v13 = vsel %vm105_vm0, %v6482_v0, 0.0  ;;  %v456_v18 = vpop.f32.mrf.mxu2 }
 0x130   :  { %v583_v61 = vadd.f32 %v582_v30, %v581_v59  ;;  %v6494_v59 = vadd.f32 %v6222_v34, %v6378_v21  ;;  %v590_v57 = vsel %vm105_vm0, %v6488_v26, 0.0  ;;  %v495_v0 = vpop.f32.mrf.mxu3 }
 0x132   :  { %v585_v52 = vadd.f32 %v584_v22, %v583_v61  ;;  %v6499_v61 = vadd.f32 %v6222_v34, %v447_v3  ;;  %v592_v35 = vsel %vm105_vm0, %v6494_v59, 0.0 }
 0x134   :  { %v587_v10 = vadd.f32 %v586_v53, %v585_v52  ;;  %v6504_v52 = vadd.f32 %v6222_v34, %v450_v23  ;;  %v594_v21 = vsel %vm105_vm0, %v6499_v61, 0.0  ;;  %v6518_v23 = vadd.f32 %v6222_v34, %v6203_v24 }
 0x136   :  { %v589_v30 = vadd.f32 %v588_v13, %v587_v10  ;;  %v6509_v10 = vadd.f32 %v6222_v34, %v453_v15  ;;  %v6512_v13 = vadd.f32 %v6222_v34, %v456_v18  ;;  %v6526_v18 = vadd.f32 %v6222_v34, %v6209_v28 }
 0x138   :  { %v591_v22 = vadd.f32 %v590_v57, %v589_v30  ;;  %12957 = vst [vmem:[#allocation14_spill] sm:$0xff] %v6509_v10  ;;  %v596_v30 = vsel %vm105_vm0, %v6504_v52, 0.0 }
 0x13a   :  { %v593_v53 = vadd.f32 %v592_v35, %v591_v22  ;;  %v598_v22 = vsel %vm105_vm0, %v6509_v10, 0.0  ;;  %v600_v35 = vsel %vm105_vm0, %v6512_v13, 0.0  ;;  %v604_v10 = vsel %vm105_vm0, %v6526_v18, 0.0 }
 0x13c   :  { %v595_v3 = vadd.f32 %v594_v21, %v593_v53  ;;  %v602_v21 = vsel %vm105_vm0, %v6518_v23, 0.0 }
 0x13e   :  { %v597_v57 = vadd.f32 %v596_v30, %v595_v3  ;;  %v6532_v3 = vadd.f32 %v6222_v34, %v6215_v32  ;;  %v498_v30 = vpop.f32.mrf.mxu3 }
 0x140   :  { %v599_v15 = vadd.f32 %v598_v22, %v597_v57  ;;  %v6538_v57 = vadd.f32 %v6222_v34, %v6229_v38  ;;  %v606_v28 = vsel %vm105_vm0, %v6532_v3, 0.0 }
 0x142   :  { %v601_v53 = vadd.f32 %v600_v35, %v599_v15  ;;  %12958 = vst [vmem:[#allocation15_spill] sm:$0xff] %v6538_v57  ;;  %v6544_v35 = vadd.f32 %v6222_v34, %v6263_v56  ;;  %v608_v32 = vsel %vm105_vm0, %v6538_v57, 0.0 }
 0x144   :  { %v603_v24 = vadd.f32 %v602_v21, %v601_v53  ;;  %v6550_v53 = vadd.f32 %v6222_v34, %v6294_v20  ;;  %v610_v38 = vsel %vm105_vm0, %v6544_v35, 0.0 }
 0x146   :  { %v605_v22 = vadd.f32 %v604_v10, %v603_v24  ;;  %v6556_v10 = vadd.f32 %v6222_v34, %v6317_v1  ;;  %v612_v56 = vsel %vm105_vm0, %v6550_v53, 0.0  ;;  %v501_v57 = vpop.f32.mrf.mxu3 }
 0x148   :  { %v607_v15 = vadd.f32 %v606_v28, %v605_v22  ;;  %12959 = vst [vmem:[#allocation16_spill] sm:$0xff] %v6556_v10  ;;  %v6562_v22 = vadd.f32 %v6222_v34, %v6352_v55  ;;  %v614_v20 = vsel %vm105_vm0, %v6556_v10, 0.0 }
 0x14a   :  { %v609_v21 = vadd.f32 %v608_v32, %v607_v15  ;;  %12960 = vst [vmem:[#allocation17_spill] sm:$0xff] %v6562_v22  ;;  %v6568_v15 = vadd.f32 %v6222_v34, %v6386_v60  ;;  %v616_v1 = vsel %vm105_vm0, %v6562_v22, 0.0 }
 0x14c   :  { %v611_v24 = vadd.f32 %v610_v38, %v609_v21  ;;  %12961 = vst [vmem:[#allocation18_spill] sm:$0xff] %v6568_v15  ;;  %v6574_v21 = vadd.f32 %v6222_v34, %v6418_v33  ;;  %v618_v55 = vsel %vm105_vm0, %v6568_v15, 0.0 }
 0x14e   :  { %v613_v28 = vadd.f32 %v612_v56, %v611_v24  ;;  %12962 = vst [vmem:[#allocation19_spill] sm:$0xff] %v6574_v21  ;;  %v6580_v24 = vadd.f32 %v6222_v34, %v6446_v14  ;;  %v620_v60 = vsel %vm105_vm0, %v6574_v21, 0.0  ;;  %v504_v15 = vpop.f32.mrf.mxu3 }
 0x150   :  { %v615_v32 = vadd.f32 %v614_v20, %v613_v28  ;;  %12963 = vst [vmem:[#allocation20_spill] sm:$0xff] %v6580_v24  ;;  %v6585_v28 = vadd.f32 %v6222_v34, %v492_v36  ;;  %v622_v33 = vsel %vm105_vm0, %v6580_v24, 0.0 }
 0x152   :  { %v617_v38 = vadd.f32 %v616_v1, %v615_v32  ;;  %12964 = vst [vmem:[#allocation21_spill] sm:$0xff] %v6585_v28  ;;  %v6590_v32 = vadd.f32 %v6222_v34, %v495_v0  ;;  %v624_v14 = vsel %vm105_vm0, %v6585_v28, 0.0 }
 0x154   :  { %v619_v56 = vadd.f32 %v618_v55, %v617_v38  ;;  %12965 = vst [vmem:[#allocation22_spill] sm:$0xff] %v6590_v32  ;;  %v6595_v38 = vadd.f32 %v6222_v34, %v498_v30  ;;  %v626_v36 = vsel %vm105_vm0, %v6590_v32, 0.0 }
 0x156   :  { %v621_v20 = vadd.f32 %v620_v60, %v619_v56  ;;  %12966 = vst [vmem:[#allocation23_spill] sm:$0xff] %v6595_v38  ;;  %v6600_v56 = vadd.f32 %v6222_v34, %v501_v57  ;;  %v505_v60 = vadd.f32 %v6222_v34, %v504_v15  ;;  %v628_v0 = vsel %vm105_vm0, %v6595_v38, 0.0 }
 0x158   :  { %v623_v1 = vadd.f32 %v622_v33, %v621_v20  ;;  %12967 = vst [vmem:[#allocation24_spill] sm:$0xff] %v6600_v56  ;;  %v630_v33 = vsel %vm105_vm0, %v6600_v56, 0.0  ;;  %v632_v30 = vsel %vm105_vm0, %v505_v60, 0.0 }
 0x15a   :  { %v625_v55 = vadd.f32 %v624_v14, %v623_v1  ;;  %v5859_v1 = vmov 512.0  }
 0x15b   :  { %5824 = vrcp.f32 %v5859_v1 }
 0x15c   :  { %v627_v24 = vadd.f32 %v626_v36, %v625_v55 }
 0x15e   :  { %v629_v20 = vadd.f32 %v628_v0, %v627_v24 }
 0x160   :  { %v631_v28 = vadd.f32 %v630_v33, %v629_v20 }
 0x161   :  { %v5825_v21 = vpop.eup %5824 }
 0x162   :  { %v633_v14 = vadd.f32 %v632_v30, %v631_v28  ;;  %v641_v22 = vmul.f32 512.0, %v5825_v21  ;;  %vm645_vm1 = vweird.f32 %v5825_v21 }
 0x164   :  { %v634_v32 = vrot.slane %v633_v14, 4  ;;  %v642_v34 = vsub.f32 1.0, %v641_v22 }
 0x166   :  { %v635_v57 = vadd.f32 %v634_v32, %v633_v14  ;;  %v643_v55 = vmul.f32 %v5825_v21, %v642_v34 }
 0x168   :  { %v636_v10 = vrot.slane %v635_v57, 2  ;;  %v644_v38 = vadd.f32 %v5825_v21, %v643_v55 }
 0x16a   :  { %v637_v15 = vadd.f32 %v636_v10, %v635_v57  ;;  %v6608_v0 = vsel %vm645_vm1, %v5825_v21, %v644_v38  ;;  %vm5364_vm1 = vcmask 74752  }
 0x16c   :  { %v638_v36 = vrot.slane %v637_v15, 1 }
 0x16e   :  { %v639_v24 = vadd.f32 %v638_v36, %v637_v15 }
 0x170   :  { %v6611_v56 = vmul.f32 %v6608_v0, %v639_v24 }
 0x172   :  { %v6614_v20 = vsub.f32 %v505_v60, %v6611_v56  ;;  %v6618_v28 = vsub.f32 %v6232_v39, %v6611_v56  ;;  %v6622_v10 = vsub.f32 %v6227_v37, %v6611_v56  ;;  %v6626_v22 = vsub.f32 %v6235_v40, %v6611_v56 }
 0x173   :  { %v6630_v21 = vsub.f32 %v6240_v42, %v6611_v56  ;;  %v6638_v39 = vsub.f32 %v6247_v45, %v6611_v56  ;;  %v6644_v40 = vsub.f32 %v6254_v50, %v6611_v56  ;;  %v6652_v1 = vsub.f32 %v6261_v54, %v6611_v56 }
 0x174   :  { %v712_v32 = vmul.f32 %v6618_v28, %v6618_v28  ;;  %v713_v38 = vmul.f32 %v6622_v10, %v6622_v10  ;;  %v714_v37 = vmul.f32 %v6626_v22, %v6626_v22  ;;  %v6659_v50 = vsub.f32 %v6268_v58, %v6611_v56 }
 0x175   :  { %v715_v42 = vmul.f32 %v6630_v21, %v6630_v21  ;;  %v716_v45 = vmul.f32 %v6638_v39, %v6638_v39  ;;  %v717_v34 = vmul.f32 %v6644_v40, %v6644_v40  ;;  %v6666_v54 = vsub.f32 %v6273_v62, %v6611_v56 }
 0x176   :  { %v776_v60 = vsel %vm105_vm0, %v712_v32, 0.0  ;;  %v777_v33 = vsel %vm105_vm0, %v713_v38, 0.0  ;;  %v779_v14 = vsel %vm105_vm0, %v714_v37, 0.0  ;;  %v718_v36 = vmul.f32 %v6652_v1, %v6652_v1 }
 0x177   :  { %v778_v30 = vadd.f32 %v777_v33, %v776_v60  ;;  %v781_v15 = vsel %vm105_vm0, %v715_v42, 0.0  ;;  %v783_v24 = vsel %vm105_vm0, %v716_v45, 0.0  ;;  %v6673_v58 = vsub.f32 %v6278_v4, %v6611_v56 }
 0x178   :  { %v719_v38 = vmul.f32 %v6659_v50, %v6659_v50  ;;  %v785_v37 = vsel %vm105_vm0, %v717_v34, 0.0  ;;  %v6680_v62 = vsub.f32 %v6285_v9, %v6611_v56  ;;  %v720_v60 = vmul.f32 %v6666_v54, %v6666_v54 }
 0x179   :  { %v780_v57 = vadd.f32 %v779_v14, %v778_v30  ;;  %v787_v33 = vsel %vm105_vm0, %v718_v36, 0.0  ;;  %v6687_v4 = vsub.f32 %v6292_v17, %v6611_v56  ;;  %v721_v45 = vmul.f32 %v6673_v58, %v6673_v58 }
 0x17a   :  { %v789_v14 = vsel %vm105_vm0, %v719_v38, 0.0  ;;  %v6694_v9 = vsub.f32 %v6299_v27, %v6611_v56  ;;  %v722_v34 = vmul.f32 %v6680_v62, %v6680_v62  ;;  %v6701_v17 = vsub.f32 %v6304_v44, %v6611_v56 }
 0x17b   :  { %v782_v55 = vadd.f32 %v781_v15, %v780_v57  ;;  %v791_v15 = vsel %vm105_vm0, %v720_v60, 0.0  ;;  %v723_v36 = vmul.f32 %v6687_v4, %v6687_v4  ;;  %v6708_v27 = vsub.f32 %v6309_v49, %v6611_v56 }
 0x17c   :  { %v724_v38 = vmul.f32 %v6694_v9, %v6694_v9  ;;  %v6715_v44 = vsub.f32 %v6324_v5, %v6611_v56  ;;  %v725_v60 = vmul.f32 %v6701_v17, %v6701_v17  ;;  %v6722_v49 = vsub.f32 %v6321_v2, %v6611_v56 }
 0x17d   :  { %v784_v32 = vadd.f32 %v783_v24, %v782_v55  ;;  %v793_v24 = vsel %vm105_vm0, %v721_v45, 0.0  ;;  %v726_v45 = vmul.f32 %v6708_v27, %v6708_v27  ;;  %v6729_v5 = vsub.f32 %v6328_v12, %v6611_v56 }
 0x17e   :  { %12968 = vst [vmem:[#allocation25_spill] sm:$0xff] %v6722_v49  ;;  %v6736_v2 = vsub.f32 %v6336_v31, %v6611_v56  ;;  %v6743_v12 = vsub.f32 %v6342_v63, %v6611_v56  ;;  %v6750_v31 = vsub.f32 %v6350_v47, %v6611_v56  ;;  %v6757_v63 = vsub.f32 %v6358_v7, %v6611_v56 }
 0x17f   :  { %v786_v42 = vadd.f32 %v785_v37, %v784_v32  ;;  %v795_v37 = vsel %vm105_vm0, %v722_v34, 0.0  ;;  %12969 = vst [vmem:[#allocation26_spill] sm:$0xff] %v6729_v5  ;;  %v727_v34 = vmul.f32 %v6715_v44, %v6715_v44  ;;  %v6764_v47 = vsub.f32 %v6364_v8, %v6611_v56 }
 0x180   :  { %12970 = vst [vmem:[#allocation27_spill] sm:$0xff] %v6736_v2  ;;  %v6771_v7 = vsub.f32 %v6370_v19, %v6611_v56  ;;  %v6778_v8 = vsub.f32 %v6376_v43, %v6611_v56  ;;  %v6792_v43 = vsub.f32 %v6392_v29, %v6611_v56  ;;  %v6806_v29 = vsub.f32 %v6403_v16, %v6611_v56 }
 0x181   :  { %v788_v30 = vadd.f32 %v787_v33, %v786_v42  ;;  %v797_v33 = vsel %vm105_vm0, %v723_v36, 0.0  ;;  %v728_v36 = vmul.f32 %v6722_v49, %v6722_v49  ;;  %12971 = vst [vmem:[#allocation28_spill] sm:$0xff] %v6743_v12 }
 0x182   :  { %12972 = vst [vmem:[#allocation29_spill] sm:$0xff] %v6750_v31 }
 0x183   :  { %v790_v57 = vadd.f32 %v789_v14, %v788_v30  ;;  %v799_v14 = vsel %vm105_vm0, %v724_v38, 0.0  ;;  %v729_v38 = vmul.f32 %v6729_v5, %v6729_v5  ;;  %12973 = vst [vmem:[#allocation30_spill] sm:$0xff] %v6757_v63 }
 0x184   :  { %12974 = vst [vmem:[#allocation31_spill] sm:$0xff] %v6764_v47 }
 0x185   :  { %v792_v55 = vadd.f32 %v791_v15, %v790_v57  ;;  %v801_v15 = vsel %vm105_vm0, %v725_v60, 0.0  ;;  %v730_v60 = vmul.f32 %v6736_v2, %v6736_v2  ;;  %12975 = vst [vmem:[#allocation32_spill] sm:$0xff] %v6771_v7 }
 0x186   :  { %12976 = vst [vmem:[#allocation33_spill] sm:$0xff] %v6778_v8 }
 0x187   :  { %v794_v32 = vadd.f32 %v793_v24, %v792_v55  ;;  %v803_v24 = vsel %vm105_vm0, %v726_v45, 0.0  ;;  %v731_v45 = vmul.f32 %v6743_v12, %v6743_v12  ;;  %12979 = vst [vmem:[#allocation34_spill] sm:$0xff] %v6792_v43 }
 0x188   :  { %12982 = vst [vmem:[#allocation35_spill] sm:$0xff] %v6806_v29 }
 0x189   :  { %v796_v42 = vadd.f32 %v795_v37, %v794_v32  ;;  %v805_v37 = vsel %vm105_vm0, %v727_v34, 0.0  ;;  %v732_v34 = vmul.f32 %v6750_v31, %v6750_v31 }
 0x18b   :  { %v798_v30 = vadd.f32 %v797_v33, %v796_v42  ;;  %v807_v33 = vsel %vm105_vm0, %v728_v36, 0.0  ;;  %v733_v36 = vmul.f32 %v6757_v63, %v6757_v63 }
 0x18d   :  { %v800_v57 = vadd.f32 %v799_v14, %v798_v30  ;;  %v809_v14 = vsel %vm105_vm0, %v729_v38, 0.0  ;;  %v734_v38 = vmul.f32 %v6764_v47, %v6764_v47 }
 0x18f   :  { %v802_v55 = vadd.f32 %v801_v15, %v800_v57  ;;  %v811_v15 = vsel %vm105_vm0, %v730_v60, 0.0  ;;  %v12977_v60 = vld [vmem:[#allocation6_spill] sm:$0xff] }
 0x190   :  { %v6785_v19 = vsub.f32 %v12977_v60, %v6611_v56  ;;  %v6813_v60 = vsub.f32 %v6408_v25, %v6611_v56  ;;  %v6827_v25 = vsub.f32 %v6416_v11, %v6611_v56  ;;  %v6841_v11 = vsub.f32 %v6432_v51, %v6611_v56 }
 0x191   :  { %v804_v32 = vadd.f32 %v803_v24, %v802_v55  ;;  %v813_v24 = vsel %vm105_vm0, %v731_v45, 0.0 }
 0x192   :  { %12978 = vst [vmem:[#allocation6_spill] sm:$0xff] %v6785_v19 }
 0x193   :  { %v806_v42 = vadd.f32 %v805_v37, %v804_v32  ;;  %v815_v37 = vsel %vm105_vm0, %v732_v34, 0.0  ;;  %12983 = vst [vmem:[#allocation36_spill] sm:$0xff] %v6813_v60 }
 0x195   :  { %v808_v30 = vadd.f32 %v807_v33, %v806_v42  ;;  %v735_v33 = vmul.f32 %v6771_v7, %v6771_v7 }
 0x197   :  { %v810_v57 = vadd.f32 %v809_v14, %v808_v30  ;;  %v817_v30 = vsel %vm105_vm0, %v733_v36, 0.0  ;;  %v736_v14 = vmul.f32 %v6778_v8, %v6778_v8  ;;  %v821_v36 = vsel %vm105_vm0, %v735_v33, 0.0 }
 0x199   :  { %v812_v55 = vadd.f32 %v811_v15, %v810_v57  ;;  %v819_v57 = vsel %vm105_vm0, %v734_v38, 0.0  ;;  %v12980_v15 = vld [vmem:[#allocation7_spill] sm:$0xff]  ;;  %v823_v38 = vsel %vm105_vm0, %v736_v14, 0.0 }
 0x19b   :  { %v814_v32 = vadd.f32 %v813_v24, %v812_v55  ;;  %v6799_v55 = vsub.f32 %v12980_v15, %v6611_v56  ;;  %v737_v24 = vmul.f32 %v6785_v19, %v6785_v19 }
 0x19d   :  { %v816_v42 = vadd.f32 %v815_v37, %v814_v32  ;;  %12981 = vst [vmem:[#allocation7_spill] sm:$0xff] %v6799_v55  ;;  %v738_v37 = vmul.f32 %v6792_v43, %v6792_v43  ;;  %v825_v33 = vsel %vm105_vm0, %v737_v24, 0.0 }
 0x19f   :  { %v818_v45 = vadd.f32 %v817_v30, %v816_v42  ;;  %v739_v30 = vmul.f32 %v6799_v55, %v6799_v55  ;;  %v827_v14 = vsel %vm105_vm0, %v738_v37, 0.0 }
 0x1a1   :  { %v820_v34 = vadd.f32 %v819_v57, %v818_v45  ;;  %v12984_v57 = vld [vmem:[#allocation8_spill] sm:$0xff]  ;;  %v829_v24 = vsel %vm105_vm0, %v739_v30, 0.0 }
 0x1a2   :  { %v6820_v16 = vsub.f32 %v12984_v57, %v6611_v56 }
 0x1a3   :  { %v822_v32 = vadd.f32 %v821_v36, %v820_v34  ;;  %v740_v34 = vmul.f32 %v6806_v29, %v6806_v29  ;;  %v741_v36 = vmul.f32 %v6813_v60, %v6813_v60 }
 0x1a5   :  { %v824_v42 = vadd.f32 %v823_v38, %v822_v32  ;;  %v6834_v38 = vsub.f32 %v6424_v41, %v6611_v56  ;;  %v831_v37 = vsel %vm105_vm0, %v740_v34, 0.0  ;;  %v833_v30 = vsel %vm105_vm0, %v741_v36, 0.0 }
 0x1a7   :  { %v826_v45 = vadd.f32 %v825_v33, %v824_v42  ;;  %v742_v42 = vmul.f32 %v6820_v16, %v6820_v16 }
 0x1a9   :  { %v828_v15 = vadd.f32 %v827_v14, %v826_v45  ;;  %v743_v45 = vmul.f32 %v6827_v25, %v6827_v25  ;;  %v12985_v14 = vld [vmem:[#allocation9_spill] sm:$0xff]  ;;  %v835_v34 = vsel %vm105_vm0, %v742_v42, 0.0 }
 0x1aa   :  { %v6848_v41 = vsub.f32 %v12985_v14, %v6611_v56 }
 0x1ab   :  { %v830_v32 = vadd.f32 %v829_v24, %v828_v15  ;;  %v744_v15 = vmul.f32 %v6834_v38, %v6834_v38  ;;  %v837_v36 = vsel %vm105_vm0, %v743_v45, 0.0 }
 0x1ac   :  { %v746_v14 = vmul.f32 %v6848_v41, %v6848_v41 }
 0x1ad   :  { %v832_v33 = vadd.f32 %v831_v37, %v830_v32  ;;  %v12986_v32 = vld [vmem:[#allocation10_spill] sm:$0xff]  ;;  %v745_v37 = vmul.f32 %v6841_v11, %v6841_v11  ;;  %v839_v42 = vsel %vm105_vm0, %v744_v15, 0.0 }
 0x1ae   :  { %v6855_v51 = vsub.f32 %v12986_v32, %v6611_v56  ;;  %v843_v15 = vsel %vm105_vm0, %v746_v14, 0.0 }
 0x1af   :  { %v834_v57 = vadd.f32 %v833_v30, %v832_v33  ;;  %v6862_v30 = vsub.f32 %v6452_v48, %v6611_v56  ;;  %v841_v45 = vsel %vm105_vm0, %v745_v37, 0.0 }
 0x1b0   :  { %v747_v32 = vmul.f32 %v6855_v51, %v6855_v51 }
 0x1b1   :  { %v836_v24 = vadd.f32 %v835_v34, %v834_v57  ;;  %v6869_v34 = vsub.f32 %v6458_v6, %v6611_v56  ;;  %v748_v60 = vmul.f32 %v6862_v30, %v6862_v30  ;;  %v6883_v6 = vsub.f32 %v6470_v46, %v6611_v56 }
 0x1b2   :  { %v845_v37 = vsel %vm105_vm0, %v747_v32, 0.0 }
 0x1b3   :  { %v838_v33 = vadd.f32 %v837_v36, %v836_v24  ;;  %v12987_v36 = vld [vmem:[#allocation11_spill] sm:$0xff]  ;;  %v847_v14 = vsel %vm105_vm0, %v748_v60, 0.0  ;;  %v751_v55 = vmul.f32 %v6883_v6, %v6883_v6 }
 0x1b4   :  { %v6876_v48 = vsub.f32 %v12987_v36, %v6611_v56 }
 0x1b5   :  { %v840_v57 = vadd.f32 %v839_v42, %v838_v33  ;;  %v749_v42 = vmul.f32 %v6869_v34, %v6869_v34 }
 0x1b6   :  { %v750_v29 = vmul.f32 %v6876_v48, %v6876_v48 }
 0x1b7   :  { %v842_v24 = vadd.f32 %v841_v45, %v840_v57  ;;  %v12988_v45 = vld [vmem:[#allocation12_spill] sm:$0xff]  ;;  %v849_v32 = vsel %vm105_vm0, %v749_v42, 0.0  ;;  %v853_v42 = vsel %vm105_vm0, %v751_v55, 0.0 }
 0x1b8   :  { %v6890_v36 = vsub.f32 %v12988_v45, %v6611_v56  ;;  %v851_v60 = vsel %vm105_vm0, %v750_v29, 0.0 }
 0x1b9   :  { %v844_v33 = vadd.f32 %v843_v15, %v842_v24  ;;  %v12989_v15 = vld [vmem:[#allocation13_spill] sm:$0xff] }
 0x1ba   :  { %v6897_v46 = vsub.f32 %v12989_v15, %v6611_v56  ;;  %v752_v45 = vmul.f32 %v6890_v36, %v6890_v36 }
 0x1bb   :  { %v846_v57 = vadd.f32 %v845_v37, %v844_v33  ;;  %v6904_v37 = vsub.f32 %v6488_v26, %v6611_v56  ;;  %v6918_v26 = vsub.f32 %v6499_v61, %v6611_v56 }
 0x1bc   :  { %v753_v15 = vmul.f32 %v6897_v46, %v6897_v46  ;;  %v855_v29 = vsel %vm105_vm0, %v752_v45, 0.0 }
 0x1bd   :  { %v848_v24 = vadd.f32 %v847_v14, %v846_v57  ;;  %v6911_v14 = vsub.f32 %v6494_v59, %v6611_v56  ;;  %v6925_v59 = vsub.f32 %v6504_v52, %v6611_v56  ;;  %v756_v43 = vmul.f32 %v6918_v26, %v6918_v26 }
 0x1be   :  { %v857_v55 = vsel %vm105_vm0, %v753_v15, 0.0  ;;  %v6939_v52 = vsub.f32 %v6512_v13, %v6611_v56  ;;  %v6953_v13 = vsub.f32 %v6526_v18, %v6611_v56 }
 0x1bf   :  { %v850_v33 = vadd.f32 %v849_v32, %v848_v24  ;;  %v754_v32 = vmul.f32 %v6904_v37, %v6904_v37 }
 0x1c0   :  { %v761_v19 = vmul.f32 %v6953_v13, %v6953_v13 }
 0x1c1   :  { %v852_v57 = vadd.f32 %v851_v60, %v850_v33  ;;  %v755_v60 = vmul.f32 %v6911_v14, %v6911_v14  ;;  %v859_v45 = vsel %vm105_vm0, %v754_v32, 0.0  ;;  %v863_v32 = vsel %vm105_vm0, %v756_v43, 0.0 }
 0x1c3   :  { %v854_v24 = vadd.f32 %v853_v42, %v852_v57  ;;  %v12990_v42 = vld [vmem:[#allocation14_spill] sm:$0xff]  ;;  %v861_v15 = vsel %vm105_vm0, %v755_v60, 0.0 }
 0x1c4   :  { %v6932_v61 = vsub.f32 %v12990_v42, %v6611_v56 }
 0x1c5   :  { %v856_v33 = vadd.f32 %v855_v29, %v854_v24  ;;  %v757_v29 = vmul.f32 %v6925_v59, %v6925_v59 }
 0x1c6   :  { %v758_v42 = vmul.f32 %v6932_v61, %v6932_v61 }
 0x1c7   :  { %v858_v57 = vadd.f32 %v857_v55, %v856_v33  ;;  %v6946_v55 = vsub.f32 %v6518_v23, %v6611_v56  ;;  %v865_v60 = vsel %vm105_vm0, %v757_v29, 0.0  ;;  %v6960_v23 = vsub.f32 %v6532_v3, %v6611_v56 }
 0x1c8   :  { %v867_v43 = vsel %vm105_vm0, %v758_v42, 0.0  ;;  %v6974_v3 = vsub.f32 %v6544_v35, %v6611_v56 }
 0x1c9   :  { %v860_v24 = vadd.f32 %v859_v45, %v858_v57  ;;  %v759_v45 = vmul.f32 %v6939_v52, %v6939_v52 }
 0x1ca   :  { %v764_v8 = vmul.f32 %v6974_v3, %v6974_v3 }
 0x1cb   :  { %v862_v33 = vadd.f32 %v861_v15, %v860_v24  ;;  %v760_v15 = vmul.f32 %v6946_v55, %v6946_v55  ;;  %v869_v29 = vsel %vm105_vm0, %v759_v45, 0.0  ;;  %v873_v45 = vsel %vm105_vm0, %v761_v19, 0.0 }
 0x1cd   :  { %v864_v57 = vadd.f32 %v863_v32, %v862_v33  ;;  %v12991_v32 = vld [vmem:[#allocation15_spill] sm:$0xff]  ;;  %v871_v42 = vsel %vm105_vm0, %v760_v15, 0.0 }
 0x1ce   :  { %v6967_v18 = vsub.f32 %v12991_v32, %v6611_v56 }
 0x1cf   :  { %v866_v24 = vadd.f32 %v865_v60, %v864_v57  ;;  %v762_v60 = vmul.f32 %v6960_v23, %v6960_v23 }
 0x1d0   :  { %v763_v32 = vmul.f32 %v6967_v18, %v6967_v18 }
 0x1d1   :  { %v868_v33 = vadd.f32 %v867_v43, %v866_v24  ;;  %v6981_v43 = vsub.f32 %v6550_v53, %v6611_v56  ;;  %v875_v15 = vsel %vm105_vm0, %v762_v60, 0.0  ;;  %v879_v60 = vsel %vm105_vm0, %v764_v8, 0.0 }
 0x1d2   :  { %v877_v19 = vsel %vm105_vm0, %v763_v32, 0.0 }
 0x1d3   :  { %v870_v57 = vadd.f32 %v869_v29, %v868_v33  ;;  %12992 = vst [vmem:[#allocation8_spill] sm:$0xff] %v6981_v43  ;;  %v12993_v29 = vld [vmem:[#allocation16_spill] sm:$0xff]  ;;  %v765_v7 = vmul.f32 %v6981_v43, %v6981_v43 }
 0x1d4   :  { %v6988_v35 = vsub.f32 %v12993_v29, %v6611_v56 }
 0x1d5   :  { %v872_v24 = vadd.f32 %v871_v42, %v870_v57  ;;  %v12995_v42 = vld [vmem:[#allocation17_spill] sm:$0xff]  ;;  %v881_v32 = vsel %vm105_vm0, %v765_v7, 0.0 }
 0x1d6   :  { %12994 = vst [vmem:[#allocation9_spill] sm:$0xff] %v6988_v35  ;;  %v6995_v53 = vsub.f32 %v12995_v42, %v6611_v56  ;;  %v766_v47 = vmul.f32 %v6988_v35, %v6988_v35 }
 0x1d7   :  { %v874_v33 = vadd.f32 %v873_v45, %v872_v24  ;;  %v12997_v45 = vld [vmem:[#allocation18_spill] sm:$0xff] }
 0x1d8   :  { %12996 = vst [vmem:[#allocation10_spill] sm:$0xff] %v6995_v53  ;;  %v7002_v29 = vsub.f32 %v12997_v45, %v6611_v56  ;;  %v767_v63 = vmul.f32 %v6995_v53, %v6995_v53  ;;  %v883_v8 = vsel %vm105_vm0, %v766_v47, 0.0  ;;  %v13005_v47 = vld [vmem:[#allocation23_spill] sm:$0xff] }
 0x1d9   :  { %v876_v57 = vadd.f32 %v875_v15, %v874_v33  ;;  %v12999_v15 = vld [vmem:[#allocation19_spill] sm:$0xff] }
 0x1da   :  { %12998 = vst [vmem:[#allocation11_spill] sm:$0xff] %v7002_v29  ;;  %v7009_v42 = vsub.f32 %v12999_v15, %v6611_v56  ;;  %v768_v31 = vmul.f32 %v7002_v29, %v7002_v29  ;;  %v885_v2 = vsel %vm105_vm0, %v767_v63, 0.0 }
 0x1db   :  { %v878_v24 = vadd.f32 %v877_v19, %v876_v57  ;;  %v13001_v19 = vld [vmem:[#allocation20_spill] sm:$0xff] }
 0x1dc   :  { %13000 = vst [vmem:[#allocation12_spill] sm:$0xff] %v7009_v42  ;;  %v7016_v45 = vsub.f32 %v13001_v19, %v6611_v56  ;;  %v769_v12 = vmul.f32 %v7009_v42, %v7009_v42  ;;  %v887_v5 = vsel %vm105_vm0, %v768_v31, 0.0  ;;  %v13006_v42 = vld [vmem:[#allocation24_spill] sm:$0xff] }
 0x1dd   :  { %v880_v33 = vadd.f32 %v879_v60, %v878_v24  ;;  %v13003_v60 = vld [vmem:[#allocation21_spill] sm:$0xff]  ;;  %v710_v63 = vsub.f32 %v13006_v42, %v6611_v56 }
 0x1de   :  { %13002 = vst [vmem:[#allocation13_spill] sm:$0xff] %v7016_v45  ;;  %v707_v15 = vsub.f32 %v13003_v60, %v6611_v56  ;;  %v770_v19 = vmul.f32 %v7016_v45, %v7016_v45  ;;  %v889_v60 = vsel %vm105_vm0, %v769_v12, 0.0 }
 0x1df   :  { %v882_v57 = vadd.f32 %v881_v32, %v880_v33  ;;  %v13004_v33 = vld [vmem:[#allocation22_spill] sm:$0xff]  ;;  %v774_v31 = vmul.f32 %v710_v63, %v710_v63 }
 0x1e0   :  { %v708_v32 = vsub.f32 %v13004_v33, %v6611_v56 }
 0x1e1   :  { %v884_v24 = vadd.f32 %v883_v8, %v882_v57  ;;  %v709_v57 = vsub.f32 %v13005_v47, %v6611_v56  ;;  %v771_v8 = vmul.f32 %v707_v15, %v707_v15  ;;  %v775_v47 = vmul.f32 %v6614_v20, %v6614_v20 }
 0x1e2   :  { %v899_v56 = vsel %vm105_vm0, %v774_v31, 0.0 }
 0x1e3   :  { %v886_v7 = vadd.f32 %v885_v2, %v884_v24  ;;  %v772_v2 = vmul.f32 %v708_v32, %v708_v32  ;;  %v891_v24 = vsel %vm105_vm0, %v770_v19, 0.0  ;;  %v773_v53 = vmul.f32 %v709_v57, %v709_v57 }
 0x1e4   :  { %v893_v45 = vsel %vm105_vm0, %v771_v8, 0.0  ;;  %v901_v19 = vsel %vm105_vm0, %v775_v47, 0.0 }
 0x1e5   :  { %v888_v49 = vadd.f32 %v887_v5, %v886_v7  ;;  %v895_v5 = vsel %vm105_vm0, %v772_v2, 0.0  ;;  %v12809_v2 = vmov 0.0  }
 0x1e6   :  { %1120 = vst.msk [vmem:[#allocation2 + $0x200] sm:$0xff] %vm105_vm0, %v12809_v2 }
 0x1e7   :  { %v890_v29 = vadd.f32 %v889_v60, %v888_v49  ;;  %v897_v49 = vsel %vm105_vm0, %v773_v53, 0.0  ;;  %1121 = vst.msk [vmem:[#allocation2 + $0x208] sm:$0xff] %vm105_vm0, %v12809_v2 }
 0x1e8   :  { %1122 = vst.msk [vmem:[#allocation2 + $0x210] sm:$0xff] %vm105_vm0, %v12809_v2 }
 0x1e9   :  { %v892_v33 = vadd.f32 %v891_v24, %v890_v29 }
 0x1eb   :  { %v894_v35 = vadd.f32 %v893_v45, %v892_v33 }
 0x1ed   :  { %v896_v7 = vadd.f32 %v895_v5, %v894_v35 }
 0x1ef   :  { %v898_v12 = vadd.f32 %v897_v49, %v896_v7 }
 0x1f1   :  { %v900_v42 = vadd.f32 %v899_v56, %v898_v12 }
 0x1f3   :  { %v902_v29 = vadd.f32 %v901_v19, %v900_v42  ;;  %v7057_v42 = vld [vmem:[%s12764_s4] ss:$0 sm:$0xff] }
 0x1f5   :  { %v903_v60 = vrot.slane %v902_v29, 4 }
 0x1f7   :  { %v904_v24 = vadd.f32 %v903_v60, %v902_v29 }
 0x1f9   :  { %v905_v8 = vrot.slane %v904_v24, 2 }
 0x1fb   :  { %v906_v45 = vadd.f32 %v905_v8, %v904_v24 }
 0x1fd   :  { %v907_v33 = vrot.slane %v906_v45, 1 }
 0x1ff   :  { %v908_v43 = vadd.f32 %v907_v33, %v906_v45 }
 0x201   :  { %v909_v35 = vmul.f32 %v908_v43, %v6608_v0  ;;  %v921_v0 = vld [vmem:[%s12763_s3] sm:$0x1]  ;;  %s5433_s3 = sshll.u32 %s12769_s9, 4  ;;  %s5434_s3 = int_to_ptr.hbm [resolvable:$true] %s5433_s3 }
 0x203   :  { %v910_v53 = vadd.f32 1e-05, %v909_v35 }
 0x205   :  { %5826 = vrsqrt.f32 %v910_v53  ;;  %vm917_vm3 = vweird.f32 %v910_v53 }
 0x20b   :  { %v5827_v31 = vpop.eup %5826 }
 0x20c   :  { %v912_v5 = vmul.f32 %v5827_v31, %v910_v53  ;;  %vm918_vm2 = vweird.f32 %v5827_v31 }
 0x20d   :  { %vm919_vm4 = vmor %vm917_vm3, %vm918_vm2 }
 0x20e   :  { %v913_v7 = vmul.f32 %v5827_v31, %v912_v5 }
 0x210   :  { %v914_v47 = vmul.f32 0.5, %v913_v7 }
 0x212   :  { %v915_v49 = vsub.f32 1.5, %v914_v47 }
 0x214   :  { %v916_v12 = vmul.f32 %v5827_v31, %v915_v49 }
 0x216   :  { %v920_v43 = vsel %vm919_vm4, %v5827_v31, %v916_v12 }
 0x217   :  { %v922_v56 = vmul.f32 %v921_v0, %v920_v43 }
 0x219   :  { %v7059_v19 = vperm.slane %v922_v56, 0 }
 0x21b   :  { %v983_v29 = vmul.f32 %v7059_v19, %v707_v15  ;;  %v984_v60 = vmul.f32 %v7059_v19, %v708_v32  ;;  %v985_v24 = vmul.f32 %v7059_v19, %v709_v57  ;;  %v986_v8 = vmul.f32 %v7059_v19, %v710_v63 }
 0x21c   :  { %v987_v45 = vmul.f32 %v7059_v19, %v6614_v20  ;;  %v924_v20 = vmul.f32 %v7059_v19, %v6618_v28  ;;  %v925_v63 = vmul.f32 %v7059_v19, %v6622_v10  ;;  %v926_v49 = vmul.f32 %v7059_v19, %v6626_v22 }
 0x21d   :  { %v1051_v33 = vadd.f32 %v7057_v42, %v983_v29  ;;  %v1052_v35 = vadd.f32 %v7057_v42, %v984_v60  ;;  %v1053_v53 = vadd.f32 %v7057_v42, %v985_v24  ;;  %v1054_v31 = vadd.f32 %v7057_v42, %v986_v8 }
 0x21e   :  { %v1055_v5 = vadd.f32 %v7057_v42, %v987_v45  ;;  %v927_v12 = vmul.f32 %v7059_v19, %v6630_v21  ;;  %v928_v0 = vmul.f32 %v7059_v19, %v6638_v39  ;;  %v929_v43 = vmul.f32 %v7059_v19, %v6644_v40 }
 0x21f   :  { %v1115_v15 = vmax.f32 %v1051_v33, 0.0  ;;  %v1116_v7 = vmax.f32 %v1052_v35, 0.0  ;;  %v1117_v32 = vmax.f32 %v1053_v53, 0.0  ;;  %v1118_v47 = vmax.f32 %v1054_v31, 0.0 }
 0x220   :  { %v1119_v57 = vmax.f32 %v1055_v5, 0.0  ;;  %v930_v56 = vmul.f32 %v7059_v19, %v6652_v1  ;;  %v931_v28 = vmul.f32 %v7059_v19, %v6659_v50  ;;  %v932_v10 = vmul.f32 %v7059_v19, %v6666_v54  ;;  %v13009_v5 = vld [vmem:[#allocation10_spill] sm:$0xff] }
 0x221   :  { %1182 = vst.msk [vmem:[#allocation2 + $0x1d8] sm:$0xff] %vm105_vm0, %v1115_v15  ;;  %v933_v22 = vmul.f32 %v7059_v19, %v6673_v58  ;;  %v7099_v21 = vmul.f32 %v7059_v19, %v6680_v62  ;;  %v7103_v39 = vmul.f32 %v7059_v19, %v6687_v4  ;;  %v7107_v40 = vmul.f32 %v7059_v19, %v6694_v9  ;;  %v13010_v15 = vld [vmem:[#allocation11_spill] sm:$0xff] }
 0x222   :  { %1183 = vst.msk [vmem:[#allocation2 + $0x1e0] sm:$0xff] %vm105_vm0, %v1116_v7  ;;  %v7111_v1 = vmul.f32 %v7059_v19, %v6701_v17  ;;  %v7115_v50 = vmul.f32 %v7059_v19, %v6708_v27  ;;  %v7119_v54 = vmul.f32 %v7059_v19, %v6715_v44  ;;  %v954_v58 = vmul.f32 %v7059_v19, %v6820_v16 }
 0x223   :  { %1184 = vst.msk [vmem:[#allocation2 + $0x1e8] sm:$0xff] %vm105_vm0, %v1117_v32  ;;  %v955_v62 = vmul.f32 %v7059_v19, %v6827_v25  ;;  %v956_v4 = vmul.f32 %v7059_v19, %v6834_v38  ;;  %v957_v9 = vmul.f32 %v7059_v19, %v6841_v11  ;;  %v958_v17 = vmul.f32 %v7059_v19, %v6848_v41 }
 0x224   :  { %1185 = vst.msk [vmem:[#allocation2 + $0x1f0] sm:$0xff] %vm105_vm0, %v1118_v47  ;;  %v996_v27 = vadd.f32 %v7057_v42, %v928_v0  ;;  %v997_v44 = vadd.f32 %v7057_v42, %v929_v43  ;;  %v959_v29 = vmul.f32 %v7059_v19, %v6855_v51  ;;  %v960_v16 = vmul.f32 %v7059_v19, %v6862_v30 }
 0x225   :  { %1186 = vst.msk [vmem:[#allocation2 + $0x1f8] sm:$0xff] %vm105_vm0, %v1119_v57  ;;  %v961_v25 = vmul.f32 %v7059_v19, %v6869_v34  ;;  %v962_v38 = vmul.f32 %v7059_v19, %v6876_v48  ;;  %v998_v11 = vadd.f32 %v7057_v42, %v930_v56  ;;  %v999_v41 = vadd.f32 %v7057_v42, %v931_v28 }
 0x226   :  { %v1060_v60 = vmax.f32 %v996_v27, 0.0  ;;  %v1061_v24 = vmax.f32 %v997_v44, 0.0  ;;  %v963_v8 = vmul.f32 %v7059_v19, %v6883_v6  ;;  %v964_v51 = vmul.f32 %v7059_v19, %v6890_v36 }
 0x227   :  { %v965_v30 = vmul.f32 %v7059_v19, %v6897_v46  ;;  %v966_v34 = vmul.f32 %v7059_v19, %v6904_v37  ;;  %v967_v48 = vmul.f32 %v7059_v19, %v6911_v14  ;;  %v968_v45 = vmul.f32 %v7059_v19, %v6918_v26 }
 0x228   :  { %v1062_v33 = vmax.f32 %v998_v11, 0.0  ;;  %v1063_v35 = vmax.f32 %v999_v41, 0.0  ;;  %1127 = vst.msk [vmem:[#allocation2 + $0x20] sm:$0xff] %vm105_vm0, %v1060_v60  ;;  %v969_v6 = vmul.f32 %v7059_v19, %v6925_v59  ;;  %v970_v36 = vmul.f32 %v7059_v19, %v6932_v61 }
 0x229   :  { %v971_v46 = vmul.f32 %v7059_v19, %v6939_v52  ;;  %v972_v37 = vmul.f32 %v7059_v19, %v6946_v55  ;;  %1128 = vst.msk [vmem:[#allocation2 + $0x28] sm:$0xff] %vm105_vm0, %v1061_v24  ;;  %v973_v14 = vmul.f32 %v7059_v19, %v6953_v13  ;;  %v974_v26 = vmul.f32 %v7059_v19, %v6960_v23  ;;  %v13007_v52 = vld [vmem:[#allocation8_spill] sm:$0xff]  ;;  %v13008_v55 = vld [vmem:[#allocation9_spill] sm:$0xff] }
 0x22a   :  { %v975_v59 = vmul.f32 %v7059_v19, %v6967_v18  ;;  %v976_v61 = vmul.f32 %v7059_v19, %v6974_v3  ;;  %1129 = vst.msk [vmem:[#allocation2 + $0x30] sm:$0xff] %vm105_vm0, %v1062_v33  ;;  %v977_v53 = vmul.f32 %v7059_v19, %v13007_v52  ;;  %v978_v31 = vmul.f32 %v7059_v19, %v13008_v55  ;;  %v13011_v18 = vld [vmem:[#allocation12_spill] sm:$0xff]  ;;  %v13012_v3 = vld [vmem:[#allocation13_spill] sm:$0xff] }
 0x22b   :  { %v979_v13 = vmul.f32 %v7059_v19, %v13009_v5  ;;  %v980_v23 = vmul.f32 %v7059_v19, %v13010_v15  ;;  %1130 = vst.msk [vmem:[#allocation2 + $0x38] sm:$0xff] %vm105_vm0, %v1063_v35  ;;  %v981_v7 = vmul.f32 %v7059_v19, %v13011_v18  ;;  %v982_v32 = vmul.f32 %v7059_v19, %v13012_v3 }
 0x22c   :  { %v7188_v47 = vadd.f32 %v7057_v42, %v924_v20  ;;  %v7191_v57 = vadd.f32 %v7057_v42, %v925_v63  ;;  %v994_v0 = vadd.f32 %v7057_v42, %v926_v49  ;;  %v995_v43 = vadd.f32 %v7057_v42, %v927_v12 }
 0x22d   :  { %v7196_v56 = vadd.f32 %v7057_v42, %v932_v10  ;;  %v7199_v28 = vadd.f32 %v7057_v42, %v933_v22  ;;  %v7202_v27 = vadd.f32 %v7057_v42, %v954_v58  ;;  %v7205_v44 = vadd.f32 %v7057_v42, %v955_v62 }
 0x22e   :  { %v7208_v20 = vadd.f32 %v7057_v42, %v956_v4  ;;  %v7211_v63 = vadd.f32 %v7057_v42, %v957_v9  ;;  %v7216_v12 = vadd.f32 %v7057_v42, %v958_v17  ;;  %v7219_v10 = vadd.f32 %v7057_v42, %v959_v29 }
 0x22f   :  { %v7213_v49 = vld [vmem:[#allocation2 + $0x20] sm:$0xff]  ;;  %v7222_v22 = vadd.f32 %v7057_v42, %v960_v16  ;;  %v7225_v58 = vadd.f32 %v7057_v42, %v961_v25  ;;  %v7231_v9 = vadd.f32 %v7057_v42, %v962_v38  ;;  %v7234_v11 = vadd.f32 %v7057_v42, %v963_v8 }
 0x230   :  { %v7227_v62 = vld [vmem:[#allocation2 + $0x28] sm:$0xff]  ;;  %v12812_v4 = vrot.slane %v7213_v49, 1  ;;  %v7237_v17 = vadd.f32 %v7057_v42, %v964_v51  ;;  %v7243_v25 = vadd.f32 %v7057_v42, %v965_v30  ;;  %v7246_v41 = vadd.f32 %v7057_v42, %v966_v34 }
 0x231   :  { %v7239_v29 = vld [vmem:[#allocation2 + $0x30] sm:$0xff]  ;;  %v12813_v16 = vrot.slane %v7227_v62, 1  ;;  %v7249_v60 = vadd.f32 %v7057_v42, %v967_v48  ;;  %v7255_v8 = vadd.f32 %v7057_v42, %v968_v45  ;;  %v7258_v51 = vadd.f32 %v7057_v42, %v969_v6 }
 0x232   :  { %v7251_v38 = vld [vmem:[#allocation2 + $0x38] sm:$0xff]  ;;  %v12814_v24 = vrot.slane %v7239_v29, 1  ;;  %v7261_v33 = vadd.f32 %v7057_v42, %v970_v36  ;;  %v7270_v48 = vadd.f32 %v7057_v42, %v971_v46  ;;  %v7273_v45 = vadd.f32 %v7057_v42, %v972_v37 }
 0x233   :  { %v1330_v30 = vsel %vm1319_vm5, %v12812_v4, %v12813_v16  ;;  %v12811_v34 = vrot.slane %v7251_v38, 1  ;;  %v7279_v6 = vadd.f32 %v7057_v42, %v973_v14  ;;  %v7282_v36 = vadd.f32 %v7057_v42, %v974_v26 }
 0x234   :  { %v7276_v35 = vmax.f32 %v7213_v49, %v1330_v30  ;;  %v7285_v52 = vadd.f32 %v7057_v42, %v975_v59  ;;  %v7293_v37 = vadd.f32 %v7057_v42, %v976_v61  ;;  %v7296_v55 = vadd.f32 %v7057_v42, %v977_v53  ;;  %v1657_v61 = vld [vmem:[%s12765_s5 + $0x20] sm:$0xff] }
 0x235   :  { %v1334_v46 = vsel %vm1319_vm5, %v12814_v24, %v12811_v34  ;;  %v7299_v14 = vadd.f32 %v7057_v42, %v978_v31  ;;  %v7305_v59 = vadd.f32 %v7057_v42, %v979_v13  ;;  %v7308_v5 = vadd.f32 %v7057_v42, %v980_v23 }
 0x236   :  { %v7302_v26 = vmax.f32 %v7239_v29, %v1334_v46  ;;  %v7311_v15 = vadd.f32 %v7057_v42, %v981_v7  ;;  %v1002_v53 = vadd.f32 %v7057_v42, %v7099_v21  ;;  %v7319_v31 = vadd.f32 %v7057_v42, %v982_v32  ;;  %v13015_v46 = vld [vmem:[#allocation25_spill] sm:$0xff] }
 0x237   :  { %v1058_v18 = vmax.f32 %v994_v0, 0.0  ;;  %v1059_v3 = vmax.f32 %v995_v43, 0.0  ;;  %v1003_v23 = vadd.f32 %v7057_v42, %v7103_v39  ;;  %v1056_v7 = vmax.f32 %v7188_v47, 0.0  ;;  %v13016_v0 = vld [vmem:[#allocation26_spill] sm:$0xff] }
 0x238   :  { %13013 = vst [vmem:[#allocation14_spill] sm:$0xff] %v7302_v26  ;;  %v7323_v13 = vmax.f32 %v7276_v35, %v7302_v26  ;;  %v1057_v30 = vmax.f32 %v7191_v57, 0.0  ;;  %v940_v2 = vmul.f32 %v7059_v19, %v13015_v46  ;;  %v1004_v21 = vadd.f32 %v7057_v42, %v7107_v40  ;;  %v13017_v57 = vld [vmem:[#allocation27_spill] sm:$0xff] }
 0x239   :  { %1125 = vst.msk [vmem:[#allocation2 + $0x10] sm:$0xff] %vm105_vm0, %v1058_v18  ;;  %v1064_v32 = vmax.f32 %v7196_v56, 0.0  ;;  %v941_v43 = vmul.f32 %v7059_v19, %v13016_v0  ;;  %v1005_v39 = vadd.f32 %v7057_v42, %v7111_v1  ;;  %v1065_v47 = vmax.f32 %v7199_v28, 0.0  ;;  %v13018_v56 = vld [vmem:[#allocation28_spill] sm:$0xff]  ;;  %v13019_v28 = vld [vmem:[#allocation29_spill] sm:$0xff] }
 0x23a   :  { %13014 = vst [vmem:[#allocation15_spill] sm:$0xff] %v7323_v13  ;;  %v1689_v34 = vmul.f32 %v1657_v61, %v7323_v13  ;;  %v942_v46 = vmul.f32 %v7059_v19, %v13017_v57  ;;  %v1006_v40 = vadd.f32 %v7057_v42, %v7115_v50  ;;  %v1066_v18 = vmax.f32 %v1002_v53, 0.0 }
 0x23b   :  { %1126 = vst.msk [vmem:[#allocation2 + $0x18] sm:$0xff] %vm105_vm0, %v1059_v3  ;;  %v943_v0 = vmul.f32 %v7059_v19, %v13018_v56  ;;  %v1007_v1 = vadd.f32 %v7057_v42, %v7119_v54  ;;  %v1067_v3 = vmax.f32 %v1003_v23, 0.0  ;;  %v944_v57 = vmul.f32 %v7059_v19, %v13019_v28  ;;  %v13021_v54 = vld [vmem:[#allocation31_spill] sm:$0xff] }
 0x23c   :  { %1123 = vst.msk [vmem:[#allocation2] sm:$0xff] %vm105_vm0, %v1056_v7  ;;  %v1761_v61 = vsel %vm105_vm0, %v1689_v34, 0.0  ;;  %v1008_v50 = vadd.f32 %v7057_v42, %v940_v2  ;;  %v1068_v53 = vmax.f32 %v1004_v21, 0.0  ;;  %v13020_v7 = vld [vmem:[#allocation30_spill] sm:$0xff]  ;;  %v1009_v34 = vadd.f32 %v7057_v42, %v941_v43  ;;  %v13022_v2 = vld [vmem:[#allocation32_spill] sm:$0xff]  ;;  %v13023_v43 = vld [vmem:[#allocation33_spill] sm:$0xff] }
 0x23d   :  { %1124 = vst.msk [vmem:[#allocation2 + $0x8] sm:$0xff] %vm105_vm0, %v1057_v30  ;;  %1762 = vadd.xlane.f32.xlu2 %v1761_v61  ;;  %v945_v56 = vmul.f32 %v7059_v19, %v13020_v7  ;;  %v1069_v4 = vmax.f32 %v1005_v39, 0.0  ;;  %v946_v23 = vmul.f32 %v7059_v19, %v13021_v54  ;;  %v1010_v30 = vadd.f32 %v7057_v42, %v942_v46 }
 0x23e   :  { %1131 = vst.msk [vmem:[#allocation2 + $0x40] sm:$0xff] %vm105_vm0, %v1064_v32  ;;  %v1070_v28 = vmax.f32 %v1006_v40, 0.0  ;;  %v947_v21 = vmul.f32 %v7059_v19, %v13022_v2  ;;  %v1011_v32 = vadd.f32 %v7057_v42, %v943_v0  ;;  %v1071_v7 = vmax.f32 %v1007_v1, 0.0 }
 0x23f   :  { %1132 = vst.msk [vmem:[#allocation2 + $0x48] sm:$0xff] %vm105_vm0, %v1065_v47  ;;  %v948_v39 = vmul.f32 %v7059_v19, %v13023_v43  ;;  %v1012_v47 = vadd.f32 %v7057_v42, %v944_v57  ;;  %v1072_v40 = vmax.f32 %v1008_v50, 0.0  ;;  %v1013_v2 = vadd.f32 %v7057_v42, %v945_v56  ;;  %v13025_v43 = vld [vmem:[#allocation34_spill] sm:$0xff]  ;;  %v13026_v50 = vld [vmem:[#allocation7_spill] sm:$0xff] }
 0x240   :  { %1133 = vst.msk [vmem:[#allocation2 + $0x50] sm:$0xff] %vm105_vm0, %v1066_v18  ;;  %v7368_v61 = vld [vmem:[#allocation2 + $0x10] sm:$0xff]  ;;  %v13024_v18 = vld [vmem:[#allocation6_spill] sm:$0xff]  ;;  %v950_v57 = vmul.f32 %v7059_v19, %v13025_v43  ;;  %v1014_v16 = vadd.f32 %v7057_v42, %v946_v23  ;;  %v1074_v24 = vmax.f32 %v1010_v30, 0.0 }
 0x241   :  { %1134 = vst.msk [vmem:[#allocation2 + $0x58] sm:$0xff] %vm105_vm0, %v1067_v3  ;;  %v12818_v46 = vrot.slane %v7368_v61, 1  ;;  %v949_v0 = vmul.f32 %v7059_v19, %v13024_v18  ;;  %v1073_v3 = vmax.f32 %v1009_v34, 0.0  ;;  %v1015_v18 = vadd.f32 %v7057_v42, %v947_v21  ;;  %v13028_v21 = vld [vmem:[#allocation36_spill] sm:$0xff] }
 0x242   :  { %v7374_v54 = vld [vmem:[#allocation2 + $0x18] sm:$0xff]  ;;  %1135 = vst.msk [vmem:[#allocation2 + $0x60] sm:$0xff] %vm105_vm0, %v1068_v53  ;;  %v951_v53 = vmul.f32 %v7059_v19, %v13026_v50  ;;  %v1075_v34 = vmax.f32 %v1011_v32, 0.0  ;;  %v1016_v23 = vadd.f32 %v7057_v42, %v948_v39  ;;  %v953_v50 = vmul.f32 %v7059_v19, %v13028_v21 }
 0x243   :  { %v1325_v1 = vrot.slane %v7374_v54, 1  ;;  %1136 = vst.msk [vmem:[#allocation2 + $0x68] sm:$0xff] %vm105_vm0, %v1069_v4  ;;  %v1187_v13 = vld [vmem:[#allocation2] sm:$0xff]  ;;  %v1017_v32 = vadd.f32 %v7057_v42, %v949_v0  ;;  %v1018_v39 = vadd.f32 %v7057_v42, %v950_v57  ;;  %v1079_v0 = vmax.f32 %v1015_v18, 0.0 }
 0x244   :  { %1137 = vst.msk [vmem:[#allocation2 + $0x70] sm:$0xff] %vm105_vm0, %v1070_v28  ;;  %v13027_v4 = vld [vmem:[#allocation35_spill] sm:$0xff]  ;;  %v1076_v28 = vmax.f32 %v1012_v47, 0.0  ;;  %v1080_v57 = vmax.f32 %v1016_v23, 0.0 }
 0x245   :  { %v1326_v56 = vsel %vm1319_vm5, %v12818_v46, %v1325_v1  ;;  %1138 = vst.msk [vmem:[#allocation2 + $0x78] sm:$0xff] %vm105_vm0, %v1071_v7  ;;  %v952_v43 = vmul.f32 %v7059_v19, %v13027_v4  ;;  %v7398_v26 = vld [vmem:[#allocation2 + $0x8] sm:$0xff]  ;;  %v7407_v7 = vld [vmem:[%s12765_s5 + $0x10] sm:$0xff]  ;;  %v1077_v4 = vmax.f32 %v1013_v2, 0.0  ;;  %v1019_v19 = vadd.f32 %v7057_v42, %v951_v53 }
 0x246   :  { %v1515_v30 = vmax.f32 %v7368_v61, %v1326_v56  ;;  %1139 = vst.msk [vmem:[#allocation2 + $0x80] sm:$0xff] %vm105_vm0, %v1072_v40  ;;  %v1078_v56 = vmax.f32 %v1014_v16, 0.0  ;;  %v1320_v40 = vrot.slane %v1187_v13, 1  ;;  %v1321_v21 = vrot.slane %v7398_v26, 1 }
 0x247   :  { %1140 = vst.msk [vmem:[#allocation2 + $0x88] sm:$0xff] %vm105_vm0, %v1073_v3  ;;  %v1020_v2 = vadd.f32 %v7057_v42, %v952_v43  ;;  %v1021_v16 = vadd.f32 %v7057_v42, %v953_v50  ;;  %v1082_v18 = vmax.f32 %v1018_v39, 0.0  ;;  %v7430_v43 = vld [vmem:[%s12765_s5] sm:$0xff]  ;;  %v13033_v39 = vrot.slane %v7213_v49, 1 }
 0x248   :  { %v7412_v47 = vmax.f32 %v1515_v30, %v7276_v35  ;;  %1141 = vst.msk [vmem:[#allocation2 + $0x90] sm:$0xff] %vm105_vm0, %v1074_v24  ;;  %v1081_v35 = vmax.f32 %v1017_v32, 0.0  ;;  %v1322_v24 = vsel %vm1319_vm5, %v1320_v40, %v1321_v21 }
 0x249   :  { %1142 = vst.msk [vmem:[#allocation2 + $0x98] sm:$0xff] %vm105_vm0, %v1075_v34  ;;  %v1513_v46 = vmax.f32 %v1187_v13, %v1322_v24  ;;  %v1083_v34 = vmax.f32 %v1019_v19, 0.0  ;;  %v1084_v42 = vmax.f32 %v1020_v2, 0.0  ;;  %v13032_v13 = vrot.slane %v7227_v62, 1 }
 0x24a   :  { %13029 = vst [vmem:[#allocation16_spill] sm:$0xff] %v7412_v47  ;;  %v1687_v3 = vmul.f32 %v7407_v7, %v7412_v47  ;;  %v1085_v32 = vmax.f32 %v1021_v16, 0.0  ;;  %v1088_v19 = vmax.f32 %v7208_v20, 0.0  ;;  %v1090_v20 = vmax.f32 %v7216_v12, 0.0 }
 0x24b   :  { %1143 = vst.msk [vmem:[#allocation2 + $0xa0] sm:$0xff] %vm105_vm0, %v1076_v28  ;;  %v7433_v23 = vmax.f32 %v1513_v46, %v1515_v30  ;;  %v13031_v28 = vrot.slane %v7239_v29, 1  ;;  %v7449_v30 = vld [vmem:[#allocation2 + $0x40] sm:$0xff]  ;;  %v1087_v29 = vmax.f32 %v7205_v44, 0.0  ;;  %v13034_v44 = vrot.slane %v7251_v38, 1 }
 0x24c   :  { %1144 = vst.msk [vmem:[#allocation2 + $0xa8] sm:$0xff] %vm105_vm0, %v1077_v4  ;;  %v1755_v53 = vsel %vm105_vm0, %v1687_v3, 0.0  ;;  %v1086_v4 = vmax.f32 %v7202_v27, 0.0  ;;  %v1335_v40 = vrot.slane %v7449_v30, 1  ;;  %v1092_v3 = vmax.f32 %v7222_v22, 0.0 }
 0x24d   :  { %1145 = vst.msk [vmem:[#allocation2 + $0xb0] sm:$0xff] %vm105_vm0, %v1078_v56  ;;  %1756 = vadd.xlane.f32.xlu1 %v1755_v53  ;;  %v1332_v50 = vsel %vm1319_vm5, %v13032_v13, %v13031_v28  ;;  %v1328_v56 = vsel %vm1319_vm5, %v1325_v1, %v13033_v39  ;;  %v1685_v46 = vmul.f32 %v7430_v43, %v7433_v23  ;;  %v1089_v1 = vmax.f32 %v7211_v63, 0.0 }
 0x24e   :  { %1146 = vst.msk [vmem:[#allocation2 + $0xb8] sm:$0xff] %vm105_vm0, %v1079_v0  ;;  %v1518_v27 = vmax.f32 %v7227_v62, %v1332_v50  ;;  %v1516_v0 = vmax.f32 %v7374_v54, %v1328_v56  ;;  %v1336_v2 = vsel %vm1319_vm5, %v13034_v44, %v1335_v40  ;;  %v1091_v63 = vmax.f32 %v7219_v10, 0.0  ;;  %v7476_v54 = vld [vmem:[%s12765_s5 + $0x28] sm:$0xff]  ;;  %v1201_v44 = vld [vmem:[#allocation2 + $0x70] sm:$0xff] }
 0x24f   :  { %13030 = vst [vmem:[#allocation17_spill] sm:$0xff] %v7433_v23  ;;  %v1749_v49 = vsel %vm105_vm0, %v1685_v46, 0.0  ;;  %v7469_v62 = vmax.f32 %v7251_v38, %v1336_v2  ;;  %v13036_v10 = vrot.slane %v7368_v61, 1  ;;  %v1094_v22 = vmax.f32 %v7231_v9, 0.0 }
 0x250   :  { %1147 = vst.msk [vmem:[#allocation2 + $0xc0] sm:$0xff] %vm105_vm0, %v1080_v57  ;;  %1750 = vadd.xlane.f32.xlu0 %v1749_v49  ;;  %v1093_v57 = vmax.f32 %v7225_v58, 0.0  ;;  %v7488_v16 = vmax.f32 %v1516_v0, %v1518_v27  ;;  %v1095_v24 = vmax.f32 %v7234_v11, 0.0  ;;  %v1102_v28 = vmax.f32 %v7261_v33, 0.0 }
 0x251   :  { %1148 = vst.msk [vmem:[#allocation2 + $0xc8] sm:$0xff] %vm105_vm0, %v1081_v35  ;;  %v7481_v12 = vmax.f32 %v1518_v27, %v7469_v62  ;;  %v1324_v38 = vsel %vm1319_vm5, %v1321_v21, %v13036_v10  ;;  %v7493_v35 = vld [vmem:[%s12765_s5 + $0x18] sm:$0xff]  ;;  %v1096_v21 = vmax.f32 %v7237_v17, 0.0  ;;  %v1099_v17 = vmax.f32 %v7249_v60, 0.0  ;;  %v1196_v60 = vld [vmem:[#allocation2 + $0x48] sm:$0xff] }
 0x252   :  { %1149 = vst.msk [vmem:[#allocation2 + $0xd0] sm:$0xff] %vm105_vm0, %v1082_v18  ;;  %v1688_v61 = vmul.f32 %v7493_v35, %v7488_v16  ;;  %v1514_v9 = vmax.f32 %v7398_v26, %v1324_v38  ;;  %v1097_v18 = vmax.f32 %v7243_v25, 0.0  ;;  %v7517_v26 = vld [vmem:[%s12765_s5 + $0x8] sm:$0xff]  ;;  %v1100_v25 = vmax.f32 %v7255_v8, 0.0  ;;  %v1197_v8 = vld [vmem:[#allocation2 + $0x50] sm:$0xff]  ;;  %v1202_v38 = vld [vmem:[#allocation2 + $0x78] sm:$0xff] }
 0x253   :  { %1150 = vst.msk [vmem:[#allocation2 + $0xd8] sm:$0xff] %vm105_vm0, %v1083_v34  ;;  %v1690_v58 = vmul.f32 %v7476_v54, %v7481_v12  ;;  %v1098_v34 = vmax.f32 %v7246_v41, 0.0  ;;  %v1101_v41 = vmax.f32 %v7258_v51, 0.0  ;;  %v1103_v50 = vmax.f32 %v7270_v48, 0.0 }
 0x254   :  { %1151 = vst.msk [vmem:[#allocation2 + $0xe0] sm:$0xff] %vm105_vm0, %v1084_v42  ;;  %v1758_v11 = vsel %vm105_vm0, %v1688_v61, 0.0  ;;  %v7521_v42 = vmax.f32 %v1514_v9, %v1516_v0  ;;  %v1105_v33 = vmax.f32 %v7279_v6, 0.0  ;;  %v1337_v39 = vrot.slane %v1196_v60, 1  ;;  %v1200_v0 = vld [vmem:[#allocation2 + $0x68] sm:$0xff] }
 0x255   :  { %1152 = vst.msk [vmem:[#allocation2 + $0xe8] sm:$0xff] %vm105_vm0, %v1085_v32  ;;  %v1764_v53 = vsel %vm105_vm0, %v1690_v58, 0.0  ;;  %1759 = vadd.xlane.f32.xlu1 %v1758_v11  ;;  %v1198_v32 = vld [vmem:[#allocation2 + $0x58] sm:$0xff]  ;;  %v1106_v56 = vmax.f32 %v7282_v36, 0.0  ;;  %v1339_v48 = vrot.slane %v1197_v8, 1  ;;  %v1109_v6 = vmax.f32 %v7296_v55, 0.0 }
 0x256   :  { %1153 = vst.msk [vmem:[#allocation2 + $0xf0] sm:$0xff] %vm105_vm0, %v1086_v4  ;;  %1765 = vadd.xlane.f32.xlu2 %v1764_v53  ;;  %v1686_v13 = vmul.f32 %v7517_v26, %v7521_v42  ;;  %v1104_v4 = vmax.f32 %v7273_v45, 0.0  ;;  %v1341_v46 = vrot.slane %v1198_v32, 1  ;;  %v1108_v45 = vmax.f32 %v7293_v37, 0.0  ;;  %v1204_v58 = vld [vmem:[#allocation2 + $0x88] sm:$0xff] }
 0x257   :  { %1154 = vst.msk [vmem:[#allocation2 + $0xf8] sm:$0xff] %vm105_vm0, %v1087_v29  ;;  %v1107_v29 = vmax.f32 %v7285_v52, 0.0  ;;  %v1338_v36 = vsel %vm1319_vm5, %v1335_v40, %v1337_v39  ;;  %v1111_v27 = vmax.f32 %v7305_v59, 0.0  ;;  %v1112_v37 = vmax.f32 %v7308_v5, 0.0  ;;  %v7562_v59 = vld [vmem:[%s12765_s5 + $0x40] sm:$0xff] }
 0x258   :  { %1155 = vst.msk [vmem:[#allocation2 + $0x100] sm:$0xff] %vm105_vm0, %v1088_v19  ;;  %v1752_v51 = vsel %vm105_vm0, %v1686_v13, 0.0  ;;  %v1110_v19 = vmax.f32 %v7299_v14, 0.0  ;;  %v1342_v52 = vsel %vm1319_vm5, %v1339_v48, %v1341_v46  ;;  %v1521_v55 = vmax.f32 %v7449_v30, %v1338_v36  ;;  %v1206_v13 = vld [vmem:[#allocation2 + $0x98] sm:$0xff] }
 0x259   :  { %13035 = vst [vmem:[#allocation18_spill] sm:$0xff] %v7481_v12  ;;  %1753 = vadd.xlane.f32.xlu0 %v1752_v51  ;;  %v1113_v49 = vmax.f32 %v7311_v15, 0.0  ;;  %v1523_v40 = vmax.f32 %v1197_v8, %v1342_v52  ;;  %v1114_v14 = vmax.f32 %v7319_v31, 0.0  ;;  %v1340_v30 = vsel %vm1319_vm5, %v1337_v39, %v1339_v48 }
 0x25a   :  { %1156 = vst.msk [vmem:[#allocation2 + $0x108] sm:$0xff] %vm105_vm0, %v1089_v1  ;;  %v1199_v1 = vld [vmem:[#allocation2 + $0x60] sm:$0xff]  ;;  %v1522_v2 = vmax.f32 %v1196_v60, %v1340_v30  ;;  %v1349_v9 = vrot.slane %v1202_v38, 1  ;;  %v1353_v11 = vrot.slane %v1204_v58, 1  ;;  %v1205_v60 = vld [vmem:[#allocation2 + $0x90] sm:$0xff] }
 0x25b   :  { %13037 = vst [vmem:[#allocation19_spill] sm:$0xff] %v7488_v16  ;;  %v7565_v5 = vmax.f32 %v1521_v55, %v1523_v40 }
 0x25c   :  { %1157 = vst.msk [vmem:[#allocation2 + $0x110] sm:$0xff] %vm105_vm0, %v1090_v20  ;;  %v1343_v20 = vrot.slane %v1199_v1, 1  ;;  %v7580_v10 = vmax.f32 %v7469_v62, %v1522_v2 }
 0x25d   :  { %1158 = vst.msk [vmem:[#allocation2 + $0x118] sm:$0xff] %vm105_vm0, %v1091_v63  ;;  %v1693_v15 = vmul.f32 %v7562_v59, %v7565_v5  ;;  %v1345_v63 = vrot.slane %v1200_v0, 1 }
 0x25e   :  { %1159 = vst.msk [vmem:[#allocation2 + $0x120] sm:$0xff] %vm105_vm0, %v1092_v3  ;;  %v1347_v3 = vrot.slane %v1201_v44, 1 }
 0x25f   :  { %1160 = vst.msk [vmem:[#allocation2 + $0x128] sm:$0xff] %vm105_vm0, %v1093_v57  ;;  %v1773_v31 = vsel %vm105_vm0, %v1693_v15, 0.0  ;;  %v7577_v57 = vld [vmem:[%s12765_s5 + $0x38] sm:$0xff]  ;;  %v1346_v53 = vsel %vm1319_vm5, %v1343_v20, %v1345_v63 }
 0x260   :  { %1161 = vst.msk [vmem:[#allocation2 + $0x130] sm:$0xff] %vm105_vm0, %v1094_v22  ;;  %1774 = vadd.xlane.f32.xlu2 %v1773_v31  ;;  %v1203_v22 = vld [vmem:[#allocation2 + $0x80] sm:$0xff]  ;;  %v1348_v61 = vsel %vm1319_vm5, %v1345_v63, %v1347_v3  ;;  %v1210_v63 = vld [vmem:[#allocation2 + $0xb8] sm:$0xff] }
 0x261   :  { %1162 = vst.msk [vmem:[#allocation2 + $0x138] sm:$0xff] %vm105_vm0, %v1095_v24  ;;  %v1344_v24 = vsel %vm1319_vm5, %v1341_v46, %v1343_v20  ;;  %v1526_v62 = vmax.f32 %v1200_v0, %v1348_v61  ;;  %v1209_v20 = vld [vmem:[#allocation2 + $0xb0] sm:$0xff] }
 0x262   :  { %1163 = vst.msk [vmem:[#allocation2 + $0x140] sm:$0xff] %vm105_vm0, %v1096_v21  ;;  %v1692_v21 = vmul.f32 %v7577_v57, %v7580_v10 }
 0x263   :  { %13038 = vst [vmem:[#allocation20_spill] sm:$0xff] %v7521_v42 }
 0x264   :  { %1164 = vst.msk [vmem:[#allocation2 + $0x148] sm:$0xff] %vm105_vm0, %v1097_v18  ;;  %v1351_v18 = vrot.slane %v1203_v22, 1 }
 0x265   :  { %1165 = vst.msk [vmem:[#allocation2 + $0x150] sm:$0xff] %vm105_vm0, %v1098_v34  ;;  %v1770_v34 = vsel %vm105_vm0, %v1692_v21, 0.0 }
 0x266   :  { %1166 = vst.msk [vmem:[#allocation2 + $0x158] sm:$0xff] %vm105_vm0, %v1099_v17  ;;  %v1524_v17 = vmax.f32 %v1198_v32, %v1344_v24  ;;  %1771 = vadd.xlane.f32.xlu1 %v1770_v34  ;;  %v1352_v8 = vsel %vm1319_vm5, %v1349_v9, %v1351_v18  ;;  %v7603_v32 = vld [vmem:[%s12765_s5 + $0x30] sm:$0xff] }
 0x267   :  { %1167 = vst.msk [vmem:[#allocation2 + $0x160] sm:$0xff] %vm105_vm0, %v1100_v25  ;;  %v1525_v25 = vmax.f32 %v1199_v1, %v1346_v53 }
 0x268   :  { %1168 = vst.msk [vmem:[#allocation2 + $0x168] sm:$0xff] %vm105_vm0, %v1101_v41  ;;  %v1350_v41 = vsel %vm1319_vm5, %v1347_v3, %v1349_v9  ;;  %v1363_v9 = vrot.slane %v1209_v20, 1 }
 0x269   :  { %1169 = vst.msk [vmem:[#allocation2 + $0x170] sm:$0xff] %vm105_vm0, %v1102_v28  ;;  %v1354_v28 = vsel %vm1319_vm5, %v1351_v18, %v1353_v11  ;;  %v7598_v39 = vmax.f32 %v1523_v40, %v1525_v25  ;;  %v1527_v48 = vmax.f32 %v1201_v44, %v1350_v41  ;;  %v7636_v44 = vld [vmem:[%s12765_s5 + $0x48] sm:$0xff]  ;;  %v1365_v18 = vrot.slane %v1210_v63, 1 }
 0x26a   :  { %1170 = vst.msk [vmem:[#allocation2 + $0x178] sm:$0xff] %vm105_vm0, %v1103_v50  ;;  %v7590_v50 = vld [vmem:[#allocation2 + $0xa0] sm:$0xff]  ;;  %v1529_v46 = vmax.f32 %v1203_v22, %v1354_v28 }
 0x26b   :  { %1171 = vst.msk [vmem:[#allocation2 + $0x180] sm:$0xff] %vm105_vm0, %v1104_v4  ;;  %v13041_v4 = vld [vmem:[#allocation14_spill] sm:$0xff]  ;;  %v1359_v36 = vrot.slane %v7590_v50, 1 }
 0x26c   :  { %1172 = vst.msk [vmem:[#allocation2 + $0x188] sm:$0xff] %vm105_vm0, %v1105_v33  ;;  %v7594_v51 = vmax.f32 %v13041_v4, %v1521_v55  ;;  %v7596_v33 = vmax.f32 %v1524_v17, %v1526_v62  ;;  %v1208_v55 = vld [vmem:[#allocation2 + $0xa8] sm:$0xff]  ;;  %v7624_v40 = vmax.f32 %v1527_v48, %v1529_v46 }
 0x26d   :  { %1173 = vst.msk [vmem:[#allocation2 + $0x190] sm:$0xff] %vm105_vm0, %v1106_v56  ;;  %v7608_v56 = vld [vmem:[%s12765_s5 + $0x58] sm:$0xff]  ;;  %v1361_v22 = vrot.slane %v1208_v55, 1 }
 0x26e   :  { %1174 = vst.msk [vmem:[#allocation2 + $0x198] sm:$0xff] %vm105_vm0, %v1107_v29  ;;  %v7613_v29 = vld [vmem:[%s12765_s5 + $0x50] sm:$0xff]  ;;  %v1691_v52 = vmul.f32 %v7603_v32, %v7594_v51 }
 0x26f   :  { %1175 = vst.msk [vmem:[#allocation2 + $0x1a0] sm:$0xff] %vm105_vm0, %v1108_v45  ;;  %v1355_v45 = vrot.slane %v1205_v60, 1  ;;  %v1232_v47 = vld [vmem:[#allocation2 + $0x168] sm:$0xff] }
 0x270   :  { %1176 = vst.msk [vmem:[#allocation2 + $0x1a8] sm:$0xff] %vm105_vm0, %v1109_v6  ;;  %v1357_v6 = vrot.slane %v1206_v13, 1 }
 0x271   :  { %1177 = vst.msk [vmem:[#allocation2 + $0x1b0] sm:$0xff] %vm105_vm0, %v1110_v19  ;;  %v1528_v19 = vmax.f32 %v1202_v38, %v1352_v8  ;;  %v1356_v31 = vsel %vm1319_vm5, %v1353_v11, %v1355_v45  ;;  %v7647_v38 = vld [vmem:[%s12765_s5 + $0x68] sm:$0xff]  ;;  %v1366_v8 = vsel %vm1319_vm5, %v1363_v9, %v1365_v18 }
 0x272   :  { %1178 = vst.msk [vmem:[#allocation2 + $0x1b8] sm:$0xff] %vm105_vm0, %v1111_v27  ;;  %v1696_v27 = vmul.f32 %v7608_v56, %v7596_v33  ;;  %v1360_v30 = vsel %vm1319_vm5, %v1357_v6, %v1359_v36  ;;  %v1358_v3 = vsel %vm1319_vm5, %v1355_v45, %v1357_v6  ;;  %v1530_v24 = vmax.f32 %v1204_v58, %v1356_v31  ;;  %v1212_v45 = vld [vmem:[#allocation2 + $0xc8] sm:$0xff]  ;;  %v1213_v6 = vld [vmem:[#allocation2 + $0xd0] sm:$0xff] }
 0x273   :  { %13039 = vst [vmem:[#allocation21_spill] sm:$0xff] %v7565_v5  ;;  %v7630_v1 = vmax.f32 %v1526_v62, %v1528_v19  ;;  %v1532_v61 = vmax.f32 %v1206_v13, %v1360_v30  ;;  %v1531_v11 = vmax.f32 %v1205_v60, %v1358_v3  ;;  %v7655_v62 = vmax.f32 %v1525_v25, %v1527_v48  ;;  %v7669_v25 = vld [vmem:[%s12765_s5 + $0x60] sm:$0xff]  ;;  %v7674_v48 = vld [vmem:[%s12765_s5 + $0x88] sm:$0xff] }
 0x274   :  { %1179 = vst.msk [vmem:[#allocation2 + $0x1c0] sm:$0xff] %vm105_vm0, %v1112_v37  ;;  %v1695_v37 = vmul.f32 %v7613_v29, %v7598_v39  ;;  %v1782_v15 = vsel %vm105_vm0, %v1696_v27, 0.0  ;;  %v1362_v13 = vsel %vm1319_vm5, %v1359_v36, %v1361_v22  ;;  %v1364_v36 = vsel %vm1319_vm5, %v1361_v22, %v1363_v9  ;;  %v1214_v22 = vld [vmem:[#allocation2 + $0xd8] sm:$0xff] }
 0x275   :  { %1180 = vst.msk [vmem:[#allocation2 + $0x1c8] sm:$0xff] %vm105_vm0, %v1113_v49  ;;  %v7622_v49 = vmax.f32 %v1522_v2, %v1524_v17  ;;  %1783 = vadd.xlane.f32.xlu2 %v1782_v15  ;;  %v7641_v2 = vld [vmem:[%s12765_s5 + $0x70] sm:$0xff]  ;;  %v1698_v34 = vmul.f32 %v7647_v38, %v7630_v1  ;;  %v1211_v17 = vld [vmem:[#allocation2 + $0xc0] sm:$0xff]  ;;  %v7657_v41 = vmax.f32 %v1530_v24, %v1532_v61  ;;  %v1369_v31 = vrot.slane %v1212_v45, 1 }
 0x276   :  { %1181 = vst.msk [vmem:[#allocation2 + $0x1d0] sm:$0xff] %vm105_vm0, %v1114_v14  ;;  %v1767_v14 = vsel %vm105_vm0, %v1691_v52, 0.0  ;;  %v1779_v0 = vsel %vm105_vm0, %v1695_v37, 0.0  ;;  %v1699_v53 = vmul.f32 %v7641_v2, %v7624_v40  ;;  %v7663_v4 = vmax.f32 %v1529_v46, %v1531_v11  ;;  %v7680_v46 = vld [vmem:[%s12765_s5 + $0x80] sm:$0xff] }
 0x277   :  { %13040 = vst [vmem:[#allocation22_spill] sm:$0xff] %v7580_v10  ;;  %1768 = vadd.xlane.f32.xlu0 %v1767_v14  ;;  %1780 = vadd.xlane.f32.xlu1 %v1779_v0  ;;  %v1694_v21 = vmul.f32 %v7636_v44, %v7622_v49  ;;  %v1788_v60 = vsel %vm105_vm0, %v1698_v34, 0.0  ;;  %v1367_v52 = vrot.slane %v1211_v17, 1  ;;  %v1533_v27 = vmax.f32 %v7590_v50, %v1362_v13 }
 0x278   :  { %13042 = vst [vmem:[#allocation23_spill] sm:$0xff] %v7594_v51  ;;  %v1791_v28 = vsel %vm105_vm0, %v1699_v53, 0.0  ;;  %v1535_v37 = vmax.f32 %v1209_v20, %v1366_v8  ;;  %v1697_v14 = vmul.f32 %v7669_v25, %v7655_v62  ;;  %v1702_v15 = vmul.f32 %v7674_v48, %v7657_v41 }
 0x279   :  { %13043 = vst [vmem:[#allocation24_spill] sm:$0xff] %v7596_v33  ;;  %v1776_v58 = vsel %vm105_vm0, %v1694_v21, 0.0  ;;  %v1371_v30 = vrot.slane %v1213_v6, 1  ;;  %v1534_v0 = vmax.f32 %v1208_v55, %v1364_v36  ;;  %v1701_v3 = vmul.f32 %v7680_v46, %v7663_v4 }
 0x27a   :  { %13044 = vst [vmem:[#allocation8_spill] sm:$0xff] %v7598_v39  ;;  %v7689_v21 = vmax.f32 %v1528_v19, %v1530_v24  ;;  %v7691_v53 = vmax.f32 %v1533_v27, %v1535_v37  ;;  %v1785_v50 = vsel %vm105_vm0, %v1697_v14, 0.0  ;;  %v1800_v20 = vsel %vm105_vm0, %v1702_v15, 0.0  ;;  %v7703_v19 = vld [vmem:[%s12765_s5 + $0x78] sm:$0xff]  ;;  %v7708_v24 = vld [vmem:[%s12765_s5 + $0xa0] sm:$0xff] }
 0x27b   :  { %13045 = vst [vmem:[#allocation9_spill] sm:$0xff] %v7622_v49  ;;  %v1368_v9 = vsel %vm1319_vm5, %v1365_v18, %v1367_v52  ;;  %v1372_v34 = vsel %vm1319_vm5, %v1369_v31, %v1371_v30  ;;  %v1797_v55 = vsel %vm105_vm0, %v1701_v3, 0.0  ;;  %v1216_v18 = vld [vmem:[#allocation2 + $0xe8] sm:$0xff]  ;;  %v1370_v13 = vsel %vm1319_vm5, %v1367_v52, %v1369_v31  ;;  %v1217_v31 = vld [vmem:[#allocation2 + $0xf0] sm:$0xff] }
 0x27c   :  { %13046 = vst [vmem:[#allocation10_spill] sm:$0xff] %v7624_v40  ;;  %v1373_v8 = vrot.slane %v1214_v22, 1  ;;  %v1538_v36 = vmax.f32 %v1212_v45, %v1372_v34  ;;  %v1700_v14 = vmul.f32 %v7703_v19, %v7689_v21  ;;  %v1705_v15 = vmul.f32 %v7708_v24, %v7691_v53 }
 0x27d   :  { %13047 = vst [vmem:[#allocation11_spill] sm:$0xff] %v7630_v1  ;;  %1792 = vadd.xlane.f32.xlu2 %v1791_v28  ;;  %v1215_v28 = vld [vmem:[#allocation2 + $0xe0] sm:$0xff] }
 0x27e   :  { %13048 = vst [vmem:[#allocation12_spill] sm:$0xff] %v7655_v62  ;;  %v1375_v3 = vrot.slane %v1215_v28, 1  ;;  %v1809_v45 = vsel %vm105_vm0, %v1705_v15, 0.0  ;;  %v1379_v15 = vrot.slane %v1217_v31, 1 }
 0x27f   :  { %13049 = vst [vmem:[#allocation13_spill] sm:$0xff] %v7657_v41  ;;  %1777 = vadd.xlane.f32.xlu0 %v1776_v58  ;;  %1789 = vadd.xlane.f32.xlu1 %v1788_v60  ;;  %v7697_v58 = vmax.f32 %v1532_v61, %v1534_v0  ;;  %v7714_v61 = vld [vmem:[%s12765_s5 + $0x98] sm:$0xff]  ;;  %v1536_v60 = vmax.f32 %v1210_v63, %v1368_v9  ;;  %v1794_v63 = vsel %vm105_vm0, %v1700_v14, 0.0 }
 0x280   :  { %13050 = vst [vmem:[#allocation25_spill] sm:$0xff] %v7663_v4  ;;  %v1374_v9 = vsel %vm1319_vm5, %v1371_v30, %v1373_v8  ;;  %v1219_v30 = vld [vmem:[#allocation2 + $0x100] sm:$0xff]  ;;  %v1376_v14 = vsel %vm1319_vm5, %v1373_v8, %v1375_v3 }
 0x281   :  { %13051 = vst [vmem:[#allocation26_spill] sm:$0xff] %v7689_v21  ;;  %v1704_v52 = vmul.f32 %v7714_v61, %v7697_v58  ;;  %v7724_v41 = vmax.f32 %v1536_v60, %v1538_v36  ;;  %v1383_v21 = vrot.slane %v1219_v30, 1  ;;  %v1540_v4 = vmax.f32 %v1214_v22, %v1376_v14 }
 0x282   :  { %13052 = vst [vmem:[#allocation27_spill] sm:$0xff] %v7691_v53 }
 0x283   :  { %13053 = vst [vmem:[#allocation28_spill] sm:$0xff] %v7697_v58 }
 0x284   :  { %13055 = vst [vmem:[#allocation30_spill] sm:$0xff] %v7724_v41 }
 0x285   :  { %1801 = vadd.xlane.f32.xlu2 %v1800_v20  ;;  %v1537_v20 = vmax.f32 %v1211_v17, %v1370_v13  ;;  %v1806_v17 = vsel %vm105_vm0, %v1704_v52, 0.0  ;;  %v1218_v13 = vld [vmem:[#allocation2 + $0xf8] sm:$0xff]  ;;  %v1539_v52 = vmax.f32 %v1213_v6, %v1374_v9 }
 0x286   :  { %v1381_v40 = vrot.slane %v1218_v13, 1 }
 0x287   :  { %1786 = vadd.xlane.f32.xlu0 %v1785_v50  ;;  %1798 = vadd.xlane.f32.xlu1 %v1797_v55  ;;  %v1377_v50 = vrot.slane %v1216_v18, 1  ;;  %v7722_v55 = vmax.f32 %v1531_v11, %v1533_v27  ;;  %v7730_v53 = vmax.f32 %v1535_v37, %v1537_v20  ;;  %v7736_v11 = vld [vmem:[%s12765_s5 + $0x90] sm:$0xff]  ;;  %v7741_v27 = vld [vmem:[%s12765_s5 + $0xb8] sm:$0xff] }
 0x288   :  { %v7747_v37 = vld [vmem:[%s12765_s5 + $0xb0] sm:$0xff]  ;;  %v1708_v58 = vmul.f32 %v7741_v27, %v7724_v41  ;;  %v7763_v41 = vmax.f32 %v1538_v36, %v1540_v4  ;;  %v1382_v14 = vsel %vm1319_vm5, %v1379_v15, %v1381_v40  ;;  %v7780_v36 = vld [vmem:[%s12765_s5 + $0xc8] sm:$0xff] }
 0x289   :  { %13054 = vst [vmem:[#allocation29_spill] sm:$0xff] %v7722_v55  ;;  %v1378_v34 = vsel %vm1319_vm5, %v1375_v3, %v1377_v50  ;;  %v1707_v8 = vmul.f32 %v7747_v37, %v7730_v53  ;;  %v1220_v3 = vld [vmem:[#allocation2 + $0x108] sm:$0xff]  ;;  %v1380_v9 = vsel %vm1319_vm5, %v1377_v50, %v1379_v15  ;;  %v1222_v50 = vld [vmem:[#allocation2 + $0x118] sm:$0xff]  ;;  %v1543_v1 = vmax.f32 %v1217_v31, %v1382_v14  ;;  %v1223_v15 = vld [vmem:[#allocation2 + $0x120] sm:$0xff] }
 0x28a   :  { %13056 = vst [vmem:[#allocation31_spill] sm:$0xff] %v7730_v53  ;;  %v1389_v62 = vrot.slane %v1222_v50, 1 }
 0x28b   :  { %13059 = vst [vmem:[#allocation6_spill] sm:$0xff] %v7763_v41  ;;  %v1815_v22 = vsel %vm105_vm0, %v1707_v8, 0.0  ;;  %v1542_v8 = vmax.f32 %v1216_v18, %v1380_v9 }
 0x28d   :  { %1810 = vadd.xlane.f32.xlu2 %v1809_v45  ;;  %v1703_v45 = vmul.f32 %v7736_v11, %v7722_v55 }
 0x28f   :  { %1795 = vadd.xlane.f32.xlu0 %v1794_v63  ;;  %1807 = vadd.xlane.f32.xlu1 %v1806_v17  ;;  %v1541_v63 = vmax.f32 %v1215_v28, %v1378_v34  ;;  %v7755_v17 = vmax.f32 %v1534_v0, %v1536_v60  ;;  %v1803_v6 = vsel %vm105_vm0, %v1703_v45, 0.0  ;;  %v1818_v28 = vsel %vm105_vm0, %v1708_v58, 0.0  ;;  %v7769_v0 = vld [vmem:[%s12765_s5 + $0xa8] sm:$0xff]  ;;  %v7774_v60 = vld [vmem:[%s12765_s5 + $0xd0] sm:$0xff] }
 0x290   :  { %v1384_v34 = vsel %vm1319_vm5, %v1381_v40, %v1383_v21  ;;  %v1221_v58 = vld [vmem:[#allocation2 + $0x110] sm:$0xff]  ;;  %v1385_v45 = vrot.slane %v1220_v3, 1  ;;  %v1710_v40 = vmul.f32 %v7780_v36, %v7763_v41 }
 0x291   :  { %13057 = vst [vmem:[#allocation32_spill] sm:$0xff] %v7755_v17  ;;  %v7757_v33 = vmax.f32 %v1539_v52, %v1541_v63  ;;  %v1387_v55 = vrot.slane %v1221_v58, 1 }
 0x292   :  { %v1386_v9 = vsel %vm1319_vm5, %v1383_v21, %v1385_v45  ;;  %v1824_v31 = vsel %vm105_vm0, %v1710_v40, 0.0  ;;  %v1225_v21 = vld [vmem:[#allocation2 + $0x130] sm:$0xff] }
 0x293   :  { %13058 = vst [vmem:[#allocation33_spill] sm:$0xff] %v7757_v33  ;;  %v1711_v53 = vmul.f32 %v7774_v60, %v7757_v33  ;;  %v7796_v33 = vmax.f32 %v1541_v63, %v1543_v1  ;;  %v1388_v14 = vsel %vm1319_vm5, %v1385_v45, %v1387_v55  ;;  %v7813_v63 = vld [vmem:[%s12765_s5 + $0xe0] sm:$0xff]  ;;  %v1545_v40 = vmax.f32 %v1219_v30, %v1386_v9  ;;  %v1226_v45 = vld [vmem:[#allocation2 + $0x138] sm:$0xff] }
 0x294   :  { %v1395_v49 = vrot.slane %v1225_v21, 1  ;;  %v1546_v39 = vmax.f32 %v1220_v3, %v1388_v14  ;;  %v1228_v14 = vld [vmem:[#allocation2 + $0x148] sm:$0xff] }
 0x295   :  { %1819 = vadd.xlane.f32.xlu2 %v1818_v28  ;;  %v1706_v28 = vmul.f32 %v7769_v0, %v7755_v17  ;;  %13062 = vst [vmem:[#allocation35_spill] sm:$0xff] %v7796_v33 }
 0x297   :  { %1804 = vadd.xlane.f32.xlu0 %v1803_v6  ;;  %1816 = vadd.xlane.f32.xlu1 %v1815_v22  ;;  %v1544_v6 = vmax.f32 %v1218_v13, %v1384_v34  ;;  %v7788_v22 = vmax.f32 %v1537_v20, %v1539_v52  ;;  %v1812_v18 = vsel %vm105_vm0, %v1706_v28, 0.0  ;;  %v1827_v13 = vsel %vm105_vm0, %v1711_v53, 0.0  ;;  %v7802_v20 = vld [vmem:[%s12765_s5 + $0xc0] sm:$0xff]  ;;  %v7807_v52 = vld [vmem:[%s12765_s5 + $0xe8] sm:$0xff] }
 0x298   :  { %v1390_v34 = vsel %vm1319_vm5, %v1387_v55, %v1389_v62  ;;  %v1224_v53 = vld [vmem:[#allocation2 + $0x128] sm:$0xff]  ;;  %v1391_v28 = vrot.slane %v1223_v15, 1  ;;  %v1713_v55 = vmul.f32 %v7813_v63, %v7796_v33 }
 0x299   :  { %13060 = vst [vmem:[#allocation34_spill] sm:$0xff] %v7788_v22  ;;  %v7790_v5 = vmax.f32 %v1542_v8, %v1544_v6  ;;  %v1393_v17 = vrot.slane %v1224_v53, 1 }
 0x29a   :  { %v1392_v9 = vsel %vm1319_vm5, %v1389_v62, %v1391_v28  ;;  %v1833_v3 = vsel %vm105_vm0, %v1713_v55, 0.0  ;;  %v7841_v62 = vld [vmem:[%s12765_s5 + $0xf8] sm:$0xff] }
 0x29b   :  { %13061 = vst [vmem:[#allocation7_spill] sm:$0xff] %v7790_v5  ;;  %v1714_v41 = vmul.f32 %v7807_v52, %v7790_v5  ;;  %v7829_v5 = vmax.f32 %v1544_v6, %v1546_v39  ;;  %v1548_v6 = vmax.f32 %v1222_v50, %v1392_v9 }
 0x29d   :  { %1828 = vadd.xlane.f32.xlu2 %v1827_v13  ;;  %v1709_v13 = vmul.f32 %v7802_v20, %v7788_v22  ;;  %13065 = vst [vmem:[#allocation37_spill] sm:$0xff] %v7829_v5  ;;  %v1401_v22 = vrot.slane %v1228_v14, 1  ;;  %v7872_v16 = vmax.f32 %v1546_v39, %v1548_v6 }
 0x29f   :  { %1813 = vadd.xlane.f32.xlu0 %v1812_v18  ;;  %1825 = vadd.xlane.f32.xlu1 %v1824_v31  ;;  %v1547_v18 = vmax.f32 %v1221_v58, %v1390_v34  ;;  %v7821_v31 = vmax.f32 %v1540_v4, %v1542_v8  ;;  %v1821_v30 = vsel %vm105_vm0, %v1709_v13, 0.0  ;;  %v1836_v58 = vsel %vm105_vm0, %v1714_v41, 0.0  ;;  %v7835_v4 = vld [vmem:[%s12765_s5 + $0xd8] sm:$0xff]  ;;  %v1227_v8 = vld [vmem:[#allocation2 + $0x140] sm:$0xff] }
 0x2a0   :  { %v1396_v34 = vsel %vm1319_vm5, %v1393_v17, %v1395_v49  ;;  %v1394_v13 = vsel %vm1319_vm5, %v1391_v28, %v1393_v17  ;;  %v1397_v41 = vrot.slane %v1226_v45, 1  ;;  %v1399_v33 = vrot.slane %v1227_v8, 1  ;;  %v1229_v28 = vld [vmem:[#allocation2 + $0x150] sm:$0xff] }
 0x2a1   :  { %13063 = vst [vmem:[#allocation36_spill] sm:$0xff] %v7821_v31  ;;  %v7823_v12 = vmax.f32 %v1545_v40, %v1547_v18  ;;  %v1712_v55 = vmul.f32 %v7835_v4, %v7821_v31  ;;  %v1549_v51 = vmax.f32 %v1223_v15, %v1394_v13  ;;  %v1716_v17 = vmul.f32 %v7841_v62, %v7829_v5  ;;  %v1231_v13 = vld [vmem:[#allocation2 + $0x160] sm:$0xff] }
 0x2a2   :  { %v1398_v9 = vsel %vm1319_vm5, %v1395_v49, %v1397_v41 }
 0x2a3   :  { %13064 = vst [vmem:[#allocation14_spill] sm:$0xff] %v7823_v12  ;;  %v1830_v50 = vsel %vm105_vm0, %v1712_v55, 0.0  ;;  %v1842_v15 = vsel %vm105_vm0, %v1716_v17, 0.0  ;;  %v1400_v55 = vsel %vm1319_vm5, %v1397_v41, %v1399_v33  ;;  %v1551_v49 = vmax.f32 %v1225_v21, %v1398_v9 }
 0x2a4   :  { %v1552_v5 = vmax.f32 %v1226_v45, %v1400_v55 }
 0x2a5   :  { %1837 = vadd.xlane.f32.xlu2 %v1836_v58  ;;  %v1717_v58 = vmul.f32 %v7430_v43, %v7823_v12  ;;  %v7857_v43 = vmax.f32 %v1547_v18, %v1549_v51 }
 0x2a7   :  { %1822 = vadd.xlane.f32.xlu0 %v1821_v30  ;;  %1834 = vadd.xlane.f32.xlu1 %v1833_v3  ;;  %v1550_v30 = vmax.f32 %v1224_v53, %v1396_v34  ;;  %v7849_v3 = vmax.f32 %v1543_v1, %v1545_v40  ;;  %v1845_v53 = vsel %vm105_vm0, %v1717_v58, 0.0  ;;  %v1402_v34 = vsel %vm1319_vm5, %v1399_v33, %v1401_v22  ;;  %v7863_v1 = vld [vmem:[%s12765_s5 + $0xf0] sm:$0xff]  ;;  %v1230_v40 = vld [vmem:[#allocation2 + $0x158] sm:$0xff] }
 0x2a8   :  { %v1403_v58 = vrot.slane %v1229_v28, 1  ;;  %v1553_v12 = vmax.f32 %v1227_v8, %v1402_v34  ;;  %v1405_v17 = vrot.slane %v1230_v40, 1  ;;  %v1719_v31 = vmul.f32 %v7407_v7, %v7857_v43  ;;  %v1233_v7 = vld [vmem:[#allocation2 + $0x170] sm:$0xff]  ;;  %v1234_v34 = vld [vmem:[#allocation2 + $0x178] sm:$0xff] }
 0x2a9   :  { %13066 = vst [vmem:[#allocation38_spill] sm:$0xff] %v7849_v3  ;;  %v7851_v10 = vmax.f32 %v1548_v6, %v1550_v30  ;;  %v1715_v18 = vmul.f32 %v7863_v1, %v7849_v3  ;;  %v1409_v6 = vrot.slane %v1232_v47, 1 }
 0x2aa   :  { %v7874_v33 = vmax.f32 %v1551_v49, %v1553_v12  ;;  %v1404_v41 = vsel %vm1319_vm5, %v1401_v22, %v1403_v58  ;;  %v1851_v45 = vsel %vm105_vm0, %v1719_v31, 0.0  ;;  %v1406_v39 = vsel %vm1319_vm5, %v1403_v58, %v1405_v17 }
 0x2ab   :  { %13067 = vst [vmem:[#allocation39_spill] sm:$0xff] %v7851_v10  ;;  %v1839_v21 = vsel %vm105_vm0, %v1715_v18, 0.0  ;;  %v1718_v18 = vmul.f32 %v7517_v26, %v7872_v16 }
 0x2ac   :  { %v1723_v22 = vmul.f32 %v7603_v32, %v7874_v33 }
 0x2ad   :  { %1846 = vadd.xlane.f32.xlu2 %v1845_v53  ;;  %v1407_v53 = vrot.slane %v1231_v13, 1 }
 0x2af   :  { %1831 = vadd.xlane.f32.xlu0 %v1830_v50  ;;  %1843 = vadd.xlane.f32.xlu1 %v1842_v15  ;;  %v1720_v50 = vmul.f32 %v7493_v35, %v7851_v10  ;;  %v1408_v9 = vsel %vm1319_vm5, %v1405_v17, %v1407_v53  ;;  %v7880_v35 = vmax.f32 %v1550_v30, %v1552_v5  ;;  %v1411_v30 = vrot.slane %v1233_v7, 1 }
 0x2b0   :  { %v1554_v15 = vmax.f32 %v1228_v14, %v1404_v41  ;;  %v1556_v55 = vmax.f32 %v1230_v40, %v1408_v9  ;;  %v7890_v10 = vmax.f32 %v1549_v51, %v1551_v49  ;;  %v1848_v14 = vsel %vm105_vm0, %v1718_v18, 0.0  ;;  %v1237_v41 = vld [vmem:[#allocation2 + $0x190] sm:$0xff] }
 0x2b1   :  { %v1854_v8 = vsel %vm105_vm0, %v1720_v50, 0.0  ;;  %v1413_v50 = vrot.slane %v1234_v34, 1  ;;  %v1722_v31 = vmul.f32 %v7476_v54, %v7880_v35  ;;  %v1863_v40 = vsel %vm105_vm0, %v1723_v22, 0.0  ;;  %v1236_v54 = vld [vmem:[#allocation2 + $0x188] sm:$0xff] }
 0x2b2   :  { %v7892_v58 = vmax.f32 %v1554_v15, %v1556_v55  ;;  %v1410_v26 = vsel %vm1319_vm5, %v1407_v53, %v1409_v6  ;;  %v1412_v51 = vsel %vm1319_vm5, %v1409_v6, %v1411_v30  ;;  %v5832_v53 = vld [vmem:[%s12765_s5 + $0x20] sm:$0xff]  ;;  %v1417_v18 = vrot.slane %v1236_v54, 1  ;;  %v1238_v6 = vld [vmem:[#allocation2 + $0x198] sm:$0xff] }
 0x2b3   :  { %v1414_v17 = vsel %vm1319_vm5, %v1411_v30, %v1413_v50  ;;  %v1557_v9 = vmax.f32 %v1231_v13, %v1410_v26  ;;  %v1419_v22 = vrot.slane %v1237_v41, 1  ;;  %v7910_v30 = vmax.f32 %v1552_v5, %v1554_v15 }
 0x2b4   :  { %13068 = vst [vmem:[#allocation40_spill] sm:$0xff] %v7892_v58  ;;  %v1421_v15 = vrot.slane %v1238_v6, 1 }
 0x2b5   :  { %1855 = vadd.xlane.f32.xlu2 %v1854_v8  ;;  %v1235_v8 = vld [vmem:[#allocation2 + $0x180] sm:$0xff] }
 0x2b6   :  { %v1415_v49 = vrot.slane %v1235_v8, 1 }
 0x2b7   :  { %1840 = vadd.xlane.f32.xlu0 %v1839_v21  ;;  %1852 = vadd.xlane.f32.xlu1 %v1851_v45  ;;  %v1555_v21 = vmax.f32 %v1229_v28, %v1406_v39  ;;  %v1860_v28 = vsel %vm105_vm0, %v1722_v31, 0.0  ;;  %v1559_v45 = vmax.f32 %v1233_v7, %v1414_v17  ;;  %v1721_v39 = vmul.f32 %v5832_v53, %v7890_v10 }
 0x2b8   :  { %v1558_v31 = vmax.f32 %v1232_v47, %v1412_v51  ;;  %v1416_v26 = vsel %vm1319_vm5, %v1413_v50, %v1415_v49  ;;  %v1420_v17 = vsel %vm1319_vm5, %v1417_v18, %v1419_v22  ;;  %v1418_v5 = vsel %vm1319_vm5, %v1415_v49, %v1417_v18  ;;  %v1241_v49 = vld [vmem:[#allocation2 + $0x1b0] sm:$0xff] }
 0x2b9   :  { %v7898_v32 = vmax.f32 %v1553_v12, %v1555_v21  ;;  %v1726_v12 = vmul.f32 %v7636_v44, %v7892_v58  ;;  %v7912_v13 = vmax.f32 %v1557_v9, %v1559_v45  ;;  %v1857_v7 = vsel %vm105_vm0, %v1721_v39, 0.0 }
 0x2ba   :  { %v7918_v44 = vmax.f32 %v1556_v55, %v1558_v31  ;;  %v1560_v51 = vmax.f32 %v1234_v34, %v1416_v26  ;;  %v1562_v53 = vmax.f32 %v1236_v54, %v1420_v17  ;;  %v1724_v39 = vmul.f32 %v7577_v57, %v7910_v30  ;;  %v1242_v17 = vld [vmem:[#allocation2 + $0x1b8] sm:$0xff] }
 0x2bb   :  { %v1729_v50 = vmul.f32 %v7669_v25, %v7912_v13  ;;  %v7932_v18 = vmax.f32 %v1555_v21, %v1557_v9  ;;  %v1422_v25 = vsel %vm1319_vm5, %v1419_v22, %v1421_v15  ;;  %v1427_v9 = vrot.slane %v1241_v49, 1 }
 0x2bc   :  { %v7934_v34 = vmax.f32 %v1560_v51, %v1562_v53  ;;  %v1866_v57 = vsel %vm105_vm0, %v1724_v39, 0.0 }
 0x2bd   :  { %1864 = vadd.xlane.f32.xlu2 %v1863_v40  ;;  %v1872_v40 = vsel %vm105_vm0, %v1726_v12, 0.0  ;;  %v1881_v54 = vsel %vm105_vm0, %v1729_v50, 0.0  ;;  %v1727_v50 = vmul.f32 %v7613_v29, %v7932_v18 }
 0x2be   :  { %v1732_v22 = vmul.f32 %v7703_v19, %v7934_v34 }
 0x2bf   :  { %1849 = vadd.xlane.f32.xlu0 %v1848_v14  ;;  %1861 = vadd.xlane.f32.xlu1 %v1860_v28  ;;  %v1725_v14 = vmul.f32 %v7562_v59, %v7898_v32  ;;  %v1239_v59 = vld [vmem:[#allocation2 + $0x1a0] sm:$0xff]  ;;  %v1240_v28 = vld [vmem:[#allocation2 + $0x1a8] sm:$0xff] }
 0x2c0   :  { %v1423_v55 = vrot.slane %v1239_v59, 1  ;;  %v1425_v12 = vrot.slane %v1240_v28, 1  ;;  %v7930_v58 = vpop.xlane.xlu1 %1756  ;;  %v1890_v29 = vsel %vm105_vm0, %v1732_v22, 0.0 }
 0x2c1   :  { %v1869_v47 = vsel %vm105_vm0, %v1725_v14, 0.0  ;;  %v1728_v14 = vmul.f32 %v7608_v56, %v7918_v44  ;;  %13070 = vst [vmem:[#allocation42_spill] sm:$0xff] %v7930_v58  ;;  %v7952_v58 = vmax.f32 %v1558_v31, %v1560_v51  ;;  %v1244_v51 = vld [vmem:[#allocation2 + $0x1c8] sm:$0xff] }
 0x2c2   :  { %v1424_v21 = vsel %vm1319_vm5, %v1421_v15, %v1423_v55  ;;  %v1428_v19 = vsel %vm1319_vm5, %v1425_v12, %v1427_v9 }
 0x2c3   :  { %v1878_v56 = vsel %vm105_vm0, %v1728_v14, 0.0 }
 0x2c5   :  { %1873 = vadd.xlane.f32.xlu2 %v1872_v40  ;;  %v7928_v40 = vpop.xlane.xlu2 %1762 }
 0x2c6   :  { %13069 = vst [vmem:[#allocation41_spill] sm:$0xff] %v7928_v40 }
 0x2c7   :  { %1858 = vadd.xlane.f32.xlu0 %v1857_v7  ;;  %1870 = vadd.xlane.f32.xlu1 %v1869_v47  ;;  %v1561_v7 = vmax.f32 %v1235_v8, %v1418_v5  ;;  %v1426_v8 = vsel %vm1319_vm5, %v1423_v55, %v1425_v12  ;;  %v1243_v47 = vld [vmem:[#allocation2 + $0x1c0] sm:$0xff]  ;;  %v1563_v5 = vmax.f32 %v1237_v41, %v1422_v25  ;;  %v1875_v41 = vsel %vm105_vm0, %v1727_v50, 0.0 }
 0x2c8   :  { %v1565_v39 = vmax.f32 %v1239_v59, %v1426_v8  ;;  %v1431_v40 = vrot.slane %v1243_v47, 1  ;;  %v7957_v59 = vpop.xlane.xlu0 %1750  ;;  %v7967_v31 = vpop.xlane.xlu1 %1759  ;;  %v1245_v8 = vld [vmem:[#allocation2 + $0x1d0] sm:$0xff]  ;;  %v1566_v50 = vmax.f32 %v1240_v28, %v1428_v19  ;;  %v1730_v12 = vmul.f32 %v7647_v38, %v7952_v58 }
 0x2c9   :  { %v7940_v26 = vmax.f32 %v1559_v45, %v1561_v7  ;;  %v1429_v45 = vrot.slane %v1242_v17, 1  ;;  %13071 = vst [vmem:[#allocation43_spill] sm:$0xff] %v7957_v59  ;;  %v7977_v59 = vmax.f32 %v1561_v7, %v1563_v5  ;;  %v1249_v19 = vld [vmem:[#allocation2 + $0x1f0] sm:$0xff] }
 0x2ca   :  { %v7954_v15 = vmax.f32 %v1563_v5, %v1565_v39  ;;  %13073 = vst [vmem:[#allocation45_spill] sm:$0xff] %v7967_v31  ;;  %v1247_v31 = vld [vmem:[#allocation2 + $0x1e0] sm:$0xff]  ;;  %v1884_v28 = vsel %vm105_vm0, %v1730_v12, 0.0 }
 0x2cb   :  { %v1731_v14 = vmul.f32 %v7641_v2, %v7940_v26 }
 0x2cd   :  { %1882 = vadd.xlane.f32.xlu2 %v1881_v54  ;;  %v7950_v54 = vld [vmem:[#allocation2 + $0x1d8] sm:$0xff]  ;;  %v7960_v55 = vpop.xlane.xlu2 %1765  ;;  %v1887_v2 = vsel %vm105_vm0, %v1731_v14, 0.0 }
 0x2ce   :  { %13072 = vst [vmem:[#allocation44_spill] sm:$0xff] %v7960_v55 }
 0x2cf   :  { %1867 = vadd.xlane.f32.xlu0 %v1866_v57  ;;  %1879 = vadd.xlane.f32.xlu1 %v1878_v56  ;;  %v1564_v57 = vmax.f32 %v1238_v6, %v1424_v21  ;;  %v1432_v6 = vsel %vm1319_vm5, %v1429_v45, %v1431_v40  ;;  %v1430_v56 = vsel %vm1319_vm5, %v1427_v9, %v1429_v45  ;;  %v1437_v21 = vrot.slane %v7950_v54, 1 }
 0x2d0   :  { %v1568_v22 = vmax.f32 %v1242_v17, %v1432_v6  ;;  %v1567_v14 = vmax.f32 %v1241_v49, %v1430_v56  ;;  %v7989_v5 = vpop.xlane.xlu0 %1753 }
 0x2d1   :  { %v7964_v25 = vmax.f32 %v1562_v53, %v1564_v57  ;;  %v1735_v53 = vmul.f32 %v7736_v11, %v7954_v15  ;;  %13075 = vst [vmem:[#allocation47_spill] sm:$0xff] %v7989_v5 }
 0x2d2   :  { %v7979_v9 = vmax.f32 %v1566_v50, %v1568_v22  ;;  %v7985_v11 = vmax.f32 %v1565_v39, %v1567_v14  ;;  %v1733_v39 = vmul.f32 %v7680_v46, %v7977_v59 }
 0x2d3   :  { %v1734_v55 = vmul.f32 %v7674_v48, %v7964_v25  ;;  %v1899_v17 = vsel %vm105_vm0, %v1735_v53, 0.0  ;;  %v1248_v48 = vld [vmem:[#allocation2 + $0x1e8] sm:$0xff] }
 0x2d4   :  { %13074 = vst [vmem:[#allocation46_spill] sm:$0xff] %v7985_v11  ;;  %v1441_v53 = vrot.slane %v1248_v48, 1 }
 0x2d5   :  { %1891 = vadd.xlane.f32.xlu2 %v1890_v29  ;;  %v1435_v29 = vrot.slane %v1245_v8, 1  ;;  %v1896_v49 = vsel %vm105_vm0, %v1734_v55, 0.0  ;;  %v7991_v6 = vpop.xlane.xlu2 %1774  ;;  %v1738_v55 = vmul.f32 %v7769_v0, %v7979_v9 }
 0x2d6   :  { %13076 = vst [vmem:[#allocation48_spill] sm:$0xff] %v7991_v6 }
 0x2d7   :  { %1876 = vadd.xlane.f32.xlu0 %v1875_v41  ;;  %1888 = vadd.xlane.f32.xlu1 %v1887_v2  ;;  %v1433_v41 = vrot.slane %v1244_v51, 1  ;;  %v1438_v45 = vsel %vm1319_vm5, %v1435_v29, %v1437_v21  ;;  %v1439_v2 = vrot.slane %v1247_v31, 1 }
 0x2d8   :  { %v1571_v12 = vmax.f32 %v1245_v8, %v1438_v45  ;;  %v1908_v8 = vsel %vm105_vm0, %v1738_v55, 0.0  ;;  %v8012_v45 = vld [vmem:[#allocation2 + $0x208] sm:$0xff] }
 0x2d9   :  { %v1434_v38 = vsel %vm1319_vm5, %v1431_v40, %v1433_v41  ;;  %v1436_v7 = vsel %vm1319_vm5, %v1433_v41, %v1435_v29  ;;  %v7993_v56 = vpop.xlane.xlu1 %1771  ;;  %v1737_v41 = vmul.f32 %v7708_v24, %v7985_v11  ;;  %v1251_v29 = vld [vmem:[#allocation2 + $0x200] sm:$0xff]  ;;  %v1440_v46 = vsel %vm1319_vm5, %v1437_v21, %v1439_v2  ;;  %v1250_v24 = vld [vmem:[#allocation2 + $0x1f8] sm:$0xff] }
 0x2da   :  { %13077 = vst [vmem:[#allocation49_spill] sm:$0xff] %v7993_v56  ;;  %v1569_v40 = vmax.f32 %v1243_v47, %v1434_v38  ;;  %v1893_v47 = vsel %vm105_vm0, %v1733_v39, 0.0  ;;  %v1579_v56 = vrot.slane %v8012_v45, 1 }
 0x2dc   :  { %v8003_v6 = vmax.f32 %v1569_v40, %v1571_v12 }
 0x2dd   :  { %1900 = vadd.xlane.f32.xlu2 %v1899_v17  ;;  %v1570_v17 = vmax.f32 %v1244_v51, %v1436_v7  ;;  %v1905_v51 = vsel %vm105_vm0, %v1737_v41, 0.0  ;;  %v1572_v7 = vmax.f32 %v7950_v54, %v1440_v46 }
 0x2de   :  { %13078 = vst [vmem:[#allocation50_spill] sm:$0xff] %v8003_v6  ;;  %v1741_v41 = vmul.f32 %v7802_v20, %v8003_v6 }
 0x2df   :  { %1885 = vadd.xlane.f32.xlu0 %v1884_v28  ;;  %1897 = vadd.xlane.f32.xlu1 %v1896_v49  ;;  %v1443_v28 = vrot.slane %v1249_v19, 1  ;;  %v8001_v49 = vmax.f32 %v1564_v57, %v1566_v50  ;;  %v8009_v0 = vmax.f32 %v1568_v22, %v1570_v17  ;;  %v1442_v57 = vsel %vm1319_vm5, %v1439_v2, %v1441_v53 }
 0x2e0   :  { %v1447_v50 = vrot.slane %v1251_v29, 1  ;;  %v1917_v46 = vsel %vm105_vm0, %v1741_v41, 0.0 }
 0x2e1   :  { %v1444_v38 = vsel %vm1319_vm5, %v1441_v53, %v1443_v28  ;;  %13079 = vst [vmem:[#allocation51_spill] sm:$0xff] %v8009_v0  ;;  %v1736_v21 = vmul.f32 %v7714_v61, %v8001_v49  ;;  %v1740_v54 = vmul.f32 %v7741_v27, %v8009_v0  ;;  %v8031_v53 = vmax.f32 %v1567_v14, %v1569_v40 }
 0x2e2   :  { %v1574_v39 = vmax.f32 %v1248_v48, %v1444_v38  ;;  %v1580_v20 = vsel %vm1319_vm5, %v1447_v50, %v1579_v56 }
 0x2e3   :  { %v1902_v61 = vsel %vm105_vm0, %v1736_v21, 0.0  ;;  %v1585_v14 = vmax.f32 %v1251_v29, %v1580_v20  ;;  %v1739_v21 = vmul.f32 %v7747_v37, %v8031_v53 }
 0x2e4   :  { %v8029_v48 = vmax.f32 %v1572_v7, %v1574_v39 }
 0x2e5   :  { %1909 = vadd.xlane.f32.xlu2 %v1908_v8  ;;  %v1573_v8 = vmax.f32 %v1247_v31, %v1442_v57  ;;  %v1911_v29 = vsel %vm105_vm0, %v1739_v21, 0.0 }
 0x2e6   :  { %13083 = vst [vmem:[#allocation55_spill] sm:$0xff] %v8029_v48 }
 0x2e7   :  { %1894 = vadd.xlane.f32.xlu0 %v1893_v47  ;;  %1906 = vadd.xlane.f32.xlu1 %v1905_v51  ;;  %v1445_v47 = vrot.slane %v1250_v24, 1  ;;  %v8037_v31 = vmax.f32 %v1571_v12, %v1573_v8  ;;  %v1914_v51 = vsel %vm105_vm0, %v1740_v54, 0.0  ;;  %v1744_v12 = vmul.f32 %v7835_v4, %v8029_v48  ;;  %v13153_v48 = vld [vmem:[#allocation36_spill] sm:$0xff] }
 0x2e8   :  { %v8020_v22 = vpop.xlane.xlu2 %1783 }
 0x2e9   :  { %13081 = vst [vmem:[#allocation53_spill] sm:$0xff] %v8020_v22  ;;  %v1446_v38 = vsel %vm1319_vm5, %v1443_v28, %v1445_v47  ;;  %v1448_v27 = vsel %vm1319_vm5, %v1445_v47, %v1447_v50  ;;  %v1743_v54 = vmul.f32 %v7774_v60, %v8037_v31  ;;  %v1926_v47 = vsel %vm105_vm0, %v1744_v12, 0.0 }
 0x2ea   :  { %v8016_v55 = vpop.xlane.xlu0 %1768  ;;  %v8025_v2 = vpop.xlane.xlu1 %1780  ;;  %13084 = vst [vmem:[#allocation56_spill] sm:$0xff] %v8037_v31  ;;  %v1575_v57 = vmax.f32 %v1249_v19, %v1446_v38  ;;  %v1576_v28 = vmax.f32 %v1250_v24, %v1448_v27  ;;  %v8055_v19 = vmax.f32 %v1570_v17, %v1572_v7  ;;  %v1253_v24 = vld [vmem:[#allocation2 + $0x210] sm:$0xff] }
 0x2eb   :  { %13080 = vst [vmem:[#allocation52_spill] sm:$0xff] %v8016_v55  ;;  %v1923_v4 = vsel %vm105_vm0, %v1743_v54, 0.0  ;;  %v1581_v7 = vrot.slane %v1253_v24, 1 }
 0x2ec   :  { %13082 = vst [vmem:[#allocation54_spill] sm:$0xff] %v8025_v2  ;;  %v8053_v50 = vmax.f32 %v1575_v57, %v1585_v14  ;;  %v8059_v37 = vmax.f32 %v1574_v39, %v1576_v28  ;;  %v1742_v60 = vmul.f32 %v7780_v36, %v8055_v19 }
 0x2ed   :  { %1918 = vadd.xlane.f32.xlu2 %v1917_v46  ;;  %13089 = vst [vmem:[#allocation61_spill] sm:$0xff] %v8055_v19  ;;  %v1582_v21 = vsel %vm1319_vm5, %v1579_v56, %v1581_v7 }
 0x2ee   :  { %13088 = vst [vmem:[#allocation60_spill] sm:$0xff] %v8053_v50  ;;  %v1747_v17 = vmul.f32 %v7863_v1, %v8053_v50  ;;  %v1746_v39 = vmul.f32 %v7807_v52, %v8059_v37  ;;  %v1920_v27 = vsel %vm105_vm0, %v1742_v60, 0.0  ;;  %v8083_v1 = vld [vmem:[%s12765_s5 + $0x108] sm:$0xff]  ;;  %v8088_v52 = vld [vmem:[%s12765_s5 + $0x100] sm:$0xff] }
 0x2ef   :  { %1903 = vadd.xlane.f32.xlu0 %v1902_v61  ;;  %1915 = vadd.xlane.f32.xlu1 %v1914_v51  ;;  %13090 = vst [vmem:[#allocation62_spill] sm:$0xff] %v8059_v37  ;;  %v8074_v51 = vmax.f32 %v1573_v8, %v1575_v57  ;;  %v1586_v8 = vmax.f32 %v8012_v45, %v1582_v21  ;;  %v8111_v60 = vld [vmem:[%s12765_s5 + $0x120] sm:$0xff] }
 0x2f0   :  { %v8045_v41 = vpop.xlane.xlu2 %1792  ;;  %v1935_v14 = vsel %vm105_vm0, %v1747_v17, 0.0  ;;  %v1932_v36 = vsel %vm105_vm0, %v1746_v39, 0.0  ;;  %v2056_v54 = vmul.f32 %v8083_v1, %v7521_v42  ;;  %v8116_v17 = vld [vmem:[%s12765_s5 + $0x118] sm:$0xff]  ;;  %v13139_v42 = vld [vmem:[#allocation32_spill] sm:$0xff] }
 0x2f1   :  { %13086 = vst [vmem:[#allocation58_spill] sm:$0xff] %v8045_v41  ;;  %v1745_v56 = vmul.f32 %v7813_v63, %v8074_v51  ;;  %v13145_v50 = vld [vmem:[#allocation34_spill] sm:$0xff] }
 0x2f2   :  { %v8041_v40 = vpop.xlane.xlu0 %1777  ;;  %v8049_v61 = vpop.xlane.xlu1 %1789  ;;  %13094 = vst [vmem:[#allocation66_spill] sm:$0xff] %v8074_v51  ;;  %v2122_v45 = vsel %vm105_vm0, %v2056_v54, 0.0 }
 0x2f3   :  { %13085 = vst [vmem:[#allocation57_spill] sm:$0xff] %v8041_v40  ;;  %v1929_v24 = vsel %vm105_vm0, %v1745_v56, 0.0  ;;  %v13121_v40 = vld [vmem:[#allocation12_spill] sm:$0xff] }
 0x2f4   :  { %13087 = vst [vmem:[#allocation59_spill] sm:$0xff] %v8049_v61 }
 0x2f5   :  { %1927 = vadd.xlane.f32.xlu2 %v1926_v47  ;;  %v2055_v47 = vmul.f32 %v8088_v52, %v7433_v23 }
 0x2f7   :  { %1912 = vadd.xlane.f32.xlu0 %v1911_v29  ;;  %1924 = vadd.xlane.f32.xlu1 %v1923_v4  ;;  %v8103_v4 = vmax.f32 %v1576_v28, %v1586_v8  ;;  %v2119_v63 = vsel %vm105_vm0, %v2055_v47, 0.0 }
 0x2f8   :  { %v8066_v38 = vpop.xlane.xlu2 %1801 }
 0x2f9   :  { %13092 = vst [vmem:[#allocation64_spill] sm:$0xff] %v8066_v38  ;;  %v1748_v7 = vmul.f32 %v7841_v62, %v8103_v4  ;;  %v8136_v62 = vld [vmem:[%s12765_s5 + $0x110] sm:$0xff] }
 0x2fa   :  { %v8062_v46 = vpop.xlane.xlu0 %1786  ;;  %v8070_v20 = vpop.xlane.xlu1 %1798  ;;  %13098 = vst [vmem:[#allocation70_spill] sm:$0xff] %v8103_v4 }
 0x2fb   :  { %13091 = vst [vmem:[#allocation63_spill] sm:$0xff] %v8062_v46  ;;  %v1938_v56 = vsel %vm105_vm0, %v1748_v7, 0.0  ;;  %v13105_v7 = vld [vmem:[#allocation16_spill] sm:$0xff]  ;;  %v13119_v46 = vld [vmem:[#allocation11_spill] sm:$0xff] }
 0x2fc   :  { %13093 = vst [vmem:[#allocation65_spill] sm:$0xff] %v8070_v20 }
 0x2fd   :  { %1936 = vadd.xlane.f32.xlu2 %v1935_v14 }
 0x2ff   :  { %1921 = vadd.xlane.f32.xlu0 %v1920_v27  ;;  %1933 = vadd.xlane.f32.xlu1 %v1932_v36  ;;  %v13101_v27 = vld [vmem:[#allocation15_spill] sm:$0xff] }
 0x300   :  { %v8095_v12 = vpop.xlane.xlu2 %1810  ;;  %v2059_v14 = vmul.f32 %v8111_v60, %v13101_v27  ;;  %v13103_v36 = vld [vmem:[#allocation19_spill] sm:$0xff]  ;;  %v13133_v27 = vld [vmem:[#allocation29_spill] sm:$0xff] }
 0x301   :  { %13096 = vst [vmem:[#allocation68_spill] sm:$0xff] %v8095_v12  ;;  %v2058_v8 = vmul.f32 %v8116_v17, %v13103_v36 }
 0x302   :  { %v8091_v57 = vpop.xlane.xlu0 %1795  ;;  %v8099_v29 = vpop.xlane.xlu1 %1807  ;;  %v2131_v54 = vsel %vm105_vm0, %v2059_v14, 0.0  ;;  %v2057_v14 = vmul.f32 %v8136_v62, %v13105_v7 }
 0x303   :  { %13095 = vst [vmem:[#allocation67_spill] sm:$0xff] %v8091_v57  ;;  %v2128_v47 = vsel %vm105_vm0, %v2058_v8, 0.0  ;;  %v13115_v57 = vld [vmem:[#allocation9_spill] sm:$0xff] }
 0x304   :  { %13097 = vst [vmem:[#allocation69_spill] sm:$0xff] %v8099_v29  ;;  %v2125_v12 = vsel %vm105_vm0, %v2057_v14, 0.0  ;;  %v8176_v14 = vld [vmem:[%s12765_s5 + $0x148] sm:$0xff] }
 0x305   :  { %2123 = vadd.xlane.f32.xlu2 %v2122_v45  ;;  %v8146_v45 = vld [vmem:[%s12765_s5 + $0x130] sm:$0xff] }
 0x307   :  { %1930 = vadd.xlane.f32.xlu0 %v1929_v24  ;;  %2120 = vadd.xlane.f32.xlu1 %v2119_v63  ;;  %v8141_v24 = vld [vmem:[%s12765_s5 + $0x138] sm:$0xff] }
 0x308   :  { %v8122_v39 = vpop.xlane.xlu2 %1819 }
 0x309   :  { %13100 = vst [vmem:[#allocation72_spill] sm:$0xff] %v8122_v39 }
 0x30a   :  { %v8118_v28 = vpop.xlane.xlu0 %1804  ;;  %v8126_v21 = vpop.xlane.xlu1 %1816 }
 0x30b   :  { %13099 = vst [vmem:[#allocation71_spill] sm:$0xff] %v8118_v28  ;;  %v13113_v28 = vld [vmem:[#allocation8_spill] sm:$0xff] }
 0x30c   :  { %13102 = vst [vmem:[#allocation73_spill] sm:$0xff] %v8126_v21  ;;  %v13109_v21 = vld [vmem:[#allocation23_spill] sm:$0xff] }
 0x30d   :  { %2132 = vadd.xlane.f32.xlu2 %v2131_v54 }
 0x30f   :  { %1939 = vadd.xlane.f32.xlu0 %v1938_v56  ;;  %2129 = vadd.xlane.f32.xlu1 %v2128_v47  ;;  %v13107_v56 = vld [vmem:[#allocation22_spill] sm:$0xff]  ;;  %v2061_v47 = vmul.f32 %v8146_v45, %v13109_v21 }
 0x310   :  { %v8152_v8 = vpop.xlane.xlu2 %1828  ;;  %v2062_v54 = vmul.f32 %v8141_v24, %v13107_v56  ;;  %v13127_v56 = vld [vmem:[#allocation26_spill] sm:$0xff] }
 0x311   :  { %13106 = vst [vmem:[#allocation75_spill] sm:$0xff] %v8152_v8  ;;  %v8166_v8 = vld [vmem:[%s12765_s5 + $0x128] sm:$0xff] }
 0x312   :  { %v8148_v63 = vpop.xlane.xlu0 %1813  ;;  %v8156_v39 = vpop.xlane.xlu1 %1825  ;;  %v2140_v29 = vsel %vm105_vm0, %v2062_v54, 0.0 }
 0x313   :  { %13104 = vst [vmem:[#allocation74_spill] sm:$0xff] %v8148_v63  ;;  %v2137_v63 = vsel %vm105_vm0, %v2061_v47, 0.0 }
 0x314   :  { %13108 = vst [vmem:[#allocation76_spill] sm:$0xff] %v8156_v39  ;;  %v8171_v39 = vld [vmem:[%s12765_s5 + $0x150] sm:$0xff] }
 0x315   :  { %2141 = vadd.xlane.f32.xlu2 %v2140_v29  ;;  %v13111_v29 = vld [vmem:[#allocation18_spill] sm:$0xff]  ;;  %v2065_v38 = vmul.f32 %v8171_v39, %v13113_v28 }
 0x316   :  { %v2060_v54 = vmul.f32 %v8166_v8, %v13111_v29 }
 0x317   :  { %2126 = vadd.xlane.f32.xlu0 %v2125_v12  ;;  %2138 = vadd.xlane.f32.xlu1 %v2137_v63  ;;  %v2064_v63 = vmul.f32 %v8176_v14, %v13115_v57  ;;  %v2149_v61 = vsel %vm105_vm0, %v2065_v38, 0.0 }
 0x318   :  { %v8182_v47 = vpop.xlane.xlu2 %1837  ;;  %v2134_v41 = vsel %vm105_vm0, %v2060_v54, 0.0  ;;  %v8206_v54 = vld [vmem:[%s12765_s5 + $0x160] sm:$0xff] }
 0x319   :  { %13112 = vst [vmem:[#allocation78_spill] sm:$0xff] %v8182_v47  ;;  %v8196_v47 = vld [vmem:[%s12765_s5 + $0x140] sm:$0xff] }
 0x31a   :  { %v8178_v12 = vpop.xlane.xlu0 %1822  ;;  %v8186_v20 = vpop.xlane.xlu1 %1834 }
 0x31b   :  { %13110 = vst [vmem:[#allocation77_spill] sm:$0xff] %v8178_v12  ;;  %v2146_v12 = vsel %vm105_vm0, %v2064_v63, 0.0 }
 0x31c   :  { %13114 = vst [vmem:[#allocation79_spill] sm:$0xff] %v8186_v20  ;;  %v8201_v20 = vld [vmem:[%s12765_s5 + $0x168] sm:$0xff] }
 0x31d   :  { %2150 = vadd.xlane.f32.xlu2 %v2149_v61  ;;  %v13117_v61 = vld [vmem:[#allocation21_spill] sm:$0xff]  ;;  %v2068_v22 = vmul.f32 %v8201_v20, %v13119_v46 }
 0x31e   :  { %v2063_v38 = vmul.f32 %v8196_v47, %v13117_v61  ;;  %v13125_v46 = vld [vmem:[#allocation25_spill] sm:$0xff] }
 0x31f   :  { %2135 = vadd.xlane.f32.xlu0 %v2134_v41  ;;  %2147 = vadd.xlane.f32.xlu1 %v2146_v12  ;;  %v2067_v12 = vmul.f32 %v8206_v54, %v13121_v40  ;;  %v2158_v5 = vsel %vm105_vm0, %v2068_v22, 0.0 }
 0x320   :  { %v8212_v63 = vpop.xlane.xlu2 %1846  ;;  %v2143_v55 = vsel %vm105_vm0, %v2063_v38, 0.0  ;;  %v8236_v38 = vld [vmem:[%s12765_s5 + $0x178] sm:$0xff] }
 0x321   :  { %13118 = vst [vmem:[#allocation81_spill] sm:$0xff] %v8212_v63  ;;  %v8226_v63 = vld [vmem:[%s12765_s5 + $0x158] sm:$0xff] }
 0x322   :  { %v8208_v41 = vpop.xlane.xlu0 %1831  ;;  %v8216_v2 = vpop.xlane.xlu1 %1843 }
 0x323   :  { %13116 = vst [vmem:[#allocation80_spill] sm:$0xff] %v8208_v41  ;;  %v2155_v41 = vsel %vm105_vm0, %v2067_v12, 0.0 }
 0x324   :  { %13120 = vst [vmem:[#allocation82_spill] sm:$0xff] %v8216_v2  ;;  %v8231_v2 = vld [vmem:[%s12765_s5 + $0x180] sm:$0xff] }
 0x325   :  { %2159 = vadd.xlane.f32.xlu2 %v2158_v5  ;;  %v13123_v5 = vld [vmem:[#allocation24_spill] sm:$0xff]  ;;  %v2071_v28 = vmul.f32 %v8231_v2, %v13125_v46 }
 0x326   :  { %v2066_v22 = vmul.f32 %v8226_v63, %v13123_v5  ;;  %v13131_v46 = vld [vmem:[#allocation28_spill] sm:$0xff] }
 0x327   :  { %2144 = vadd.xlane.f32.xlu0 %v2143_v55  ;;  %2156 = vadd.xlane.f32.xlu1 %v2155_v41  ;;  %v2070_v41 = vmul.f32 %v8236_v38, %v13127_v56  ;;  %v2167_v57 = vsel %vm105_vm0, %v2071_v28, 0.0 }
 0x328   :  { %v8242_v12 = vpop.xlane.xlu2 %1855  ;;  %v2152_v61 = vsel %vm105_vm0, %v2066_v22, 0.0  ;;  %v8266_v22 = vld [vmem:[%s12765_s5 + $0x190] sm:$0xff] }
 0x329   :  { %13124 = vst [vmem:[#allocation84_spill] sm:$0xff] %v8242_v12  ;;  %v8256_v12 = vld [vmem:[%s12765_s5 + $0x170] sm:$0xff] }
 0x32a   :  { %v8238_v55 = vpop.xlane.xlu0 %1840  ;;  %v8246_v40 = vpop.xlane.xlu1 %1852 }
 0x32b   :  { %13122 = vst [vmem:[#allocation83_spill] sm:$0xff] %v8238_v55  ;;  %v2164_v55 = vsel %vm105_vm0, %v2070_v41, 0.0 }
 0x32c   :  { %13126 = vst [vmem:[#allocation85_spill] sm:$0xff] %v8246_v40  ;;  %v8261_v40 = vld [vmem:[%s12765_s5 + $0x198] sm:$0xff] }
 0x32d   :  { %2168 = vadd.xlane.f32.xlu2 %v2167_v57  ;;  %v13129_v57 = vld [vmem:[#allocation10_spill] sm:$0xff]  ;;  %v2074_v56 = vmul.f32 %v8261_v40, %v13131_v46  ;;  %v13137_v46 = vld [vmem:[#allocation31_spill] sm:$0xff] }
 0x32f   :  { %2153 = vadd.xlane.f32.xlu0 %v2152_v61  ;;  %2165 = vadd.xlane.f32.xlu1 %v2164_v55  ;;  %v2069_v61 = vmul.f32 %v8256_v12, %v13129_v57  ;;  %v2073_v55 = vmul.f32 %v8266_v22, %v13133_v27  ;;  %v2176_v21 = vsel %vm105_vm0, %v2074_v56, 0.0 }
 0x330   :  { %v8272_v41 = vpop.xlane.xlu2 %1864 }
 0x331   :  { %13130 = vst [vmem:[#allocation87_spill] sm:$0xff] %v8272_v41  ;;  %v2161_v29 = vsel %vm105_vm0, %v2069_v61, 0.0  ;;  %v8286_v41 = vld [vmem:[%s12765_s5 + $0x188] sm:$0xff] }
 0x332   :  { %v8268_v28 = vpop.xlane.xlu0 %1849  ;;  %v8276_v5 = vpop.xlane.xlu1 %1861  ;;  %v8296_v61 = vld [vmem:[%s12765_s5 + $0x1a8] sm:$0xff] }
 0x333   :  { %13128 = vst [vmem:[#allocation86_spill] sm:$0xff] %v8268_v28  ;;  %v2173_v28 = vsel %vm105_vm0, %v2073_v55, 0.0 }
 0x334   :  { %13132 = vst [vmem:[#allocation88_spill] sm:$0xff] %v8276_v5  ;;  %v8291_v5 = vld [vmem:[%s12765_s5 + $0x1b0] sm:$0xff] }
 0x335   :  { %2177 = vadd.xlane.f32.xlu2 %v2176_v21  ;;  %v13135_v21 = vld [vmem:[#allocation13_spill] sm:$0xff]  ;;  %v2077_v27 = vmul.f32 %v8291_v5, %v13137_v46  ;;  %v13143_v46 = vld [vmem:[#allocation6_spill] sm:$0xff] }
 0x337   :  { %2162 = vadd.xlane.f32.xlu0 %v2161_v29  ;;  %2174 = vadd.xlane.f32.xlu1 %v2173_v28  ;;  %v2072_v29 = vmul.f32 %v8286_v41, %v13135_v21  ;;  %v2076_v28 = vmul.f32 %v8296_v61, %v13139_v42  ;;  %v2185_v36 = vsel %vm105_vm0, %v2077_v27, 0.0 }
 0x338   :  { %v8302_v55 = vpop.xlane.xlu2 %1873 }
 0x339   :  { %13136 = vst [vmem:[#allocation90_spill] sm:$0xff] %v8302_v55  ;;  %v2170_v7 = vsel %vm105_vm0, %v2072_v29, 0.0  ;;  %v8316_v55 = vld [vmem:[%s12765_s5 + $0x1a0] sm:$0xff] }
 0x33a   :  { %v8298_v56 = vpop.xlane.xlu0 %1858  ;;  %v8306_v57 = vpop.xlane.xlu1 %1870  ;;  %v8326_v29 = vld [vmem:[%s12765_s5 + $0x1c0] sm:$0xff] }
 0x33b   :  { %13134 = vst [vmem:[#allocation89_spill] sm:$0xff] %v8298_v56  ;;  %v2182_v56 = vsel %vm105_vm0, %v2076_v28, 0.0 }
 0x33c   :  { %13138 = vst [vmem:[#allocation91_spill] sm:$0xff] %v8306_v57  ;;  %v8321_v57 = vld [vmem:[%s12765_s5 + $0x1c8] sm:$0xff] }
 0x33d   :  { %2186 = vadd.xlane.f32.xlu2 %v2185_v36  ;;  %v13141_v36 = vld [vmem:[#allocation27_spill] sm:$0xff]  ;;  %v2080_v42 = vmul.f32 %v8321_v57, %v13143_v46 }
 0x33e   :  { %v13151_v46 = vld [vmem:[#allocation35_spill] sm:$0xff] }
 0x33f   :  { %2171 = vadd.xlane.f32.xlu0 %v2170_v7  ;;  %2183 = vadd.xlane.f32.xlu1 %v2182_v56  ;;  %v2075_v7 = vmul.f32 %v8316_v55, %v13141_v36  ;;  %v2079_v56 = vmul.f32 %v8326_v29, %v13145_v50  ;;  %v2194_v23 = vsel %vm105_vm0, %v2080_v42, 0.0 }
 0x340   :  { %v8332_v28 = vpop.xlane.xlu2 %1882 }
 0x341   :  { %13142 = vst [vmem:[#allocation93_spill] sm:$0xff] %v8332_v28  ;;  %v2179_v4 = vsel %vm105_vm0, %v2075_v7, 0.0  ;;  %v8346_v28 = vld [vmem:[%s12765_s5 + $0x1b8] sm:$0xff] }
 0x342   :  { %v8328_v27 = vpop.xlane.xlu0 %1867  ;;  %v8336_v21 = vpop.xlane.xlu1 %1879  ;;  %v8356_v7 = vld [vmem:[%s12765_s5 + $0x1d8] sm:$0xff] }
 0x343   :  { %13140 = vst [vmem:[#allocation92_spill] sm:$0xff] %v8328_v27  ;;  %v2191_v27 = vsel %vm105_vm0, %v2079_v56, 0.0 }
 0x344   :  { %13144 = vst [vmem:[#allocation94_spill] sm:$0xff] %v8336_v21  ;;  %v8351_v21 = vld [vmem:[%s12765_s5 + $0x1e0] sm:$0xff] }
 0x345   :  { %2195 = vadd.xlane.f32.xlu2 %v2194_v23  ;;  %13146 = vst [vmem:[#allocation95_spill] sm:$0xff] %v8351_v21  ;;  %v13149_v23 = vld [vmem:[#allocation30_spill] sm:$0xff]  ;;  %v2083_v50 = vmul.f32 %v8351_v21, %v13151_v46  ;;  %v13157_v46 = vld [vmem:[#allocation37_spill] sm:$0xff] }
 0x346   :  { %13147 = vst [vmem:[#allocation96_spill] sm:$0xff] %v8356_v7 }
 0x347   :  { %2180 = vadd.xlane.f32.xlu0 %v2179_v4  ;;  %2192 = vadd.xlane.f32.xlu1 %v2191_v27  ;;  %v2078_v4 = vmul.f32 %v8346_v28, %v13149_v23  ;;  %v2082_v27 = vmul.f32 %v8356_v7, %v13153_v48  ;;  %v2203_v37 = vsel %vm105_vm0, %v2083_v50, 0.0 }
 0x348   :  { %v8362_v56 = vpop.xlane.xlu2 %1891 }
 0x349   :  { %13150 = vst [vmem:[#allocation98_spill] sm:$0xff] %v8362_v56  ;;  %v2188_v51 = vsel %vm105_vm0, %v2078_v4, 0.0  ;;  %v8376_v56 = vld [vmem:[%s12765_s5 + $0x1d0] sm:$0xff] }
 0x34a   :  { %v8358_v42 = vpop.xlane.xlu0 %1876  ;;  %v8366_v36 = vpop.xlane.xlu1 %1888  ;;  %v8386_v4 = vld [vmem:[%s12765_s5 + $0x1f0] sm:$0xff] }
 0x34b   :  { %13148 = vst [vmem:[#allocation97_spill] sm:$0xff] %v8358_v42  ;;  %v2200_v42 = vsel %vm105_vm0, %v2082_v27, 0.0 }
 0x34c   :  { %13152 = vst [vmem:[#allocation99_spill] sm:$0xff] %v8366_v36  ;;  %v8381_v36 = vld [vmem:[%s12765_s5 + $0x1f8] sm:$0xff] }
 0x34d   :  { %2204 = vadd.xlane.f32.xlu2 %v2203_v37  ;;  %v13155_v37 = vld [vmem:[#allocation33_spill] sm:$0xff]  ;;  %v2086_v48 = vmul.f32 %v8381_v36, %v13157_v46 }
 0x34f   :  { %2189 = vadd.xlane.f32.xlu0 %v2188_v51  ;;  %2201 = vadd.xlane.f32.xlu1 %v2200_v42  ;;  %v2081_v51 = vmul.f32 %v8376_v56, %v13155_v37  ;;  %v2085_v42 = vmul.f32 %v8386_v4, %v7849_v3  ;;  %v2212_v21 = vsel %vm105_vm0, %v2086_v48, 0.0  ;;  %v2089_v48 = vmul.f32 %v8136_v62, %v7857_v43 }
 0x350   :  { %v8392_v27 = vpop.xlane.xlu2 %1900 }
 0x351   :  { %13156 = vst [vmem:[#allocation101_spill] sm:$0xff] %v8392_v27  ;;  %v2197_v7 = vsel %vm105_vm0, %v2081_v51, 0.0  ;;  %v8406_v27 = vld [vmem:[%s12765_s5 + $0x1e8] sm:$0xff] }
 0x352   :  { %v8388_v50 = vpop.xlane.xlu0 %1885  ;;  %v8396_v23 = vpop.xlane.xlu1 %1897 }
 0x353   :  { %13154 = vst [vmem:[#allocation100_spill] sm:$0xff] %v8388_v50  ;;  %v2209_v50 = vsel %vm105_vm0, %v2085_v42, 0.0  ;;  %v2221_v42 = vsel %vm105_vm0, %v2089_v48, 0.0 }
 0x354   :  { %13158 = vst [vmem:[#allocation102_spill] sm:$0xff] %v8396_v23  ;;  %v13160_v23 = vld [vmem:[#allocation7_spill] sm:$0xff] }
 0x355   :  { %2213 = vadd.xlane.f32.xlu2 %v2212_v21  ;;  %v2084_v37 = vmul.f32 %v8406_v27, %v13160_v23  ;;  %v2088_v21 = vmul.f32 %v8083_v1, %v7872_v16 }
 0x357   :  { %2198 = vadd.xlane.f32.xlu0 %v2197_v7  ;;  %2210 = vadd.xlane.f32.xlu1 %v2209_v50  ;;  %v2206_v51 = vsel %vm105_vm0, %v2084_v37, 0.0  ;;  %v2218_v50 = vsel %vm105_vm0, %v2088_v21, 0.0  ;;  %v2091_v37 = vmul.f32 %v8111_v60, %v7890_v10 }
 0x358   :  { %v8412_v3 = vpop.xlane.xlu2 %1909 }
 0x359   :  { %13161 = vst [vmem:[#allocation104_spill] sm:$0xff] %v8412_v3  ;;  %v13164_v3 = vld [vmem:[#allocation14_spill] sm:$0xff] }
 0x35a   :  { %v8408_v46 = vpop.xlane.xlu0 %1894  ;;  %v8416_v7 = vpop.xlane.xlu1 %1906  ;;  %v2087_v23 = vmul.f32 %v8088_v52, %v13164_v3 }
 0x35b   :  { %13159 = vst [vmem:[#allocation103_spill] sm:$0xff] %v8408_v46 }
 0x35c   :  { %13162 = vst [vmem:[#allocation105_spill] sm:$0xff] %v8416_v7  ;;  %v2092_v7 = vmul.f32 %v8166_v8, %v7880_v35  ;;  %v2215_v48 = vsel %vm105_vm0, %v2087_v23, 0.0  ;;  %v2094_v23 = vmul.f32 %v8141_v24, %v7910_v30 }
 0x35d   :  { %2222 = vadd.xlane.f32.xlu2 %v2221_v42  ;;  %v13168_v42 = vld [vmem:[#allocation39_spill] sm:$0xff] }
 0x35e   :  { %v2230_v21 = vsel %vm105_vm0, %v2092_v7, 0.0 }
 0x35f   :  { %2207 = vadd.xlane.f32.xlu0 %v2206_v51  ;;  %2219 = vadd.xlane.f32.xlu1 %v2218_v50  ;;  %v2227_v51 = vsel %vm105_vm0, %v2091_v37, 0.0  ;;  %v2090_v50 = vmul.f32 %v8116_v17, %v13168_v42 }
 0x360   :  { %v8427_v62 = vpop.xlane.xlu2 %1918 }
 0x361   :  { %13165 = vst [vmem:[#allocation107_spill] sm:$0xff] %v8427_v62  ;;  %v2095_v62 = vmul.f32 %v8196_v47, %v7898_v32  ;;  %v2224_v7 = vsel %vm105_vm0, %v2090_v50, 0.0 }
 0x362   :  { %v8423_v46 = vpop.xlane.xlu0 %1903  ;;  %v8431_v1 = vpop.xlane.xlu1 %1915 }
 0x363   :  { %13163 = vst [vmem:[#allocation106_spill] sm:$0xff] %v8423_v46  ;;  %v2239_v37 = vsel %vm105_vm0, %v2095_v62, 0.0  ;;  %v2097_v62 = vmul.f32 %v8171_v39, %v7932_v18 }
 0x364   :  { %13166 = vst [vmem:[#allocation108_spill] sm:$0xff] %v8431_v1 }
 0x365   :  { %2231 = vadd.xlane.f32.xlu2 %v2230_v21  ;;  %v2093_v21 = vmul.f32 %v8146_v45, %v7874_v33 }
 0x367   :  { %2216 = vadd.xlane.f32.xlu0 %v2215_v48  ;;  %2228 = vadd.xlane.f32.xlu1 %v2227_v51  ;;  %v2236_v48 = vsel %vm105_vm0, %v2094_v23, 0.0  ;;  %v2098_v51 = vmul.f32 %v8226_v63, %v7918_v44  ;;  %v2233_v50 = vsel %vm105_vm0, %v2093_v21, 0.0  ;;  %v2100_v21 = vmul.f32 %v8201_v20, %v7952_v58 }
 0x368   :  { %v8442_v8 = vpop.xlane.xlu2 %1927 }
 0x369   :  { %13169 = vst [vmem:[#allocation39_spill] sm:$0xff] %v8442_v8  ;;  %v2248_v23 = vsel %vm105_vm0, %v2098_v51, 0.0 }
 0x36a   :  { %v8438_v52 = vpop.xlane.xlu0 %1912  ;;  %v8446_v60 = vpop.xlane.xlu1 %1924 }
 0x36b   :  { %13167 = vst [vmem:[#allocation109_spill] sm:$0xff] %v8438_v52 }
 0x36c   :  { %13170 = vst [vmem:[#allocation110_spill] sm:$0xff] %v8446_v60 }
 0x36d   :  { %2240 = vadd.xlane.f32.xlu2 %v2239_v37  ;;  %v13175_v37 = vld [vmem:[#allocation40_spill] sm:$0xff] }
 0x36f   :  { %2225 = vadd.xlane.f32.xlu0 %v2224_v7  ;;  %2237 = vadd.xlane.f32.xlu1 %v2236_v48  ;;  %v2245_v7 = vsel %vm105_vm0, %v2097_v62, 0.0  ;;  %v2096_v48 = vmul.f32 %v8176_v14, %v13175_v37 }
 0x370   :  { %v8457_v47 = vpop.xlane.xlu2 %1936 }
 0x371   :  { %13172 = vst [vmem:[#allocation112_spill] sm:$0xff] %v8457_v47  ;;  %v2101_v47 = vmul.f32 %v8256_v12, %v7940_v26  ;;  %v2242_v51 = vsel %vm105_vm0, %v2096_v48, 0.0 }
 0x372   :  { %v8453_v17 = vpop.xlane.xlu0 %1921  ;;  %v8461_v24 = vpop.xlane.xlu1 %1933 }
 0x373   :  { %13171 = vst [vmem:[#allocation111_spill] sm:$0xff] %v8453_v17  ;;  %v2257_v62 = vsel %vm105_vm0, %v2101_v47, 0.0  ;;  %v2103_v47 = vmul.f32 %v8231_v2, %v7977_v59 }
 0x374   :  { %13173 = vst [vmem:[#allocation113_spill] sm:$0xff] %v8461_v24  ;;  %v13195_v24 = vld [vmem:[#allocation95_spill] sm:$0xff] }
 0x375   :  { %2249 = vadd.xlane.f32.xlu2 %v2248_v23  ;;  %v2099_v23 = vmul.f32 %v8206_v54, %v7912_v13 }
 0x377   :  { %2234 = vadd.xlane.f32.xlu0 %v2233_v50  ;;  %2246 = vadd.xlane.f32.xlu1 %v2245_v7  ;;  %v2254_v50 = vsel %vm105_vm0, %v2100_v21, 0.0  ;;  %v2104_v7 = vmul.f32 %v8286_v41, %v7964_v25  ;;  %v2251_v48 = vsel %vm105_vm0, %v2099_v23, 0.0  ;;  %v2106_v23 = vmul.f32 %v8261_v40, %v8001_v49 }
 0x378   :  { %v8472_v63 = vpop.xlane.xlu2 %2123 }
 0x379   :  { %13176 = vst [vmem:[#allocation40_spill] sm:$0xff] %v8472_v63  ;;  %v2266_v21 = vsel %vm105_vm0, %v2104_v7, 0.0 }
 0x37a   :  { %v8468_v45 = vpop.xlane.xlu0 %1930  ;;  %v8476_v39 = vpop.xlane.xlu1 %2120 }
 0x37b   :  { %13174 = vst [vmem:[#allocation114_spill] sm:$0xff] %v8468_v45 }
 0x37c   :  { %13177 = vst [vmem:[#allocation115_spill] sm:$0xff] %v8476_v39 }
 0x37d   :  { %2258 = vadd.xlane.f32.xlu2 %v2257_v62  ;;  %v2102_v62 = vmul.f32 %v8236_v38, %v7934_v34 }
 0x37f   :  { %2243 = vadd.xlane.f32.xlu0 %v2242_v51  ;;  %2255 = vadd.xlane.f32.xlu1 %v2254_v50  ;;  %v2263_v51 = vsel %vm105_vm0, %v2103_v47, 0.0  ;;  %v2107_v50 = vmul.f32 %v8316_v55, %v7985_v11  ;;  %v2260_v7 = vsel %vm105_vm0, %v2102_v62, 0.0  ;;  %v2109_v62 = vmul.f32 %v8291_v5, %v8031_v53 }
 0x380   :  { %v8487_v12 = vpop.xlane.xlu2 %2132 }
 0x381   :  { %13179 = vst [vmem:[#allocation117_spill] sm:$0xff] %v8487_v12  ;;  %v2275_v47 = vsel %vm105_vm0, %v2107_v50, 0.0 }
 0x382   :  { %v8483_v14 = vpop.xlane.xlu0 %1939  ;;  %v8491_v20 = vpop.xlane.xlu1 %2129 }
 0x383   :  { %13178 = vst [vmem:[#allocation116_spill] sm:$0xff] %v8483_v14 }
 0x384   :  { %13180 = vst [vmem:[#allocation118_spill] sm:$0xff] %v8491_v20 }
 0x385   :  { %2267 = vadd.xlane.f32.xlu2 %v2266_v21  ;;  %v2105_v21 = vmul.f32 %v8266_v22, %v7954_v15 }
 0x387   :  { %2252 = vadd.xlane.f32.xlu0 %v2251_v48  ;;  %2264 = vadd.xlane.f32.xlu1 %v2263_v51  ;;  %v2272_v48 = vsel %vm105_vm0, %v2106_v23, 0.0  ;;  %v2110_v51 = vmul.f32 %v8346_v28, %v8009_v0  ;;  %v2269_v50 = vsel %vm105_vm0, %v2105_v21, 0.0  ;;  %v2112_v21 = vmul.f32 %v8321_v57, %v8055_v19 }
 0x388   :  { %v8502_v41 = vpop.xlane.xlu2 %2141 }
 0x389   :  { %13182 = vst [vmem:[#allocation120_spill] sm:$0xff] %v8502_v41  ;;  %v2284_v23 = vsel %vm105_vm0, %v2110_v51, 0.0  ;;  %v13220_v41 = vld [vmem:[#allocation21_spill] sm:$0xff] }
 0x38a   :  { %v8498_v54 = vpop.xlane.xlu0 %2126  ;;  %v8506_v2 = vpop.xlane.xlu1 %2138 }
 0x38b   :  { %13181 = vst [vmem:[#allocation119_spill] sm:$0xff] %v8498_v54  ;;  %v13226_v54 = vld [vmem:[#allocation24_spill] sm:$0xff] }
 0x38c   :  { %13183 = vst [vmem:[#allocation121_spill] sm:$0xff] %v8506_v2 }
 0x38d   :  { %2276 = vadd.xlane.f32.xlu2 %v2275_v47  ;;  %v2108_v47 = vmul.f32 %v8296_v61, %v7979_v9 }
 0x38f   :  { %2261 = vadd.xlane.f32.xlu0 %v2260_v7  ;;  %2273 = vadd.xlane.f32.xlu1 %v2272_v48  ;;  %v2281_v7 = vsel %vm105_vm0, %v2109_v62, 0.0  ;;  %v2113_v48 = vmul.f32 %v8376_v56, %v8037_v31  ;;  %v2278_v51 = vsel %vm105_vm0, %v2108_v47, 0.0  ;;  %v13194_v47 = vld [vmem:[#allocation66_spill] sm:$0xff]  ;;  %v13259_v31 = vld [vmem:[#allocation33_spill] sm:$0xff] }
 0x390   :  { %v8517_v55 = vpop.xlane.xlu2 %2150 }
 0x391   :  { %13185 = vst [vmem:[#allocation123_spill] sm:$0xff] %v8517_v55  ;;  %v2293_v62 = vsel %vm105_vm0, %v2113_v48, 0.0  ;;  %v2115_v48 = vmul.f32 %v13195_v24, %v13194_v47 }
 0x392   :  { %v8513_v38 = vpop.xlane.xlu0 %2135  ;;  %v8521_v40 = vpop.xlane.xlu1 %2147 }
 0x393   :  { %13184 = vst [vmem:[#allocation122_spill] sm:$0xff] %v8513_v38  ;;  %v13224_v38 = vld [vmem:[#allocation12_spill] sm:$0xff] }
 0x394   :  { %13186 = vst [vmem:[#allocation124_spill] sm:$0xff] %v8521_v40  ;;  %v13218_v40 = vld [vmem:[#allocation9_spill] sm:$0xff] }
 0x395   :  { %2285 = vadd.xlane.f32.xlu2 %v2284_v23  ;;  %v2111_v23 = vmul.f32 %v8326_v29, %v8003_v6  ;;  %v8561_v29 = vld [vmem:[%s12765_s5 + $0x200] sm:$0xff] }
 0x397   :  { %2270 = vadd.xlane.f32.xlu0 %v2269_v50  ;;  %2282 = vadd.xlane.f32.xlu1 %v2281_v7  ;;  %v2290_v50 = vsel %vm105_vm0, %v2112_v21, 0.0  ;;  %v13192_v7 = vld [vmem:[#allocation62_spill] sm:$0xff] }
 0x398   :  { %v8532_v28 = vpop.xlane.xlu2 %2159  ;;  %v2116_v14 = vmul.f32 %v8406_v27, %v13192_v7  ;;  %v13251_v7 = vld [vmem:[#allocation30_spill] sm:$0xff] }
 0x399   :  { %13188 = vst [vmem:[#allocation126_spill] sm:$0xff] %v8532_v28 }
 0x39a   :  { %v8528_v22 = vpop.xlane.xlu0 %2144  ;;  %v8536_v5 = vpop.xlane.xlu1 %2156  ;;  %v2302_v21 = vsel %vm105_vm0, %v2116_v14, 0.0 }
 0x39b   :  { %13187 = vst [vmem:[#allocation125_spill] sm:$0xff] %v8528_v22 }
 0x39c   :  { %13189 = vst [vmem:[#allocation127_spill] sm:$0xff] %v8536_v5 }
 0x39d   :  { %2294 = vadd.xlane.f32.xlu2 %v2293_v62  ;;  %v2299_v62 = vsel %vm105_vm0, %v2115_v48, 0.0 }
 0x39f   :  { %2279 = vadd.xlane.f32.xlu0 %v2278_v51  ;;  %2291 = vadd.xlane.f32.xlu1 %v2290_v50  ;;  %v2287_v51 = vsel %vm105_vm0, %v2111_v23, 0.0  ;;  %v13197_v50 = vld [vmem:[#allocation55_spill] sm:$0xff]  ;;  %v13200_v23 = vld [vmem:[#allocation17_spill] sm:$0xff] }
 0x3a0   :  { %v8547_v56 = vpop.xlane.xlu2 %2168  ;;  %v2425_v14 = vmul.f32 %v8561_v29, %v13200_v23  ;;  %v13244_v23 = vld [vmem:[#allocation27_spill] sm:$0xff] }
 0x3a1   :  { %13191 = vst [vmem:[#allocation129_spill] sm:$0xff] %v8547_v56  ;;  %v13198_v56 = vld [vmem:[#allocation96_spill] sm:$0xff] }
 0x3a2   :  { %v8543_v61 = vpop.xlane.xlu0 %2153  ;;  %v8551_v57 = vpop.xlane.xlu1 %2165  ;;  %v2114_v45 = vmul.f32 %v13198_v56, %v13197_v50  ;;  %v2489_v8 = vsel %vm105_vm0, %v2425_v14, 0.0  ;;  %v8581_v56 = vld [vmem:[%s12765_s5 + $0x218] sm:$0xff] }
 0x3a3   :  { %13190 = vst [vmem:[#allocation128_spill] sm:$0xff] %v8543_v61  ;;  %v13214_v61 = vld [vmem:[#allocation18_spill] sm:$0xff] }
 0x3a4   :  { %13193 = vst [vmem:[#allocation130_spill] sm:$0xff] %v8551_v57  ;;  %v2296_v57 = vsel %vm105_vm0, %v2114_v45, 0.0  ;;  %v13204_v45 = vld [vmem:[#allocation60_spill] sm:$0xff] }
 0x3a5   :  { %2303 = vadd.xlane.f32.xlu2 %v2302_v21  ;;  %v13202_v21 = vld [vmem:[#allocation70_spill] sm:$0xff]  ;;  %v2117_v14 = vmul.f32 %v8386_v4, %v13204_v45  ;;  %v8606_v4 = vld [vmem:[%s12765_s5 + $0x208] sm:$0xff] }
 0x3a6   :  { %v2118_v48 = vmul.f32 %v8381_v36, %v13202_v21 }
 0x3a7   :  { %2288 = vadd.xlane.f32.xlu0 %v2287_v51  ;;  %2300 = vadd.xlane.f32.xlu1 %v2299_v62  ;;  %v2305_v60 = vsel %vm105_vm0, %v2117_v14, 0.0  ;;  %v8616_v14 = vld [vmem:[%s12765_s5 + $0x228] sm:$0xff] }
 0x3a8   :  { %v8567_v24 = vpop.xlane.xlu2 %2177  ;;  %v2308_v62 = vsel %vm105_vm0, %v2118_v48, 0.0 }
 0x3a9   :  { %13199 = vst [vmem:[#allocation96_spill] sm:$0xff] %v8567_v24  ;;  %v8586_v24 = vld [vmem:[%s12765_s5 + $0x210] sm:$0xff] }
 0x3aa   :  { %v8563_v27 = vpop.xlane.xlu0 %2162  ;;  %v8571_v51 = vpop.xlane.xlu1 %2174 }
 0x3ab   :  { %13196 = vst [vmem:[#allocation95_spill] sm:$0xff] %v8563_v27  ;;  %v13208_v27 = vld [vmem:[#allocation16_spill] sm:$0xff] }
 0x3ac   :  { %13201 = vst [vmem:[#allocation131_spill] sm:$0xff] %v8571_v51 }
 0x3ad   :  { %2490 = vadd.xlane.f32.xlu2 %v2489_v8  ;;  %v13206_v8 = vld [vmem:[#allocation19_spill] sm:$0xff] }
 0x3ae   :  { %v2428_v48 = vmul.f32 %v8581_v56, %v13206_v8  ;;  %v13238_v8 = vld [vmem:[#allocation13_spill] sm:$0xff] }
 0x3af   :  { %2297 = vadd.xlane.f32.xlu0 %v2296_v57  ;;  %2309 = vadd.xlane.f32.xlu1 %v2308_v62  ;;  %v2427_v62 = vmul.f32 %v8586_v24, %v13208_v27 }
 0x3b0   :  { %v8592_v57 = vpop.xlane.xlu2 %2186  ;;  %v2498_v28 = vsel %vm105_vm0, %v2428_v48, 0.0 }
 0x3b1   :  { %13205 = vst [vmem:[#allocation133_spill] sm:$0xff] %v8592_v57  ;;  %v8611_v57 = vld [vmem:[%s12765_s5 + $0x230] sm:$0xff] }
 0x3b2   :  { %v8588_v36 = vpop.xlane.xlu0 %2171  ;;  %v8596_v51 = vpop.xlane.xlu1 %2183 }
 0x3b3   :  { %13203 = vst [vmem:[#allocation132_spill] sm:$0xff] %v8588_v36  ;;  %v2495_v36 = vsel %vm105_vm0, %v2427_v62, 0.0 }
 0x3b4   :  { %13207 = vst [vmem:[#allocation134_spill] sm:$0xff] %v8596_v51  ;;  %v13212_v51 = vld [vmem:[#allocation23_spill] sm:$0xff] }
 0x3b5   :  { %2499 = vadd.xlane.f32.xlu2 %v2498_v28  ;;  %v13210_v28 = vld [vmem:[#allocation20_spill] sm:$0xff]  ;;  %v2431_v17 = vmul.f32 %v8611_v57, %v13212_v51  ;;  %v13232_v51 = vld [vmem:[#allocation10_spill] sm:$0xff] }
 0x3b6   :  { %v2426_v48 = vmul.f32 %v8606_v4, %v13210_v28 }
 0x3b7   :  { %2306 = vadd.xlane.f32.xlu0 %v2305_v60  ;;  %2496 = vadd.xlane.f32.xlu1 %v2495_v36  ;;  %v2430_v36 = vmul.f32 %v8616_v14, %v13214_v61  ;;  %v2507_v1 = vsel %vm105_vm0, %v2431_v17, 0.0 }
 0x3b8   :  { %v8622_v62 = vpop.xlane.xlu2 %2195  ;;  %v2492_v55 = vsel %vm105_vm0, %v2426_v48, 0.0  ;;  %v8646_v48 = vld [vmem:[%s12765_s5 + $0x240] sm:$0xff] }
 0x3b9   :  { %13211 = vst [vmem:[#allocation136_spill] sm:$0xff] %v8622_v62  ;;  %v8636_v62 = vld [vmem:[%s12765_s5 + $0x220] sm:$0xff] }
 0x3ba   :  { %v8618_v60 = vpop.xlane.xlu0 %2180  ;;  %v8626_v5 = vpop.xlane.xlu1 %2192 }
 0x3bb   :  { %13209 = vst [vmem:[#allocation135_spill] sm:$0xff] %v8618_v60  ;;  %v2504_v60 = vsel %vm105_vm0, %v2430_v36, 0.0 }
 0x3bc   :  { %13213 = vst [vmem:[#allocation137_spill] sm:$0xff] %v8626_v5  ;;  %v8641_v5 = vld [vmem:[%s12765_s5 + $0x248] sm:$0xff] }
 0x3bd   :  { %2508 = vadd.xlane.f32.xlu2 %v2507_v1  ;;  %v13216_v1 = vld [vmem:[#allocation15_spill] sm:$0xff]  ;;  %v2434_v52 = vmul.f32 %v8641_v5, %v13218_v40 }
 0x3bf   :  { %2493 = vadd.xlane.f32.xlu0 %v2492_v55  ;;  %2505 = vadd.xlane.f32.xlu1 %v2504_v60  ;;  %v2429_v55 = vmul.f32 %v8636_v62, %v13216_v1  ;;  %v2433_v60 = vmul.f32 %v8646_v48, %v13220_v41  ;;  %v2516_v46 = vsel %vm105_vm0, %v2434_v52, 0.0 }
 0x3c0   :  { %v8652_v36 = vpop.xlane.xlu2 %2204 }
 0x3c1   :  { %13217 = vst [vmem:[#allocation139_spill] sm:$0xff] %v8652_v36  ;;  %v2501_v2 = vsel %vm105_vm0, %v2429_v55, 0.0  ;;  %v8666_v36 = vld [vmem:[%s12765_s5 + $0x238] sm:$0xff] }
 0x3c2   :  { %v8648_v17 = vpop.xlane.xlu0 %2189  ;;  %v8656_v22 = vpop.xlane.xlu1 %2201  ;;  %v8676_v55 = vld [vmem:[%s12765_s5 + $0x258] sm:$0xff] }
 0x3c3   :  { %13215 = vst [vmem:[#allocation138_spill] sm:$0xff] %v8648_v17  ;;  %v2513_v17 = vsel %vm105_vm0, %v2433_v60, 0.0 }
 0x3c4   :  { %13219 = vst [vmem:[#allocation140_spill] sm:$0xff] %v8656_v22  ;;  %v8671_v22 = vld [vmem:[%s12765_s5 + $0x260] sm:$0xff] }
 0x3c5   :  { %2517 = vadd.xlane.f32.xlu2 %v2516_v46  ;;  %v13222_v46 = vld [vmem:[#allocation22_spill] sm:$0xff]  ;;  %v2437_v12 = vmul.f32 %v8671_v22, %v13224_v38 }
 0x3c6   :  { %v13230_v38 = vld [vmem:[#allocation26_spill] sm:$0xff] }
 0x3c7   :  { %2502 = vadd.xlane.f32.xlu0 %v2501_v2  ;;  %2514 = vadd.xlane.f32.xlu1 %v2513_v17  ;;  %v2432_v2 = vmul.f32 %v8666_v36, %v13222_v46  ;;  %v2436_v17 = vmul.f32 %v8676_v55, %v13226_v54  ;;  %v2525_v39 = vsel %vm105_vm0, %v2437_v12, 0.0 }
 0x3c8   :  { %v8682_v60 = vpop.xlane.xlu2 %2213 }
 0x3c9   :  { %13223 = vst [vmem:[#allocation142_spill] sm:$0xff] %v8682_v60  ;;  %v2510_v63 = vsel %vm105_vm0, %v2432_v2, 0.0  ;;  %v8696_v60 = vld [vmem:[%s12765_s5 + $0x250] sm:$0xff] }
 0x3ca   :  { %v8678_v52 = vpop.xlane.xlu0 %2198  ;;  %v8686_v20 = vpop.xlane.xlu1 %2210  ;;  %v8706_v2 = vld [vmem:[%s12765_s5 + $0x270] sm:$0xff] }
 0x3cb   :  { %13221 = vst [vmem:[#allocation141_spill] sm:$0xff] %v8678_v52  ;;  %v2522_v52 = vsel %vm105_vm0, %v2436_v17, 0.0 }
 0x3cc   :  { %13225 = vst [vmem:[#allocation143_spill] sm:$0xff] %v8686_v20  ;;  %v8701_v20 = vld [vmem:[%s12765_s5 + $0x278] sm:$0xff] }
 0x3cd   :  { %2526 = vadd.xlane.f32.xlu2 %v2525_v39  ;;  %v13228_v39 = vld [vmem:[#allocation8_spill] sm:$0xff]  ;;  %v2440_v40 = vmul.f32 %v8701_v20, %v13230_v38  ;;  %v13236_v38 = vld [vmem:[#allocation29_spill] sm:$0xff] }
 0x3ce   :  { %v2435_v12 = vmul.f32 %v8696_v60, %v13228_v39 }
 0x3cf   :  { %2511 = vadd.xlane.f32.xlu0 %v2510_v63  ;;  %2523 = vadd.xlane.f32.xlu1 %v2522_v52  ;;  %v2439_v52 = vmul.f32 %v8706_v2, %v13232_v51  ;;  %v2534_v41 = vsel %vm105_vm0, %v2440_v40, 0.0 }
 0x3d0   :  { %v8712_v17 = vpop.xlane.xlu2 %2222  ;;  %v2519_v46 = vsel %vm105_vm0, %v2435_v12, 0.0  ;;  %v8736_v12 = vld [vmem:[%s12765_s5 + $0x288] sm:$0xff] }
 0x3d1   :  { %13229 = vst [vmem:[#allocation145_spill] sm:$0xff] %v8712_v17  ;;  %v8726_v17 = vld [vmem:[%s12765_s5 + $0x268] sm:$0xff] }
 0x3d2   :  { %v8708_v63 = vpop.xlane.xlu0 %2207  ;;  %v8716_v54 = vpop.xlane.xlu1 %2219 }
 0x3d3   :  { %13227 = vst [vmem:[#allocation144_spill] sm:$0xff] %v8708_v63  ;;  %v2531_v63 = vsel %vm105_vm0, %v2439_v52, 0.0 }
 0x3d4   :  { %13231 = vst [vmem:[#allocation146_spill] sm:$0xff] %v8716_v54  ;;  %v8731_v54 = vld [vmem:[%s12765_s5 + $0x290] sm:$0xff] }
 0x3d5   :  { %2535 = vadd.xlane.f32.xlu2 %v2534_v41  ;;  %v13234_v41 = vld [vmem:[#allocation11_spill] sm:$0xff]  ;;  %v2443_v51 = vmul.f32 %v8731_v54, %v13236_v38  ;;  %v13242_v38 = vld [vmem:[#allocation32_spill] sm:$0xff] }
 0x3d7   :  { %2520 = vadd.xlane.f32.xlu0 %v2519_v46  ;;  %2532 = vadd.xlane.f32.xlu1 %v2531_v63  ;;  %v2438_v46 = vmul.f32 %v8726_v17, %v13234_v41  ;;  %v2442_v63 = vmul.f32 %v8736_v12, %v13238_v8  ;;  %v2543_v61 = vsel %vm105_vm0, %v2443_v51, 0.0 }
 0x3d8   :  { %v8742_v52 = vpop.xlane.xlu2 %2231 }
 0x3d9   :  { %13235 = vst [vmem:[#allocation148_spill] sm:$0xff] %v8742_v52  ;;  %v2528_v1 = vsel %vm105_vm0, %v2438_v46, 0.0  ;;  %v8756_v52 = vld [vmem:[%s12765_s5 + $0x280] sm:$0xff] }
 0x3da   :  { %v8738_v40 = vpop.xlane.xlu0 %2216  ;;  %v8746_v39 = vpop.xlane.xlu1 %2228  ;;  %v8766_v46 = vld [vmem:[%s12765_s5 + $0x2a0] sm:$0xff] }
 0x3db   :  { %13233 = vst [vmem:[#allocation147_spill] sm:$0xff] %v8738_v40  ;;  %v2540_v40 = vsel %vm105_vm0, %v2442_v63, 0.0 }
 0x3dc   :  { %13237 = vst [vmem:[#allocation149_spill] sm:$0xff] %v8746_v39  ;;  %v8761_v39 = vld [vmem:[%s12765_s5 + $0x2a8] sm:$0xff] }
 0x3dd   :  { %2544 = vadd.xlane.f32.xlu2 %v2543_v61  ;;  %v13240_v61 = vld [vmem:[#allocation25_spill] sm:$0xff]  ;;  %v2446_v8 = vmul.f32 %v8761_v39, %v13242_v38  ;;  %v13249_v38 = vld [vmem:[#allocation34_spill] sm:$0xff] }
 0x3df   :  { %2529 = vadd.xlane.f32.xlu0 %v2528_v1  ;;  %2541 = vadd.xlane.f32.xlu1 %v2540_v40  ;;  %v2441_v1 = vmul.f32 %v8756_v52, %v13240_v61  ;;  %v2445_v40 = vmul.f32 %v8766_v46, %v13244_v23  ;;  %v2552_v27 = vsel %vm105_vm0, %v2446_v8, 0.0 }
 0x3e0   :  { %v8772_v63 = vpop.xlane.xlu2 %2240 }
 0x3e1   :  { %13241 = vst [vmem:[#allocation151_spill] sm:$0xff] %v8772_v63  ;;  %v2537_v28 = vsel %vm105_vm0, %v2441_v1, 0.0  ;;  %v8786_v63 = vld [vmem:[%s12765_s5 + $0x298] sm:$0xff] }
 0x3e2   :  { %v8768_v51 = vpop.xlane.xlu0 %2225  ;;  %v8776_v41 = vpop.xlane.xlu1 %2237  ;;  %v8796_v1 = vld [vmem:[%s12765_s5 + $0x2b8] sm:$0xff] }
 0x3e3   :  { %13239 = vst [vmem:[#allocation150_spill] sm:$0xff] %v8768_v51  ;;  %v2549_v51 = vsel %vm105_vm0, %v2445_v40, 0.0 }
 0x3e4   :  { %13243 = vst [vmem:[#allocation152_spill] sm:$0xff] %v8776_v41  ;;  %v8791_v41 = vld [vmem:[%s12765_s5 + $0x2c0] sm:$0xff] }
 0x3e5   :  { %2553 = vadd.xlane.f32.xlu2 %v2552_v27  ;;  %13245 = vst [vmem:[#allocation153_spill] sm:$0xff] %v8796_v1  ;;  %v13247_v27 = vld [vmem:[#allocation28_spill] sm:$0xff]  ;;  %v2449_v23 = vmul.f32 %v8791_v41, %v13249_v38 }
 0x3e6   :  { %v13257_v38 = vld [vmem:[#allocation36_spill] sm:$0xff] }
 0x3e7   :  { %2538 = vadd.xlane.f32.xlu0 %v2537_v28  ;;  %2550 = vadd.xlane.f32.xlu1 %v2549_v51  ;;  %v2444_v28 = vmul.f32 %v8786_v63, %v13247_v27  ;;  %v2448_v51 = vmul.f32 %v8796_v1, %v13251_v7  ;;  %v2561_v21 = vsel %vm105_vm0, %v2449_v23, 0.0 }
 0x3e8   :  { %v8802_v40 = vpop.xlane.xlu2 %2249 }
 0x3e9   :  { %13248 = vst [vmem:[#allocation155_spill] sm:$0xff] %v8802_v40  ;;  %v2546_v45 = vsel %vm105_vm0, %v2444_v28, 0.0  ;;  %v8816_v40 = vld [vmem:[%s12765_s5 + $0x2b0] sm:$0xff] }
 0x3ea   :  { %v8798_v8 = vpop.xlane.xlu0 %2234  ;;  %v8806_v61 = vpop.xlane.xlu1 %2246  ;;  %v8826_v28 = vld [vmem:[%s12765_s5 + $0x2d0] sm:$0xff] }
 0x3eb   :  { %13246 = vst [vmem:[#allocation154_spill] sm:$0xff] %v8798_v8  ;;  %v2558_v8 = vsel %vm105_vm0, %v2448_v51, 0.0 }
 0x3ec   :  { %13250 = vst [vmem:[#allocation156_spill] sm:$0xff] %v8806_v61  ;;  %v8821_v61 = vld [vmem:[%s12765_s5 + $0x2d8] sm:$0xff] }
 0x3ed   :  { %2562 = vadd.xlane.f32.xlu2 %v2561_v21  ;;  %13252 = vst [vmem:[#allocation157_spill] sm:$0xff] %v8821_v61  ;;  %v13255_v21 = vld [vmem:[#allocation31_spill] sm:$0xff]  ;;  %v2452_v7 = vmul.f32 %v8821_v61, %v13257_v38  ;;  %v13263_v38 = vld [vmem:[#allocation38_spill] sm:$0xff] }
 0x3ee   :  { %13253 = vst [vmem:[#allocation158_spill] sm:$0xff] %v8826_v28 }
 0x3ef   :  { %2547 = vadd.xlane.f32.xlu0 %v2546_v45  ;;  %2559 = vadd.xlane.f32.xlu1 %v2558_v8  ;;  %v2447_v45 = vmul.f32 %v8816_v40, %v13255_v21  ;;  %v2451_v8 = vmul.f32 %v8826_v28, %v13259_v31  ;;  %v2570_v47 = vsel %vm105_vm0, %v2452_v7, 0.0  ;;  %v13265_v28 = vld [vmem:[#allocation7_spill] sm:$0xff] }
 0x3f0   :  { %v8832_v51 = vpop.xlane.xlu2 %2258 }
 0x3f1   :  { %13256 = vst [vmem:[#allocation160_spill] sm:$0xff] %v8832_v51  ;;  %v2555_v50 = vsel %vm105_vm0, %v2447_v45, 0.0  ;;  %v8846_v51 = vld [vmem:[%s12765_s5 + $0x2c8] sm:$0xff] }
 0x3f2   :  { %v8828_v23 = vpop.xlane.xlu0 %2243  ;;  %v8836_v27 = vpop.xlane.xlu1 %2255  ;;  %v8856_v45 = vld [vmem:[%s12765_s5 + $0x2e8] sm:$0xff] }
 0x3f3   :  { %13254 = vst [vmem:[#allocation159_spill] sm:$0xff] %v8828_v23  ;;  %v2567_v23 = vsel %vm105_vm0, %v2451_v8, 0.0 }
 0x3f4   :  { %13258 = vst [vmem:[#allocation161_spill] sm:$0xff] %v8836_v27  ;;  %v8851_v27 = vld [vmem:[%s12765_s5 + $0x2f0] sm:$0xff] }
 0x3f5   :  { %2571 = vadd.xlane.f32.xlu2 %v2570_v47  ;;  %v13261_v47 = vld [vmem:[#allocation6_spill] sm:$0xff]  ;;  %v2455_v31 = vmul.f32 %v8851_v27, %v13263_v38 }
 0x3f7   :  { %2556 = vadd.xlane.f32.xlu0 %v2555_v50  ;;  %2568 = vadd.xlane.f32.xlu1 %v2567_v23  ;;  %v2450_v50 = vmul.f32 %v8846_v51, %v13261_v47  ;;  %v2454_v23 = vmul.f32 %v8856_v45, %v13265_v28  ;;  %v2579_v1 = vsel %vm105_vm0, %v2455_v31, 0.0  ;;  %v2458_v31 = vmul.f32 %v8606_v4, %v7872_v16 }
 0x3f8   :  { %v8862_v8 = vpop.xlane.xlu2 %2267 }
 0x3f9   :  { %13262 = vst [vmem:[#allocation163_spill] sm:$0xff] %v8862_v8  ;;  %v2564_v61 = vsel %vm105_vm0, %v2450_v50, 0.0  ;;  %v8876_v8 = vld [vmem:[%s12765_s5 + $0x2e0] sm:$0xff] }
 0x3fa   :  { %v8858_v7 = vpop.xlane.xlu0 %2252  ;;  %v8866_v21 = vpop.xlane.xlu1 %2264 }
 0x3fb   :  { %13260 = vst [vmem:[#allocation162_spill] sm:$0xff] %v8858_v7  ;;  %v2576_v7 = vsel %vm105_vm0, %v2454_v23, 0.0  ;;  %v2588_v23 = vsel %vm105_vm0, %v2458_v31, 0.0 }
 0x3fc   :  { %13264 = vst [vmem:[#allocation164_spill] sm:$0xff] %v8866_v21  ;;  %v13267_v21 = vld [vmem:[#allocation35_spill] sm:$0xff] }
 0x3fd   :  { %2580 = vadd.xlane.f32.xlu2 %v2579_v1  ;;  %v2453_v47 = vmul.f32 %v8876_v8, %v13267_v21  ;;  %v2457_v1 = vmul.f32 %v8561_v29, %v13164_v3 }
 0x3ff   :  { %2565 = vadd.xlane.f32.xlu0 %v2564_v61  ;;  %2577 = vadd.xlane.f32.xlu1 %v2576_v7  ;;  %v2573_v50 = vsel %vm105_vm0, %v2453_v47, 0.0  ;;  %v2585_v7 = vsel %vm105_vm0, %v2457_v1, 0.0  ;;  %v2461_v47 = vmul.f32 %v8636_v62, %v7890_v10  ;;  %v2460_v1 = vmul.f32 %v8581_v56, %v13168_v42 }
 0x400   :  { %v8882_v28 = vpop.xlane.xlu2 %2276 }
 0x401   :  { %13268 = vst [vmem:[#allocation166_spill] sm:$0xff] %v8882_v28  ;;  %v8896_v28 = vld [vmem:[%s12765_s5 + $0x2f8] sm:$0xff] }
 0x402   :  { %v8878_v38 = vpop.xlane.xlu0 %2261  ;;  %v8886_v61 = vpop.xlane.xlu1 %2273 }
 0x403   :  { %13266 = vst [vmem:[#allocation165_spill] sm:$0xff] %v8878_v38 }
 0x404   :  { %13269 = vst [vmem:[#allocation167_spill] sm:$0xff] %v8886_v61  ;;  %v13271_v61 = vld [vmem:[#allocation37_spill] sm:$0xff] }
 0x405   :  { %2589 = vadd.xlane.f32.xlu2 %v2588_v23  ;;  %v2456_v38 = vmul.f32 %v8896_v28, %v13271_v61  ;;  %v2597_v23 = vsel %vm105_vm0, %v2461_v47, 0.0 }
 0x407   :  { %2574 = vadd.xlane.f32.xlu0 %v2573_v50  ;;  %2586 = vadd.xlane.f32.xlu1 %v2585_v7  ;;  %v2582_v50 = vsel %vm105_vm0, %v2456_v38, 0.0  ;;  %v2594_v7 = vsel %vm105_vm0, %v2460_v1, 0.0  ;;  %v2463_v38 = vmul.f32 %v8611_v57, %v7874_v33 }
 0x408   :  { %v8902_v29 = vpop.xlane.xlu2 %2285 }
 0x409   :  { %13272 = vst [vmem:[#allocation169_spill] sm:$0xff] %v8902_v29  ;;  %v2459_v29 = vmul.f32 %v8586_v24, %v7857_v43 }
 0x40a   :  { %v8898_v4 = vpop.xlane.xlu0 %2270  ;;  %v8906_v31 = vpop.xlane.xlu1 %2282 }
 0x40b   :  { %13270 = vst [vmem:[#allocation168_spill] sm:$0xff] %v8898_v4  ;;  %v2591_v47 = vsel %vm105_vm0, %v2459_v29, 0.0  ;;  %v2466_v29 = vmul.f32 %v8641_v5, %v13175_v37 }
 0x40c   :  { %13273 = vst [vmem:[#allocation170_spill] sm:$0xff] %v8906_v31  ;;  %v2464_v31 = vmul.f32 %v8666_v36, %v7910_v30 }
 0x40d   :  { %2598 = vadd.xlane.f32.xlu2 %v2597_v23  ;;  %v2462_v23 = vmul.f32 %v8616_v14, %v7880_v35 }
 0x40e   :  { %v2606_v1 = vsel %vm105_vm0, %v2464_v31, 0.0 }
 0x40f   :  { %2583 = vadd.xlane.f32.xlu0 %v2582_v50  ;;  %2595 = vadd.xlane.f32.xlu1 %v2594_v7  ;;  %v2603_v50 = vsel %vm105_vm0, %v2463_v38, 0.0  ;;  %v2467_v7 = vmul.f32 %v8696_v60, %v7932_v18  ;;  %v2600_v31 = vsel %vm105_vm0, %v2462_v23, 0.0  ;;  %v2469_v23 = vmul.f32 %v8671_v22, %v7912_v13 }
 0x410   :  { %v8917_v62 = vpop.xlane.xlu2 %2294 }
 0x411   :  { %13275 = vst [vmem:[#allocation172_spill] sm:$0xff] %v8917_v62  ;;  %v2615_v38 = vsel %vm105_vm0, %v2467_v7, 0.0 }
 0x412   :  { %v8913_v4 = vpop.xlane.xlu0 %2279  ;;  %v8921_v56 = vpop.xlane.xlu1 %2291 }
 0x413   :  { %13274 = vst [vmem:[#allocation171_spill] sm:$0xff] %v8913_v4 }
 0x414   :  { %13276 = vst [vmem:[#allocation173_spill] sm:$0xff] %v8921_v56  ;;  %v13320_v56 = vld [vmem:[#allocation15_spill] sm:$0xff] }
 0x415   :  { %2607 = vadd.xlane.f32.xlu2 %v2606_v1  ;;  %v2465_v1 = vmul.f32 %v8646_v48, %v7898_v32 }
 0x417   :  { %2592 = vadd.xlane.f32.xlu0 %v2591_v47  ;;  %2604 = vadd.xlane.f32.xlu1 %v2603_v50  ;;  %v2612_v47 = vsel %vm105_vm0, %v2466_v29, 0.0  ;;  %v2470_v50 = vmul.f32 %v8726_v17, %v7952_v58  ;;  %v2609_v7 = vsel %vm105_vm0, %v2465_v1, 0.0  ;;  %v2472_v1 = vmul.f32 %v8701_v20, %v7934_v34 }
 0x418   :  { %v8932_v36 = vpop.xlane.xlu2 %2303 }
 0x419   :  { %13278 = vst [vmem:[#allocation175_spill] sm:$0xff] %v8932_v36  ;;  %v2624_v29 = vsel %vm105_vm0, %v2470_v50, 0.0  ;;  %v13301_v36 = vld [vmem:[#allocation157_spill] sm:$0xff] }
 0x41a   :  { %v8928_v24 = vpop.xlane.xlu0 %2288  ;;  %v8936_v57 = vpop.xlane.xlu1 %2300 }
 0x41b   :  { %13277 = vst [vmem:[#allocation174_spill] sm:$0xff] %v8928_v24 }
 0x41c   :  { %13279 = vst [vmem:[#allocation176_spill] sm:$0xff] %v8936_v57  ;;  %v13304_v57 = vld [vmem:[#allocation158_spill] sm:$0xff] }
 0x41d   :  { %2616 = vadd.xlane.f32.xlu2 %v2615_v38  ;;  %v2468_v38 = vmul.f32 %v8676_v55, %v7918_v44 }
 0x41f   :  { %2601 = vadd.xlane.f32.xlu0 %v2600_v31  ;;  %2613 = vadd.xlane.f32.xlu1 %v2612_v47  ;;  %v2621_v31 = vsel %vm105_vm0, %v2469_v23, 0.0  ;;  %v2473_v47 = vmul.f32 %v8756_v52, %v7977_v59  ;;  %v2618_v50 = vsel %vm105_vm0, %v2468_v38, 0.0  ;;  %v2475_v38 = vmul.f32 %v8731_v54, %v7954_v15 }
 0x420   :  { %v8947_v60 = vpop.xlane.xlu2 %2490 }
 0x421   :  { %13281 = vst [vmem:[#allocation178_spill] sm:$0xff] %v8947_v60  ;;  %v2633_v23 = vsel %vm105_vm0, %v2473_v47, 0.0 }
 0x422   :  { %v8943_v14 = vpop.xlane.xlu0 %2297  ;;  %v8951_v5 = vpop.xlane.xlu1 %2309 }
 0x423   :  { %13280 = vst [vmem:[#allocation177_spill] sm:$0xff] %v8943_v14  ;;  %v13306_v14 = vld [vmem:[#allocation70_spill] sm:$0xff] }
 0x424   :  { %13282 = vst [vmem:[#allocation179_spill] sm:$0xff] %v8951_v5  ;;  %v13298_v5 = vld [vmem:[#allocation66_spill] sm:$0xff] }
 0x425   :  { %2625 = vadd.xlane.f32.xlu2 %v2624_v29  ;;  %v2471_v29 = vmul.f32 %v8706_v2, %v7940_v26 }
 0x427   :  { %2610 = vadd.xlane.f32.xlu0 %v2609_v7  ;;  %2622 = vadd.xlane.f32.xlu1 %v2621_v31  ;;  %v2630_v7 = vsel %vm105_vm0, %v2472_v1, 0.0  ;;  %v2476_v31 = vmul.f32 %v8786_v63, %v8001_v49  ;;  %v2627_v47 = vsel %vm105_vm0, %v2471_v29, 0.0  ;;  %v2478_v29 = vmul.f32 %v8761_v39, %v7979_v9 }
 0x428   :  { %v8962_v17 = vpop.xlane.xlu2 %2499 }
 0x429   :  { %13284 = vst [vmem:[#allocation181_spill] sm:$0xff] %v8962_v17  ;;  %v2642_v1 = vsel %vm105_vm0, %v2476_v31, 0.0 }
 0x42a   :  { %v8958_v48 = vpop.xlane.xlu0 %2306  ;;  %v8966_v22 = vpop.xlane.xlu1 %2496 }
 0x42b   :  { %13283 = vst [vmem:[#allocation180_spill] sm:$0xff] %v8958_v48  ;;  %v2485_v48 = vmul.f32 %v8876_v8, %v13298_v5  ;;  %v13356_v5 = vld [vmem:[#allocation31_spill] sm:$0xff] }
 0x42c   :  { %13285 = vst [vmem:[#allocation182_spill] sm:$0xff] %v8966_v22  ;;  %v13332_v22 = vld [vmem:[#allocation8_spill] sm:$0xff] }
 0x42d   :  { %2634 = vadd.xlane.f32.xlu2 %v2633_v23  ;;  %v2474_v23 = vmul.f32 %v8736_v12, %v7964_v25 }
 0x42f   :  { %2619 = vadd.xlane.f32.xlu0 %v2618_v50  ;;  %2631 = vadd.xlane.f32.xlu1 %v2630_v7  ;;  %v2639_v50 = vsel %vm105_vm0, %v2475_v38, 0.0  ;;  %v2479_v7 = vmul.f32 %v8816_v40, %v8031_v53  ;;  %v2636_v31 = vsel %vm105_vm0, %v2474_v23, 0.0  ;;  %v2481_v23 = vmul.f32 %v8791_v41, %v8003_v6 }
 0x430   :  { %v8977_v52 = vpop.xlane.xlu2 %2508 }
 0x431   :  { %13287 = vst [vmem:[#allocation184_spill] sm:$0xff] %v8977_v52  ;;  %v2651_v38 = vsel %vm105_vm0, %v2479_v7, 0.0 }
 0x432   :  { %v8973_v55 = vpop.xlane.xlu0 %2493  ;;  %v8981_v20 = vpop.xlane.xlu1 %2505 }
 0x433   :  { %13286 = vst [vmem:[#allocation183_spill] sm:$0xff] %v8973_v55 }
 0x434   :  { %13288 = vst [vmem:[#allocation185_spill] sm:$0xff] %v8981_v20  ;;  %v13330_v20 = vld [vmem:[#allocation24_spill] sm:$0xff] }
 0x435   :  { %2643 = vadd.xlane.f32.xlu2 %v2642_v1  ;;  %v2477_v1 = vmul.f32 %v8766_v46, %v7985_v11 }
 0x437   :  { %2628 = vadd.xlane.f32.xlu0 %v2627_v47  ;;  %2640 = vadd.xlane.f32.xlu1 %v2639_v50  ;;  %v2648_v47 = vsel %vm105_vm0, %v2478_v29, 0.0  ;;  %v2482_v50 = vmul.f32 %v8846_v51, %v8055_v19  ;;  %v2645_v7 = vsel %vm105_vm0, %v2477_v1, 0.0  ;;  %v13300_v1 = vld [vmem:[#allocation55_spill] sm:$0xff]  ;;  %v13364_v19 = vld [vmem:[#allocation6_spill] sm:$0xff] }
 0x438   :  { %v8992_v63 = vpop.xlane.xlu2 %2517 }
 0x439   :  { %13290 = vst [vmem:[#allocation187_spill] sm:$0xff] %v8992_v63  ;;  %v2660_v29 = vsel %vm105_vm0, %v2482_v50, 0.0  ;;  %v2484_v50 = vmul.f32 %v13301_v36, %v13300_v1 }
 0x43a   :  { %v8988_v2 = vpop.xlane.xlu0 %2502  ;;  %v8996_v54 = vpop.xlane.xlu1 %2514 }
 0x43b   :  { %13289 = vst [vmem:[#allocation186_spill] sm:$0xff] %v8988_v2 }
 0x43c   :  { %13291 = vst [vmem:[#allocation188_spill] sm:$0xff] %v8996_v54 }
 0x43d   :  { %2652 = vadd.xlane.f32.xlu2 %v2651_v38  ;;  %v13296_v38 = vld [vmem:[#allocation153_spill] sm:$0xff] }
 0x43f   :  { %2637 = vadd.xlane.f32.xlu0 %v2636_v31  ;;  %2649 = vadd.xlane.f32.xlu1 %v2648_v47  ;;  %v2657_v31 = vsel %vm105_vm0, %v2481_v23, 0.0  ;;  %v2480_v47 = vmul.f32 %v13296_v38, %v8009_v0  ;;  %v2669_v23 = vsel %vm105_vm0, %v2485_v48, 0.0  ;;  %v13303_v38 = vld [vmem:[#allocation56_spill] sm:$0xff] }
 0x440   :  { %v9007_v40 = vpop.xlane.xlu2 %2526 }
 0x441   :  { %13293 = vst [vmem:[#allocation190_spill] sm:$0xff] %v9007_v40 }
 0x442   :  { %v9003_v12 = vpop.xlane.xlu0 %2511  ;;  %v9011_v39 = vpop.xlane.xlu1 %2523 }
 0x443   :  { %13292 = vst [vmem:[#allocation189_spill] sm:$0xff] %v9003_v12  ;;  %v13326_v12 = vld [vmem:[#allocation22_spill] sm:$0xff] }
 0x444   :  { %13294 = vst [vmem:[#allocation191_spill] sm:$0xff] %v9011_v39 }
 0x445   :  { %2661 = vadd.xlane.f32.xlu2 %v2660_v29  ;;  %v2666_v29 = vsel %vm105_vm0, %v2484_v50, 0.0 }
 0x447   :  { %2646 = vadd.xlane.f32.xlu0 %v2645_v7  ;;  %2658 = vadd.xlane.f32.xlu1 %v2657_v31  ;;  %v2654_v7 = vsel %vm105_vm0, %v2480_v47, 0.0  ;;  %v13308_v47 = vld [vmem:[#allocation60_spill] sm:$0xff] }
 0x448   :  { %v9022_v51 = vpop.xlane.xlu2 %2535  ;;  %v2487_v48 = vmul.f32 %v8851_v27, %v13308_v47 }
 0x449   :  { %13297 = vst [vmem:[#allocation153_spill] sm:$0xff] %v9022_v51  ;;  %v2483_v51 = vmul.f32 %v13304_v57, %v13303_v38  ;;  %v9051_v57 = vld [vmem:[%s12765_s5 + $0x310] sm:$0xff] }
 0x44a   :  { %v9018_v46 = vpop.xlane.xlu0 %2520  ;;  %v9026_v41 = vpop.xlane.xlu1 %2532 }
 0x44b   :  { %13295 = vst [vmem:[#allocation192_spill] sm:$0xff] %v9018_v46  ;;  %v13324_v46 = vld [vmem:[#allocation21_spill] sm:$0xff] }
 0x44c   :  { %13299 = vst [vmem:[#allocation193_spill] sm:$0xff] %v9026_v41  ;;  %v2488_v41 = vmul.f32 %v8896_v28, %v13306_v14  ;;  %v9056_v28 = vld [vmem:[%s12765_s5 + $0x308] sm:$0xff] }
 0x44d   :  { %2670 = vadd.xlane.f32.xlu2 %v2669_v23  ;;  %v2675_v23 = vsel %vm105_vm0, %v2487_v48, 0.0  ;;  %v13350_v14 = vld [vmem:[#allocation28_spill] sm:$0xff] }
 0x44e   :  { %v2678_v50 = vsel %vm105_vm0, %v2488_v41, 0.0 }
 0x44f   :  { %2655 = vadd.xlane.f32.xlu0 %v2654_v7  ;;  %2667 = vadd.xlane.f32.xlu1 %v2666_v29  ;;  %v2663_v7 = vsel %vm105_vm0, %v2483_v51, 0.0  ;;  %v13310_v51 = vld [vmem:[#allocation62_spill] sm:$0xff] }
 0x450   :  { %v9037_v8 = vpop.xlane.xlu2 %2544  ;;  %v2486_v41 = vmul.f32 %v8856_v45, %v13310_v51  ;;  %v9076_v45 = vld [vmem:[%s12765_s5 + $0x300] sm:$0xff] }
 0x451   :  { %13305 = vst [vmem:[#allocation158_spill] sm:$0xff] %v9037_v8  ;;  %v13314_v8 = vld [vmem:[#allocation20_spill] sm:$0xff] }
 0x452   :  { %v9033_v31 = vpop.xlane.xlu0 %2529  ;;  %v9041_v36 = vpop.xlane.xlu1 %2541 }
 0x453   :  { %13302 = vst [vmem:[#allocation157_spill] sm:$0xff] %v9033_v31 }
 0x454   :  { %13307 = vst [vmem:[#allocation194_spill] sm:$0xff] %v9041_v36  ;;  %v2672_v36 = vsel %vm105_vm0, %v2486_v41, 0.0  ;;  %v9086_v41 = vld [vmem:[%s12765_s5 + $0x320] sm:$0xff] }
 0x455   :  { %2679 = vadd.xlane.f32.xlu2 %v2678_v50 }
 0x457   :  { %2664 = vadd.xlane.f32.xlu0 %v2663_v7  ;;  %2676 = vadd.xlane.f32.xlu1 %v2675_v23  ;;  %v13312_v7 = vld [vmem:[#allocation16_spill] sm:$0xff]  ;;  %v2796_v23 = vmul.f32 %v9056_v28, %v13314_v8 }
 0x458   :  { %v9062_v29 = vpop.xlane.xlu2 %2553  ;;  %v2797_v48 = vmul.f32 %v9051_v57, %v13312_v7  ;;  %v13344_v7 = vld [vmem:[#allocation25_spill] sm:$0xff] }
 0x459   :  { %13311 = vst [vmem:[#allocation196_spill] sm:$0xff] %v9062_v29  ;;  %v9081_v29 = vld [vmem:[%s12765_s5 + $0x328] sm:$0xff] }
 0x45a   :  { %v9058_v27 = vpop.xlane.xlu0 %2538  ;;  %v9066_v50 = vpop.xlane.xlu1 %2550  ;;  %v2865_v62 = vsel %vm105_vm0, %v2797_v48, 0.0 }
 0x45b   :  { %13309 = vst [vmem:[#allocation195_spill] sm:$0xff] %v9058_v27  ;;  %v2862_v27 = vsel %vm105_vm0, %v2796_v23, 0.0 }
 0x45c   :  { %13313 = vst [vmem:[#allocation197_spill] sm:$0xff] %v9066_v50  ;;  %v13318_v50 = vld [vmem:[#allocation18_spill] sm:$0xff] }
 0x45d   :  { %2866 = vadd.xlane.f32.xlu2 %v2865_v62  ;;  %v13316_v62 = vld [vmem:[#allocation17_spill] sm:$0xff]  ;;  %v2800_v31 = vmul.f32 %v9081_v29, %v13318_v50  ;;  %v13338_v50 = vld [vmem:[#allocation11_spill] sm:$0xff] }
 0x45e   :  { %v2795_v48 = vmul.f32 %v9076_v45, %v13316_v62 }
 0x45f   :  { %2673 = vadd.xlane.f32.xlu0 %v2672_v36  ;;  %2863 = vadd.xlane.f32.xlu1 %v2862_v27  ;;  %v2799_v27 = vmul.f32 %v9086_v41, %v13320_v56  ;;  %v2874_v24 = vsel %vm105_vm0, %v2800_v31, 0.0 }
 0x460   :  { %v9092_v23 = vpop.xlane.xlu2 %2562  ;;  %v2859_v39 = vsel %vm105_vm0, %v2795_v48, 0.0  ;;  %v9116_v48 = vld [vmem:[%s12765_s5 + $0x338] sm:$0xff] }
 0x461   :  { %13317 = vst [vmem:[#allocation199_spill] sm:$0xff] %v9092_v23  ;;  %v9106_v23 = vld [vmem:[%s12765_s5 + $0x318] sm:$0xff] }
 0x462   :  { %v9088_v36 = vpop.xlane.xlu0 %2547  ;;  %v9096_v40 = vpop.xlane.xlu1 %2559 }
 0x463   :  { %13315 = vst [vmem:[#allocation198_spill] sm:$0xff] %v9088_v36  ;;  %v2871_v36 = vsel %vm105_vm0, %v2799_v27, 0.0 }
 0x464   :  { %13319 = vst [vmem:[#allocation200_spill] sm:$0xff] %v9096_v40  ;;  %v9111_v40 = vld [vmem:[%s12765_s5 + $0x340] sm:$0xff] }
 0x465   :  { %2875 = vadd.xlane.f32.xlu2 %v2874_v24  ;;  %v13322_v24 = vld [vmem:[#allocation19_spill] sm:$0xff]  ;;  %v2803_v63 = vmul.f32 %v9111_v40, %v13324_v46 }
 0x466   :  { %v2798_v31 = vmul.f32 %v9106_v23, %v13322_v24 }
 0x467   :  { %2860 = vadd.xlane.f32.xlu0 %v2859_v39  ;;  %2872 = vadd.xlane.f32.xlu1 %v2871_v36  ;;  %v2802_v36 = vmul.f32 %v9116_v48, %v13326_v12  ;;  %v2883_v52 = vsel %vm105_vm0, %v2803_v63, 0.0 }
 0x468   :  { %v9122_v27 = vpop.xlane.xlu2 %2571  ;;  %v2868_v4 = vsel %vm105_vm0, %v2798_v31, 0.0  ;;  %v9146_v31 = vld [vmem:[%s12765_s5 + $0x350] sm:$0xff] }
 0x469   :  { %13323 = vst [vmem:[#allocation202_spill] sm:$0xff] %v9122_v27  ;;  %v9136_v27 = vld [vmem:[%s12765_s5 + $0x330] sm:$0xff] }
 0x46a   :  { %v9118_v39 = vpop.xlane.xlu0 %2556  ;;  %v9126_v54 = vpop.xlane.xlu1 %2568 }
 0x46b   :  { %13321 = vst [vmem:[#allocation201_spill] sm:$0xff] %v9118_v39  ;;  %v2880_v39 = vsel %vm105_vm0, %v2802_v36, 0.0 }
 0x46c   :  { %13325 = vst [vmem:[#allocation203_spill] sm:$0xff] %v9126_v54  ;;  %v9141_v54 = vld [vmem:[%s12765_s5 + $0x358] sm:$0xff] }
 0x46d   :  { %2884 = vadd.xlane.f32.xlu2 %v2883_v52  ;;  %v13328_v52 = vld [vmem:[#allocation23_spill] sm:$0xff]  ;;  %v2806_v2 = vmul.f32 %v9141_v54, %v13330_v20  ;;  %v13336_v20 = vld [vmem:[#allocation10_spill] sm:$0xff] }
 0x46e   :  { %v2801_v63 = vmul.f32 %v9136_v27, %v13328_v52 }
 0x46f   :  { %2869 = vadd.xlane.f32.xlu0 %v2868_v4  ;;  %2881 = vadd.xlane.f32.xlu1 %v2880_v39  ;;  %v2805_v39 = vmul.f32 %v9146_v31, %v13332_v22  ;;  %v2892_v60 = vsel %vm105_vm0, %v2806_v2, 0.0 }
 0x470   :  { %v9152_v36 = vpop.xlane.xlu2 %2580  ;;  %v2877_v55 = vsel %vm105_vm0, %v2801_v63, 0.0  ;;  %v9176_v63 = vld [vmem:[%s12765_s5 + $0x368] sm:$0xff] }
 0x471   :  { %13329 = vst [vmem:[#allocation205_spill] sm:$0xff] %v9152_v36  ;;  %v9166_v36 = vld [vmem:[%s12765_s5 + $0x348] sm:$0xff] }
 0x472   :  { %v9148_v4 = vpop.xlane.xlu0 %2565  ;;  %v9156_v17 = vpop.xlane.xlu1 %2577 }
 0x473   :  { %13327 = vst [vmem:[#allocation204_spill] sm:$0xff] %v9148_v4  ;;  %v2889_v4 = vsel %vm105_vm0, %v2805_v39, 0.0 }
 0x474   :  { %13331 = vst [vmem:[#allocation206_spill] sm:$0xff] %v9156_v17  ;;  %v9171_v17 = vld [vmem:[%s12765_s5 + $0x370] sm:$0xff] }
 0x475   :  { %2893 = vadd.xlane.f32.xlu2 %v2892_v60  ;;  %v13334_v60 = vld [vmem:[#allocation9_spill] sm:$0xff]  ;;  %v2809_v46 = vmul.f32 %v9171_v17, %v13336_v20 }
 0x476   :  { %v2804_v2 = vmul.f32 %v9166_v36, %v13334_v60  ;;  %v13342_v20 = vld [vmem:[#allocation13_spill] sm:$0xff] }
 0x477   :  { %2878 = vadd.xlane.f32.xlu0 %v2877_v55  ;;  %2890 = vadd.xlane.f32.xlu1 %v2889_v4  ;;  %v2808_v4 = vmul.f32 %v9176_v63, %v13338_v50  ;;  %v2901_v12 = vsel %vm105_vm0, %v2809_v46, 0.0 }
 0x478   :  { %v9182_v39 = vpop.xlane.xlu2 %2589  ;;  %v2886_v52 = vsel %vm105_vm0, %v2804_v2, 0.0  ;;  %v9206_v2 = vld [vmem:[%s12765_s5 + $0x380] sm:$0xff] }
 0x479   :  { %13335 = vst [vmem:[#allocation208_spill] sm:$0xff] %v9182_v39  ;;  %v9196_v39 = vld [vmem:[%s12765_s5 + $0x360] sm:$0xff] }
 0x47a   :  { %v9178_v55 = vpop.xlane.xlu0 %2574  ;;  %v9186_v22 = vpop.xlane.xlu1 %2586 }
 0x47b   :  { %13333 = vst [vmem:[#allocation207_spill] sm:$0xff] %v9178_v55  ;;  %v2898_v55 = vsel %vm105_vm0, %v2808_v4, 0.0 }
 0x47c   :  { %13337 = vst [vmem:[#allocation209_spill] sm:$0xff] %v9186_v22  ;;  %v9201_v22 = vld [vmem:[%s12765_s5 + $0x388] sm:$0xff] }
 0x47d   :  { %2902 = vadd.xlane.f32.xlu2 %v2901_v12  ;;  %v13340_v12 = vld [vmem:[#allocation12_spill] sm:$0xff]  ;;  %v2812_v50 = vmul.f32 %v9201_v22, %v13342_v20  ;;  %v13348_v20 = vld [vmem:[#allocation27_spill] sm:$0xff] }
 0x47f   :  { %2887 = vadd.xlane.f32.xlu0 %v2886_v52  ;;  %2899 = vadd.xlane.f32.xlu1 %v2898_v55  ;;  %v2807_v52 = vmul.f32 %v9196_v39, %v13340_v12  ;;  %v2811_v55 = vmul.f32 %v9206_v2, %v13344_v7  ;;  %v2910_v56 = vsel %vm105_vm0, %v2812_v50, 0.0 }
 0x480   :  { %v9212_v4 = vpop.xlane.xlu2 %2598 }
 0x481   :  { %13341 = vst [vmem:[#allocation211_spill] sm:$0xff] %v9212_v4  ;;  %v2895_v24 = vsel %vm105_vm0, %v2807_v52, 0.0  ;;  %v9226_v4 = vld [vmem:[%s12765_s5 + $0x378] sm:$0xff] }
 0x482   :  { %v9208_v46 = vpop.xlane.xlu0 %2583  ;;  %v9216_v60 = vpop.xlane.xlu1 %2595  ;;  %v9236_v52 = vld [vmem:[%s12765_s5 + $0x398] sm:$0xff] }
 0x483   :  { %13339 = vst [vmem:[#allocation210_spill] sm:$0xff] %v9208_v46  ;;  %v2907_v46 = vsel %vm105_vm0, %v2811_v55, 0.0 }
 0x484   :  { %13343 = vst [vmem:[#allocation212_spill] sm:$0xff] %v9216_v60  ;;  %v9231_v60 = vld [vmem:[%s12765_s5 + $0x3a0] sm:$0xff] }
 0x485   :  { %2911 = vadd.xlane.f32.xlu2 %v2910_v56  ;;  %v13346_v56 = vld [vmem:[#allocation26_spill] sm:$0xff]  ;;  %v2815_v7 = vmul.f32 %v9231_v60, %v13348_v20 }
 0x486   :  { %v13354_v20 = vld [vmem:[#allocation30_spill] sm:$0xff] }
 0x487   :  { %2896 = vadd.xlane.f32.xlu0 %v2895_v24  ;;  %2908 = vadd.xlane.f32.xlu1 %v2907_v46  ;;  %v2810_v24 = vmul.f32 %v9226_v4, %v13346_v56  ;;  %v2814_v46 = vmul.f32 %v9236_v52, %v13350_v14  ;;  %v2919_v8 = vsel %vm105_vm0, %v2815_v7, 0.0 }
 0x488   :  { %v9242_v55 = vpop.xlane.xlu2 %2607 }
 0x489   :  { %13347 = vst [vmem:[#allocation214_spill] sm:$0xff] %v9242_v55  ;;  %v2904_v62 = vsel %vm105_vm0, %v2810_v24, 0.0  ;;  %v9256_v55 = vld [vmem:[%s12765_s5 + $0x390] sm:$0xff] }
 0x48a   :  { %v9238_v50 = vpop.xlane.xlu0 %2592  ;;  %v9246_v12 = vpop.xlane.xlu1 %2604  ;;  %v9266_v24 = vld [vmem:[%s12765_s5 + $0x3b0] sm:$0xff] }
 0x48b   :  { %13345 = vst [vmem:[#allocation213_spill] sm:$0xff] %v9238_v50  ;;  %v2916_v50 = vsel %vm105_vm0, %v2814_v46, 0.0 }
 0x48c   :  { %13349 = vst [vmem:[#allocation215_spill] sm:$0xff] %v9246_v12  ;;  %v9261_v12 = vld [vmem:[%s12765_s5 + $0x3b8] sm:$0xff] }
 0x48d   :  { %2920 = vadd.xlane.f32.xlu2 %v2919_v8  ;;  %v13352_v8 = vld [vmem:[#allocation29_spill] sm:$0xff]  ;;  %v2818_v14 = vmul.f32 %v9261_v12, %v13354_v20 }
 0x48e   :  { %v13362_v20 = vld [vmem:[#allocation33_spill] sm:$0xff] }
 0x48f   :  { %2905 = vadd.xlane.f32.xlu0 %v2904_v62  ;;  %2917 = vadd.xlane.f32.xlu1 %v2916_v50  ;;  %v2813_v62 = vmul.f32 %v9256_v55, %v13352_v8  ;;  %v2817_v50 = vmul.f32 %v9266_v24, %v13356_v5  ;;  %v2928_v47 = vsel %vm105_vm0, %v2818_v14, 0.0 }
 0x490   :  { %v9272_v46 = vpop.xlane.xlu2 %2616 }
 0x491   :  { %13353 = vst [vmem:[#allocation217_spill] sm:$0xff] %v9272_v46  ;;  %v2913_v51 = vsel %vm105_vm0, %v2813_v62, 0.0  ;;  %v9286_v46 = vld [vmem:[%s12765_s5 + $0x3a8] sm:$0xff] }
 0x492   :  { %v9268_v7 = vpop.xlane.xlu0 %2601  ;;  %v9276_v56 = vpop.xlane.xlu1 %2613  ;;  %v9296_v62 = vld [vmem:[%s12765_s5 + $0x3c8] sm:$0xff] }
 0x493   :  { %13351 = vst [vmem:[#allocation216_spill] sm:$0xff] %v9268_v7  ;;  %v2925_v7 = vsel %vm105_vm0, %v2817_v50, 0.0 }
 0x494   :  { %13355 = vst [vmem:[#allocation218_spill] sm:$0xff] %v9276_v56  ;;  %v9291_v56 = vld [vmem:[%s12765_s5 + $0x3d0] sm:$0xff] }
 0x495   :  { %2929 = vadd.xlane.f32.xlu2 %v2928_v47  ;;  %13357 = vst [vmem:[#allocation219_spill] sm:$0xff] %v9291_v56  ;;  %v13360_v47 = vld [vmem:[#allocation32_spill] sm:$0xff]  ;;  %v2821_v5 = vmul.f32 %v9291_v56, %v13362_v20  ;;  %v13368_v20 = vld [vmem:[#allocation7_spill] sm:$0xff] }
 0x496   :  { %13358 = vst [vmem:[#allocation220_spill] sm:$0xff] %v9296_v62 }
 0x497   :  { %2914 = vadd.xlane.f32.xlu0 %v2913_v51  ;;  %2926 = vadd.xlane.f32.xlu1 %v2925_v7  ;;  %v2816_v51 = vmul.f32 %v9286_v46, %v13360_v47  ;;  %v2820_v7 = vmul.f32 %v9296_v62, %v13364_v19  ;;  %v2937_v1 = vsel %vm105_vm0, %v2821_v5, 0.0 }
 0x498   :  { %v9302_v50 = vpop.xlane.xlu2 %2625 }
 0x499   :  { %13361 = vst [vmem:[#allocation222_spill] sm:$0xff] %v9302_v50  ;;  %v2922_v38 = vsel %vm105_vm0, %v2816_v51, 0.0  ;;  %v9316_v50 = vld [vmem:[%s12765_s5 + $0x3c0] sm:$0xff] }
 0x49a   :  { %v9298_v14 = vpop.xlane.xlu0 %2610  ;;  %v9306_v8 = vpop.xlane.xlu1 %2622  ;;  %v9326_v51 = vld [vmem:[%s12765_s5 + $0x3e0] sm:$0xff] }
 0x49b   :  { %13359 = vst [vmem:[#allocation221_spill] sm:$0xff] %v9298_v14  ;;  %v2934_v14 = vsel %vm105_vm0, %v2820_v7, 0.0 }
 0x49c   :  { %13363 = vst [vmem:[#allocation223_spill] sm:$0xff] %v9306_v8  ;;  %v9321_v8 = vld [vmem:[%s12765_s5 + $0x3e8] sm:$0xff] }
 0x49d   :  { %2938 = vadd.xlane.f32.xlu2 %v2937_v1  ;;  %v13366_v1 = vld [vmem:[#allocation34_spill] sm:$0xff]  ;;  %v2824_v19 = vmul.f32 %v9321_v8, %v13368_v20 }
 0x49f   :  { %2923 = vadd.xlane.f32.xlu0 %v2922_v38  ;;  %2935 = vadd.xlane.f32.xlu1 %v2934_v14  ;;  %v2819_v38 = vmul.f32 %v9316_v50, %v13366_v1  ;;  %v2823_v14 = vmul.f32 %v9326_v51, %v13267_v21  ;;  %v2946_v56 = vsel %vm105_vm0, %v2824_v19, 0.0 }
 0x4a0   :  { %v9332_v7 = vpop.xlane.xlu2 %2634 }
 0x4a1   :  { %13367 = vst [vmem:[#allocation225_spill] sm:$0xff] %v9332_v7  ;;  %v2931_v62 = vsel %vm105_vm0, %v2819_v38, 0.0  ;;  %v9346_v7 = vld [vmem:[%s12765_s5 + $0x3d8] sm:$0xff]  ;;  %v13371_v38 = vld [vmem:[#allocation36_spill] sm:$0xff] }
 0x4a2   :  { %v9328_v5 = vpop.xlane.xlu0 %2619  ;;  %v9336_v47 = vpop.xlane.xlu1 %2631  ;;  %v2822_v19 = vmul.f32 %v9346_v7, %v13371_v38 }
 0x4a3   :  { %13365 = vst [vmem:[#allocation224_spill] sm:$0xff] %v9328_v5  ;;  %v2943_v5 = vsel %vm105_vm0, %v2823_v14, 0.0 }
 0x4a4   :  { %13369 = vst [vmem:[#allocation226_spill] sm:$0xff] %v9336_v47  ;;  %v9351_v47 = vld [vmem:[%s12765_s5 + $0x3f8] sm:$0xff]  ;;  %v2940_v21 = vsel %vm105_vm0, %v2822_v19, 0.0  ;;  %v2830_v19 = vmul.f32 %v9106_v23, %v13168_v42 }
 0x4a5   :  { %2947 = vadd.xlane.f32.xlu2 %v2946_v56  ;;  %v2827_v56 = vmul.f32 %v9076_v45, %v13164_v3 }
 0x4a7   :  { %2932 = vadd.xlane.f32.xlu0 %v2931_v62  ;;  %2944 = vadd.xlane.f32.xlu1 %v2943_v5  ;;  %v2826_v5 = vmul.f32 %v9351_v47, %v13271_v61  ;;  %v2955_v1 = vsel %vm105_vm0, %v2827_v56, 0.0 }
 0x4a8   :  { %v9357_v62 = vpop.xlane.xlu2 %2643 }
 0x4a9   :  { %13372 = vst [vmem:[#allocation228_spill] sm:$0xff] %v9357_v62  ;;  %v9371_v62 = vld [vmem:[%s12765_s5 + $0x3f0] sm:$0xff] }
 0x4aa   :  { %v9353_v20 = vpop.xlane.xlu0 %2628  ;;  %v9361_v14 = vpop.xlane.xlu1 %2640 }
 0x4ab   :  { %13370 = vst [vmem:[#allocation227_spill] sm:$0xff] %v9353_v20  ;;  %v2952_v20 = vsel %vm105_vm0, %v2826_v5, 0.0  ;;  %v2964_v5 = vsel %vm105_vm0, %v2830_v19, 0.0 }
 0x4ac   :  { %13373 = vst [vmem:[#allocation229_spill] sm:$0xff] %v9361_v14  ;;  %v13375_v14 = vld [vmem:[#allocation38_spill] sm:$0xff] }
 0x4ad   :  { %2956 = vadd.xlane.f32.xlu2 %v2955_v1  ;;  %v2825_v3 = vmul.f32 %v9371_v62, %v13375_v14  ;;  %v2829_v1 = vmul.f32 %v9051_v57, %v7857_v43 }
 0x4af   :  { %2941 = vadd.xlane.f32.xlu0 %v2940_v21  ;;  %2953 = vadd.xlane.f32.xlu1 %v2952_v20  ;;  %v2949_v56 = vsel %vm105_vm0, %v2825_v3, 0.0  ;;  %v2961_v20 = vsel %vm105_vm0, %v2829_v1, 0.0  ;;  %v2832_v3 = vmul.f32 %v9081_v29, %v7880_v35 }
 0x4b0   :  { %v9377_v61 = vpop.xlane.xlu2 %2652 }
 0x4b1   :  { %13376 = vst [vmem:[#allocation231_spill] sm:$0xff] %v9377_v61  ;;  %v2828_v61 = vmul.f32 %v9056_v28, %v7872_v16 }
 0x4b2   :  { %v9373_v45 = vpop.xlane.xlu0 %2637  ;;  %v9381_v21 = vpop.xlane.xlu1 %2649 }
 0x4b3   :  { %13374 = vst [vmem:[#allocation230_spill] sm:$0xff] %v9373_v45  ;;  %v2958_v19 = vsel %vm105_vm0, %v2828_v61, 0.0  ;;  %v2835_v61 = vmul.f32 %v9111_v40, %v7898_v32 }
 0x4b4   :  { %13377 = vst [vmem:[#allocation232_spill] sm:$0xff] %v9381_v21  ;;  %v2833_v21 = vmul.f32 %v9136_v27, %v7874_v33 }
 0x4b5   :  { %2965 = vadd.xlane.f32.xlu2 %v2964_v5  ;;  %v2831_v5 = vmul.f32 %v9086_v41, %v7890_v10 }
 0x4b6   :  { %v2973_v1 = vsel %vm105_vm0, %v2833_v21, 0.0 }
 0x4b7   :  { %2950 = vadd.xlane.f32.xlu0 %v2949_v56  ;;  %2962 = vadd.xlane.f32.xlu1 %v2961_v20  ;;  %v2970_v56 = vsel %vm105_vm0, %v2832_v3, 0.0  ;;  %v2836_v20 = vmul.f32 %v9166_v36, %v13175_v37  ;;  %v2967_v21 = vsel %vm105_vm0, %v2831_v5, 0.0  ;;  %v2838_v5 = vmul.f32 %v9141_v54, %v7918_v44 }
 0x4b8   :  { %v9392_v23 = vpop.xlane.xlu2 %2661 }
 0x4b9   :  { %13379 = vst [vmem:[#allocation234_spill] sm:$0xff] %v9392_v23  ;;  %v2982_v3 = vsel %vm105_vm0, %v2836_v20, 0.0  ;;  %v13423_v23 = vld [vmem:[#allocation19_spill] sm:$0xff] }
 0x4ba   :  { %v9388_v45 = vpop.xlane.xlu0 %2646  ;;  %v9396_v57 = vpop.xlane.xlu1 %2658 }
 0x4bb   :  { %13378 = vst [vmem:[#allocation233_spill] sm:$0xff] %v9388_v45  ;;  %v13433_v45 = vld [vmem:[#allocation8_spill] sm:$0xff] }
 0x4bc   :  { %13380 = vst [vmem:[#allocation235_spill] sm:$0xff] %v9396_v57 }
 0x4bd   :  { %2974 = vadd.xlane.f32.xlu2 %v2973_v1  ;;  %v2834_v1 = vmul.f32 %v9116_v48, %v7910_v30 }
 0x4bf   :  { %2959 = vadd.xlane.f32.xlu0 %v2958_v19  ;;  %2971 = vadd.xlane.f32.xlu1 %v2970_v56  ;;  %v2979_v19 = vsel %vm105_vm0, %v2835_v61, 0.0  ;;  %v2839_v56 = vmul.f32 %v9196_v39, %v7912_v13  ;;  %v2976_v20 = vsel %vm105_vm0, %v2834_v1, 0.0  ;;  %v2841_v1 = vmul.f32 %v9171_v17, %v7940_v26 }
 0x4c0   :  { %v9407_v27 = vpop.xlane.xlu2 %2670 }
 0x4c1   :  { %13382 = vst [vmem:[#allocation237_spill] sm:$0xff] %v9407_v27  ;;  %v2991_v61 = vsel %vm105_vm0, %v2839_v56, 0.0 }
 0x4c2   :  { %v9403_v28 = vpop.xlane.xlu0 %2655  ;;  %v9411_v29 = vpop.xlane.xlu1 %2667 }
 0x4c3   :  { %13381 = vst [vmem:[#allocation236_spill] sm:$0xff] %v9403_v28 }
 0x4c4   :  { %13383 = vst [vmem:[#allocation238_spill] sm:$0xff] %v9411_v29  ;;  %v13409_v29 = vld [vmem:[#allocation60_spill] sm:$0xff] }
 0x4c5   :  { %2983 = vadd.xlane.f32.xlu2 %v2982_v3  ;;  %v2837_v3 = vmul.f32 %v9146_v31, %v7932_v18 }
 0x4c7   :  { %2968 = vadd.xlane.f32.xlu0 %v2967_v21  ;;  %2980 = vadd.xlane.f32.xlu1 %v2979_v19  ;;  %v2988_v21 = vsel %vm105_vm0, %v2838_v5, 0.0  ;;  %v2842_v19 = vmul.f32 %v9226_v4, %v7934_v34  ;;  %v2985_v56 = vsel %vm105_vm0, %v2837_v3, 0.0  ;;  %v2844_v3 = vmul.f32 %v9201_v22, %v7964_v25 }
 0x4c8   :  { %v9422_v36 = vpop.xlane.xlu2 %2679 }
 0x4c9   :  { %13385 = vst [vmem:[#allocation240_spill] sm:$0xff] %v9422_v36  ;;  %v3000_v5 = vsel %vm105_vm0, %v2842_v19, 0.0 }
 0x4ca   :  { %v9418_v41 = vpop.xlane.xlu0 %2664  ;;  %v9426_v40 = vpop.xlane.xlu1 %2676 }
 0x4cb   :  { %13384 = vst [vmem:[#allocation239_spill] sm:$0xff] %v9418_v41 }
 0x4cc   :  { %13386 = vst [vmem:[#allocation241_spill] sm:$0xff] %v9426_v40  ;;  %v13404_v40 = vld [vmem:[#allocation219_spill] sm:$0xff] }
 0x4cd   :  { %2992 = vadd.xlane.f32.xlu2 %v2991_v61  ;;  %v2840_v61 = vmul.f32 %v9176_v63, %v7952_v58 }
 0x4cf   :  { %2977 = vadd.xlane.f32.xlu0 %v2976_v20  ;;  %2989 = vadd.xlane.f32.xlu1 %v2988_v21  ;;  %v2997_v20 = vsel %vm105_vm0, %v2841_v1, 0.0  ;;  %v2845_v21 = vmul.f32 %v9256_v55, %v7954_v15  ;;  %v2994_v19 = vsel %vm105_vm0, %v2840_v61, 0.0  ;;  %v2847_v61 = vmul.f32 %v9231_v60, %v7985_v11 }
 0x4d0   :  { %v9437_v39 = vpop.xlane.xlu2 %2866 }
 0x4d1   :  { %13388 = vst [vmem:[#allocation243_spill] sm:$0xff] %v9437_v39  ;;  %v3009_v1 = vsel %vm105_vm0, %v2845_v21, 0.0  ;;  %v13439_v39 = vld [vmem:[#allocation11_spill] sm:$0xff] }
 0x4d2   :  { %v9433_v48 = vpop.xlane.xlu0 %2673  ;;  %v9441_v54 = vpop.xlane.xlu1 %2863 }
 0x4d3   :  { %13387 = vst [vmem:[#allocation242_spill] sm:$0xff] %v9433_v48  ;;  %v13407_v48 = vld [vmem:[#allocation220_spill] sm:$0xff] }
 0x4d4   :  { %13389 = vst [vmem:[#allocation244_spill] sm:$0xff] %v9441_v54 }
 0x4d5   :  { %3001 = vadd.xlane.f32.xlu2 %v3000_v5  ;;  %v2843_v5 = vmul.f32 %v9206_v2, %v7977_v59 }
 0x4d7   :  { %2986 = vadd.xlane.f32.xlu0 %v2985_v56  ;;  %2998 = vadd.xlane.f32.xlu1 %v2997_v20  ;;  %v3006_v56 = vsel %vm105_vm0, %v2844_v3, 0.0  ;;  %v2848_v20 = vmul.f32 %v9286_v46, %v7979_v9  ;;  %v3003_v21 = vsel %vm105_vm0, %v2843_v5, 0.0  ;;  %v2850_v5 = vmul.f32 %v9261_v12, %v8009_v0 }
 0x4d8   :  { %v9452_v4 = vpop.xlane.xlu2 %2875 }
 0x4d9   :  { %13391 = vst [vmem:[#allocation246_spill] sm:$0xff] %v9452_v4  ;;  %v3018_v3 = vsel %vm105_vm0, %v2848_v20, 0.0  ;;  %v13435_v4 = vld [vmem:[#allocation9_spill] sm:$0xff] }
 0x4da   :  { %v9448_v31 = vpop.xlane.xlu0 %2860  ;;  %v9456_v17 = vpop.xlane.xlu1 %2872 }
 0x4db   :  { %13390 = vst [vmem:[#allocation245_spill] sm:$0xff] %v9448_v31 }
 0x4dc   :  { %13392 = vst [vmem:[#allocation247_spill] sm:$0xff] %v9456_v17 }
 0x4dd   :  { %3010 = vadd.xlane.f32.xlu2 %v3009_v1  ;;  %v2846_v1 = vmul.f32 %v9236_v52, %v8001_v49 }
 0x4df   :  { %2995 = vadd.xlane.f32.xlu0 %v2994_v19  ;;  %3007 = vadd.xlane.f32.xlu1 %v3006_v56  ;;  %v3015_v19 = vsel %vm105_vm0, %v2847_v61, 0.0  ;;  %v2851_v56 = vmul.f32 %v9316_v50, %v8003_v6  ;;  %v3012_v20 = vsel %vm105_vm0, %v2846_v1, 0.0  ;;  %v13403_v1 = vld [vmem:[#allocation56_spill] sm:$0xff] }
 0x4e0   :  { %v9467_v55 = vpop.xlane.xlu2 %2884 }
 0x4e1   :  { %13394 = vst [vmem:[#allocation249_spill] sm:$0xff] %v9467_v55  ;;  %v3027_v61 = vsel %vm105_vm0, %v2851_v56, 0.0  ;;  %v2853_v56 = vmul.f32 %v13404_v40, %v13403_v1 }
 0x4e2   :  { %v9463_v63 = vpop.xlane.xlu0 %2869  ;;  %v9471_v22 = vpop.xlane.xlu1 %2881 }
 0x4e3   :  { %13393 = vst [vmem:[#allocation248_spill] sm:$0xff] %v9463_v63 }
 0x4e4   :  { %13395 = vst [vmem:[#allocation250_spill] sm:$0xff] %v9471_v22 }
 0x4e5   :  { %3019 = vadd.xlane.f32.xlu2 %v3018_v3  ;;  %v2849_v3 = vmul.f32 %v9266_v24, %v8031_v53 }
 0x4e7   :  { %3004 = vadd.xlane.f32.xlu0 %v3003_v21  ;;  %3016 = vadd.xlane.f32.xlu1 %v3015_v19  ;;  %v3024_v21 = vsel %vm105_vm0, %v2850_v5, 0.0  ;;  %v13401_v19 = vld [vmem:[#allocation55_spill] sm:$0xff] }
 0x4e8   :  { %v9482_v46 = vpop.xlane.xlu2 %2893  ;;  %v2854_v36 = vmul.f32 %v9346_v7, %v13401_v19  ;;  %v13466_v19 = vld [vmem:[#allocation34_spill] sm:$0xff] }
 0x4e9   :  { %13397 = vst [vmem:[#allocation252_spill] sm:$0xff] %v9482_v46 }
 0x4ea   :  { %v9478_v2 = vpop.xlane.xlu0 %2878  ;;  %v9486_v60 = vpop.xlane.xlu1 %2890  ;;  %v3036_v5 = vsel %vm105_vm0, %v2854_v36, 0.0 }
 0x4eb   :  { %13396 = vst [vmem:[#allocation251_spill] sm:$0xff] %v9478_v2 }
 0x4ec   :  { %13398 = vst [vmem:[#allocation253_spill] sm:$0xff] %v9486_v60  ;;  %v13429_v60 = vld [vmem:[#allocation23_spill] sm:$0xff] }
 0x4ed   :  { %3028 = vadd.xlane.f32.xlu2 %v3027_v61  ;;  %v3033_v61 = vsel %vm105_vm0, %v2853_v56, 0.0 }
 0x4ef   :  { %3013 = vadd.xlane.f32.xlu0 %v3012_v20  ;;  %3025 = vadd.xlane.f32.xlu1 %v3024_v21  ;;  %v3021_v20 = vsel %vm105_vm0, %v2849_v3, 0.0  ;;  %v13406_v21 = vld [vmem:[#allocation61_spill] sm:$0xff]  ;;  %v13411_v3 = vld [vmem:[#allocation62_spill] sm:$0xff] }
 0x4f0   :  { %v9497_v50 = vpop.xlane.xlu2 %2902  ;;  %v2852_v27 = vmul.f32 %v13407_v48, %v13406_v21  ;;  %v2856_v36 = vmul.f32 %v9321_v8, %v13411_v3  ;;  %v9526_v48 = vld [vmem:[%s12765_s5 + $0x408] sm:$0xff] }
 0x4f1   :  { %13400 = vst [vmem:[#allocation255_spill] sm:$0xff] %v9497_v50  ;;  %v2857_v50 = vmul.f32 %v9371_v62, %v13409_v29  ;;  %v9531_v62 = vld [vmem:[%s12765_s5 + $0x400] sm:$0xff]  ;;  %v13459_v29 = vld [vmem:[#allocation32_spill] sm:$0xff] }
 0x4f2   :  { %v9493_v52 = vpop.xlane.xlu0 %2887  ;;  %v9501_v12 = vpop.xlane.xlu1 %2899 }
 0x4f3   :  { %13399 = vst [vmem:[#allocation254_spill] sm:$0xff] %v9493_v52  ;;  %v3045_v56 = vsel %vm105_vm0, %v2857_v50, 0.0 }
 0x4f4   :  { %13402 = vst [vmem:[#allocation256_spill] sm:$0xff] %v9501_v12 }
 0x4f5   :  { %3037 = vadd.xlane.f32.xlu2 %v3036_v5  ;;  %v3042_v5 = vsel %vm105_vm0, %v2856_v36, 0.0 }
 0x4f7   :  { %3022 = vadd.xlane.f32.xlu0 %v3021_v20  ;;  %3034 = vadd.xlane.f32.xlu1 %v3033_v61  ;;  %v3030_v20 = vsel %vm105_vm0, %v2852_v27, 0.0  ;;  %v13413_v27 = vld [vmem:[#allocation66_spill] sm:$0xff] }
 0x4f8   :  { %v9512_v7 = vpop.xlane.xlu2 %2911  ;;  %v2855_v50 = vmul.f32 %v9326_v51, %v13413_v27  ;;  %v9551_v51 = vld [vmem:[%s12765_s5 + $0x420] sm:$0xff] }
 0x4f9   :  { %13408 = vst [vmem:[#allocation220_spill] sm:$0xff] %v9512_v7  ;;  %v13417_v7 = vld [vmem:[#allocation17_spill] sm:$0xff] }
 0x4fa   :  { %v9508_v24 = vpop.xlane.xlu0 %2896  ;;  %v9516_v40 = vpop.xlane.xlu1 %2908 }
 0x4fb   :  { %13405 = vst [vmem:[#allocation219_spill] sm:$0xff] %v9508_v24 }
 0x4fc   :  { %13410 = vst [vmem:[#allocation257_spill] sm:$0xff] %v9516_v40  ;;  %v3039_v40 = vsel %vm105_vm0, %v2855_v50, 0.0  ;;  %v13419_v50 = vld [vmem:[#allocation70_spill] sm:$0xff] }
 0x4fd   :  { %3046 = vadd.xlane.f32.xlu2 %v3045_v56 }
 0x4ff   :  { %3031 = vadd.xlane.f32.xlu0 %v3030_v20  ;;  %3043 = vadd.xlane.f32.xlu1 %v3042_v5  ;;  %v13415_v20 = vld [vmem:[#allocation20_spill] sm:$0xff]  ;;  %v3165_v5 = vmul.f32 %v9531_v62, %v13417_v7 }
 0x500   :  { %v9537_v61 = vpop.xlane.xlu2 %2920  ;;  %v3166_v36 = vmul.f32 %v9526_v48, %v13415_v20  ;;  %v13453_v20 = vld [vmem:[#allocation29_spill] sm:$0xff] }
 0x501   :  { %13414 = vst [vmem:[#allocation259_spill] sm:$0xff] %v9537_v61  ;;  %v9556_v61 = vld [vmem:[%s12765_s5 + $0x418] sm:$0xff] }
 0x502   :  { %v9533_v8 = vpop.xlane.xlu0 %2905  ;;  %v9541_v56 = vpop.xlane.xlu1 %2917  ;;  %v3232_v41 = vsel %vm105_vm0, %v3166_v36, 0.0  ;;  %v2858_v36 = vmul.f32 %v9351_v47, %v13419_v50  ;;  %v9576_v47 = vld [vmem:[%s12765_s5 + $0x410] sm:$0xff] }
 0x503   :  { %13412 = vst [vmem:[#allocation258_spill] sm:$0xff] %v9533_v8  ;;  %v3229_v8 = vsel %vm105_vm0, %v3165_v5, 0.0 }
 0x504   :  { %13416 = vst [vmem:[#allocation260_spill] sm:$0xff] %v9541_v56  ;;  %v3048_v24 = vsel %vm105_vm0, %v2858_v36, 0.0  ;;  %v9586_v36 = vld [vmem:[%s12765_s5 + $0x430] sm:$0xff] }
 0x505   :  { %3233 = vadd.xlane.f32.xlu2 %v3232_v41  ;;  %v13421_v41 = vld [vmem:[#allocation15_spill] sm:$0xff] }
 0x506   :  { %v3169_v5 = vmul.f32 %v9551_v51, %v13421_v41  ;;  %v13447_v41 = vld [vmem:[#allocation26_spill] sm:$0xff] }
 0x507   :  { %3040 = vadd.xlane.f32.xlu0 %v3039_v40  ;;  %3230 = vadd.xlane.f32.xlu1 %v3229_v8  ;;  %v3168_v8 = vmul.f32 %v9556_v61, %v13423_v23 }
 0x508   :  { %v9562_v40 = vpop.xlane.xlu2 %2929  ;;  %v3241_v57 = vsel %vm105_vm0, %v3169_v5, 0.0 }
 0x509   :  { %13420 = vst [vmem:[#allocation262_spill] sm:$0xff] %v9562_v40  ;;  %v9581_v40 = vld [vmem:[%s12765_s5 + $0x438] sm:$0xff] }
 0x50a   :  { %v9558_v56 = vpop.xlane.xlu0 %2914  ;;  %v9566_v12 = vpop.xlane.xlu1 %2926 }
 0x50b   :  { %13418 = vst [vmem:[#allocation261_spill] sm:$0xff] %v9558_v56  ;;  %v3238_v56 = vsel %vm105_vm0, %v3168_v8, 0.0 }
 0x50c   :  { %13422 = vst [vmem:[#allocation263_spill] sm:$0xff] %v9566_v12  ;;  %v13427_v12 = vld [vmem:[#allocation22_spill] sm:$0xff] }
 0x50d   :  { %3242 = vadd.xlane.f32.xlu2 %v3241_v57  ;;  %v13425_v57 = vld [vmem:[#allocation16_spill] sm:$0xff]  ;;  %v3172_v46 = vmul.f32 %v9581_v40, %v13427_v12 }
 0x50e   :  { %v3167_v5 = vmul.f32 %v9576_v47, %v13425_v57 }
 0x50f   :  { %3049 = vadd.xlane.f32.xlu0 %v3048_v24  ;;  %3239 = vadd.xlane.f32.xlu1 %v3238_v56  ;;  %v3171_v56 = vmul.f32 %v9586_v36, %v13429_v60  ;;  %v3250_v55 = vsel %vm105_vm0, %v3172_v46, 0.0 }
 0x510   :  { %v9592_v8 = vpop.xlane.xlu2 %2938  ;;  %v3235_v52 = vsel %vm105_vm0, %v3167_v5, 0.0  ;;  %v9616_v5 = vld [vmem:[%s12765_s5 + $0x448] sm:$0xff] }
 0x511   :  { %13426 = vst [vmem:[#allocation265_spill] sm:$0xff] %v9592_v8  ;;  %v9606_v8 = vld [vmem:[%s12765_s5 + $0x428] sm:$0xff] }
 0x512   :  { %v9588_v24 = vpop.xlane.xlu0 %2923  ;;  %v9596_v28 = vpop.xlane.xlu1 %2935 }
 0x513   :  { %13424 = vst [vmem:[#allocation264_spill] sm:$0xff] %v9588_v24  ;;  %v3247_v24 = vsel %vm105_vm0, %v3171_v56, 0.0 }
 0x514   :  { %13428 = vst [vmem:[#allocation266_spill] sm:$0xff] %v9596_v28  ;;  %v9611_v28 = vld [vmem:[%s12765_s5 + $0x450] sm:$0xff] }
 0x515   :  { %3251 = vadd.xlane.f32.xlu2 %v3250_v55  ;;  %v13431_v55 = vld [vmem:[#allocation18_spill] sm:$0xff]  ;;  %v3175_v22 = vmul.f32 %v9611_v28, %v13433_v45  ;;  %v13441_v45 = vld [vmem:[#allocation12_spill] sm:$0xff] }
 0x517   :  { %3236 = vadd.xlane.f32.xlu0 %v3235_v52  ;;  %3248 = vadd.xlane.f32.xlu1 %v3247_v24  ;;  %v3170_v52 = vmul.f32 %v9606_v8, %v13431_v55  ;;  %v3174_v24 = vmul.f32 %v9616_v5, %v13435_v4  ;;  %v3259_v63 = vsel %vm105_vm0, %v3175_v22, 0.0 }
 0x518   :  { %v9622_v56 = vpop.xlane.xlu2 %2947 }
 0x519   :  { %13432 = vst [vmem:[#allocation268_spill] sm:$0xff] %v9622_v56  ;;  %v3244_v17 = vsel %vm105_vm0, %v3170_v52, 0.0  ;;  %v9636_v56 = vld [vmem:[%s12765_s5 + $0x440] sm:$0xff] }
 0x51a   :  { %v9618_v46 = vpop.xlane.xlu0 %2932  ;;  %v9626_v2 = vpop.xlane.xlu1 %2944  ;;  %v9646_v52 = vld [vmem:[%s12765_s5 + $0x460] sm:$0xff] }
 0x51b   :  { %13430 = vst [vmem:[#allocation267_spill] sm:$0xff] %v9618_v46  ;;  %v3256_v46 = vsel %vm105_vm0, %v3174_v24, 0.0 }
 0x51c   :  { %13434 = vst [vmem:[#allocation269_spill] sm:$0xff] %v9626_v2  ;;  %v9641_v2 = vld [vmem:[%s12765_s5 + $0x468] sm:$0xff] }
 0x51d   :  { %3260 = vadd.xlane.f32.xlu2 %v3259_v63  ;;  %v13437_v63 = vld [vmem:[#allocation21_spill] sm:$0xff]  ;;  %v3178_v54 = vmul.f32 %v9641_v2, %v13439_v39 }
 0x51e   :  { %v3173_v22 = vmul.f32 %v9636_v56, %v13437_v63  ;;  %v13445_v39 = vld [vmem:[#allocation25_spill] sm:$0xff] }
 0x51f   :  { %3245 = vadd.xlane.f32.xlu0 %v3244_v17  ;;  %3257 = vadd.xlane.f32.xlu1 %v3256_v46  ;;  %v3177_v46 = vmul.f32 %v9646_v52, %v13441_v45  ;;  %v3268_v4 = vsel %vm105_vm0, %v3178_v54, 0.0 }
 0x520   :  { %v9652_v24 = vpop.xlane.xlu2 %2956  ;;  %v3253_v12 = vsel %vm105_vm0, %v3173_v22, 0.0  ;;  %v9676_v22 = vld [vmem:[%s12765_s5 + $0x478] sm:$0xff] }
 0x521   :  { %13438 = vst [vmem:[#allocation271_spill] sm:$0xff] %v9652_v24  ;;  %v9666_v24 = vld [vmem:[%s12765_s5 + $0x458] sm:$0xff] }
 0x522   :  { %v9648_v17 = vpop.xlane.xlu0 %2941  ;;  %v9656_v31 = vpop.xlane.xlu1 %2953 }
 0x523   :  { %13436 = vst [vmem:[#allocation270_spill] sm:$0xff] %v9648_v17  ;;  %v3265_v17 = vsel %vm105_vm0, %v3177_v46, 0.0 }
 0x524   :  { %13440 = vst [vmem:[#allocation272_spill] sm:$0xff] %v9656_v31  ;;  %v9671_v31 = vld [vmem:[%s12765_s5 + $0x480] sm:$0xff] }
 0x525   :  { %3269 = vadd.xlane.f32.xlu2 %v3268_v4  ;;  %v13443_v4 = vld [vmem:[#allocation24_spill] sm:$0xff]  ;;  %v3181_v45 = vmul.f32 %v9671_v31, %v13445_v39 }
 0x526   :  { %v13451_v39 = vld [vmem:[#allocation28_spill] sm:$0xff] }
 0x527   :  { %3254 = vadd.xlane.f32.xlu0 %v3253_v12  ;;  %3266 = vadd.xlane.f32.xlu1 %v3265_v17  ;;  %v3176_v12 = vmul.f32 %v9666_v24, %v13443_v4  ;;  %v3180_v17 = vmul.f32 %v9676_v22, %v13447_v41  ;;  %v3277_v60 = vsel %vm105_vm0, %v3181_v45, 0.0 }
 0x528   :  { %v9682_v46 = vpop.xlane.xlu2 %2965 }
 0x529   :  { %13444 = vst [vmem:[#allocation274_spill] sm:$0xff] %v9682_v46  ;;  %v3262_v55 = vsel %vm105_vm0, %v3176_v12, 0.0  ;;  %v9696_v46 = vld [vmem:[%s12765_s5 + $0x470] sm:$0xff] }
 0x52a   :  { %v9678_v54 = vpop.xlane.xlu0 %2950  ;;  %v9686_v63 = vpop.xlane.xlu1 %2962  ;;  %v9706_v12 = vld [vmem:[%s12765_s5 + $0x490] sm:$0xff] }
 0x52b   :  { %13442 = vst [vmem:[#allocation273_spill] sm:$0xff] %v9678_v54  ;;  %v3274_v54 = vsel %vm105_vm0, %v3180_v17, 0.0 }
 0x52c   :  { %13446 = vst [vmem:[#allocation275_spill] sm:$0xff] %v9686_v63  ;;  %v9701_v63 = vld [vmem:[%s12765_s5 + $0x498] sm:$0xff] }
 0x52d   :  { %3278 = vadd.xlane.f32.xlu2 %v3277_v60  ;;  %v13449_v60 = vld [vmem:[#allocation10_spill] sm:$0xff]  ;;  %v3184_v41 = vmul.f32 %v9701_v63, %v13451_v39  ;;  %v13457_v39 = vld [vmem:[#allocation31_spill] sm:$0xff] }
 0x52f   :  { %3263 = vadd.xlane.f32.xlu0 %v3262_v55  ;;  %3275 = vadd.xlane.f32.xlu1 %v3274_v54  ;;  %v3179_v55 = vmul.f32 %v9696_v46, %v13449_v60  ;;  %v3183_v54 = vmul.f32 %v9706_v12, %v13453_v20  ;;  %v3286_v23 = vsel %vm105_vm0, %v3184_v41, 0.0 }
 0x530   :  { %v9712_v17 = vpop.xlane.xlu2 %2974 }
 0x531   :  { %13450 = vst [vmem:[#allocation277_spill] sm:$0xff] %v9712_v17  ;;  %v3271_v57 = vsel %vm105_vm0, %v3179_v55, 0.0  ;;  %v9726_v17 = vld [vmem:[%s12765_s5 + $0x488] sm:$0xff] }
 0x532   :  { %v9708_v45 = vpop.xlane.xlu0 %2959  ;;  %v9716_v4 = vpop.xlane.xlu1 %2971  ;;  %v9736_v55 = vld [vmem:[%s12765_s5 + $0x4a8] sm:$0xff] }
 0x533   :  { %13448 = vst [vmem:[#allocation276_spill] sm:$0xff] %v9708_v45  ;;  %v3283_v45 = vsel %vm105_vm0, %v3183_v54, 0.0 }
 0x534   :  { %13452 = vst [vmem:[#allocation278_spill] sm:$0xff] %v9716_v4  ;;  %v9731_v4 = vld [vmem:[%s12765_s5 + $0x4b0] sm:$0xff] }
 0x535   :  { %3287 = vadd.xlane.f32.xlu2 %v3286_v23  ;;  %v13455_v23 = vld [vmem:[#allocation13_spill] sm:$0xff]  ;;  %v3187_v20 = vmul.f32 %v9731_v4, %v13457_v39  ;;  %v13464_v39 = vld [vmem:[#allocation6_spill] sm:$0xff] }
 0x537   :  { %3272 = vadd.xlane.f32.xlu0 %v3271_v57  ;;  %3284 = vadd.xlane.f32.xlu1 %v3283_v45  ;;  %v3182_v57 = vmul.f32 %v9726_v17, %v13455_v23  ;;  %v3186_v45 = vmul.f32 %v9736_v55, %v13459_v29  ;;  %v3295_v7 = vsel %vm105_vm0, %v3187_v20, 0.0 }
 0x538   :  { %v9742_v54 = vpop.xlane.xlu2 %2983 }
 0x539   :  { %13456 = vst [vmem:[#allocation280_spill] sm:$0xff] %v9742_v54  ;;  %v3280_v50 = vsel %vm105_vm0, %v3182_v57, 0.0  ;;  %v9756_v54 = vld [vmem:[%s12765_s5 + $0x4a0] sm:$0xff] }
 0x53a   :  { %v9738_v41 = vpop.xlane.xlu0 %2968  ;;  %v9746_v60 = vpop.xlane.xlu1 %2980  ;;  %v9766_v57 = vld [vmem:[%s12765_s5 + $0x4c0] sm:$0xff] }
 0x53b   :  { %13454 = vst [vmem:[#allocation279_spill] sm:$0xff] %v9738_v41  ;;  %v3292_v41 = vsel %vm105_vm0, %v3186_v45, 0.0 }
 0x53c   :  { %13458 = vst [vmem:[#allocation281_spill] sm:$0xff] %v9746_v60  ;;  %v9761_v60 = vld [vmem:[%s12765_s5 + $0x4c8] sm:$0xff] }
 0x53d   :  { %3296 = vadd.xlane.f32.xlu2 %v3295_v7  ;;  %13460 = vst [vmem:[#allocation282_spill] sm:$0xff] %v9766_v57  ;;  %v13462_v7 = vld [vmem:[#allocation27_spill] sm:$0xff]  ;;  %v3190_v29 = vmul.f32 %v9761_v60, %v13464_v39 }
 0x53e   :  { %v13472_v39 = vld [vmem:[#allocation35_spill] sm:$0xff] }
 0x53f   :  { %3281 = vadd.xlane.f32.xlu0 %v3280_v50  ;;  %3293 = vadd.xlane.f32.xlu1 %v3292_v41  ;;  %v3185_v50 = vmul.f32 %v9756_v54, %v13462_v7  ;;  %v3189_v41 = vmul.f32 %v9766_v57, %v13466_v19  ;;  %v3304_v3 = vsel %vm105_vm0, %v3190_v29, 0.0 }
 0x540   :  { %v9772_v45 = vpop.xlane.xlu2 %2992 }
 0x541   :  { %13463 = vst [vmem:[#allocation284_spill] sm:$0xff] %v9772_v45  ;;  %v3289_v27 = vsel %vm105_vm0, %v3185_v50, 0.0  ;;  %v9786_v45 = vld [vmem:[%s12765_s5 + $0x4b8] sm:$0xff] }
 0x542   :  { %v9768_v20 = vpop.xlane.xlu0 %2977  ;;  %v9776_v23 = vpop.xlane.xlu1 %2989  ;;  %v9796_v50 = vld [vmem:[%s12765_s5 + $0x4d8] sm:$0xff] }
 0x543   :  { %13461 = vst [vmem:[#allocation283_spill] sm:$0xff] %v9768_v20  ;;  %v3301_v20 = vsel %vm105_vm0, %v3189_v41, 0.0 }
 0x544   :  { %13465 = vst [vmem:[#allocation285_spill] sm:$0xff] %v9776_v23  ;;  %v9791_v23 = vld [vmem:[%s12765_s5 + $0x4e0] sm:$0xff] }
 0x545   :  { %3305 = vadd.xlane.f32.xlu2 %v3304_v3  ;;  %13467 = vst [vmem:[#allocation286_spill] sm:$0xff] %v9791_v23  ;;  %v13470_v3 = vld [vmem:[#allocation30_spill] sm:$0xff]  ;;  %v3193_v19 = vmul.f32 %v9791_v23, %v13472_v39  ;;  %v13477_v39 = vld [vmem:[#allocation37_spill] sm:$0xff] }
 0x546   :  { %13468 = vst [vmem:[#allocation287_spill] sm:$0xff] %v9796_v50 }
 0x547   :  { %3290 = vadd.xlane.f32.xlu0 %v3289_v27  ;;  %3302 = vadd.xlane.f32.xlu1 %v3301_v20  ;;  %v3188_v27 = vmul.f32 %v9786_v45, %v13470_v3  ;;  %v3192_v20 = vmul.f32 %v9796_v50, %v13371_v38  ;;  %v3313_v6 = vsel %vm105_vm0, %v3193_v19, 0.0 }
 0x548   :  { %v9802_v41 = vpop.xlane.xlu2 %3001 }
 0x549   :  { %13471 = vst [vmem:[#allocation289_spill] sm:$0xff] %v9802_v41  ;;  %v3298_v57 = vsel %vm105_vm0, %v3188_v27, 0.0  ;;  %v9816_v41 = vld [vmem:[%s12765_s5 + $0x4d0] sm:$0xff] }
 0x54a   :  { %v9798_v29 = vpop.xlane.xlu0 %2986  ;;  %v9806_v7 = vpop.xlane.xlu1 %2998  ;;  %v9826_v27 = vld [vmem:[%s12765_s5 + $0x4f0] sm:$0xff] }
 0x54b   :  { %13469 = vst [vmem:[#allocation288_spill] sm:$0xff] %v9798_v29  ;;  %v3310_v29 = vsel %vm105_vm0, %v3192_v20, 0.0 }
 0x54c   :  { %13473 = vst [vmem:[#allocation290_spill] sm:$0xff] %v9806_v7  ;;  %v9821_v7 = vld [vmem:[%s12765_s5 + $0x4f8] sm:$0xff] }
 0x54d   :  { %3314 = vadd.xlane.f32.xlu2 %v3313_v6  ;;  %v13475_v6 = vld [vmem:[#allocation33_spill] sm:$0xff]  ;;  %v3196_v38 = vmul.f32 %v9821_v7, %v13477_v39 }
 0x54f   :  { %3299 = vadd.xlane.f32.xlu0 %v3298_v57  ;;  %3311 = vadd.xlane.f32.xlu1 %v3310_v29  ;;  %v3191_v57 = vmul.f32 %v9816_v41, %v13475_v6  ;;  %v3195_v29 = vmul.f32 %v9826_v27, %v13375_v14  ;;  %v3322_v23 = vsel %vm105_vm0, %v3196_v38, 0.0  ;;  %v3199_v38 = vmul.f32 %v9576_v47, %v7857_v43 }
 0x550   :  { %v9832_v20 = vpop.xlane.xlu2 %3010 }
 0x551   :  { %13476 = vst [vmem:[#allocation292_spill] sm:$0xff] %v9832_v20  ;;  %v3307_v50 = vsel %vm105_vm0, %v3191_v57, 0.0  ;;  %v9846_v20 = vld [vmem:[%s12765_s5 + $0x4e8] sm:$0xff] }
 0x552   :  { %v9828_v19 = vpop.xlane.xlu0 %2995  ;;  %v9836_v3 = vpop.xlane.xlu1 %3007 }
 0x553   :  { %13474 = vst [vmem:[#allocation291_spill] sm:$0xff] %v9828_v19  ;;  %v3319_v19 = vsel %vm105_vm0, %v3195_v29, 0.0  ;;  %v3331_v29 = vsel %vm105_vm0, %v3199_v38, 0.0 }
 0x554   :  { %13478 = vst [vmem:[#allocation293_spill] sm:$0xff] %v9836_v3  ;;  %v13480_v3 = vld [vmem:[#allocation7_spill] sm:$0xff] }
 0x555   :  { %3323 = vadd.xlane.f32.xlu2 %v3322_v23  ;;  %v3194_v6 = vmul.f32 %v9846_v20, %v13480_v3  ;;  %v3198_v23 = vmul.f32 %v9526_v48, %v7872_v16 }
 0x557   :  { %3308 = vadd.xlane.f32.xlu0 %v3307_v50  ;;  %3320 = vadd.xlane.f32.xlu1 %v3319_v19  ;;  %v3316_v57 = vsel %vm105_vm0, %v3194_v6, 0.0  ;;  %v3328_v19 = vsel %vm105_vm0, %v3198_v23, 0.0  ;;  %v3201_v6 = vmul.f32 %v9551_v51, %v7890_v10 }
 0x558   :  { %v9852_v14 = vpop.xlane.xlu2 %3019 }
 0x559   :  { %13481 = vst [vmem:[#allocation295_spill] sm:$0xff] %v9852_v14  ;;  %v13484_v14 = vld [vmem:[#allocation14_spill] sm:$0xff] }
 0x55a   :  { %v9848_v39 = vpop.xlane.xlu0 %3004  ;;  %v9856_v50 = vpop.xlane.xlu1 %3016  ;;  %v3197_v3 = vmul.f32 %v9531_v62, %v13484_v14 }
 0x55b   :  { %13479 = vst [vmem:[#allocation294_spill] sm:$0xff] %v9848_v39 }
 0x55c   :  { %13482 = vst [vmem:[#allocation296_spill] sm:$0xff] %v9856_v50  ;;  %v3202_v50 = vmul.f32 %v9606_v8, %v7880_v35  ;;  %v3325_v38 = vsel %vm105_vm0, %v3197_v3, 0.0  ;;  %v3204_v3 = vmul.f32 %v9581_v40, %v7910_v30 }
 0x55d   :  { %3332 = vadd.xlane.f32.xlu2 %v3331_v29  ;;  %v3200_v29 = vmul.f32 %v9556_v61, %v13168_v42 }
 0x55e   :  { %v3340_v23 = vsel %vm105_vm0, %v3202_v50, 0.0 }
 0x55f   :  { %3317 = vadd.xlane.f32.xlu0 %v3316_v57  ;;  %3329 = vadd.xlane.f32.xlu1 %v3328_v19  ;;  %v3337_v57 = vsel %vm105_vm0, %v3201_v6, 0.0  ;;  %v3205_v19 = vmul.f32 %v9636_v56, %v7898_v32  ;;  %v3334_v50 = vsel %vm105_vm0, %v3200_v29, 0.0  ;;  %v3207_v29 = vmul.f32 %v9611_v28, %v7932_v18 }
 0x560   :  { %v9867_v47 = vpop.xlane.xlu2 %3028 }
 0x561   :  { %13485 = vst [vmem:[#allocation298_spill] sm:$0xff] %v9867_v47  ;;  %v3349_v6 = vsel %vm105_vm0, %v3205_v19, 0.0 }
 0x562   :  { %v9863_v39 = vpop.xlane.xlu0 %3013  ;;  %v9871_v48 = vpop.xlane.xlu1 %3025 }
 0x563   :  { %13483 = vst [vmem:[#allocation297_spill] sm:$0xff] %v9863_v39 }
 0x564   :  { %13486 = vst [vmem:[#allocation299_spill] sm:$0xff] %v9871_v48  ;;  %v13534_v48 = vld [vmem:[#allocation18_spill] sm:$0xff] }
 0x565   :  { %3341 = vadd.xlane.f32.xlu2 %v3340_v23  ;;  %v3203_v23 = vmul.f32 %v9586_v36, %v7874_v33 }
 0x567   :  { %3326 = vadd.xlane.f32.xlu0 %v3325_v38  ;;  %3338 = vadd.xlane.f32.xlu1 %v3337_v57  ;;  %v3346_v38 = vsel %vm105_vm0, %v3204_v3, 0.0  ;;  %v3208_v57 = vmul.f32 %v9666_v24, %v7918_v44  ;;  %v3343_v19 = vsel %vm105_vm0, %v3203_v23, 0.0  ;;  %v3210_v23 = vmul.f32 %v9641_v2, %v7952_v58 }
 0x568   :  { %v9882_v8 = vpop.xlane.xlu2 %3037 }
 0x569   :  { %13488 = vst [vmem:[#allocation301_spill] sm:$0xff] %v9882_v8  ;;  %v3358_v3 = vsel %vm105_vm0, %v3208_v57, 0.0 }
 0x56a   :  { %v9878_v62 = vpop.xlane.xlu0 %3022  ;;  %v9886_v51 = vpop.xlane.xlu1 %3034 }
 0x56b   :  { %13487 = vst [vmem:[#allocation300_spill] sm:$0xff] %v9878_v62  ;;  %v13538_v62 = vld [vmem:[#allocation9_spill] sm:$0xff] }
 0x56c   :  { %13489 = vst [vmem:[#allocation302_spill] sm:$0xff] %v9886_v51 }
 0x56d   :  { %3350 = vadd.xlane.f32.xlu2 %v3349_v6  ;;  %v3206_v6 = vmul.f32 %v9616_v5, %v13175_v37 }
 0x56f   :  { %3335 = vadd.xlane.f32.xlu0 %v3334_v50  ;;  %3347 = vadd.xlane.f32.xlu1 %v3346_v38  ;;  %v3355_v50 = vsel %vm105_vm0, %v3207_v29, 0.0  ;;  %v3211_v38 = vmul.f32 %v9696_v46, %v7940_v26  ;;  %v3352_v57 = vsel %vm105_vm0, %v3206_v6, 0.0  ;;  %v3213_v6 = vmul.f32 %v9671_v31, %v7977_v59 }
 0x570   :  { %v9897_v56 = vpop.xlane.xlu2 %3046 }
 0x571   :  { %13491 = vst [vmem:[#allocation304_spill] sm:$0xff] %v9897_v56  ;;  %v3367_v29 = vsel %vm105_vm0, %v3211_v38, 0.0  ;;  %v13512_v56 = vld [vmem:[#allocation62_spill] sm:$0xff] }
 0x572   :  { %v9893_v61 = vpop.xlane.xlu0 %3031  ;;  %v9901_v40 = vpop.xlane.xlu1 %3043 }
 0x573   :  { %13490 = vst [vmem:[#allocation303_spill] sm:$0xff] %v9893_v61 }
 0x574   :  { %13492 = vst [vmem:[#allocation305_spill] sm:$0xff] %v9901_v40  ;;  %v3226_v40 = vmul.f32 %v9846_v20, %v13512_v56  ;;  %v13571_v56 = vld [vmem:[#allocation30_spill] sm:$0xff] }
 0x575   :  { %3359 = vadd.xlane.f32.xlu2 %v3358_v3  ;;  %v3209_v3 = vmul.f32 %v9646_v52, %v7912_v13 }
 0x577   :  { %3344 = vadd.xlane.f32.xlu0 %v3343_v19  ;;  %3356 = vadd.xlane.f32.xlu1 %v3355_v50  ;;  %v3364_v19 = vsel %vm105_vm0, %v3210_v23, 0.0  ;;  %v3214_v50 = vmul.f32 %v9726_v17, %v7964_v25  ;;  %v3361_v38 = vsel %vm105_vm0, %v3209_v3, 0.0  ;;  %v3216_v3 = vmul.f32 %v9701_v63, %v8001_v49 }
 0x578   :  { %v9912_v24 = vpop.xlane.xlu2 %3233 }
 0x579   :  { %13494 = vst [vmem:[#allocation307_spill] sm:$0xff] %v9912_v24  ;;  %v3376_v23 = vsel %vm105_vm0, %v3214_v50, 0.0 }
 0x57a   :  { %v9908_v36 = vpop.xlane.xlu0 %3040  ;;  %v9916_v28 = vpop.xlane.xlu1 %3230 }
 0x57b   :  { %13493 = vst [vmem:[#allocation306_spill] sm:$0xff] %v9908_v36  ;;  %v13515_v36 = vld [vmem:[#allocation286_spill] sm:$0xff] }
 0x57c   :  { %13495 = vst [vmem:[#allocation308_spill] sm:$0xff] %v9916_v28 }
 0x57d   :  { %3368 = vadd.xlane.f32.xlu2 %v3367_v29  ;;  %v3212_v29 = vmul.f32 %v9676_v22, %v7934_v34 }
 0x57f   :  { %3353 = vadd.xlane.f32.xlu0 %v3352_v57  ;;  %3365 = vadd.xlane.f32.xlu1 %v3364_v19  ;;  %v3373_v57 = vsel %vm105_vm0, %v3213_v6, 0.0  ;;  %v3217_v19 = vmul.f32 %v9756_v54, %v7985_v11  ;;  %v3370_v50 = vsel %vm105_vm0, %v3212_v29, 0.0  ;;  %v3219_v29 = vmul.f32 %v9731_v4, %v8031_v53 }
 0x580   :  { %v9927_v46 = vpop.xlane.xlu2 %3242 }
 0x581   :  { %13497 = vst [vmem:[#allocation310_spill] sm:$0xff] %v9927_v46  ;;  %v3385_v6 = vsel %vm105_vm0, %v3217_v19, 0.0 }
 0x582   :  { %v9923_v5 = vpop.xlane.xlu0 %3049  ;;  %v9931_v2 = vpop.xlane.xlu1 %3239 }
 0x583   :  { %13496 = vst [vmem:[#allocation309_spill] sm:$0xff] %v9923_v5 }
 0x584   :  { %13498 = vst [vmem:[#allocation311_spill] sm:$0xff] %v9931_v2 }
 0x585   :  { %3377 = vadd.xlane.f32.xlu2 %v3376_v23  ;;  %v3215_v23 = vmul.f32 %v9706_v12, %v7954_v15 }
 0x587   :  { %3362 = vadd.xlane.f32.xlu0 %v3361_v38  ;;  %3374 = vadd.xlane.f32.xlu1 %v3373_v57  ;;  %v3382_v38 = vsel %vm105_vm0, %v3216_v3, 0.0  ;;  %v3220_v57 = vmul.f32 %v9786_v45, %v8009_v0  ;;  %v3379_v19 = vsel %vm105_vm0, %v3215_v23, 0.0  ;;  %v3222_v23 = vmul.f32 %v9761_v60, %v13406_v21 }
 0x588   :  { %v9942_v17 = vpop.xlane.xlu2 %3251 }
 0x589   :  { %13500 = vst [vmem:[#allocation313_spill] sm:$0xff] %v9942_v17  ;;  %v3394_v3 = vsel %vm105_vm0, %v3220_v57, 0.0  ;;  %v13540_v17 = vld [vmem:[#allocation21_spill] sm:$0xff] }
 0x58a   :  { %v9938_v52 = vpop.xlane.xlu0 %3236  ;;  %v9946_v31 = vpop.xlane.xlu1 %3248 }
 0x58b   :  { %13499 = vst [vmem:[#allocation312_spill] sm:$0xff] %v9938_v52  ;;  %v13546_v52 = vld [vmem:[#allocation24_spill] sm:$0xff] }
 0x58c   :  { %13501 = vst [vmem:[#allocation314_spill] sm:$0xff] %v9946_v31 }
 0x58d   :  { %3386 = vadd.xlane.f32.xlu2 %v3385_v6  ;;  %v3218_v6 = vmul.f32 %v9736_v55, %v7979_v9 }
 0x58f   :  { %3371 = vadd.xlane.f32.xlu0 %v3370_v50  ;;  %3383 = vadd.xlane.f32.xlu1 %v3382_v38  ;;  %v3391_v50 = vsel %vm105_vm0, %v3219_v29, 0.0  ;;  %v3223_v38 = vmul.f32 %v9816_v41, %v13403_v1  ;;  %v3388_v57 = vsel %vm105_vm0, %v3218_v6, 0.0  ;;  %v13514_v6 = vld [vmem:[#allocation66_spill] sm:$0xff]  ;;  %v13579_v1 = vld [vmem:[#allocation33_spill] sm:$0xff] }
 0x590   :  { %v9957_v54 = vpop.xlane.xlu2 %3260 }
 0x591   :  { %13503 = vst [vmem:[#allocation316_spill] sm:$0xff] %v9957_v54  ;;  %v3403_v29 = vsel %vm105_vm0, %v3223_v38, 0.0  ;;  %v3225_v38 = vmul.f32 %v13515_v36, %v13514_v6 }
 0x592   :  { %v9953_v22 = vpop.xlane.xlu0 %3245  ;;  %v9961_v63 = vpop.xlane.xlu1 %3257 }
 0x593   :  { %13502 = vst [vmem:[#allocation315_spill] sm:$0xff] %v9953_v22  ;;  %v13544_v22 = vld [vmem:[#allocation12_spill] sm:$0xff] }
 0x594   :  { %13504 = vst [vmem:[#allocation317_spill] sm:$0xff] %v9961_v63 }
 0x595   :  { %3395 = vadd.xlane.f32.xlu2 %v3394_v3  ;;  %v13509_v3 = vld [vmem:[#allocation50_spill] sm:$0xff] }
 0x597   :  { %3380 = vadd.xlane.f32.xlu0 %v3379_v19  ;;  %3392 = vadd.xlane.f32.xlu1 %v3391_v50  ;;  %v3400_v19 = vsel %vm105_vm0, %v3222_v23, 0.0  ;;  %v13510_v50 = vld [vmem:[#allocation282_spill] sm:$0xff]  ;;  %v3412_v23 = vsel %vm105_vm0, %v3226_v40, 0.0 }
 0x598   :  { %v9972_v45 = vpop.xlane.xlu2 %3269  ;;  %v3221_v5 = vmul.f32 %v13510_v50, %v13509_v3  ;;  %v13517_v50 = vld [vmem:[#allocation55_spill] sm:$0xff] }
 0x599   :  { %13506 = vst [vmem:[#allocation319_spill] sm:$0xff] %v9972_v45 }
 0x59a   :  { %v9968_v12 = vpop.xlane.xlu0 %3254  ;;  %v9976_v4 = vpop.xlane.xlu1 %3266 }
 0x59b   :  { %13505 = vst [vmem:[#allocation318_spill] sm:$0xff] %v9968_v12 }
 0x59c   :  { %13507 = vst [vmem:[#allocation320_spill] sm:$0xff] %v9976_v4 }
 0x59d   :  { %3404 = vadd.xlane.f32.xlu2 %v3403_v29  ;;  %v3409_v29 = vsel %vm105_vm0, %v3225_v38, 0.0 }
 0x59f   :  { %3389 = vadd.xlane.f32.xlu0 %v3388_v57  ;;  %3401 = vadd.xlane.f32.xlu1 %v3400_v19  ;;  %v3397_v57 = vsel %vm105_vm0, %v3221_v5, 0.0  ;;  %v10001_v19 = vld [vmem:[%s12765_s5 + $0x500] sm:$0xff]  ;;  %v13520_v5 = vld [vmem:[#allocation17_spill] sm:$0xff] }
 0x5a0   :  { %v9987_v41 = vpop.xlane.xlu2 %3278  ;;  %v3535_v40 = vmul.f32 %v10001_v19, %v13520_v5  ;;  %v13564_v5 = vld [vmem:[#allocation27_spill] sm:$0xff] }
 0x5a1   :  { %13511 = vst [vmem:[#allocation282_spill] sm:$0xff] %v9987_v41  ;;  %v13518_v41 = vld [vmem:[#allocation287_spill] sm:$0xff] }
 0x5a2   :  { %v9983_v55 = vpop.xlane.xlu0 %3263  ;;  %v9991_v60 = vpop.xlane.xlu1 %3275  ;;  %v3224_v8 = vmul.f32 %v13518_v41, %v13517_v50  ;;  %v3599_v51 = vsel %vm105_vm0, %v3535_v40, 0.0  ;;  %v10021_v41 = vld [vmem:[%s12765_s5 + $0x518] sm:$0xff] }
 0x5a3   :  { %13508 = vst [vmem:[#allocation321_spill] sm:$0xff] %v9983_v55 }
 0x5a4   :  { %13513 = vst [vmem:[#allocation322_spill] sm:$0xff] %v9991_v60  ;;  %v3406_v60 = vsel %vm105_vm0, %v3224_v8, 0.0  ;;  %v13524_v8 = vld [vmem:[#allocation60_spill] sm:$0xff] }
 0x5a5   :  { %3413 = vadd.xlane.f32.xlu2 %v3412_v23  ;;  %v13522_v23 = vld [vmem:[#allocation70_spill] sm:$0xff]  ;;  %v3227_v40 = vmul.f32 %v9826_v27, %v13524_v8  ;;  %v10046_v27 = vld [vmem:[%s12765_s5 + $0x508] sm:$0xff] }
 0x5a6   :  { %v3228_v38 = vmul.f32 %v9821_v7, %v13522_v23 }
 0x5a7   :  { %3398 = vadd.xlane.f32.xlu0 %v3397_v57  ;;  %3410 = vadd.xlane.f32.xlu1 %v3409_v29  ;;  %v3415_v45 = vsel %vm105_vm0, %v3227_v40, 0.0  ;;  %v10056_v40 = vld [vmem:[%s12765_s5 + $0x528] sm:$0xff] }
 0x5a8   :  { %v10007_v36 = vpop.xlane.xlu2 %3287  ;;  %v3418_v29 = vsel %vm105_vm0, %v3228_v38, 0.0 }
 0x5a9   :  { %13519 = vst [vmem:[#allocation287_spill] sm:$0xff] %v10007_v36  ;;  %v10026_v36 = vld [vmem:[%s12765_s5 + $0x510] sm:$0xff] }
 0x5aa   :  { %v10003_v20 = vpop.xlane.xlu0 %3272  ;;  %v10011_v57 = vpop.xlane.xlu1 %3284 }
 0x5ab   :  { %13516 = vst [vmem:[#allocation286_spill] sm:$0xff] %v10003_v20  ;;  %v13528_v20 = vld [vmem:[#allocation16_spill] sm:$0xff] }
 0x5ac   :  { %13521 = vst [vmem:[#allocation323_spill] sm:$0xff] %v10011_v57 }
 0x5ad   :  { %3600 = vadd.xlane.f32.xlu2 %v3599_v51  ;;  %v13526_v51 = vld [vmem:[#allocation19_spill] sm:$0xff] }
 0x5ae   :  { %v3538_v38 = vmul.f32 %v10021_v41, %v13526_v51  ;;  %v13558_v51 = vld [vmem:[#allocation13_spill] sm:$0xff] }
 0x5af   :  { %3407 = vadd.xlane.f32.xlu0 %v3406_v60  ;;  %3419 = vadd.xlane.f32.xlu1 %v3418_v29  ;;  %v3537_v29 = vmul.f32 %v10026_v36, %v13528_v20 }
 0x5b0   :  { %v10032_v60 = vpop.xlane.xlu2 %3296  ;;  %v3608_v61 = vsel %vm105_vm0, %v3538_v38, 0.0 }
 0x5b1   :  { %13525 = vst [vmem:[#allocation325_spill] sm:$0xff] %v10032_v60  ;;  %v10051_v60 = vld [vmem:[%s12765_s5 + $0x530] sm:$0xff] }
 0x5b2   :  { %v10028_v7 = vpop.xlane.xlu0 %3281  ;;  %v10036_v57 = vpop.xlane.xlu1 %3293 }
 0x5b3   :  { %13523 = vst [vmem:[#allocation324_spill] sm:$0xff] %v10028_v7  ;;  %v3605_v7 = vsel %vm105_vm0, %v3537_v29, 0.0 }
 0x5b4   :  { %13527 = vst [vmem:[#allocation326_spill] sm:$0xff] %v10036_v57  ;;  %v13532_v57 = vld [vmem:[#allocation23_spill] sm:$0xff] }
 0x5b5   :  { %3609 = vadd.xlane.f32.xlu2 %v3608_v61  ;;  %v13530_v61 = vld [vmem:[#allocation20_spill] sm:$0xff]  ;;  %v3541_v47 = vmul.f32 %v10051_v60, %v13532_v57  ;;  %v13552_v57 = vld [vmem:[#allocation10_spill] sm:$0xff] }
 0x5b6   :  { %v3536_v38 = vmul.f32 %v10046_v27, %v13530_v61 }
 0x5b7   :  { %3416 = vadd.xlane.f32.xlu0 %v3415_v45  ;;  %3606 = vadd.xlane.f32.xlu1 %v3605_v7  ;;  %v3540_v7 = vmul.f32 %v10056_v40, %v13534_v48  ;;  %v3617_v54 = vsel %vm105_vm0, %v3541_v47, 0.0 }
 0x5b8   :  { %v10062_v29 = vpop.xlane.xlu2 %3305  ;;  %v3602_v55 = vsel %vm105_vm0, %v3536_v38, 0.0  ;;  %v10086_v38 = vld [vmem:[%s12765_s5 + $0x540] sm:$0xff] }
 0x5b9   :  { %13531 = vst [vmem:[#allocation328_spill] sm:$0xff] %v10062_v29  ;;  %v10076_v29 = vld [vmem:[%s12765_s5 + $0x520] sm:$0xff] }
 0x5ba   :  { %v10058_v45 = vpop.xlane.xlu0 %3290  ;;  %v10066_v4 = vpop.xlane.xlu1 %3302 }
 0x5bb   :  { %13529 = vst [vmem:[#allocation327_spill] sm:$0xff] %v10058_v45  ;;  %v3614_v45 = vsel %vm105_vm0, %v3540_v7, 0.0 }
 0x5bc   :  { %13533 = vst [vmem:[#allocation329_spill] sm:$0xff] %v10066_v4  ;;  %v10081_v4 = vld [vmem:[%s12765_s5 + $0x548] sm:$0xff] }
 0x5bd   :  { %3618 = vadd.xlane.f32.xlu2 %v3617_v54  ;;  %v13536_v54 = vld [vmem:[#allocation15_spill] sm:$0xff]  ;;  %v3544_v63 = vmul.f32 %v10081_v4, %v13538_v62 }
 0x5bf   :  { %3603 = vadd.xlane.f32.xlu0 %v3602_v55  ;;  %3615 = vadd.xlane.f32.xlu1 %v3614_v45  ;;  %v3539_v55 = vmul.f32 %v10076_v29, %v13536_v54  ;;  %v3543_v45 = vmul.f32 %v10086_v38, %v13540_v17  ;;  %v3626_v31 = vsel %vm105_vm0, %v3544_v63, 0.0 }
 0x5c0   :  { %v10092_v7 = vpop.xlane.xlu2 %3314 }
 0x5c1   :  { %13537 = vst [vmem:[#allocation331_spill] sm:$0xff] %v10092_v7  ;;  %v3611_v39 = vsel %vm105_vm0, %v3539_v55, 0.0  ;;  %v10106_v7 = vld [vmem:[%s12765_s5 + $0x538] sm:$0xff] }
 0x5c2   :  { %v10088_v47 = vpop.xlane.xlu0 %3299  ;;  %v10096_v12 = vpop.xlane.xlu1 %3311  ;;  %v10116_v55 = vld [vmem:[%s12765_s5 + $0x558] sm:$0xff] }
 0x5c3   :  { %13535 = vst [vmem:[#allocation330_spill] sm:$0xff] %v10088_v47  ;;  %v3623_v47 = vsel %vm105_vm0, %v3543_v45, 0.0 }
 0x5c4   :  { %13539 = vst [vmem:[#allocation332_spill] sm:$0xff] %v10096_v12  ;;  %v10111_v12 = vld [vmem:[%s12765_s5 + $0x560] sm:$0xff] }
 0x5c5   :  { %3627 = vadd.xlane.f32.xlu2 %v3626_v31  ;;  %v13542_v31 = vld [vmem:[#allocation22_spill] sm:$0xff]  ;;  %v3547_v46 = vmul.f32 %v10111_v12, %v13544_v22 }
 0x5c6   :  { %v3542_v63 = vmul.f32 %v10106_v7, %v13542_v31  ;;  %v13550_v22 = vld [vmem:[#allocation26_spill] sm:$0xff] }
 0x5c7   :  { %3612 = vadd.xlane.f32.xlu0 %v3611_v39  ;;  %3624 = vadd.xlane.f32.xlu1 %v3623_v47  ;;  %v3546_v47 = vmul.f32 %v10116_v55, %v13546_v52  ;;  %v3635_v28 = vsel %vm105_vm0, %v3547_v46, 0.0 }
 0x5c8   :  { %v10122_v45 = vpop.xlane.xlu2 %3323  ;;  %v3620_v24 = vsel %vm105_vm0, %v3542_v63, 0.0  ;;  %v10146_v63 = vld [vmem:[%s12765_s5 + $0x570] sm:$0xff] }
 0x5c9   :  { %13543 = vst [vmem:[#allocation334_spill] sm:$0xff] %v10122_v45  ;;  %v10136_v45 = vld [vmem:[%s12765_s5 + $0x550] sm:$0xff] }
 0x5ca   :  { %v10118_v39 = vpop.xlane.xlu0 %3308  ;;  %v10126_v2 = vpop.xlane.xlu1 %3320 }
 0x5cb   :  { %13541 = vst [vmem:[#allocation333_spill] sm:$0xff] %v10118_v39  ;;  %v3632_v39 = vsel %vm105_vm0, %v3546_v47, 0.0 }
 0x5cc   :  { %13545 = vst [vmem:[#allocation335_spill] sm:$0xff] %v10126_v2  ;;  %v10141_v2 = vld [vmem:[%s12765_s5 + $0x578] sm:$0xff] }
 0x5cd   :  { %3636 = vadd.xlane.f32.xlu2 %v3635_v28  ;;  %v13548_v28 = vld [vmem:[#allocation8_spill] sm:$0xff]  ;;  %v3550_v62 = vmul.f32 %v10141_v2, %v13550_v22  ;;  %v13556_v22 = vld [vmem:[#allocation29_spill] sm:$0xff] }
 0x5ce   :  { %v3545_v46 = vmul.f32 %v10136_v45, %v13548_v28 }
 0x5cf   :  { %3621 = vadd.xlane.f32.xlu0 %v3620_v24  ;;  %3633 = vadd.xlane.f32.xlu1 %v3632_v39  ;;  %v3549_v39 = vmul.f32 %v10146_v63, %v13552_v57  ;;  %v3644_v17 = vsel %vm105_vm0, %v3550_v62, 0.0 }
 0x5d0   :  { %v10152_v47 = vpop.xlane.xlu2 %3332  ;;  %v3629_v31 = vsel %vm105_vm0, %v3545_v46, 0.0  ;;  %v10176_v46 = vld [vmem:[%s12765_s5 + $0x588] sm:$0xff] }
 0x5d1   :  { %13549 = vst [vmem:[#allocation337_spill] sm:$0xff] %v10152_v47  ;;  %v10166_v47 = vld [vmem:[%s12765_s5 + $0x568] sm:$0xff] }
 0x5d2   :  { %v10148_v24 = vpop.xlane.xlu0 %3317  ;;  %v10156_v52 = vpop.xlane.xlu1 %3329 }
 0x5d3   :  { %13547 = vst [vmem:[#allocation336_spill] sm:$0xff] %v10148_v24  ;;  %v3641_v24 = vsel %vm105_vm0, %v3549_v39, 0.0 }
 0x5d4   :  { %13551 = vst [vmem:[#allocation338_spill] sm:$0xff] %v10156_v52  ;;  %v10171_v52 = vld [vmem:[%s12765_s5 + $0x590] sm:$0xff] }
 0x5d5   :  { %3645 = vadd.xlane.f32.xlu2 %v3644_v17  ;;  %v13554_v17 = vld [vmem:[#allocation11_spill] sm:$0xff]  ;;  %v3553_v57 = vmul.f32 %v10171_v52, %v13556_v22  ;;  %v13562_v22 = vld [vmem:[#allocation32_spill] sm:$0xff] }
 0x5d7   :  { %3630 = vadd.xlane.f32.xlu0 %v3629_v31  ;;  %3642 = vadd.xlane.f32.xlu1 %v3641_v24  ;;  %v3548_v31 = vmul.f32 %v10166_v47, %v13554_v17  ;;  %v3552_v24 = vmul.f32 %v10176_v46, %v13558_v51  ;;  %v3653_v48 = vsel %vm105_vm0, %v3553_v57, 0.0 }
 0x5d8   :  { %v10182_v39 = vpop.xlane.xlu2 %3341 }
 0x5d9   :  { %13555 = vst [vmem:[#allocation340_spill] sm:$0xff] %v10182_v39  ;;  %v3638_v54 = vsel %vm105_vm0, %v3548_v31, 0.0  ;;  %v10196_v39 = vld [vmem:[%s12765_s5 + $0x580] sm:$0xff] }
 0x5da   :  { %v10178_v62 = vpop.xlane.xlu0 %3326  ;;  %v10186_v28 = vpop.xlane.xlu1 %3338  ;;  %v10206_v31 = vld [vmem:[%s12765_s5 + $0x5a0] sm:$0xff] }
 0x5db   :  { %13553 = vst [vmem:[#allocation339_spill] sm:$0xff] %v10178_v62  ;;  %v3650_v62 = vsel %vm105_vm0, %v3552_v24, 0.0 }
 0x5dc   :  { %13557 = vst [vmem:[#allocation341_spill] sm:$0xff] %v10186_v28  ;;  %v10201_v28 = vld [vmem:[%s12765_s5 + $0x5a8] sm:$0xff] }
 0x5dd   :  { %3654 = vadd.xlane.f32.xlu2 %v3653_v48  ;;  %v13560_v48 = vld [vmem:[#allocation25_spill] sm:$0xff]  ;;  %v3556_v51 = vmul.f32 %v10201_v28, %v13562_v22  ;;  %v13569_v22 = vld [vmem:[#allocation34_spill] sm:$0xff] }
 0x5df   :  { %3639 = vadd.xlane.f32.xlu0 %v3638_v54  ;;  %3651 = vadd.xlane.f32.xlu1 %v3650_v62  ;;  %v3551_v54 = vmul.f32 %v10196_v39, %v13560_v48  ;;  %v3555_v62 = vmul.f32 %v10206_v31, %v13564_v5  ;;  %v3662_v20 = vsel %vm105_vm0, %v3556_v51, 0.0 }
 0x5e0   :  { %v10212_v24 = vpop.xlane.xlu2 %3350 }
 0x5e1   :  { %13561 = vst [vmem:[#allocation343_spill] sm:$0xff] %v10212_v24  ;;  %v3647_v61 = vsel %vm105_vm0, %v3551_v54, 0.0  ;;  %v10226_v24 = vld [vmem:[%s12765_s5 + $0x598] sm:$0xff] }
 0x5e2   :  { %v10208_v57 = vpop.xlane.xlu0 %3335  ;;  %v10216_v17 = vpop.xlane.xlu1 %3347  ;;  %v10236_v54 = vld [vmem:[%s12765_s5 + $0x5b8] sm:$0xff] }
 0x5e3   :  { %13559 = vst [vmem:[#allocation342_spill] sm:$0xff] %v10208_v57  ;;  %v3659_v57 = vsel %vm105_vm0, %v3555_v62, 0.0 }
 0x5e4   :  { %13563 = vst [vmem:[#allocation344_spill] sm:$0xff] %v10216_v17  ;;  %v10231_v17 = vld [vmem:[%s12765_s5 + $0x5c0] sm:$0xff] }
 0x5e5   :  { %3663 = vadd.xlane.f32.xlu2 %v3662_v20  ;;  %13565 = vst [vmem:[#allocation345_spill] sm:$0xff] %v10236_v54  ;;  %v13567_v20 = vld [vmem:[#allocation28_spill] sm:$0xff]  ;;  %v3559_v5 = vmul.f32 %v10231_v17, %v13569_v22 }
 0x5e6   :  { %v13577_v22 = vld [vmem:[#allocation36_spill] sm:$0xff] }
 0x5e7   :  { %3648 = vadd.xlane.f32.xlu0 %v3647_v61  ;;  %3660 = vadd.xlane.f32.xlu1 %v3659_v57  ;;  %v3554_v61 = vmul.f32 %v10226_v24, %v13567_v20  ;;  %v3558_v57 = vmul.f32 %v10236_v54, %v13571_v56  ;;  %v3671_v23 = vsel %vm105_vm0, %v3559_v5, 0.0 }
 0x5e8   :  { %v10242_v62 = vpop.xlane.xlu2 %3359 }
 0x5e9   :  { %13568 = vst [vmem:[#allocation347_spill] sm:$0xff] %v10242_v62  ;;  %v3656_v8 = vsel %vm105_vm0, %v3554_v61, 0.0  ;;  %v10256_v62 = vld [vmem:[%s12765_s5 + $0x5b0] sm:$0xff] }
 0x5ea   :  { %v10238_v51 = vpop.xlane.xlu0 %3344  ;;  %v10246_v48 = vpop.xlane.xlu1 %3356  ;;  %v10266_v61 = vld [vmem:[%s12765_s5 + $0x5d0] sm:$0xff] }
 0x5eb   :  { %13566 = vst [vmem:[#allocation346_spill] sm:$0xff] %v10238_v51  ;;  %v3668_v51 = vsel %vm105_vm0, %v3558_v57, 0.0 }
 0x5ec   :  { %13570 = vst [vmem:[#allocation348_spill] sm:$0xff] %v10246_v48  ;;  %v10261_v48 = vld [vmem:[%s12765_s5 + $0x5d8] sm:$0xff] }
 0x5ed   :  { %3672 = vadd.xlane.f32.xlu2 %v3671_v23  ;;  %13572 = vst [vmem:[#allocation349_spill] sm:$0xff] %v10261_v48  ;;  %v13575_v23 = vld [vmem:[#allocation31_spill] sm:$0xff]  ;;  %v3562_v56 = vmul.f32 %v10261_v48, %v13577_v22  ;;  %v13583_v22 = vld [vmem:[#allocation38_spill] sm:$0xff] }
 0x5ee   :  { %13573 = vst [vmem:[#allocation350_spill] sm:$0xff] %v10266_v61 }
 0x5ef   :  { %3657 = vadd.xlane.f32.xlu0 %v3656_v8  ;;  %3669 = vadd.xlane.f32.xlu1 %v3668_v51  ;;  %v3557_v8 = vmul.f32 %v10256_v62, %v13575_v23  ;;  %v3561_v51 = vmul.f32 %v10266_v61, %v13579_v1  ;;  %v3680_v6 = vsel %vm105_vm0, %v3562_v56, 0.0  ;;  %v13585_v61 = vld [vmem:[#allocation7_spill] sm:$0xff] }
 0x5f0   :  { %v10272_v57 = vpop.xlane.xlu2 %3368 }
 0x5f1   :  { %13576 = vst [vmem:[#allocation352_spill] sm:$0xff] %v10272_v57  ;;  %v3665_v50 = vsel %vm105_vm0, %v3557_v8, 0.0  ;;  %v10286_v57 = vld [vmem:[%s12765_s5 + $0x5c8] sm:$0xff] }
 0x5f2   :  { %v10268_v5 = vpop.xlane.xlu0 %3353  ;;  %v10276_v20 = vpop.xlane.xlu1 %3365  ;;  %v10296_v8 = vld [vmem:[%s12765_s5 + $0x5e8] sm:$0xff] }
 0x5f3   :  { %13574 = vst [vmem:[#allocation351_spill] sm:$0xff] %v10268_v5  ;;  %v3677_v5 = vsel %vm105_vm0, %v3561_v51, 0.0 }
 0x5f4   :  { %13578 = vst [vmem:[#allocation353_spill] sm:$0xff] %v10276_v20  ;;  %v10291_v20 = vld [vmem:[%s12765_s5 + $0x5f0] sm:$0xff] }
 0x5f5   :  { %3681 = vadd.xlane.f32.xlu2 %v3680_v6  ;;  %v13581_v6 = vld [vmem:[#allocation6_spill] sm:$0xff]  ;;  %v3565_v1 = vmul.f32 %v10291_v20, %v13583_v22 }
 0x5f7   :  { %3666 = vadd.xlane.f32.xlu0 %v3665_v50  ;;  %3678 = vadd.xlane.f32.xlu1 %v3677_v5  ;;  %v3560_v50 = vmul.f32 %v10286_v57, %v13581_v6  ;;  %v3564_v5 = vmul.f32 %v10296_v8, %v13585_v61  ;;  %v3689_v54 = vsel %vm105_vm0, %v3565_v1, 0.0  ;;  %v3568_v1 = vmul.f32 %v10046_v27, %v7872_v16 }
 0x5f8   :  { %v10302_v51 = vpop.xlane.xlu2 %3377 }
 0x5f9   :  { %13582 = vst [vmem:[#allocation355_spill] sm:$0xff] %v10302_v51  ;;  %v3674_v48 = vsel %vm105_vm0, %v3560_v50, 0.0  ;;  %v10316_v51 = vld [vmem:[%s12765_s5 + $0x5e0] sm:$0xff] }
 0x5fa   :  { %v10298_v56 = vpop.xlane.xlu0 %3362  ;;  %v10306_v23 = vpop.xlane.xlu1 %3374 }
 0x5fb   :  { %13580 = vst [vmem:[#allocation354_spill] sm:$0xff] %v10298_v56  ;;  %v3686_v56 = vsel %vm105_vm0, %v3564_v5, 0.0  ;;  %v3698_v5 = vsel %vm105_vm0, %v3568_v1, 0.0 }
 0x5fc   :  { %13584 = vst [vmem:[#allocation356_spill] sm:$0xff] %v10306_v23  ;;  %v13587_v23 = vld [vmem:[#allocation35_spill] sm:$0xff] }
 0x5fd   :  { %3690 = vadd.xlane.f32.xlu2 %v3689_v54  ;;  %v3563_v6 = vmul.f32 %v10316_v51, %v13587_v23  ;;  %v3567_v54 = vmul.f32 %v10001_v19, %v13484_v14 }
 0x5ff   :  { %3675 = vadd.xlane.f32.xlu0 %v3674_v48  ;;  %3687 = vadd.xlane.f32.xlu1 %v3686_v56  ;;  %v3683_v50 = vsel %vm105_vm0, %v3563_v6, 0.0  ;;  %v3695_v56 = vsel %vm105_vm0, %v3567_v54, 0.0  ;;  %v3571_v6 = vmul.f32 %v10076_v29, %v7890_v10  ;;  %v3570_v54 = vmul.f32 %v10021_v41, %v13168_v42 }
 0x600   :  { %v10322_v61 = vpop.xlane.xlu2 %3386 }
 0x601   :  { %13588 = vst [vmem:[#allocation358_spill] sm:$0xff] %v10322_v61  ;;  %v10336_v61 = vld [vmem:[%s12765_s5 + $0x5f8] sm:$0xff] }
 0x602   :  { %v10318_v22 = vpop.xlane.xlu0 %3371  ;;  %v10326_v48 = vpop.xlane.xlu1 %3383 }
 0x603   :  { %13586 = vst [vmem:[#allocation357_spill] sm:$0xff] %v10318_v22 }
 0x604   :  { %13589 = vst [vmem:[#allocation359_spill] sm:$0xff] %v10326_v48  ;;  %v13591_v48 = vld [vmem:[#allocation37_spill] sm:$0xff] }
 0x605   :  { %3699 = vadd.xlane.f32.xlu2 %v3698_v5  ;;  %v3566_v22 = vmul.f32 %v10336_v61, %v13591_v48  ;;  %v3707_v5 = vsel %vm105_vm0, %v3571_v6, 0.0 }
 0x607   :  { %3684 = vadd.xlane.f32.xlu0 %v3683_v50  ;;  %3696 = vadd.xlane.f32.xlu1 %v3695_v56  ;;  %v3692_v50 = vsel %vm105_vm0, %v3566_v22, 0.0  ;;  %v3704_v56 = vsel %vm105_vm0, %v3570_v54, 0.0  ;;  %v3573_v22 = vmul.f32 %v10051_v60, %v7874_v33 }
 0x608   :  { %v10342_v19 = vpop.xlane.xlu2 %3395 }
 0x609   :  { %13592 = vst [vmem:[#allocation361_spill] sm:$0xff] %v10342_v19  ;;  %v3569_v19 = vmul.f32 %v10026_v36, %v7857_v43 }
 0x60a   :  { %v10338_v27 = vpop.xlane.xlu0 %3380  ;;  %v10346_v1 = vpop.xlane.xlu1 %3392 }
 0x60b   :  { %13590 = vst [vmem:[#allocation360_spill] sm:$0xff] %v10338_v27  ;;  %v3701_v6 = vsel %vm105_vm0, %v3569_v19, 0.0  ;;  %v3576_v19 = vmul.f32 %v10081_v4, %v13175_v37 }
 0x60c   :  { %13593 = vst [vmem:[#allocation362_spill] sm:$0xff] %v10346_v1  ;;  %v3574_v1 = vmul.f32 %v10106_v7, %v7910_v30 }
 0x60d   :  { %3708 = vadd.xlane.f32.xlu2 %v3707_v5  ;;  %v3572_v5 = vmul.f32 %v10056_v40, %v7880_v35 }
 0x60e   :  { %v3716_v54 = vsel %vm105_vm0, %v3574_v1, 0.0 }
 0x60f   :  { %3693 = vadd.xlane.f32.xlu0 %v3692_v50  ;;  %3705 = vadd.xlane.f32.xlu1 %v3704_v56  ;;  %v3713_v50 = vsel %vm105_vm0, %v3573_v22, 0.0  ;;  %v3577_v56 = vmul.f32 %v10136_v45, %v7932_v18  ;;  %v3710_v1 = vsel %vm105_vm0, %v3572_v5, 0.0  ;;  %v3579_v5 = vmul.f32 %v10111_v12, %v7912_v13 }
 0x610   :  { %v10357_v29 = vpop.xlane.xlu2 %3404 }
 0x611   :  { %13595 = vst [vmem:[#allocation364_spill] sm:$0xff] %v10357_v29  ;;  %v3725_v22 = vsel %vm105_vm0, %v3577_v56, 0.0 }
 0x612   :  { %v10353_v27 = vpop.xlane.xlu0 %3389  ;;  %v10361_v41 = vpop.xlane.xlu1 %3401 }
 0x613   :  { %13594 = vst [vmem:[#allocation363_spill] sm:$0xff] %v10353_v27  ;;  %v13646_v27 = vld [vmem:[#allocation22_spill] sm:$0xff] }
 0x614   :  { %13596 = vst [vmem:[#allocation365_spill] sm:$0xff] %v10361_v41  ;;  %v13640_v41 = vld [vmem:[#allocation15_spill] sm:$0xff] }
 0x615   :  { %3717 = vadd.xlane.f32.xlu2 %v3716_v54  ;;  %v3575_v54 = vmul.f32 %v10086_v38, %v7898_v32 }
 0x617   :  { %3702 = vadd.xlane.f32.xlu0 %v3701_v6  ;;  %3714 = vadd.xlane.f32.xlu1 %v3713_v50  ;;  %v3722_v6 = vsel %vm105_vm0, %v3576_v19, 0.0  ;;  %v3580_v50 = vmul.f32 %v10166_v47, %v7952_v58  ;;  %v3719_v56 = vsel %vm105_vm0, %v3575_v54, 0.0  ;;  %v3582_v54 = vmul.f32 %v10141_v2, %v7934_v34 }
 0x618   :  { %v10372_v7 = vpop.xlane.xlu2 %3413 }
 0x619   :  { %13598 = vst [vmem:[#allocation367_spill] sm:$0xff] %v10372_v7  ;;  %v3734_v19 = vsel %vm105_vm0, %v3580_v50, 0.0  ;;  %v13621_v7 = vld [vmem:[#allocation349_spill] sm:$0xff] }
 0x61a   :  { %v10368_v36 = vpop.xlane.xlu0 %3398  ;;  %v10376_v60 = vpop.xlane.xlu1 %3410 }
 0x61b   :  { %13597 = vst [vmem:[#allocation366_spill] sm:$0xff] %v10368_v36 }
 0x61c   :  { %13599 = vst [vmem:[#allocation368_spill] sm:$0xff] %v10376_v60 }
 0x61d   :  { %3726 = vadd.xlane.f32.xlu2 %v3725_v22  ;;  %v3578_v22 = vmul.f32 %v10116_v55, %v7918_v44 }
 0x61f   :  { %3711 = vadd.xlane.f32.xlu0 %v3710_v1  ;;  %3723 = vadd.xlane.f32.xlu1 %v3722_v6  ;;  %v3731_v1 = vsel %vm105_vm0, %v3579_v5, 0.0  ;;  %v3583_v6 = vmul.f32 %v10196_v39, %v7977_v59  ;;  %v3728_v50 = vsel %vm105_vm0, %v3578_v22, 0.0  ;;  %v3585_v22 = vmul.f32 %v10171_v52, %v7954_v15 }
 0x620   :  { %v10387_v45 = vpop.xlane.xlu2 %3600 }
 0x621   :  { %13601 = vst [vmem:[#allocation370_spill] sm:$0xff] %v10387_v45  ;;  %v3743_v5 = vsel %vm105_vm0, %v3583_v6, 0.0 }
 0x622   :  { %v10383_v40 = vpop.xlane.xlu0 %3407  ;;  %v10391_v4 = vpop.xlane.xlu1 %3419 }
 0x623   :  { %13600 = vst [vmem:[#allocation369_spill] sm:$0xff] %v10383_v40 }
 0x624   :  { %13602 = vst [vmem:[#allocation371_spill] sm:$0xff] %v10391_v4  ;;  %v13618_v4 = vld [vmem:[#allocation66_spill] sm:$0xff] }
 0x625   :  { %3735 = vadd.xlane.f32.xlu2 %v3734_v19  ;;  %v3581_v19 = vmul.f32 %v10146_v63, %v7940_v26 }
 0x627   :  { %3720 = vadd.xlane.f32.xlu0 %v3719_v56  ;;  %3732 = vadd.xlane.f32.xlu1 %v3731_v1  ;;  %v3740_v56 = vsel %vm105_vm0, %v3582_v54, 0.0  ;;  %v3586_v1 = vmul.f32 %v10226_v24, %v8001_v49  ;;  %v3737_v6 = vsel %vm105_vm0, %v3581_v19, 0.0  ;;  %v3588_v19 = vmul.f32 %v10201_v28, %v7979_v9 }
 0x628   :  { %v10402_v47 = vpop.xlane.xlu2 %3609 }
 0x629   :  { %13604 = vst [vmem:[#allocation373_spill] sm:$0xff] %v10402_v47  ;;  %v3752_v54 = vsel %vm105_vm0, %v3586_v1, 0.0 }
 0x62a   :  { %v10398_v38 = vpop.xlane.xlu0 %3416  ;;  %v10406_v12 = vpop.xlane.xlu1 %3606 }
 0x62b   :  { %13603 = vst [vmem:[#allocation372_spill] sm:$0xff] %v10398_v38  ;;  %v3595_v38 = vmul.f32 %v10316_v51, %v13618_v4  ;;  %v13676_v4 = vld [vmem:[#allocation31_spill] sm:$0xff] }
 0x62c   :  { %13605 = vst [vmem:[#allocation374_spill] sm:$0xff] %v10406_v12  ;;  %v13652_v12 = vld [vmem:[#allocation8_spill] sm:$0xff] }
 0x62d   :  { %3744 = vadd.xlane.f32.xlu2 %v3743_v5  ;;  %v3584_v5 = vmul.f32 %v10176_v46, %v7964_v25 }
 0x62f   :  { %3729 = vadd.xlane.f32.xlu0 %v3728_v50  ;;  %3741 = vadd.xlane.f32.xlu1 %v3740_v56  ;;  %v3749_v50 = vsel %vm105_vm0, %v3585_v22, 0.0  ;;  %v3589_v56 = vmul.f32 %v10256_v62, %v8031_v53  ;;  %v3746_v1 = vsel %vm105_vm0, %v3584_v5, 0.0  ;;  %v3591_v5 = vmul.f32 %v10231_v17, %v13509_v3 }
 0x630   :  { %v10417_v39 = vpop.xlane.xlu2 %3618 }
 0x631   :  { %13607 = vst [vmem:[#allocation376_spill] sm:$0xff] %v10417_v39  ;;  %v3761_v22 = vsel %vm105_vm0, %v3589_v56, 0.0 }
 0x632   :  { %v10413_v55 = vpop.xlane.xlu0 %3603  ;;  %v10421_v2 = vpop.xlane.xlu1 %3615 }
 0x633   :  { %13606 = vst [vmem:[#allocation375_spill] sm:$0xff] %v10413_v55 }
 0x634   :  { %13608 = vst [vmem:[#allocation377_spill] sm:$0xff] %v10421_v2  ;;  %v13650_v2 = vld [vmem:[#allocation24_spill] sm:$0xff] }
 0x635   :  { %3753 = vadd.xlane.f32.xlu2 %v3752_v54  ;;  %v3587_v54 = vmul.f32 %v10206_v31, %v7985_v11 }
 0x637   :  { %3738 = vadd.xlane.f32.xlu0 %v3737_v6  ;;  %3750 = vadd.xlane.f32.xlu1 %v3749_v50  ;;  %v3758_v6 = vsel %vm105_vm0, %v3588_v19, 0.0  ;;  %v3592_v50 = vmul.f32 %v10286_v57, %v13406_v21  ;;  %v3755_v56 = vsel %vm105_vm0, %v3587_v54, 0.0  ;;  %v13620_v54 = vld [vmem:[#allocation55_spill] sm:$0xff]  ;;  %v13684_v21 = vld [vmem:[#allocation6_spill] sm:$0xff] }
 0x638   :  { %v10432_v24 = vpop.xlane.xlu2 %3627 }
 0x639   :  { %13610 = vst [vmem:[#allocation379_spill] sm:$0xff] %v10432_v24  ;;  %v3770_v19 = vsel %vm105_vm0, %v3592_v50, 0.0  ;;  %v3594_v50 = vmul.f32 %v13621_v7, %v13620_v54 }
 0x63a   :  { %v10428_v63 = vpop.xlane.xlu0 %3612  ;;  %v10436_v52 = vpop.xlane.xlu1 %3624 }
 0x63b   :  { %13609 = vst [vmem:[#allocation378_spill] sm:$0xff] %v10428_v63 }
 0x63c   :  { %13611 = vst [vmem:[#allocation380_spill] sm:$0xff] %v10436_v52 }
 0x63d   :  { %3762 = vadd.xlane.f32.xlu2 %v3761_v22  ;;  %v13616_v22 = vld [vmem:[#allocation345_spill] sm:$0xff] }
 0x63f   :  { %3747 = vadd.xlane.f32.xlu0 %v3746_v1  ;;  %3759 = vadd.xlane.f32.xlu1 %v3758_v6  ;;  %v3767_v1 = vsel %vm105_vm0, %v3591_v5, 0.0  ;;  %v3590_v6 = vmul.f32 %v13616_v22, %v8009_v0  ;;  %v3779_v5 = vsel %vm105_vm0, %v3595_v38, 0.0  ;;  %v13623_v22 = vld [vmem:[#allocation56_spill] sm:$0xff] }
 0x640   :  { %v10447_v62 = vpop.xlane.xlu2 %3636 }
 0x641   :  { %13613 = vst [vmem:[#allocation382_spill] sm:$0xff] %v10447_v62 }
 0x642   :  { %v10443_v46 = vpop.xlane.xlu0 %3621  ;;  %v10451_v28 = vpop.xlane.xlu1 %3633 }
 0x643   :  { %13612 = vst [vmem:[#allocation381_spill] sm:$0xff] %v10443_v46 }
 0x644   :  { %13614 = vst [vmem:[#allocation383_spill] sm:$0xff] %v10451_v28 }
 0x645   :  { %3771 = vadd.xlane.f32.xlu2 %v3770_v19  ;;  %v3776_v19 = vsel %vm105_vm0, %v3594_v50, 0.0 }
 0x647   :  { %3756 = vadd.xlane.f32.xlu0 %v3755_v56  ;;  %3768 = vadd.xlane.f32.xlu1 %v3767_v1  ;;  %v3764_v56 = vsel %vm105_vm0, %v3590_v6, 0.0  ;;  %v13628_v6 = vld [vmem:[#allocation60_spill] sm:$0xff] }
 0x648   :  { %v10462_v57 = vpop.xlane.xlu2 %3645  ;;  %v3597_v38 = vmul.f32 %v10291_v20, %v13628_v6 }
 0x649   :  { %13617 = vst [vmem:[#allocation345_spill] sm:$0xff] %v10462_v57  ;;  %v13624_v57 = vld [vmem:[#allocation350_spill] sm:$0xff] }
 0x64a   :  { %v10458_v31 = vpop.xlane.xlu0 %3630  ;;  %v10466_v17 = vpop.xlane.xlu1 %3642  ;;  %v3593_v60 = vmul.f32 %v13624_v57, %v13623_v22  ;;  %v10491_v57 = vld [vmem:[%s12765_s5 + $0x610] sm:$0xff] }
 0x64b   :  { %13615 = vst [vmem:[#allocation384_spill] sm:$0xff] %v10458_v31  ;;  %v13644_v31 = vld [vmem:[#allocation21_spill] sm:$0xff] }
 0x64c   :  { %13619 = vst [vmem:[#allocation385_spill] sm:$0xff] %v10466_v17  ;;  %v13626_v17 = vld [vmem:[#allocation70_spill] sm:$0xff] }
 0x64d   :  { %3780 = vadd.xlane.f32.xlu2 %v3779_v5  ;;  %v3598_v40 = vmul.f32 %v10336_v61, %v13626_v17  ;;  %v3785_v5 = vsel %vm105_vm0, %v3597_v38, 0.0  ;;  %v10496_v61 = vld [vmem:[%s12765_s5 + $0x608] sm:$0xff] }
 0x64e   :  { %v13670_v17 = vld [vmem:[#allocation28_spill] sm:$0xff] }
 0x64f   :  { %3765 = vadd.xlane.f32.xlu0 %v3764_v56  ;;  %3777 = vadd.xlane.f32.xlu1 %v3776_v19  ;;  %v3773_v56 = vsel %vm105_vm0, %v3593_v60, 0.0  ;;  %v3788_v50 = vsel %vm105_vm0, %v3598_v40, 0.0  ;;  %v13630_v60 = vld [vmem:[#allocation62_spill] sm:$0xff] }
 0x650   :  { %v10477_v51 = vpop.xlane.xlu2 %3654  ;;  %v3596_v40 = vmul.f32 %v10296_v8, %v13630_v60  ;;  %v10516_v8 = vld [vmem:[%s12765_s5 + $0x600] sm:$0xff] }
 0x651   :  { %13625 = vst [vmem:[#allocation350_spill] sm:$0xff] %v10477_v51  ;;  %v13634_v51 = vld [vmem:[#allocation20_spill] sm:$0xff] }
 0x652   :  { %v10473_v1 = vpop.xlane.xlu0 %3639  ;;  %v10481_v7 = vpop.xlane.xlu1 %3651 }
 0x653   :  { %13622 = vst [vmem:[#allocation349_spill] sm:$0xff] %v10473_v1 }
 0x654   :  { %13627 = vst [vmem:[#allocation386_spill] sm:$0xff] %v10481_v7  ;;  %v3782_v7 = vsel %vm105_vm0, %v3596_v40, 0.0  ;;  %v10526_v40 = vld [vmem:[%s12765_s5 + $0x620] sm:$0xff] }
 0x655   :  { %3789 = vadd.xlane.f32.xlu2 %v3788_v50 }
 0x657   :  { %3774 = vadd.xlane.f32.xlu0 %v3773_v56  ;;  %3786 = vadd.xlane.f32.xlu1 %v3785_v5  ;;  %v13632_v56 = vld [vmem:[#allocation16_spill] sm:$0xff]  ;;  %v3906_v5 = vmul.f32 %v10496_v61, %v13634_v51 }
 0x658   :  { %v10502_v19 = vpop.xlane.xlu2 %3663  ;;  %v3907_v38 = vmul.f32 %v10491_v57, %v13632_v56  ;;  %v13664_v56 = vld [vmem:[#allocation25_spill] sm:$0xff] }
 0x659   :  { %13631 = vst [vmem:[#allocation388_spill] sm:$0xff] %v10502_v19  ;;  %v10521_v19 = vld [vmem:[%s12765_s5 + $0x628] sm:$0xff] }
 0x65a   :  { %v10498_v20 = vpop.xlane.xlu0 %3648  ;;  %v10506_v50 = vpop.xlane.xlu1 %3660  ;;  %v3975_v29 = vsel %vm105_vm0, %v3907_v38, 0.0 }
 0x65b   :  { %13629 = vst [vmem:[#allocation387_spill] sm:$0xff] %v10498_v20  ;;  %v3972_v20 = vsel %vm105_vm0, %v3906_v5, 0.0 }
 0x65c   :  { %13633 = vst [vmem:[#allocation389_spill] sm:$0xff] %v10506_v50  ;;  %v13638_v50 = vld [vmem:[#allocation18_spill] sm:$0xff] }
 0x65d   :  { %3976 = vadd.xlane.f32.xlu2 %v3975_v29  ;;  %v13636_v29 = vld [vmem:[#allocation17_spill] sm:$0xff]  ;;  %v3910_v1 = vmul.f32 %v10521_v19, %v13638_v50  ;;  %v13658_v50 = vld [vmem:[#allocation11_spill] sm:$0xff] }
 0x65e   :  { %v3905_v38 = vmul.f32 %v10516_v8, %v13636_v29 }
 0x65f   :  { %3783 = vadd.xlane.f32.xlu0 %v3782_v7  ;;  %3973 = vadd.xlane.f32.xlu1 %v3972_v20  ;;  %v3909_v20 = vmul.f32 %v10526_v40, %v13640_v41  ;;  %v3984_v36 = vsel %vm105_vm0, %v3910_v1, 0.0 }
 0x660   :  { %v10532_v5 = vpop.xlane.xlu2 %3672  ;;  %v3969_v28 = vsel %vm105_vm0, %v3905_v38, 0.0  ;;  %v10556_v38 = vld [vmem:[%s12765_s5 + $0x638] sm:$0xff] }
 0x661   :  { %13637 = vst [vmem:[#allocation391_spill] sm:$0xff] %v10532_v5  ;;  %v10546_v5 = vld [vmem:[%s12765_s5 + $0x618] sm:$0xff] }
 0x662   :  { %v10528_v7 = vpop.xlane.xlu0 %3657  ;;  %v10536_v62 = vpop.xlane.xlu1 %3669 }
 0x663   :  { %13635 = vst [vmem:[#allocation390_spill] sm:$0xff] %v10528_v7  ;;  %v3981_v7 = vsel %vm105_vm0, %v3909_v20, 0.0 }
 0x664   :  { %13639 = vst [vmem:[#allocation392_spill] sm:$0xff] %v10536_v62  ;;  %v10551_v62 = vld [vmem:[%s12765_s5 + $0x640] sm:$0xff] }
 0x665   :  { %3985 = vadd.xlane.f32.xlu2 %v3984_v36  ;;  %v13642_v36 = vld [vmem:[#allocation19_spill] sm:$0xff]  ;;  %v3913_v24 = vmul.f32 %v10551_v62, %v13644_v31 }
 0x666   :  { %v3908_v1 = vmul.f32 %v10546_v5, %v13642_v36 }
 0x667   :  { %3970 = vadd.xlane.f32.xlu0 %v3969_v28  ;;  %3982 = vadd.xlane.f32.xlu1 %v3981_v7  ;;  %v3912_v7 = vmul.f32 %v10556_v38, %v13646_v27  ;;  %v3993_v39 = vsel %vm105_vm0, %v3913_v24, 0.0 }
 0x668   :  { %v10562_v20 = vpop.xlane.xlu2 %3681  ;;  %v3978_v46 = vsel %vm105_vm0, %v3908_v1, 0.0  ;;  %v10586_v1 = vld [vmem:[%s12765_s5 + $0x650] sm:$0xff] }
 0x669   :  { %13643 = vst [vmem:[#allocation394_spill] sm:$0xff] %v10562_v20  ;;  %v10576_v20 = vld [vmem:[%s12765_s5 + $0x630] sm:$0xff] }
 0x66a   :  { %v10558_v28 = vpop.xlane.xlu0 %3666  ;;  %v10566_v52 = vpop.xlane.xlu1 %3678 }
 0x66b   :  { %13641 = vst [vmem:[#allocation393_spill] sm:$0xff] %v10558_v28  ;;  %v3990_v28 = vsel %vm105_vm0, %v3912_v7, 0.0 }
 0x66c   :  { %13645 = vst [vmem:[#allocation395_spill] sm:$0xff] %v10566_v52  ;;  %v10581_v52 = vld [vmem:[%s12765_s5 + $0x658] sm:$0xff] }
 0x66d   :  { %3994 = vadd.xlane.f32.xlu2 %v3993_v39  ;;  %v13648_v39 = vld [vmem:[#allocation23_spill] sm:$0xff]  ;;  %v3916_v63 = vmul.f32 %v10581_v52, %v13650_v2  ;;  %v13656_v2 = vld [vmem:[#allocation10_spill] sm:$0xff] }
 0x66f   :  { %3979 = vadd.xlane.f32.xlu0 %v3978_v46  ;;  %3991 = vadd.xlane.f32.xlu1 %v3990_v28  ;;  %v3911_v46 = vmul.f32 %v10576_v20, %v13648_v39  ;;  %v3915_v28 = vmul.f32 %v10586_v1, %v13652_v12  ;;  %v4002_v45 = vsel %vm105_vm0, %v3916_v63, 0.0 }
 0x670   :  { %v10592_v7 = vpop.xlane.xlu2 %3690 }
 0x671   :  { %13649 = vst [vmem:[#allocation397_spill] sm:$0xff] %v10592_v7  ;;  %v3987_v55 = vsel %vm105_vm0, %v3911_v46, 0.0  ;;  %v10606_v7 = vld [vmem:[%s12765_s5 + $0x648] sm:$0xff] }
 0x672   :  { %v10588_v24 = vpop.xlane.xlu0 %3675  ;;  %v10596_v47 = vpop.xlane.xlu1 %3687  ;;  %v10616_v46 = vld [vmem:[%s12765_s5 + $0x668] sm:$0xff] }
 0x673   :  { %13647 = vst [vmem:[#allocation396_spill] sm:$0xff] %v10588_v24  ;;  %v3999_v24 = vsel %vm105_vm0, %v3915_v28, 0.0 }
 0x674   :  { %13651 = vst [vmem:[#allocation398_spill] sm:$0xff] %v10596_v47  ;;  %v10611_v47 = vld [vmem:[%s12765_s5 + $0x670] sm:$0xff] }
 0x675   :  { %4003 = vadd.xlane.f32.xlu2 %v4002_v45  ;;  %v13654_v45 = vld [vmem:[#allocation9_spill] sm:$0xff]  ;;  %v3919_v31 = vmul.f32 %v10611_v47, %v13656_v2 }
 0x676   :  { %v3914_v63 = vmul.f32 %v10606_v7, %v13654_v45  ;;  %v13662_v2 = vld [vmem:[#allocation13_spill] sm:$0xff] }
 0x677   :  { %3988 = vadd.xlane.f32.xlu0 %v3987_v55  ;;  %4000 = vadd.xlane.f32.xlu1 %v3999_v24  ;;  %v3918_v24 = vmul.f32 %v10616_v46, %v13658_v50  ;;  %v4011_v27 = vsel %vm105_vm0, %v3919_v31, 0.0 }
 0x678   :  { %v10622_v28 = vpop.xlane.xlu2 %3699  ;;  %v3996_v39 = vsel %vm105_vm0, %v3914_v63, 0.0  ;;  %v10646_v63 = vld [vmem:[%s12765_s5 + $0x680] sm:$0xff] }
 0x679   :  { %13655 = vst [vmem:[#allocation400_spill] sm:$0xff] %v10622_v28  ;;  %v10636_v28 = vld [vmem:[%s12765_s5 + $0x660] sm:$0xff] }
 0x67a   :  { %v10618_v55 = vpop.xlane.xlu0 %3684  ;;  %v10626_v12 = vpop.xlane.xlu1 %3696 }
 0x67b   :  { %13653 = vst [vmem:[#allocation399_spill] sm:$0xff] %v10618_v55  ;;  %v4008_v55 = vsel %vm105_vm0, %v3918_v24, 0.0 }
 0x67c   :  { %13657 = vst [vmem:[#allocation401_spill] sm:$0xff] %v10626_v12  ;;  %v10641_v12 = vld [vmem:[%s12765_s5 + $0x688] sm:$0xff] }
 0x67d   :  { %4012 = vadd.xlane.f32.xlu2 %v4011_v27  ;;  %v13660_v27 = vld [vmem:[#allocation12_spill] sm:$0xff]  ;;  %v3922_v50 = vmul.f32 %v10641_v12, %v13662_v2  ;;  %v13668_v2 = vld [vmem:[#allocation27_spill] sm:$0xff] }
 0x67f   :  { %3997 = vadd.xlane.f32.xlu0 %v3996_v39  ;;  %4009 = vadd.xlane.f32.xlu1 %v4008_v55  ;;  %v3917_v39 = vmul.f32 %v10636_v28, %v13660_v27  ;;  %v3921_v55 = vmul.f32 %v10646_v63, %v13664_v56  ;;  %v4020_v41 = vsel %vm105_vm0, %v3922_v50, 0.0 }
 0x680   :  { %v10652_v24 = vpop.xlane.xlu2 %3708 }
 0x681   :  { %13661 = vst [vmem:[#allocation403_spill] sm:$0xff] %v10652_v24  ;;  %v4005_v36 = vsel %vm105_vm0, %v3917_v39, 0.0  ;;  %v10666_v24 = vld [vmem:[%s12765_s5 + $0x678] sm:$0xff] }
 0x682   :  { %v10648_v31 = vpop.xlane.xlu0 %3693  ;;  %v10656_v45 = vpop.xlane.xlu1 %3705  ;;  %v10676_v39 = vld [vmem:[%s12765_s5 + $0x698] sm:$0xff] }
 0x683   :  { %13659 = vst [vmem:[#allocation402_spill] sm:$0xff] %v10648_v31  ;;  %v4017_v31 = vsel %vm105_vm0, %v3921_v55, 0.0 }
 0x684   :  { %13663 = vst [vmem:[#allocation404_spill] sm:$0xff] %v10656_v45  ;;  %v10671_v45 = vld [vmem:[%s12765_s5 + $0x6a0] sm:$0xff] }
 0x685   :  { %4021 = vadd.xlane.f32.xlu2 %v4020_v41  ;;  %v13666_v41 = vld [vmem:[#allocation26_spill] sm:$0xff]  ;;  %v3925_v56 = vmul.f32 %v10671_v45, %v13668_v2 }
 0x686   :  { %v13674_v2 = vld [vmem:[#allocation30_spill] sm:$0xff] }
 0x687   :  { %4006 = vadd.xlane.f32.xlu0 %v4005_v36  ;;  %4018 = vadd.xlane.f32.xlu1 %v4017_v31  ;;  %v3920_v36 = vmul.f32 %v10666_v24, %v13666_v41  ;;  %v3924_v31 = vmul.f32 %v10676_v39, %v13670_v17  ;;  %v4029_v51 = vsel %vm105_vm0, %v3925_v56, 0.0 }
 0x688   :  { %v10682_v55 = vpop.xlane.xlu2 %3717 }
 0x689   :  { %13667 = vst [vmem:[#allocation406_spill] sm:$0xff] %v10682_v55  ;;  %v4014_v29 = vsel %vm105_vm0, %v3920_v36, 0.0  ;;  %v10696_v55 = vld [vmem:[%s12765_s5 + $0x690] sm:$0xff] }
 0x68a   :  { %v10678_v50 = vpop.xlane.xlu0 %3702  ;;  %v10686_v27 = vpop.xlane.xlu1 %3714  ;;  %v10706_v36 = vld [vmem:[%s12765_s5 + $0x6b0] sm:$0xff] }
 0x68b   :  { %13665 = vst [vmem:[#allocation405_spill] sm:$0xff] %v10678_v50  ;;  %v4026_v50 = vsel %vm105_vm0, %v3924_v31, 0.0 }
 0x68c   :  { %13669 = vst [vmem:[#allocation407_spill] sm:$0xff] %v10686_v27  ;;  %v10701_v27 = vld [vmem:[%s12765_s5 + $0x6b8] sm:$0xff] }
 0x68d   :  { %4030 = vadd.xlane.f32.xlu2 %v4029_v51  ;;  %v13672_v51 = vld [vmem:[#allocation29_spill] sm:$0xff]  ;;  %v3928_v17 = vmul.f32 %v10701_v27, %v13674_v2 }
 0x68e   :  { %v13682_v2 = vld [vmem:[#allocation33_spill] sm:$0xff] }
 0x68f   :  { %4015 = vadd.xlane.f32.xlu0 %v4014_v29  ;;  %4027 = vadd.xlane.f32.xlu1 %v4026_v50  ;;  %v3923_v29 = vmul.f32 %v10696_v55, %v13672_v51  ;;  %v3927_v50 = vmul.f32 %v10706_v36, %v13676_v4  ;;  %v4038_v6 = vsel %vm105_vm0, %v3928_v17, 0.0 }
 0x690   :  { %v10712_v31 = vpop.xlane.xlu2 %3726 }
 0x691   :  { %13673 = vst [vmem:[#allocation409_spill] sm:$0xff] %v10712_v31  ;;  %v4023_v60 = vsel %vm105_vm0, %v3923_v29, 0.0  ;;  %v10726_v31 = vld [vmem:[%s12765_s5 + $0x6a8] sm:$0xff] }
 0x692   :  { %v10708_v56 = vpop.xlane.xlu0 %3711  ;;  %v10716_v41 = vpop.xlane.xlu1 %3723  ;;  %v10736_v29 = vld [vmem:[%s12765_s5 + $0x6c8] sm:$0xff] }
 0x693   :  { %13671 = vst [vmem:[#allocation408_spill] sm:$0xff] %v10708_v56  ;;  %v4035_v56 = vsel %vm105_vm0, %v3927_v50, 0.0 }
 0x694   :  { %13675 = vst [vmem:[#allocation410_spill] sm:$0xff] %v10716_v41  ;;  %v10731_v41 = vld [vmem:[%s12765_s5 + $0x6d0] sm:$0xff] }
 0x695   :  { %4039 = vadd.xlane.f32.xlu2 %v4038_v6  ;;  %13677 = vst [vmem:[#allocation411_spill] sm:$0xff] %v10731_v41  ;;  %v13680_v6 = vld [vmem:[#allocation32_spill] sm:$0xff]  ;;  %v3931_v4 = vmul.f32 %v10731_v41, %v13682_v2  ;;  %v13688_v2 = vld [vmem:[#allocation7_spill] sm:$0xff] }
 0x696   :  { %13678 = vst [vmem:[#allocation412_spill] sm:$0xff] %v10736_v29 }
 0x697   :  { %4024 = vadd.xlane.f32.xlu0 %v4023_v60  ;;  %4036 = vadd.xlane.f32.xlu1 %v4035_v56  ;;  %v3926_v60 = vmul.f32 %v10726_v31, %v13680_v6  ;;  %v3930_v56 = vmul.f32 %v10736_v29, %v13684_v21  ;;  %v4047_v54 = vsel %vm105_vm0, %v3931_v4, 0.0 }
 0x698   :  { %v10742_v50 = vpop.xlane.xlu2 %3735 }
 0x699   :  { %13681 = vst [vmem:[#allocation414_spill] sm:$0xff] %v10742_v50  ;;  %v4032_v22 = vsel %vm105_vm0, %v3926_v60, 0.0  ;;  %v10756_v50 = vld [vmem:[%s12765_s5 + $0x6c0] sm:$0xff] }
 0x69a   :  { %v10738_v17 = vpop.xlane.xlu0 %3720  ;;  %v10746_v51 = vpop.xlane.xlu1 %3732  ;;  %v10766_v60 = vld [vmem:[%s12765_s5 + $0x6e0] sm:$0xff] }
 0x69b   :  { %13679 = vst [vmem:[#allocation413_spill] sm:$0xff] %v10738_v17  ;;  %v4044_v17 = vsel %vm105_vm0, %v3930_v56, 0.0 }
 0x69c   :  { %13683 = vst [vmem:[#allocation415_spill] sm:$0xff] %v10746_v51  ;;  %v10761_v51 = vld [vmem:[%s12765_s5 + $0x6e8] sm:$0xff] }
 0x69d   :  { %4048 = vadd.xlane.f32.xlu2 %v4047_v54  ;;  %v13686_v54 = vld [vmem:[#allocation34_spill] sm:$0xff]  ;;  %v3934_v21 = vmul.f32 %v10761_v51, %v13688_v2 }
 0x69f   :  { %4033 = vadd.xlane.f32.xlu0 %v4032_v22  ;;  %4045 = vadd.xlane.f32.xlu1 %v4044_v17  ;;  %v3929_v22 = vmul.f32 %v10756_v50, %v13686_v54  ;;  %v3933_v17 = vmul.f32 %v10766_v60, %v13587_v23  ;;  %v4056_v41 = vsel %vm105_vm0, %v3934_v21, 0.0 }
 0x6a0   :  { %v10772_v56 = vpop.xlane.xlu2 %3744 }
 0x6a1   :  { %13687 = vst [vmem:[#allocation417_spill] sm:$0xff] %v10772_v56  ;;  %v4041_v29 = vsel %vm105_vm0, %v3929_v22, 0.0  ;;  %v10786_v56 = vld [vmem:[%s12765_s5 + $0x6d8] sm:$0xff]  ;;  %v13691_v22 = vld [vmem:[#allocation36_spill] sm:$0xff] }
 0x6a2   :  { %v10768_v4 = vpop.xlane.xlu0 %3729  ;;  %v10776_v6 = vpop.xlane.xlu1 %3741  ;;  %v3932_v21 = vmul.f32 %v10786_v56, %v13691_v22 }
 0x6a3   :  { %13685 = vst [vmem:[#allocation416_spill] sm:$0xff] %v10768_v4  ;;  %v4053_v4 = vsel %vm105_vm0, %v3933_v17, 0.0 }
 0x6a4   :  { %13689 = vst [vmem:[#allocation418_spill] sm:$0xff] %v10776_v6  ;;  %v10791_v6 = vld [vmem:[%s12765_s5 + $0x6f8] sm:$0xff]  ;;  %v4050_v23 = vsel %vm105_vm0, %v3932_v21, 0.0  ;;  %v3940_v21 = vmul.f32 %v10546_v5, %v13168_v42 }
 0x6a5   :  { %4057 = vadd.xlane.f32.xlu2 %v4056_v41  ;;  %v3937_v41 = vmul.f32 %v10516_v8, %v13484_v14 }
 0x6a7   :  { %4042 = vadd.xlane.f32.xlu0 %v4041_v29  ;;  %4054 = vadd.xlane.f32.xlu1 %v4053_v4  ;;  %v3936_v4 = vmul.f32 %v10791_v6, %v13591_v48  ;;  %v4065_v54 = vsel %vm105_vm0, %v3937_v41, 0.0 }
 0x6a8   :  { %v10797_v29 = vpop.xlane.xlu2 %3753 }
 0x6a9   :  { %13692 = vst [vmem:[#allocation420_spill] sm:$0xff] %v10797_v29  ;;  %v10811_v29 = vld [vmem:[%s12765_s5 + $0x6f0] sm:$0xff] }
 0x6aa   :  { %v10793_v2 = vpop.xlane.xlu0 %3738  ;;  %v10801_v17 = vpop.xlane.xlu1 %3750 }
 0x6ab   :  { %13690 = vst [vmem:[#allocation419_spill] sm:$0xff] %v10793_v2  ;;  %v4062_v2 = vsel %vm105_vm0, %v3936_v4, 0.0  ;;  %v4074_v4 = vsel %vm105_vm0, %v3940_v21, 0.0 }
 0x6ac   :  { %13693 = vst [vmem:[#allocation421_spill] sm:$0xff] %v10801_v17  ;;  %v13695_v17 = vld [vmem:[#allocation38_spill] sm:$0xff] }
 0x6ad   :  { %4066 = vadd.xlane.f32.xlu2 %v4065_v54  ;;  %v3935_v14 = vmul.f32 %v10811_v29, %v13695_v17  ;;  %v3939_v54 = vmul.f32 %v10491_v57, %v7857_v43 }
 0x6af   :  { %4051 = vadd.xlane.f32.xlu0 %v4050_v23  ;;  %4063 = vadd.xlane.f32.xlu1 %v4062_v2  ;;  %v4059_v41 = vsel %vm105_vm0, %v3935_v14, 0.0  ;;  %v4071_v2 = vsel %vm105_vm0, %v3939_v54, 0.0  ;;  %v3942_v14 = vmul.f32 %v10521_v19, %v7880_v35 }
 0x6b0   :  { %v10817_v48 = vpop.xlane.xlu2 %3762 }
 0x6b1   :  { %13696 = vst [vmem:[#allocation423_spill] sm:$0xff] %v10817_v48  ;;  %v3938_v48 = vmul.f32 %v10496_v61, %v7872_v16 }
 0x6b2   :  { %v10813_v8 = vpop.xlane.xlu0 %3747  ;;  %v10821_v23 = vpop.xlane.xlu1 %3759 }
 0x6b3   :  { %13694 = vst [vmem:[#allocation422_spill] sm:$0xff] %v10813_v8  ;;  %v4068_v21 = vsel %vm105_vm0, %v3938_v48, 0.0  ;;  %v3945_v48 = vmul.f32 %v10551_v62, %v7898_v32 }
 0x6b4   :  { %13697 = vst [vmem:[#allocation424_spill] sm:$0xff] %v10821_v23  ;;  %v3943_v23 = vmul.f32 %v10576_v20, %v7874_v33 }
 0x6b5   :  { %4075 = vadd.xlane.f32.xlu2 %v4074_v4  ;;  %v3941_v4 = vmul.f32 %v10526_v40, %v7890_v10 }
 0x6b6   :  { %v4083_v54 = vsel %vm105_vm0, %v3943_v23, 0.0 }
 0x6b7   :  { %4060 = vadd.xlane.f32.xlu0 %v4059_v41  ;;  %4072 = vadd.xlane.f32.xlu1 %v4071_v2  ;;  %v4080_v41 = vsel %vm105_vm0, %v3942_v14, 0.0  ;;  %v3946_v2 = vmul.f32 %v10606_v7, %v13175_v37  ;;  %v4077_v23 = vsel %vm105_vm0, %v3941_v4, 0.0  ;;  %v3948_v4 = vmul.f32 %v10581_v52, %v7918_v44 }
 0x6b8   :  { %v10832_v5 = vpop.xlane.xlu2 %3771 }
 0x6b9   :  { %13699 = vst [vmem:[#allocation426_spill] sm:$0xff] %v10832_v5  ;;  %v4092_v14 = vsel %vm105_vm0, %v3946_v2, 0.0  ;;  %v13743_v5 = vld [vmem:[#allocation19_spill] sm:$0xff] }
 0x6ba   :  { %v10828_v8 = vpop.xlane.xlu0 %3756  ;;  %v10836_v57 = vpop.xlane.xlu1 %3768 }
 0x6bb   :  { %13698 = vst [vmem:[#allocation425_spill] sm:$0xff] %v10828_v8 }
 0x6bc   :  { %13700 = vst [vmem:[#allocation427_spill] sm:$0xff] %v10836_v57 }
 0x6bd   :  { %4084 = vadd.xlane.f32.xlu2 %v4083_v54  ;;  %v3944_v54 = vmul.f32 %v10556_v38, %v7910_v30 }
 0x6bf   :  { %4069 = vadd.xlane.f32.xlu0 %v4068_v21  ;;  %4081 = vadd.xlane.f32.xlu1 %v4080_v41  ;;  %v4089_v21 = vsel %vm105_vm0, %v3945_v48, 0.0  ;;  %v3949_v41 = vmul.f32 %v10636_v28, %v7912_v13  ;;  %v4086_v2 = vsel %vm105_vm0, %v3944_v54, 0.0  ;;  %v3951_v54 = vmul.f32 %v10611_v47, %v7940_v26 }
 0x6c0   :  { %v10847_v20 = vpop.xlane.xlu2 %3780 }
 0x6c1   :  { %13702 = vst [vmem:[#allocation429_spill] sm:$0xff] %v10847_v20  ;;  %v4101_v48 = vsel %vm105_vm0, %v3949_v41, 0.0 }
 0x6c2   :  { %v10843_v61 = vpop.xlane.xlu0 %3765  ;;  %v10851_v19 = vpop.xlane.xlu1 %3777 }
 0x6c3   :  { %13701 = vst [vmem:[#allocation428_spill] sm:$0xff] %v10843_v61  ;;  %v13749_v61 = vld [vmem:[#allocation23_spill] sm:$0xff] }
 0x6c4   :  { %13703 = vst [vmem:[#allocation430_spill] sm:$0xff] %v10851_v19 }
 0x6c5   :  { %4093 = vadd.xlane.f32.xlu2 %v4092_v14  ;;  %v3947_v14 = vmul.f32 %v10586_v1, %v7932_v18 }
 0x6c7   :  { %4078 = vadd.xlane.f32.xlu0 %v4077_v23  ;;  %4090 = vadd.xlane.f32.xlu1 %v4089_v21  ;;  %v4098_v23 = vsel %vm105_vm0, %v3948_v4, 0.0  ;;  %v3952_v21 = vmul.f32 %v10666_v24, %v7934_v34  ;;  %v4095_v41 = vsel %vm105_vm0, %v3947_v14, 0.0  ;;  %v3954_v14 = vmul.f32 %v10641_v12, %v7964_v25 }
 0x6c8   :  { %v10862_v7 = vpop.xlane.xlu2 %3789 }
 0x6c9   :  { %13705 = vst [vmem:[#allocation432_spill] sm:$0xff] %v10862_v7  ;;  %v4110_v4 = vsel %vm105_vm0, %v3952_v21, 0.0 }
 0x6ca   :  { %v10858_v40 = vpop.xlane.xlu0 %3774  ;;  %v10866_v62 = vpop.xlane.xlu1 %3786 }
 0x6cb   :  { %13704 = vst [vmem:[#allocation431_spill] sm:$0xff] %v10858_v40 }
 0x6cc   :  { %13706 = vst [vmem:[#allocation433_spill] sm:$0xff] %v10866_v62  ;;  %v13724_v62 = vld [vmem:[#allocation411_spill] sm:$0xff] }
 0x6cd   :  { %4102 = vadd.xlane.f32.xlu2 %v4101_v48  ;;  %v3950_v48 = vmul.f32 %v10616_v46, %v7952_v58 }
 0x6cf   :  { %4087 = vadd.xlane.f32.xlu0 %v4086_v2  ;;  %4099 = vadd.xlane.f32.xlu1 %v4098_v23  ;;  %v4107_v2 = vsel %vm105_vm0, %v3951_v54, 0.0  ;;  %v3955_v23 = vmul.f32 %v10696_v55, %v7954_v15  ;;  %v4104_v21 = vsel %vm105_vm0, %v3950_v48, 0.0  ;;  %v3957_v48 = vmul.f32 %v10671_v45, %v7985_v11 }
 0x6d0   :  { %v10877_v28 = vpop.xlane.xlu2 %3976 }
 0x6d1   :  { %13708 = vst [vmem:[#allocation435_spill] sm:$0xff] %v10877_v28  ;;  %v4119_v54 = vsel %vm105_vm0, %v3955_v23, 0.0  ;;  %v13759_v28 = vld [vmem:[#allocation11_spill] sm:$0xff] }
 0x6d2   :  { %v10873_v38 = vpop.xlane.xlu0 %3783  ;;  %v10881_v52 = vpop.xlane.xlu1 %3973 }
 0x6d3   :  { %13707 = vst [vmem:[#allocation434_spill] sm:$0xff] %v10873_v38  ;;  %v13727_v38 = vld [vmem:[#allocation412_spill] sm:$0xff] }
 0x6d4   :  { %13709 = vst [vmem:[#allocation436_spill] sm:$0xff] %v10881_v52 }
 0x6d5   :  { %4111 = vadd.xlane.f32.xlu2 %v4110_v4  ;;  %v3953_v4 = vmul.f32 %v10646_v63, %v7977_v59 }
 0x6d7   :  { %4096 = vadd.xlane.f32.xlu0 %v4095_v41  ;;  %4108 = vadd.xlane.f32.xlu1 %v4107_v2  ;;  %v4116_v41 = vsel %vm105_vm0, %v3954_v14, 0.0  ;;  %v3958_v2 = vmul.f32 %v10726_v31, %v7979_v9  ;;  %v4113_v23 = vsel %vm105_vm0, %v3953_v4, 0.0  ;;  %v3960_v4 = vmul.f32 %v10701_v27, %v8009_v0 }
 0x6d8   :  { %v10892_v24 = vpop.xlane.xlu2 %3985 }
 0x6d9   :  { %13711 = vst [vmem:[#allocation438_spill] sm:$0xff] %v10892_v24  ;;  %v4128_v14 = vsel %vm105_vm0, %v3958_v2, 0.0  ;;  %v13755_v24 = vld [vmem:[#allocation9_spill] sm:$0xff] }
 0x6da   :  { %v10888_v1 = vpop.xlane.xlu0 %3970  ;;  %v10896_v47 = vpop.xlane.xlu1 %3982 }
 0x6db   :  { %13710 = vst [vmem:[#allocation437_spill] sm:$0xff] %v10888_v1 }
 0x6dc   :  { %13712 = vst [vmem:[#allocation439_spill] sm:$0xff] %v10896_v47 }
 0x6dd   :  { %4120 = vadd.xlane.f32.xlu2 %v4119_v54  ;;  %v3956_v54 = vmul.f32 %v10676_v39, %v8001_v49 }
 0x6df   :  { %4105 = vadd.xlane.f32.xlu0 %v4104_v21  ;;  %4117 = vadd.xlane.f32.xlu1 %v4116_v41  ;;  %v4125_v21 = vsel %vm105_vm0, %v3957_v48, 0.0  ;;  %v3961_v41 = vmul.f32 %v10756_v50, %v13509_v3  ;;  %v4122_v2 = vsel %vm105_vm0, %v3956_v54, 0.0  ;;  %v13723_v54 = vld [vmem:[#allocation56_spill] sm:$0xff] }
 0x6e0   :  { %v10907_v55 = vpop.xlane.xlu2 %3994 }
 0x6e1   :  { %13714 = vst [vmem:[#allocation441_spill] sm:$0xff] %v10907_v55  ;;  %v4137_v48 = vsel %vm105_vm0, %v3961_v41, 0.0  ;;  %v3963_v41 = vmul.f32 %v13724_v62, %v13723_v54 }
 0x6e2   :  { %v10903_v46 = vpop.xlane.xlu0 %3979  ;;  %v10911_v12 = vpop.xlane.xlu1 %3991 }
 0x6e3   :  { %13713 = vst [vmem:[#allocation440_spill] sm:$0xff] %v10903_v46 }
 0x6e4   :  { %13715 = vst [vmem:[#allocation442_spill] sm:$0xff] %v10911_v12  ;;  %v13753_v12 = vld [vmem:[#allocation8_spill] sm:$0xff] }
 0x6e5   :  { %4129 = vadd.xlane.f32.xlu2 %v4128_v14  ;;  %v3959_v14 = vmul.f32 %v10706_v36, %v8031_v53 }
 0x6e7   :  { %4114 = vadd.xlane.f32.xlu0 %v4113_v23  ;;  %4126 = vadd.xlane.f32.xlu1 %v4125_v21  ;;  %v4134_v23 = vsel %vm105_vm0, %v3960_v4, 0.0  ;;  %v13721_v21 = vld [vmem:[#allocation55_spill] sm:$0xff] }
 0x6e8   :  { %v10922_v31 = vpop.xlane.xlu2 %4003  ;;  %v3964_v7 = vmul.f32 %v10786_v56, %v13721_v21  ;;  %v13786_v21 = vld [vmem:[#allocation34_spill] sm:$0xff] }
 0x6e9   :  { %13717 = vst [vmem:[#allocation444_spill] sm:$0xff] %v10922_v31 }
 0x6ea   :  { %v10918_v63 = vpop.xlane.xlu0 %3988  ;;  %v10926_v45 = vpop.xlane.xlu1 %4000  ;;  %v4146_v4 = vsel %vm105_vm0, %v3964_v7, 0.0 }
 0x6eb   :  { %13716 = vst [vmem:[#allocation443_spill] sm:$0xff] %v10918_v63 }
 0x6ec   :  { %13718 = vst [vmem:[#allocation445_spill] sm:$0xff] %v10926_v45 }
 0x6ed   :  { %4138 = vadd.xlane.f32.xlu2 %v4137_v48  ;;  %v4143_v48 = vsel %vm105_vm0, %v3963_v41, 0.0 }
 0x6ef   :  { %4123 = vadd.xlane.f32.xlu0 %v4122_v2  ;;  %4135 = vadd.xlane.f32.xlu1 %v4134_v23  ;;  %v4131_v2 = vsel %vm105_vm0, %v3959_v14, 0.0  ;;  %v13726_v23 = vld [vmem:[#allocation61_spill] sm:$0xff]  ;;  %v13731_v14 = vld [vmem:[#allocation62_spill] sm:$0xff] }
 0x6f0   :  { %v10937_v50 = vpop.xlane.xlu2 %4012  ;;  %v3962_v20 = vmul.f32 %v13727_v38, %v13726_v23  ;;  %v3966_v7 = vmul.f32 %v10761_v51, %v13731_v14  ;;  %v10966_v38 = vld [vmem:[%s12765_s5 + $0x708] sm:$0xff] }
 0x6f1   :  { %13720 = vst [vmem:[#allocation447_spill] sm:$0xff] %v10937_v50  ;;  %v13729_v50 = vld [vmem:[#allocation60_spill] sm:$0xff] }
 0x6f2   :  { %v10933_v39 = vpop.xlane.xlu0 %3997  ;;  %v10941_v27 = vpop.xlane.xlu1 %4009  ;;  %v3967_v19 = vmul.f32 %v10811_v29, %v13729_v50  ;;  %v10971_v29 = vld [vmem:[%s12765_s5 + $0x700] sm:$0xff]  ;;  %v13779_v50 = vld [vmem:[#allocation32_spill] sm:$0xff] }
 0x6f3   :  { %13719 = vst [vmem:[#allocation446_spill] sm:$0xff] %v10933_v39 }
 0x6f4   :  { %13722 = vst [vmem:[#allocation448_spill] sm:$0xff] %v10941_v27  ;;  %v4155_v41 = vsel %vm105_vm0, %v3967_v19, 0.0 }
 0x6f5   :  { %4147 = vadd.xlane.f32.xlu2 %v4146_v4  ;;  %v4152_v4 = vsel %vm105_vm0, %v3966_v7, 0.0 }
 0x6f7   :  { %4132 = vadd.xlane.f32.xlu0 %v4131_v2  ;;  %4144 = vadd.xlane.f32.xlu1 %v4143_v48  ;;  %v4140_v2 = vsel %vm105_vm0, %v3962_v20, 0.0  ;;  %v13733_v20 = vld [vmem:[#allocation66_spill] sm:$0xff] }
 0x6f8   :  { %v10952_v56 = vpop.xlane.xlu2 %4021  ;;  %v3965_v19 = vmul.f32 %v10766_v60, %v13733_v20  ;;  %v10991_v60 = vld [vmem:[%s12765_s5 + $0x720] sm:$0xff] }
 0x6f9   :  { %13728 = vst [vmem:[#allocation412_spill] sm:$0xff] %v10952_v56  ;;  %v13737_v56 = vld [vmem:[#allocation17_spill] sm:$0xff] }
 0x6fa   :  { %v10948_v36 = vpop.xlane.xlu0 %4006  ;;  %v10956_v62 = vpop.xlane.xlu1 %4018 }
 0x6fb   :  { %13725 = vst [vmem:[#allocation411_spill] sm:$0xff] %v10948_v36 }
 0x6fc   :  { %13730 = vst [vmem:[#allocation449_spill] sm:$0xff] %v10956_v62  ;;  %v4149_v62 = vsel %vm105_vm0, %v3965_v19, 0.0  ;;  %v13739_v19 = vld [vmem:[#allocation70_spill] sm:$0xff] }
 0x6fd   :  { %4156 = vadd.xlane.f32.xlu2 %v4155_v41 }
 0x6ff   :  { %4141 = vadd.xlane.f32.xlu0 %v4140_v2  ;;  %4153 = vadd.xlane.f32.xlu1 %v4152_v4  ;;  %v13735_v2 = vld [vmem:[#allocation20_spill] sm:$0xff]  ;;  %v4275_v4 = vmul.f32 %v10971_v29, %v13737_v56 }
 0x700   :  { %v10977_v48 = vpop.xlane.xlu2 %4030  ;;  %v4276_v7 = vmul.f32 %v10966_v38, %v13735_v2  ;;  %v13773_v2 = vld [vmem:[#allocation29_spill] sm:$0xff] }
 0x701   :  { %13734 = vst [vmem:[#allocation451_spill] sm:$0xff] %v10977_v48  ;;  %v10996_v48 = vld [vmem:[%s12765_s5 + $0x718] sm:$0xff] }
 0x702   :  { %v10973_v51 = vpop.xlane.xlu0 %4015  ;;  %v10981_v41 = vpop.xlane.xlu1 %4027  ;;  %v4342_v27 = vsel %vm105_vm0, %v4276_v7, 0.0  ;;  %v3968_v7 = vmul.f32 %v10791_v6, %v13739_v19  ;;  %v11016_v6 = vld [vmem:[%s12765_s5 + $0x710] sm:$0xff] }
 0x703   :  { %13732 = vst [vmem:[#allocation450_spill] sm:$0xff] %v10973_v51  ;;  %v4339_v51 = vsel %vm105_vm0, %v4275_v4, 0.0 }
 0x704   :  { %13736 = vst [vmem:[#allocation452_spill] sm:$0xff] %v10981_v41  ;;  %v4158_v36 = vsel %vm105_vm0, %v3968_v7, 0.0  ;;  %v11026_v7 = vld [vmem:[%s12765_s5 + $0x730] sm:$0xff] }
 0x705   :  { %4343 = vadd.xlane.f32.xlu2 %v4342_v27  ;;  %v13741_v27 = vld [vmem:[#allocation15_spill] sm:$0xff] }
 0x706   :  { %v4279_v4 = vmul.f32 %v10991_v60, %v13741_v27  ;;  %v13767_v27 = vld [vmem:[#allocation26_spill] sm:$0xff] }
 0x707   :  { %4150 = vadd.xlane.f32.xlu0 %v4149_v62  ;;  %4340 = vadd.xlane.f32.xlu1 %v4339_v51  ;;  %v4278_v51 = vmul.f32 %v10996_v48, %v13743_v5 }
 0x708   :  { %v11002_v62 = vpop.xlane.xlu2 %4039  ;;  %v4351_v31 = vsel %vm105_vm0, %v4279_v4, 0.0 }
 0x709   :  { %13740 = vst [vmem:[#allocation454_spill] sm:$0xff] %v11002_v62  ;;  %v11021_v62 = vld [vmem:[%s12765_s5 + $0x738] sm:$0xff] }
 0x70a   :  { %v10998_v41 = vpop.xlane.xlu0 %4024  ;;  %v11006_v40 = vpop.xlane.xlu1 %4036 }
 0x70b   :  { %13738 = vst [vmem:[#allocation453_spill] sm:$0xff] %v10998_v41  ;;  %v4348_v41 = vsel %vm105_vm0, %v4278_v51, 0.0 }
 0x70c   :  { %13742 = vst [vmem:[#allocation455_spill] sm:$0xff] %v11006_v40  ;;  %v13747_v40 = vld [vmem:[#allocation22_spill] sm:$0xff] }
 0x70d   :  { %4352 = vadd.xlane.f32.xlu2 %v4351_v31  ;;  %v13745_v31 = vld [vmem:[#allocation16_spill] sm:$0xff]  ;;  %v4282_v57 = vmul.f32 %v11021_v62, %v13747_v40 }
 0x70e   :  { %v4277_v4 = vmul.f32 %v11016_v6, %v13745_v31 }
 0x70f   :  { %4159 = vadd.xlane.f32.xlu0 %v4158_v36  ;;  %4349 = vadd.xlane.f32.xlu1 %v4348_v41  ;;  %v4281_v41 = vmul.f32 %v11026_v7, %v13749_v61  ;;  %v4360_v55 = vsel %vm105_vm0, %v4282_v57, 0.0 }
 0x710   :  { %v11032_v51 = vpop.xlane.xlu2 %4048  ;;  %v4345_v39 = vsel %vm105_vm0, %v4277_v4, 0.0  ;;  %v11056_v4 = vld [vmem:[%s12765_s5 + $0x748] sm:$0xff] }
 0x711   :  { %13746 = vst [vmem:[#allocation457_spill] sm:$0xff] %v11032_v51  ;;  %v11046_v51 = vld [vmem:[%s12765_s5 + $0x728] sm:$0xff] }
 0x712   :  { %v11028_v36 = vpop.xlane.xlu0 %4033  ;;  %v11036_v45 = vpop.xlane.xlu1 %4045 }
 0x713   :  { %13744 = vst [vmem:[#allocation456_spill] sm:$0xff] %v11028_v36  ;;  %v4357_v36 = vsel %vm105_vm0, %v4281_v41, 0.0 }
 0x714   :  { %13748 = vst [vmem:[#allocation458_spill] sm:$0xff] %v11036_v45  ;;  %v11051_v45 = vld [vmem:[%s12765_s5 + $0x750] sm:$0xff] }
 0x715   :  { %4361 = vadd.xlane.f32.xlu2 %v4360_v55  ;;  %v13751_v55 = vld [vmem:[#allocation18_spill] sm:$0xff]  ;;  %v4285_v8 = vmul.f32 %v11051_v45, %v13753_v12  ;;  %v13761_v12 = vld [vmem:[#allocation12_spill] sm:$0xff] }
 0x717   :  { %4346 = vadd.xlane.f32.xlu0 %v4345_v39  ;;  %4358 = vadd.xlane.f32.xlu1 %v4357_v36  ;;  %v4280_v39 = vmul.f32 %v11046_v51, %v13751_v55  ;;  %v4284_v36 = vmul.f32 %v11056_v4, %v13755_v24  ;;  %v4369_v46 = vsel %vm105_vm0, %v4285_v8, 0.0 }
 0x718   :  { %v11062_v41 = vpop.xlane.xlu2 %4057 }
 0x719   :  { %13752 = vst [vmem:[#allocation460_spill] sm:$0xff] %v11062_v41  ;;  %v4354_v47 = vsel %vm105_vm0, %v4280_v39, 0.0  ;;  %v11076_v41 = vld [vmem:[%s12765_s5 + $0x740] sm:$0xff] }
 0x71a   :  { %v11058_v57 = vpop.xlane.xlu0 %4042  ;;  %v11066_v63 = vpop.xlane.xlu1 %4054  ;;  %v11086_v39 = vld [vmem:[%s12765_s5 + $0x760] sm:$0xff] }
 0x71b   :  { %13750 = vst [vmem:[#allocation459_spill] sm:$0xff] %v11058_v57  ;;  %v4366_v57 = vsel %vm105_vm0, %v4284_v36, 0.0 }
 0x71c   :  { %13754 = vst [vmem:[#allocation461_spill] sm:$0xff] %v11066_v63  ;;  %v11081_v63 = vld [vmem:[%s12765_s5 + $0x768] sm:$0xff] }
 0x71d   :  { %4370 = vadd.xlane.f32.xlu2 %v4369_v46  ;;  %v4288_v52 = vmul.f32 %v11081_v63, %v13759_v28  ;;  %v13765_v28 = vld [vmem:[#allocation25_spill] sm:$0xff] }
 0x71f   :  { %4355 = vadd.xlane.f32.xlu0 %v4354_v47  ;;  %4367 = vadd.xlane.f32.xlu1 %v4366_v57  ;;  %v13757_v47 = vld [vmem:[#allocation21_spill] sm:$0xff]  ;;  %v4287_v57 = vmul.f32 %v11086_v39, %v13761_v12  ;;  %v4378_v24 = vsel %vm105_vm0, %v4288_v52, 0.0  ;;  %v13763_v52 = vld [vmem:[#allocation24_spill] sm:$0xff] }
 0x720   :  { %v4283_v46 = vmul.f32 %v11076_v41, %v13757_v47  ;;  %v11092_v36 = vpop.xlane.xlu2 %4066 }
 0x721   :  { %13758 = vst [vmem:[#allocation463_spill] sm:$0xff] %v11092_v36  ;;  %v11106_v36 = vld [vmem:[%s12765_s5 + $0x758] sm:$0xff] }
 0x722   :  { %v11088_v8 = vpop.xlane.xlu0 %4051  ;;  %v11096_v1 = vpop.xlane.xlu1 %4063  ;;  %v4363_v40 = vsel %vm105_vm0, %v4283_v46, 0.0  ;;  %v11116_v46 = vld [vmem:[%s12765_s5 + $0x778] sm:$0xff] }
 0x723   :  { %13756 = vst [vmem:[#allocation462_spill] sm:$0xff] %v11088_v8  ;;  %v4375_v8 = vsel %vm105_vm0, %v4287_v57, 0.0 }
 0x724   :  { %13760 = vst [vmem:[#allocation464_spill] sm:$0xff] %v11096_v1  ;;  %v11111_v1 = vld [vmem:[%s12765_s5 + $0x780] sm:$0xff] }
 0x725   :  { %4379 = vadd.xlane.f32.xlu2 %v4378_v24  ;;  %v4286_v24 = vmul.f32 %v11106_v36, %v13763_v52  ;;  %v4291_v12 = vmul.f32 %v11111_v1, %v13765_v28  ;;  %v13771_v28 = vld [vmem:[#allocation28_spill] sm:$0xff] }
 0x727   :  { %4364 = vadd.xlane.f32.xlu0 %v4363_v40  ;;  %4376 = vadd.xlane.f32.xlu1 %v4375_v8  ;;  %v4290_v8 = vmul.f32 %v11116_v46, %v13767_v27  ;;  %v4372_v55 = vsel %vm105_vm0, %v4286_v24, 0.0  ;;  %v4387_v61 = vsel %vm105_vm0, %v4291_v12, 0.0  ;;  %v11146_v24 = vld [vmem:[%s12765_s5 + $0x790] sm:$0xff] }
 0x728   :  { %v11122_v57 = vpop.xlane.xlu2 %4075 }
 0x729   :  { %13764 = vst [vmem:[#allocation466_spill] sm:$0xff] %v11122_v57  ;;  %v11136_v57 = vld [vmem:[%s12765_s5 + $0x770] sm:$0xff] }
 0x72a   :  { %v11118_v40 = vpop.xlane.xlu0 %4060  ;;  %v11126_v47 = vpop.xlane.xlu1 %4072 }
 0x72b   :  { %13762 = vst [vmem:[#allocation465_spill] sm:$0xff] %v11118_v40  ;;  %v4384_v40 = vsel %vm105_vm0, %v4290_v8, 0.0 }
 0x72c   :  { %13766 = vst [vmem:[#allocation467_spill] sm:$0xff] %v11126_v47  ;;  %v11141_v47 = vld [vmem:[%s12765_s5 + $0x798] sm:$0xff] }
 0x72d   :  { %4388 = vadd.xlane.f32.xlu2 %v4387_v61  ;;  %v13769_v61 = vld [vmem:[#allocation10_spill] sm:$0xff]  ;;  %v4294_v27 = vmul.f32 %v11141_v47, %v13771_v28  ;;  %v13777_v28 = vld [vmem:[#allocation31_spill] sm:$0xff] }
 0x72f   :  { %4373 = vadd.xlane.f32.xlu0 %v4372_v55  ;;  %4385 = vadd.xlane.f32.xlu1 %v4384_v40  ;;  %v4289_v55 = vmul.f32 %v11136_v57, %v13769_v61  ;;  %v4293_v40 = vmul.f32 %v11146_v24, %v13773_v2  ;;  %v4396_v5 = vsel %vm105_vm0, %v4294_v27, 0.0 }
 0x730   :  { %v11152_v8 = vpop.xlane.xlu2 %4084 }
 0x731   :  { %13770 = vst [vmem:[#allocation469_spill] sm:$0xff] %v11152_v8  ;;  %v4381_v31 = vsel %vm105_vm0, %v4289_v55, 0.0  ;;  %v11166_v8 = vld [vmem:[%s12765_s5 + $0x788] sm:$0xff] }
 0x732   :  { %v11148_v12 = vpop.xlane.xlu0 %4069  ;;  %v11156_v52 = vpop.xlane.xlu1 %4081  ;;  %v11176_v55 = vld [vmem:[%s12765_s5 + $0x7a8] sm:$0xff] }
 0x733   :  { %13768 = vst [vmem:[#allocation468_spill] sm:$0xff] %v11148_v12  ;;  %v4393_v12 = vsel %vm105_vm0, %v4293_v40, 0.0 }
 0x734   :  { %13772 = vst [vmem:[#allocation470_spill] sm:$0xff] %v11156_v52  ;;  %v11171_v52 = vld [vmem:[%s12765_s5 + $0x7b0] sm:$0xff] }
 0x735   :  { %4397 = vadd.xlane.f32.xlu2 %v4396_v5  ;;  %v13775_v5 = vld [vmem:[#allocation13_spill] sm:$0xff]  ;;  %v4297_v2 = vmul.f32 %v11171_v52, %v13777_v28  ;;  %v13784_v28 = vld [vmem:[#allocation6_spill] sm:$0xff] }
 0x737   :  { %4382 = vadd.xlane.f32.xlu0 %v4381_v31  ;;  %4394 = vadd.xlane.f32.xlu1 %v4393_v12  ;;  %v4292_v31 = vmul.f32 %v11166_v8, %v13775_v5  ;;  %v4296_v12 = vmul.f32 %v11176_v55, %v13779_v50  ;;  %v4405_v56 = vsel %vm105_vm0, %v4297_v2, 0.0 }
 0x738   :  { %v11182_v40 = vpop.xlane.xlu2 %4093 }
 0x739   :  { %13776 = vst [vmem:[#allocation472_spill] sm:$0xff] %v11182_v40  ;;  %v4390_v19 = vsel %vm105_vm0, %v4292_v31, 0.0  ;;  %v11196_v40 = vld [vmem:[%s12765_s5 + $0x7a0] sm:$0xff] }
 0x73a   :  { %v11178_v27 = vpop.xlane.xlu0 %4078  ;;  %v11186_v61 = vpop.xlane.xlu1 %4090  ;;  %v11206_v31 = vld [vmem:[%s12765_s5 + $0x7c0] sm:$0xff] }
 0x73b   :  { %13774 = vst [vmem:[#allocation471_spill] sm:$0xff] %v11178_v27  ;;  %v4402_v27 = vsel %vm105_vm0, %v4296_v12, 0.0 }
 0x73c   :  { %13778 = vst [vmem:[#allocation473_spill] sm:$0xff] %v11186_v61  ;;  %v11201_v61 = vld [vmem:[%s12765_s5 + $0x7c8] sm:$0xff] }
 0x73d   :  { %4406 = vadd.xlane.f32.xlu2 %v4405_v56  ;;  %13780 = vst [vmem:[#allocation474_spill] sm:$0xff] %v11206_v31  ;;  %v13782_v56 = vld [vmem:[#allocation27_spill] sm:$0xff]  ;;  %v4300_v50 = vmul.f32 %v11201_v61, %v13784_v28 }
 0x73e   :  { %v13792_v28 = vld [vmem:[#allocation35_spill] sm:$0xff] }
 0x73f   :  { %4391 = vadd.xlane.f32.xlu0 %v4390_v19  ;;  %4403 = vadd.xlane.f32.xlu1 %v4402_v27  ;;  %v4295_v19 = vmul.f32 %v11196_v40, %v13782_v56  ;;  %v4299_v27 = vmul.f32 %v11206_v31, %v13786_v21  ;;  %v4414_v14 = vsel %vm105_vm0, %v4300_v50, 0.0 }
 0x740   :  { %v11212_v12 = vpop.xlane.xlu2 %4102 }
 0x741   :  { %13783 = vst [vmem:[#allocation476_spill] sm:$0xff] %v11212_v12  ;;  %v4399_v20 = vsel %vm105_vm0, %v4295_v19, 0.0  ;;  %v11226_v12 = vld [vmem:[%s12765_s5 + $0x7b8] sm:$0xff] }
 0x742   :  { %v11208_v2 = vpop.xlane.xlu0 %4087  ;;  %v11216_v5 = vpop.xlane.xlu1 %4099  ;;  %v11236_v19 = vld [vmem:[%s12765_s5 + $0x7d8] sm:$0xff] }
 0x743   :  { %13781 = vst [vmem:[#allocation475_spill] sm:$0xff] %v11208_v2  ;;  %v4411_v2 = vsel %vm105_vm0, %v4299_v27, 0.0 }
 0x744   :  { %13785 = vst [vmem:[#allocation477_spill] sm:$0xff] %v11216_v5  ;;  %v11231_v5 = vld [vmem:[%s12765_s5 + $0x7e0] sm:$0xff] }
 0x745   :  { %4415 = vadd.xlane.f32.xlu2 %v4414_v14  ;;  %13787 = vst [vmem:[#allocation478_spill] sm:$0xff] %v11231_v5  ;;  %v13790_v14 = vld [vmem:[#allocation30_spill] sm:$0xff]  ;;  %v4303_v21 = vmul.f32 %v11231_v5, %v13792_v28  ;;  %v13797_v28 = vld [vmem:[#allocation37_spill] sm:$0xff] }
 0x746   :  { %13788 = vst [vmem:[#allocation479_spill] sm:$0xff] %v11236_v19 }
 0x747   :  { %4400 = vadd.xlane.f32.xlu0 %v4399_v20  ;;  %4412 = vadd.xlane.f32.xlu1 %v4411_v2  ;;  %v4298_v20 = vmul.f32 %v11226_v12, %v13790_v14  ;;  %v4302_v2 = vmul.f32 %v11236_v19, %v13691_v22  ;;  %v4423_v3 = vsel %vm105_vm0, %v4303_v21, 0.0 }
 0x748   :  { %v11242_v27 = vpop.xlane.xlu2 %4111 }
 0x749   :  { %13791 = vst [vmem:[#allocation481_spill] sm:$0xff] %v11242_v27  ;;  %v4408_v31 = vsel %vm105_vm0, %v4298_v20, 0.0  ;;  %v11256_v27 = vld [vmem:[%s12765_s5 + $0x7d0] sm:$0xff] }
 0x74a   :  { %v11238_v50 = vpop.xlane.xlu0 %4096  ;;  %v11246_v56 = vpop.xlane.xlu1 %4108  ;;  %v11266_v20 = vld [vmem:[%s12765_s5 + $0x7f0] sm:$0xff] }
 0x74b   :  { %13789 = vst [vmem:[#allocation480_spill] sm:$0xff] %v11238_v50  ;;  %v4420_v50 = vsel %vm105_vm0, %v4302_v2, 0.0 }
 0x74c   :  { %13793 = vst [vmem:[#allocation482_spill] sm:$0xff] %v11246_v56  ;;  %v11261_v56 = vld [vmem:[%s12765_s5 + $0x7f8] sm:$0xff] }
 0x74d   :  { %4424 = vadd.xlane.f32.xlu2 %v4423_v3  ;;  %v13795_v3 = vld [vmem:[#allocation33_spill] sm:$0xff]  ;;  %v4306_v22 = vmul.f32 %v11261_v56, %v13797_v28 }
 0x74f   :  { %4409 = vadd.xlane.f32.xlu0 %v4408_v31  ;;  %4421 = vadd.xlane.f32.xlu1 %v4420_v50  ;;  %v4301_v31 = vmul.f32 %v11256_v27, %v13795_v3  ;;  %v4305_v50 = vmul.f32 %v11266_v20, %v13695_v17  ;;  %v4432_v5 = vsel %vm105_vm0, %v4306_v22, 0.0  ;;  %v4309_v22 = vmul.f32 %v11016_v6, %v7857_v43 }
 0x750   :  { %v11272_v2 = vpop.xlane.xlu2 %4120 }
 0x751   :  { %13796 = vst [vmem:[#allocation484_spill] sm:$0xff] %v11272_v2  ;;  %v4417_v19 = vsel %vm105_vm0, %v4301_v31, 0.0  ;;  %v11286_v2 = vld [vmem:[%s12765_s5 + $0x7e8] sm:$0xff] }
 0x752   :  { %v11268_v21 = vpop.xlane.xlu0 %4105  ;;  %v11276_v14 = vpop.xlane.xlu1 %4117 }
 0x753   :  { %13794 = vst [vmem:[#allocation483_spill] sm:$0xff] %v11268_v21  ;;  %v4429_v21 = vsel %vm105_vm0, %v4305_v50, 0.0  ;;  %v4441_v50 = vsel %vm105_vm0, %v4309_v22, 0.0 }
 0x754   :  { %13798 = vst [vmem:[#allocation485_spill] sm:$0xff] %v11276_v14  ;;  %v13800_v14 = vld [vmem:[#allocation7_spill] sm:$0xff] }
 0x755   :  { %4433 = vadd.xlane.f32.xlu2 %v4432_v5  ;;  %v4304_v3 = vmul.f32 %v11286_v2, %v13800_v14  ;;  %v4308_v5 = vmul.f32 %v10966_v38, %v7872_v16 }
 0x757   :  { %4418 = vadd.xlane.f32.xlu0 %v4417_v19  ;;  %4430 = vadd.xlane.f32.xlu1 %v4429_v21  ;;  %v4426_v31 = vsel %vm105_vm0, %v4304_v3, 0.0  ;;  %v4438_v21 = vsel %vm105_vm0, %v4308_v5, 0.0  ;;  %v4311_v3 = vmul.f32 %v10991_v60, %v7890_v10 }
 0x758   :  { %v11292_v17 = vpop.xlane.xlu2 %4129 }
 0x759   :  { %13801 = vst [vmem:[#allocation487_spill] sm:$0xff] %v11292_v17  ;;  %v13804_v17 = vld [vmem:[#allocation14_spill] sm:$0xff] }
 0x75a   :  { %v11288_v28 = vpop.xlane.xlu0 %4114  ;;  %v11296_v19 = vpop.xlane.xlu1 %4126  ;;  %v4307_v14 = vmul.f32 %v10971_v29, %v13804_v17 }
 0x75b   :  { %13799 = vst [vmem:[#allocation486_spill] sm:$0xff] %v11288_v28 }
 0x75c   :  { %13802 = vst [vmem:[#allocation488_spill] sm:$0xff] %v11296_v19  ;;  %v4312_v19 = vmul.f32 %v11046_v51, %v7880_v35  ;;  %v4435_v22 = vsel %vm105_vm0, %v4307_v14, 0.0  ;;  %v4314_v14 = vmul.f32 %v11021_v62, %v7910_v30 }
 0x75d   :  { %4442 = vadd.xlane.f32.xlu2 %v4441_v50  ;;  %v4310_v50 = vmul.f32 %v10996_v48, %v13168_v42 }
 0x75e   :  { %v4450_v5 = vsel %vm105_vm0, %v4312_v19, 0.0 }
 0x75f   :  { %4427 = vadd.xlane.f32.xlu0 %v4426_v31  ;;  %4439 = vadd.xlane.f32.xlu1 %v4438_v21  ;;  %v4447_v31 = vsel %vm105_vm0, %v4311_v3, 0.0  ;;  %v4315_v21 = vmul.f32 %v11076_v41, %v7898_v32  ;;  %v4444_v19 = vsel %vm105_vm0, %v4310_v50, 0.0  ;;  %v4317_v50 = vmul.f32 %v11051_v45, %v7932_v18 }
 0x760   :  { %v11307_v6 = vpop.xlane.xlu2 %4138 }
 0x761   :  { %13805 = vst [vmem:[#allocation14_spill] sm:$0xff] %v11307_v6  ;;  %v4459_v3 = vsel %vm105_vm0, %v4315_v21, 0.0 }
 0x762   :  { %v11303_v28 = vpop.xlane.xlu0 %4123  ;;  %v11311_v38 = vpop.xlane.xlu1 %4135 }
 0x763   :  { %13803 = vst [vmem:[#allocation489_spill] sm:$0xff] %v11303_v28 }
 0x764   :  { %13806 = vst [vmem:[#allocation490_spill] sm:$0xff] %v11311_v38 }
 0x765   :  { %4451 = vadd.xlane.f32.xlu2 %v4450_v5  ;;  %v4313_v5 = vmul.f32 %v11026_v7, %v7874_v33 }
 0x767   :  { %4436 = vadd.xlane.f32.xlu0 %v4435_v22  ;;  %4448 = vadd.xlane.f32.xlu1 %v4447_v31  ;;  %v4456_v22 = vsel %vm105_vm0, %v4314_v14, 0.0  ;;  %v4318_v31 = vmul.f32 %v11106_v36, %v7918_v44  ;;  %v4453_v21 = vsel %vm105_vm0, %v4313_v5, 0.0  ;;  %v4320_v5 = vmul.f32 %v11081_v63, %v7952_v58 }
 0x768   :  { %v11322_v51 = vpop.xlane.xlu2 %4147 }
 0x769   :  { %13808 = vst [vmem:[#allocation492_spill] sm:$0xff] %v11322_v51  ;;  %v4468_v14 = vsel %vm105_vm0, %v4318_v31, 0.0 }
 0x76a   :  { %v11318_v29 = vpop.xlane.xlu0 %4132  ;;  %v11326_v60 = vpop.xlane.xlu1 %4144 }
 0x76b   :  { %13807 = vst [vmem:[#allocation491_spill] sm:$0xff] %v11318_v29  ;;  %v13858_v29 = vld [vmem:[#allocation9_spill] sm:$0xff] }
 0x76c   :  { %13809 = vst [vmem:[#allocation493_spill] sm:$0xff] %v11326_v60 }
 0x76d   :  { %4460 = vadd.xlane.f32.xlu2 %v4459_v3  ;;  %v4316_v3 = vmul.f32 %v11056_v4, %v13175_v37 }
 0x76f   :  { %4445 = vadd.xlane.f32.xlu0 %v4444_v19  ;;  %4457 = vadd.xlane.f32.xlu1 %v4456_v22  ;;  %v4465_v19 = vsel %vm105_vm0, %v4317_v50, 0.0  ;;  %v4321_v22 = vmul.f32 %v11136_v57, %v7940_v26  ;;  %v4462_v31 = vsel %vm105_vm0, %v4316_v3, 0.0  ;;  %v4323_v3 = vmul.f32 %v11111_v1, %v7977_v59 }
 0x770   :  { %v11337_v41 = vpop.xlane.xlu2 %4156 }
 0x771   :  { %13811 = vst [vmem:[#allocation495_spill] sm:$0xff] %v11337_v41  ;;  %v4477_v50 = vsel %vm105_vm0, %v4321_v22, 0.0  ;;  %v13832_v41 = vld [vmem:[#allocation62_spill] sm:$0xff] }
 0x772   :  { %v11333_v48 = vpop.xlane.xlu0 %4141  ;;  %v11341_v62 = vpop.xlane.xlu1 %4153 }
 0x773   :  { %13810 = vst [vmem:[#allocation494_spill] sm:$0xff] %v11333_v48 }
 0x774   :  { %13812 = vst [vmem:[#allocation496_spill] sm:$0xff] %v11341_v62  ;;  %v4336_v62 = vmul.f32 %v11286_v2, %v13832_v41 }
 0x775   :  { %4469 = vadd.xlane.f32.xlu2 %v4468_v14  ;;  %v4319_v14 = vmul.f32 %v11086_v39, %v7912_v13 }
 0x777   :  { %4454 = vadd.xlane.f32.xlu0 %v4453_v21  ;;  %4466 = vadd.xlane.f32.xlu1 %v4465_v19  ;;  %v4474_v21 = vsel %vm105_vm0, %v4320_v5, 0.0  ;;  %v4324_v19 = vmul.f32 %v11166_v8, %v7964_v25  ;;  %v4471_v22 = vsel %vm105_vm0, %v4319_v14, 0.0  ;;  %v4326_v14 = vmul.f32 %v11141_v47, %v8001_v49 }
 0x778   :  { %v11352_v36 = vpop.xlane.xlu2 %4343 }
 0x779   :  { %13814 = vst [vmem:[#allocation498_spill] sm:$0xff] %v11352_v36  ;;  %v4486_v5 = vsel %vm105_vm0, %v4324_v19, 0.0 }
 0x77a   :  { %v11348_v7 = vpop.xlane.xlu0 %4150  ;;  %v11356_v45 = vpop.xlane.xlu1 %4340 }
 0x77b   :  { %13813 = vst [vmem:[#allocation497_spill] sm:$0xff] %v11348_v7  ;;  %v13835_v7 = vld [vmem:[#allocation478_spill] sm:$0xff] }
 0x77c   :  { %13815 = vst [vmem:[#allocation499_spill] sm:$0xff] %v11356_v45 }
 0x77d   :  { %4478 = vadd.xlane.f32.xlu2 %v4477_v50  ;;  %v4322_v50 = vmul.f32 %v11116_v46, %v7934_v34 }
 0x77f   :  { %4463 = vadd.xlane.f32.xlu0 %v4462_v31  ;;  %4475 = vadd.xlane.f32.xlu1 %v4474_v21  ;;  %v4483_v31 = vsel %vm105_vm0, %v4323_v3, 0.0  ;;  %v4327_v21 = vmul.f32 %v11196_v40, %v7985_v11  ;;  %v4480_v19 = vsel %vm105_vm0, %v4322_v50, 0.0  ;;  %v4329_v50 = vmul.f32 %v11171_v52, %v8031_v53 }
 0x780   :  { %v11367_v57 = vpop.xlane.xlu2 %4352 }
 0x781   :  { %13817 = vst [vmem:[#allocation501_spill] sm:$0xff] %v11367_v57  ;;  %v4495_v3 = vsel %vm105_vm0, %v4327_v21, 0.0 }
 0x782   :  { %v11363_v4 = vpop.xlane.xlu0 %4159  ;;  %v11371_v63 = vpop.xlane.xlu1 %4349 }
 0x783   :  { %13816 = vst [vmem:[#allocation500_spill] sm:$0xff] %v11363_v4 }
 0x784   :  { %13818 = vst [vmem:[#allocation502_spill] sm:$0xff] %v11371_v63 }
 0x785   :  { %4487 = vadd.xlane.f32.xlu2 %v4486_v5  ;;  %v4325_v5 = vmul.f32 %v11146_v24, %v7954_v15 }
 0x787   :  { %4472 = vadd.xlane.f32.xlu0 %v4471_v22  ;;  %4484 = vadd.xlane.f32.xlu1 %v4483_v31  ;;  %v4492_v22 = vsel %vm105_vm0, %v4326_v14, 0.0  ;;  %v4330_v31 = vmul.f32 %v11226_v12, %v8009_v0  ;;  %v4489_v21 = vsel %vm105_vm0, %v4325_v5, 0.0  ;;  %v4332_v5 = vmul.f32 %v11201_v61, %v13726_v23 }
 0x788   :  { %v11382_v8 = vpop.xlane.xlu2 %4361 }
 0x789   :  { %13820 = vst [vmem:[#allocation504_spill] sm:$0xff] %v11382_v8  ;;  %v4504_v14 = vsel %vm105_vm0, %v4330_v31, 0.0  ;;  %v13860_v8 = vld [vmem:[#allocation21_spill] sm:$0xff] }
 0x78a   :  { %v11378_v39 = vpop.xlane.xlu0 %4346  ;;  %v11386_v1 = vpop.xlane.xlu1 %4358 }
 0x78b   :  { %13819 = vst [vmem:[#allocation503_spill] sm:$0xff] %v11378_v39  ;;  %v13866_v39 = vld [vmem:[#allocation24_spill] sm:$0xff] }
 0x78c   :  { %13821 = vst [vmem:[#allocation505_spill] sm:$0xff] %v11386_v1 }
 0x78d   :  { %4496 = vadd.xlane.f32.xlu2 %v4495_v3  ;;  %v4328_v3 = vmul.f32 %v11176_v55, %v7979_v9 }
 0x78f   :  { %4481 = vadd.xlane.f32.xlu0 %v4480_v19  ;;  %4493 = vadd.xlane.f32.xlu1 %v4492_v22  ;;  %v4501_v19 = vsel %vm105_vm0, %v4329_v50, 0.0  ;;  %v4333_v22 = vmul.f32 %v11256_v27, %v13723_v54  ;;  %v4498_v31 = vsel %vm105_vm0, %v4328_v3, 0.0  ;;  %v13834_v3 = vld [vmem:[#allocation66_spill] sm:$0xff]  ;;  %v13878_v54 = vld [vmem:[#allocation27_spill] sm:$0xff] }
 0x790   :  { %v11397_v40 = vpop.xlane.xlu2 %4370 }
 0x791   :  { %13823 = vst [vmem:[#allocation507_spill] sm:$0xff] %v11397_v40  ;;  %v4513_v50 = vsel %vm105_vm0, %v4333_v22, 0.0  ;;  %v4335_v22 = vmul.f32 %v13835_v7, %v13834_v3 }
 0x792   :  { %v11393_v46 = vpop.xlane.xlu0 %4355  ;;  %v11401_v47 = vpop.xlane.xlu1 %4367 }
 0x793   :  { %13822 = vst [vmem:[#allocation506_spill] sm:$0xff] %v11393_v46  ;;  %v13864_v46 = vld [vmem:[#allocation12_spill] sm:$0xff] }
 0x794   :  { %13824 = vst [vmem:[#allocation508_spill] sm:$0xff] %v11401_v47 }
 0x795   :  { %4505 = vadd.xlane.f32.xlu2 %v4504_v14  ;;  %v13829_v14 = vld [vmem:[#allocation50_spill] sm:$0xff] }
 0x797   :  { %4490 = vadd.xlane.f32.xlu0 %v4489_v21  ;;  %4502 = vadd.xlane.f32.xlu1 %v4501_v19  ;;  %v4510_v21 = vsel %vm105_vm0, %v4332_v5, 0.0  ;;  %v13830_v19 = vld [vmem:[#allocation474_spill] sm:$0xff]  ;;  %v4522_v5 = vsel %vm105_vm0, %v4336_v62, 0.0 }
 0x798   :  { %v11412_v12 = vpop.xlane.xlu2 %4379  ;;  %v4331_v4 = vmul.f32 %v13830_v19, %v13829_v14  ;;  %v13837_v19 = vld [vmem:[#allocation55_spill] sm:$0xff] }
 0x799   :  { %13826 = vst [vmem:[#allocation510_spill] sm:$0xff] %v11412_v12 }
 0x79a   :  { %v11408_v24 = vpop.xlane.xlu0 %4364  ;;  %v11416_v52 = vpop.xlane.xlu1 %4376 }
 0x79b   :  { %13825 = vst [vmem:[#allocation509_spill] sm:$0xff] %v11408_v24 }
 0x79c   :  { %13827 = vst [vmem:[#allocation511_spill] sm:$0xff] %v11416_v52 }
 0x79d   :  { %4514 = vadd.xlane.f32.xlu2 %v4513_v50  ;;  %v4519_v50 = vsel %vm105_vm0, %v4335_v22, 0.0 }
 0x79f   :  { %4499 = vadd.xlane.f32.xlu0 %v4498_v31  ;;  %4511 = vadd.xlane.f32.xlu1 %v4510_v21  ;;  %v4507_v31 = vsel %vm105_vm0, %v4331_v4, 0.0  ;;  %v11441_v21 = vld [vmem:[%s12765_s5 + $0x800] sm:$0xff]  ;;  %v13840_v4 = vld [vmem:[#allocation17_spill] sm:$0xff] }
 0x7a0   :  { %v11427_v27 = vpop.xlane.xlu2 %4388  ;;  %v4645_v62 = vmul.f32 %v11441_v21, %v13840_v4 }
 0x7a1   :  { %13831 = vst [vmem:[#allocation474_spill] sm:$0xff] %v11427_v27  ;;  %v13838_v27 = vld [vmem:[#allocation479_spill] sm:$0xff] }
 0x7a2   :  { %v11423_v55 = vpop.xlane.xlu0 %4373  ;;  %v11431_v61 = vpop.xlane.xlu1 %4385  ;;  %v4709_v60 = vsel %vm105_vm0, %v4645_v62, 0.0 }
 0x7a3   :  { %13828 = vst [vmem:[#allocation512_spill] sm:$0xff] %v11423_v55  ;;  %v13854_v55 = vld [vmem:[#allocation18_spill] sm:$0xff] }
 0x7a4   :  { %13833 = vst [vmem:[#allocation513_spill] sm:$0xff] %v11431_v61  ;;  %v4334_v61 = vmul.f32 %v13838_v27, %v13837_v19  ;;  %v11461_v27 = vld [vmem:[%s12765_s5 + $0x818] sm:$0xff] }
 0x7a5   :  { %4523 = vadd.xlane.f32.xlu2 %v4522_v5  ;;  %v13842_v5 = vld [vmem:[#allocation70_spill] sm:$0xff] }
 0x7a6   :  { %v4338_v22 = vmul.f32 %v11261_v56, %v13842_v5  ;;  %v4516_v51 = vsel %vm105_vm0, %v4334_v61, 0.0  ;;  %v13844_v61 = vld [vmem:[#allocation60_spill] sm:$0xff] }
 0x7a7   :  { %4508 = vadd.xlane.f32.xlu0 %v4507_v31  ;;  %4520 = vadd.xlane.f32.xlu1 %v4519_v50  ;;  %v4337_v62 = vmul.f32 %v11266_v20, %v13844_v61  ;;  %v11486_v20 = vld [vmem:[%s12765_s5 + $0x808] sm:$0xff] }
 0x7a8   :  { %v11447_v7 = vpop.xlane.xlu2 %4397  ;;  %v4528_v50 = vsel %vm105_vm0, %v4338_v22, 0.0 }
 0x7a9   :  { %13839 = vst [vmem:[#allocation479_spill] sm:$0xff] %v11447_v7  ;;  %v11466_v7 = vld [vmem:[%s12765_s5 + $0x810] sm:$0xff]  ;;  %v4525_v12 = vsel %vm105_vm0, %v4337_v62, 0.0  ;;  %v11496_v62 = vld [vmem:[%s12765_s5 + $0x828] sm:$0xff] }
 0x7aa   :  { %v11443_v2 = vpop.xlane.xlu0 %4382  ;;  %v11451_v31 = vpop.xlane.xlu1 %4394 }
 0x7ab   :  { %13836 = vst [vmem:[#allocation478_spill] sm:$0xff] %v11443_v2  ;;  %v13848_v2 = vld [vmem:[#allocation16_spill] sm:$0xff] }
 0x7ac   :  { %13841 = vst [vmem:[#allocation514_spill] sm:$0xff] %v11451_v31 }
 0x7ad   :  { %4710 = vadd.xlane.f32.xlu2 %v4709_v60  ;;  %v13846_v60 = vld [vmem:[#allocation19_spill] sm:$0xff] }
 0x7ae   :  { %v4648_v22 = vmul.f32 %v11461_v27, %v13846_v60  ;;  %v13873_v60 = vld [vmem:[#allocation13_spill] sm:$0xff] }
 0x7af   :  { %4517 = vadd.xlane.f32.xlu0 %v4516_v51  ;;  %4529 = vadd.xlane.f32.xlu1 %v4528_v50  ;;  %v4647_v50 = vmul.f32 %v11466_v7, %v13848_v2 }
 0x7b0   :  { %v11472_v51 = vpop.xlane.xlu2 %4406  ;;  %v4718_v48 = vsel %vm105_vm0, %v4648_v22, 0.0 }
 0x7b1   :  { %13845 = vst [vmem:[#allocation516_spill] sm:$0xff] %v11472_v51  ;;  %v11491_v51 = vld [vmem:[%s12765_s5 + $0x830] sm:$0xff] }
 0x7b2   :  { %v11468_v56 = vpop.xlane.xlu0 %4391  ;;  %v11476_v31 = vpop.xlane.xlu1 %4403 }
 0x7b3   :  { %13843 = vst [vmem:[#allocation515_spill] sm:$0xff] %v11468_v56  ;;  %v4715_v56 = vsel %vm105_vm0, %v4647_v50, 0.0 }
 0x7b4   :  { %13847 = vst [vmem:[#allocation517_spill] sm:$0xff] %v11476_v31  ;;  %v13852_v31 = vld [vmem:[#allocation23_spill] sm:$0xff] }
 0x7b5   :  { %4719 = vadd.xlane.f32.xlu2 %v4718_v48  ;;  %v13850_v48 = vld [vmem:[#allocation20_spill] sm:$0xff]  ;;  %v4651_v52 = vmul.f32 %v11491_v51, %v13852_v31 }
 0x7b6   :  { %v4646_v22 = vmul.f32 %v11486_v20, %v13850_v48 }
 0x7b7   :  { %4526 = vadd.xlane.f32.xlu0 %v4525_v12  ;;  %4716 = vadd.xlane.f32.xlu1 %v4715_v56  ;;  %v4650_v56 = vmul.f32 %v11496_v62, %v13854_v55  ;;  %v4727_v40 = vsel %vm105_vm0, %v4651_v52, 0.0 }
 0x7b8   :  { %v11502_v50 = vpop.xlane.xlu2 %4415  ;;  %v4712_v38 = vsel %vm105_vm0, %v4646_v22, 0.0  ;;  %v11526_v22 = vld [vmem:[%s12765_s5 + $0x840] sm:$0xff] }
 0x7b9   :  { %13851 = vst [vmem:[#allocation519_spill] sm:$0xff] %v11502_v50  ;;  %v11516_v50 = vld [vmem:[%s12765_s5 + $0x820] sm:$0xff] }
 0x7ba   :  { %v11498_v12 = vpop.xlane.xlu0 %4400  ;;  %v11506_v6 = vpop.xlane.xlu1 %4412 }
 0x7bb   :  { %13849 = vst [vmem:[#allocation518_spill] sm:$0xff] %v11498_v12  ;;  %v4724_v12 = vsel %vm105_vm0, %v4650_v56, 0.0 }
 0x7bc   :  { %13853 = vst [vmem:[#allocation520_spill] sm:$0xff] %v11506_v6  ;;  %v11521_v6 = vld [vmem:[%s12765_s5 + $0x848] sm:$0xff] }
 0x7bd   :  { %4728 = vadd.xlane.f32.xlu2 %v4727_v40  ;;  %v13856_v40 = vld [vmem:[#allocation15_spill] sm:$0xff]  ;;  %v4654_v47 = vmul.f32 %v11521_v6, %v13858_v29 }
 0x7be   :  { %v4649_v52 = vmul.f32 %v11516_v50, %v13856_v40 }
 0x7bf   :  { %4713 = vadd.xlane.f32.xlu0 %v4712_v38  ;;  %4725 = vadd.xlane.f32.xlu1 %v4724_v12  ;;  %v4653_v12 = vmul.f32 %v11526_v22, %v13860_v8  ;;  %v4736_v1 = vsel %vm105_vm0, %v4654_v47, 0.0 }
 0x7c0   :  { %v11532_v56 = vpop.xlane.xlu2 %4424  ;;  %v4721_v28 = vsel %vm105_vm0, %v4649_v52, 0.0  ;;  %v11556_v52 = vld [vmem:[%s12765_s5 + $0x858] sm:$0xff] }
 0x7c1   :  { %13857 = vst [vmem:[#allocation522_spill] sm:$0xff] %v11532_v56  ;;  %v11546_v56 = vld [vmem:[%s12765_s5 + $0x838] sm:$0xff] }
 0x7c2   :  { %v11528_v38 = vpop.xlane.xlu0 %4409  ;;  %v11536_v24 = vpop.xlane.xlu1 %4421 }
 0x7c3   :  { %13855 = vst [vmem:[#allocation521_spill] sm:$0xff] %v11528_v38  ;;  %v4733_v38 = vsel %vm105_vm0, %v4653_v12, 0.0 }
 0x7c4   :  { %13859 = vst [vmem:[#allocation523_spill] sm:$0xff] %v11536_v24  ;;  %v11551_v24 = vld [vmem:[%s12765_s5 + $0x860] sm:$0xff] }
 0x7c5   :  { %4737 = vadd.xlane.f32.xlu2 %v4736_v1  ;;  %v13862_v1 = vld [vmem:[#allocation22_spill] sm:$0xff]  ;;  %v4657_v57 = vmul.f32 %v11551_v24, %v13864_v46 }
 0x7c6   :  { %v4652_v47 = vmul.f32 %v11546_v56, %v13862_v1  ;;  %v13869_v46 = vld [vmem:[#allocation26_spill] sm:$0xff] }
 0x7c7   :  { %4722 = vadd.xlane.f32.xlu0 %v4721_v28  ;;  %4734 = vadd.xlane.f32.xlu1 %v4733_v38  ;;  %v4656_v38 = vmul.f32 %v11556_v52, %v13866_v39  ;;  %v4745_v45 = vsel %vm105_vm0, %v4657_v57, 0.0  ;;  %v13870_v1 = vld [vmem:[#allocation10_spill] sm:$0xff] }
 0x7c8   :  { %v11562_v12 = vpop.xlane.xlu2 %4433  ;;  %v4730_v36 = vsel %vm105_vm0, %v4652_v47, 0.0  ;;  %v11586_v47 = vld [vmem:[%s12765_s5 + $0x870] sm:$0xff] }
 0x7c9   :  { %13863 = vst [vmem:[#allocation525_spill] sm:$0xff] %v11562_v12  ;;  %v11576_v12 = vld [vmem:[%s12765_s5 + $0x850] sm:$0xff]  ;;  %v4659_v8 = vmul.f32 %v11586_v47, %v13870_v1 }
 0x7ca   :  { %v11558_v28 = vpop.xlane.xlu0 %4418  ;;  %v11566_v63 = vpop.xlane.xlu1 %4430  ;;  %v13872_v1 = vld [vmem:[#allocation29_spill] sm:$0xff] }
 0x7cb   :  { %13861 = vst [vmem:[#allocation524_spill] sm:$0xff] %v11558_v28  ;;  %v4742_v28 = vsel %vm105_vm0, %v4656_v38, 0.0  ;;  %v4751_v40 = vsel %vm105_vm0, %v4659_v8, 0.0 }
 0x7cc   :  { %13865 = vst [vmem:[#allocation526_spill] sm:$0xff] %v11566_v63  ;;  %v11581_v63 = vld [vmem:[%s12765_s5 + $0x878] sm:$0xff] }
 0x7cd   :  { %4746 = vadd.xlane.f32.xlu2 %v4745_v45  ;;  %v13868_v45 = vld [vmem:[#allocation8_spill] sm:$0xff]  ;;  %v4660_v39 = vmul.f32 %v11581_v63, %v13869_v46 }
 0x7ce   :  { %v4655_v57 = vmul.f32 %v11576_v12, %v13868_v45  ;;  %v11607_v46 = vld [vmem:[%s12765_s5 + $0x890] sm:$0xff] }
 0x7cf   :  { %4731 = vadd.xlane.f32.xlu0 %v4730_v36  ;;  %4743 = vadd.xlane.f32.xlu1 %v4742_v28  ;;  %v4754_v31 = vsel %vm105_vm0, %v4660_v39, 0.0  ;;  %v4663_v45 = vmul.f32 %v11607_v46, %v13872_v1  ;;  %v11631_v1 = vld [vmem:[%s12765_s5 + $0x8a8] sm:$0xff] }
 0x7d0   :  { %v4443_v38 = vpop.xlane.xlu2 %4442  ;;  %v4739_v28 = vsel %vm105_vm0, %v4655_v57, 0.0  ;;  %v11612_v57 = vld [vmem:[%s12765_s5 + $0x888] sm:$0xff]  ;;  %13874 = vst [vmem:[#allocation528_spill] sm:$0xff] %v11631_v1 }
 0x7d1   :  { %v4662_v48 = vmul.f32 %v11612_v57, %v13873_v60  ;;  %v4763_v4 = vsel %vm105_vm0, %v4663_v45, 0.0 }
 0x7d2   :  { %v11588_v36 = vpop.xlane.xlu0 %4427  ;;  %v4440_v29 = vpop.xlane.xlu1 %4439 }
 0x7d3   :  { %13867 = vst [vmem:[#allocation527_spill] sm:$0xff] %v11588_v36  ;;  %v11602_v36 = vld [vmem:[%s12765_s5 + $0x868] sm:$0xff]  ;;  %v4760_v41 = vsel %vm105_vm0, %v4662_v48, 0.0 }
 0x7d5   :  { %4755 = vadd.xlane.f32.xlu2 %v4754_v31  ;;  %v13871_v31 = vld [vmem:[#allocation11_spill] sm:$0xff] }
 0x7d6   :  { %v4658_v8 = vmul.f32 %v11602_v36, %v13871_v31  ;;  %v11626_v31 = vld [vmem:[%s12765_s5 + $0x880] sm:$0xff] }
 0x7d7   :  { %4740 = vadd.xlane.f32.xlu0 %v4739_v28  ;;  %4752 = vadd.xlane.f32.xlu1 %v4751_v40 }
 0x7d8   :  { %v4452_v28 = vpop.xlane.xlu2 %4451  ;;  %v4748_v40 = vsel %vm105_vm0, %v4658_v8, 0.0 }
 0x7da   :  { %v4437_v39 = vpop.xlane.xlu0 %4436  ;;  %v4449_v55 = vpop.xlane.xlu1 %4448 }
 0x7db   :  { %v4568_v2 = vadd.f32 %v4440_v29, %v4437_v39  ;;  %v11636_v29 = vld [vmem:[%s12765_s5 + $0x8a0] sm:$0xff]  ;;  %v13876_v39 = vld [vmem:[#allocation25_spill] sm:$0xff] }
 0x7dc   :  { %13875 = vst [vmem:[#allocation529_spill] sm:$0xff] %v11636_v29  ;;  %v4661_v48 = vmul.f32 %v11626_v31, %v13876_v39  ;;  %v4665_v19 = vmul.f32 %v11636_v29, %v13878_v54  ;;  %v13883_v39 = vld [vmem:[#allocation30_spill] sm:$0xff] }
 0x7dd   :  { %4764 = vadd.xlane.f32.xlu2 %v4763_v4  ;;  %v4569_v45 = vadd.f32 %v4568_v2, %v4443_v38  ;;  %v11650_v38 = vld [vmem:[%s12765_s5 + $0x898] sm:$0xff] }
 0x7de   :  { %v4757_v3 = vsel %vm105_vm0, %v4661_v48, 0.0  ;;  %v4769_v2 = vsel %vm105_vm0, %v4665_v19, 0.0 }
 0x7df   :  { %4749 = vadd.xlane.f32.xlu0 %v4748_v40  ;;  %4761 = vadd.xlane.f32.xlu1 %v4760_v41  ;;  %v13877_v40 = vld [vmem:[#allocation32_spill] sm:$0xff] }
 0x7e0   :  { %v4461_v8 = vpop.xlane.xlu2 %4460  ;;  %v4666_v60 = vmul.f32 %v11631_v1, %v13877_v40 }
 0x7e2   :  { %v4446_v4 = vpop.xlane.xlu0 %4445  ;;  %v4458_v5 = vpop.xlane.xlu1 %4457  ;;  %v4772_v0 = vsel %vm105_vm0, %v4666_v60, 0.0 }
 0x7e3   :  { %v4570_v61 = vadd.f32 %v4569_v45, %v4446_v4  ;;  %v11655_v45 = vld [vmem:[%s12765_s5 + $0x8c0] sm:$0xff] }
 0x7e4   :  { %13879 = vst [vmem:[#allocation530_spill] sm:$0xff] %v11655_v45  ;;  %v13882_v4 = vld [vmem:[#allocation34_spill] sm:$0xff] }
 0x7e5   :  { %v4571_v41 = vadd.f32 %v4570_v61, %v4449_v55  ;;  %4773 = vadd.xlane.f32.xlu2 %v4772_v0  ;;  %v11660_v55 = vld [vmem:[%s12765_s5 + $0x8b8] sm:$0xff]  ;;  %v13881_v61 = vld [vmem:[#allocation28_spill] sm:$0xff]  ;;  %v4669_v48 = vmul.f32 %v11655_v45, %v13882_v4 }
 0x7e6   :  { %13880 = vst [vmem:[#allocation531_spill] sm:$0xff] %v11660_v55  ;;  %v4664_v19 = vmul.f32 %v11650_v38, %v13881_v61  ;;  %v4668_v14 = vmul.f32 %v11660_v55, %v13883_v39  ;;  %v13888_v61 = vld [vmem:[#allocation33_spill] sm:$0xff] }
 0x7e7   :  { %4758 = vadd.xlane.f32.xlu0 %v4757_v3  ;;  %4770 = vadd.xlane.f32.xlu1 %v4769_v2  ;;  %v4572_v3 = vadd.f32 %v4571_v41, %v4452_v28  ;;  %v4781_v29 = vsel %vm105_vm0, %v4669_v48, 0.0  ;;  %v11674_v41 = vld [vmem:[%s12765_s5 + $0x8b0] sm:$0xff] }
 0x7e8   :  { %v4470_v60 = vpop.xlane.xlu2 %4469  ;;  %v4766_v23 = vsel %vm105_vm0, %v4664_v19, 0.0  ;;  %v4778_v28 = vsel %vm105_vm0, %v4668_v14, 0.0  ;;  %v13887_v19 = vld [vmem:[#allocation36_spill] sm:$0xff] }
 0x7ea   :  { %v4455_v0 = vpop.xlane.xlu0 %4454  ;;  %v4467_v54 = vpop.xlane.xlu1 %4466 }
 0x7eb   :  { %v4573_v40 = vadd.f32 %v4572_v3, %v4455_v0  ;;  %v11679_v3 = vld [vmem:[%s12765_s5 + $0x8d8] sm:$0xff] }
 0x7ec   :  { %13884 = vst [vmem:[#allocation532_spill] sm:$0xff] %v11679_v3  ;;  %v4672_v48 = vmul.f32 %v11679_v3, %v13887_v19 }
 0x7ed   :  { %v4574_v2 = vadd.f32 %v4573_v40, %v4458_v5  ;;  %4782 = vadd.xlane.f32.xlu2 %v4781_v29  ;;  %v11684_v5 = vld [vmem:[%s12765_s5 + $0x8d0] sm:$0xff]  ;;  %v13886_v40 = vld [vmem:[#allocation31_spill] sm:$0xff] }
 0x7ee   :  { %13885 = vst [vmem:[#allocation533_spill] sm:$0xff] %v11684_v5  ;;  %v4667_v14 = vmul.f32 %v11674_v41, %v13886_v40  ;;  %v4671_v55 = vmul.f32 %v11684_v5, %v13888_v61  ;;  %v4790_v11 = vsel %vm105_vm0, %v4672_v48, 0.0  ;;  %v13891_v40 = vld [vmem:[#allocation7_spill] sm:$0xff] }
 0x7ef   :  { %4767 = vadd.xlane.f32.xlu0 %v4766_v23  ;;  %4779 = vadd.xlane.f32.xlu1 %v4778_v28  ;;  %v4575_v23 = vadd.f32 %v4574_v2, %v4461_v8  ;;  %v11698_v2 = vld [vmem:[%s12765_s5 + $0x8c8] sm:$0xff] }
 0x7f0   :  { %v4479_v0 = vpop.xlane.xlu2 %4478  ;;  %v4775_v45 = vsel %vm105_vm0, %v4667_v14, 0.0  ;;  %v4787_v8 = vsel %vm105_vm0, %v4671_v55, 0.0  ;;  %v13890_v14 = vld [vmem:[#allocation38_spill] sm:$0xff] }
 0x7f2   :  { %v4464_v29 = vpop.xlane.xlu0 %4463  ;;  %v4476_v39 = vpop.xlane.xlu1 %4475 }
 0x7f3   :  { %v4576_v4 = vadd.f32 %v4575_v23, %v4464_v29  ;;  %v11703_v23 = vld [vmem:[%s12765_s5 + $0x8f0] sm:$0xff] }
 0x7f4   :  { %v4675_v48 = vmul.f32 %v11703_v23, %v13890_v14 }
 0x7f5   :  { %v4577_v28 = vadd.f32 %v4576_v4, %v4467_v54  ;;  %4791 = vadd.xlane.f32.xlu2 %v4790_v11  ;;  %v11708_v54 = vld [vmem:[%s12765_s5 + $0x8e8] sm:$0xff]  ;;  %v13889_v4 = vld [vmem:[#allocation6_spill] sm:$0xff] }
 0x7f6   :  { %v4670_v55 = vmul.f32 %v11698_v2, %v13889_v4  ;;  %v4674_v5 = vmul.f32 %v11708_v54, %v13891_v40  ;;  %v4799_v1 = vsel %vm105_vm0, %v4675_v48, 0.0  ;;  %v11722_v4 = vld [vmem:[%s12765_s5 + $0x8e0] sm:$0xff] }
 0x7f7   :  { %4776 = vadd.xlane.f32.xlu0 %v4775_v45  ;;  %4788 = vadd.xlane.f32.xlu1 %v4787_v8  ;;  %v4578_v45 = vadd.f32 %v4577_v28, %v4470_v60 }
 0x7f8   :  { %v4488_v29 = vpop.xlane.xlu2 %4487  ;;  %v4784_v3 = vsel %vm105_vm0, %v4670_v55, 0.0  ;;  %v4796_v28 = vsel %vm105_vm0, %v4674_v5, 0.0 }
 0x7fa   :  { %v4473_v11 = vpop.xlane.xlu0 %4472  ;;  %v4485_v61 = vpop.xlane.xlu1 %4484 }
 0x7fb   :  { %v4579_v19 = vadd.f32 %v4578_v45, %v4473_v11  ;;  %v13892_v11 = vld [vmem:[#allocation35_spill] sm:$0xff] }
 0x7fc   :  { %v4673_v14 = vmul.f32 %v11722_v4, %v13892_v11  ;;  %v11736_v11 = vld [vmem:[%s12765_s5 + $0x8f8] sm:$0xff] }
 0x7fd   :  { %v4580_v8 = vadd.f32 %v4579_v19, %v4476_v39  ;;  %4800 = vadd.xlane.f32.xlu2 %v4799_v1  ;;  %v4678_v19 = vmul.f32 %v11486_v20, %v7872_v16  ;;  %v4677_v1 = vmul.f32 %v11441_v21, %v13804_v17 }
 0x7ff   :  { %4785 = vadd.xlane.f32.xlu0 %v4784_v3  ;;  %v4581_v60 = vadd.f32 %v4580_v8, %v4479_v0  ;;  %4797 = vadd.xlane.f32.xlu1 %v4796_v28  ;;  %v4793_v0 = vsel %vm105_vm0, %v4673_v14, 0.0  ;;  %v4808_v48 = vsel %vm105_vm0, %v4678_v19, 0.0  ;;  %v4805_v28 = vsel %vm105_vm0, %v4677_v1, 0.0 }
 0x800   :  { %v4497_v39 = vpop.xlane.xlu2 %4496  ;;  %v4681_v14 = vmul.f32 %v11516_v50, %v7890_v10  ;;  %v4679_v50 = vmul.f32 %v11466_v7, %v7857_v43 }
 0x802   :  { %v4482_v45 = vpop.xlane.xlu0 %4481  ;;  %v4494_v3 = vpop.xlane.xlu1 %4493 }
 0x803   :  { %v4582_v55 = vadd.f32 %v4581_v60, %v4482_v45  ;;  %v13893_v60 = vld [vmem:[#allocation37_spill] sm:$0xff] }
 0x804   :  { %v4676_v21 = vmul.f32 %v11736_v11, %v13893_v60 }
 0x805   :  { %v4583_v5 = vadd.f32 %v4582_v55, %v4485_v61  ;;  %4809 = vadd.xlane.f32.xlu2 %v4808_v48 }
 0x806   :  { %v4802_v1 = vsel %vm105_vm0, %v4676_v21, 0.0  ;;  %v4683_v21 = vmul.f32 %v11491_v51, %v7874_v33 }
 0x807   :  { %4794 = vadd.xlane.f32.xlu0 %v4793_v0  ;;  %v4584_v8 = vadd.f32 %v4583_v5, %v4488_v29  ;;  %4806 = vadd.xlane.f32.xlu1 %v4805_v28  ;;  %v4680_v29 = vmul.f32 %v11461_v27, %v13168_v42  ;;  %v4817_v5 = vsel %vm105_vm0, %v4681_v14, 0.0 }
 0x808   :  { %v4506_v61 = vpop.xlane.xlu2 %4505 }
 0x809   :  { %v4814_v48 = vsel %vm105_vm0, %v4680_v29, 0.0 }
 0x80a   :  { %v4491_v20 = vpop.xlane.xlu0 %4490  ;;  %v4503_v19 = vpop.xlane.xlu1 %4502 }
 0x80b   :  { %v4585_v45 = vadd.f32 %v4584_v8, %v4491_v20  ;;  %v4684_v20 = vmul.f32 %v11546_v56, %v7910_v30  ;;  %v4682_v56 = vmul.f32 %v11496_v62, %v7880_v35 }
 0x80d   :  { %v4586_v55 = vadd.f32 %v4585_v45, %v4494_v3  ;;  %4818 = vadd.xlane.f32.xlu2 %v4817_v5  ;;  %v4826_v45 = vsel %vm105_vm0, %v4684_v20, 0.0  ;;  %v4687_v5 = vmul.f32 %v11576_v12, %v7932_v18  ;;  %v4685_v12 = vmul.f32 %v11526_v22, %v7898_v32 }
 0x80f   :  { %4803 = vadd.xlane.f32.xlu0 %v4802_v1  ;;  %v4587_v0 = vadd.f32 %v4586_v55, %v4497_v39  ;;  %4815 = vadd.xlane.f32.xlu1 %v4814_v48  ;;  %v4811_v39 = vsel %vm105_vm0, %v4679_v50, 0.0  ;;  %v4823_v55 = vsel %vm105_vm0, %v4683_v21, 0.0  ;;  %v4690_v21 = vmul.f32 %v11602_v36, %v7952_v58 }
 0x810   :  { %v4515_v8 = vpop.xlane.xlu2 %4514  ;;  %v4688_v36 = vmul.f32 %v11556_v52, %v7918_v44 }
 0x812   :  { %v4500_v28 = vpop.xlane.xlu0 %4499  ;;  %v4512_v3 = vpop.xlane.xlu1 %4511 }
 0x813   :  { %v4588_v27 = vadd.f32 %v4587_v0, %v4500_v28  ;;  %v4686_v0 = vmul.f32 %v11521_v6, %v13175_v37  ;;  %v4835_v28 = vsel %vm105_vm0, %v4687_v5, 0.0 }
 0x815   :  { %v4589_v14 = vadd.f32 %v4588_v27, %v4503_v19  ;;  %4827 = vadd.xlane.f32.xlu2 %v4826_v45  ;;  %v4832_v20 = vsel %vm105_vm0, %v4686_v0, 0.0  ;;  %v4844_v45 = vsel %vm105_vm0, %v4690_v21, 0.0 }
 0x817   :  { %4812 = vadd.xlane.f32.xlu0 %v4811_v39  ;;  %v4590_v29 = vadd.f32 %v4589_v14, %v4506_v61  ;;  %4824 = vadd.xlane.f32.xlu1 %v4823_v55  ;;  %v4820_v61 = vsel %vm105_vm0, %v4682_v56, 0.0  ;;  %v4689_v14 = vmul.f32 %v11551_v24, %v7912_v13  ;;  %v4693_v56 = vmul.f32 %v11626_v31, %v7977_v59 }
 0x818   :  { %v4524_v1 = vpop.xlane.xlu2 %4523  ;;  %v4691_v31 = vmul.f32 %v11586_v47, %v7940_v26 }
 0x819   :  { %v4841_v55 = vsel %vm105_vm0, %v4689_v14, 0.0  ;;  %v4853_v0 = vsel %vm105_vm0, %v4693_v56, 0.0  ;;  %v4699_v14 = vmul.f32 %v11674_v41, %v8031_v53  ;;  %v13895_v56 = vld [vmem:[#allocation46_spill] sm:$0xff] }
 0x81a   :  { %v4509_v7 = vpop.xlane.xlu0 %4508  ;;  %v4521_v19 = vpop.xlane.xlu1 %4520 }
 0x81b   :  { %v4591_v51 = vadd.f32 %v4590_v29, %v4509_v7 }
 0x81d   :  { %v4592_v48 = vadd.f32 %v4591_v51, %v4512_v3  ;;  %4836 = vadd.xlane.f32.xlu2 %v4835_v28  ;;  %v4692_v51 = vmul.f32 %v11581_v63, %v7934_v34  ;;  %v4696_v28 = vmul.f32 %v11650_v38, %v8001_v49  ;;  %v4694_v38 = vmul.f32 %v11612_v57, %v7964_v25 }
 0x81f   :  { %4821 = vadd.xlane.f32.xlu0 %v4820_v61  ;;  %v4593_v50 = vadd.f32 %v4592_v48, %v4515_v8  ;;  %4833 = vadd.xlane.f32.xlu1 %v4832_v20  ;;  %v4829_v8 = vsel %vm105_vm0, %v4685_v12, 0.0  ;;  %v4850_v48 = vsel %vm105_vm0, %v4692_v51, 0.0  ;;  %v4695_v20 = vmul.f32 %v11607_v46, %v7954_v15  ;;  %v13897_v51 = vld [vmem:[#allocation61_spill] sm:$0xff] }
 0x820   :  { %v4711_v27 = vpop.xlane.xlu2 %4710  ;;  %v4847_v12 = vsel %vm105_vm0, %v4691_v31, 0.0  ;;  %v4862_v21 = vsel %vm105_vm0, %v4696_v28, 0.0  ;;  %v13899_v31 = vld [vmem:[#allocation530_spill] sm:$0xff] }
 0x822   :  { %v4518_v62 = vpop.xlane.xlu0 %4517  ;;  %v4530_v3 = vpop.xlane.xlu1 %4529 }
 0x823   :  { %v4594_v6 = vadd.f32 %v4593_v50, %v4518_v62 }
 0x825   :  { %v4595_v39 = vadd.f32 %v4594_v6, %v4521_v19  ;;  %4845 = vadd.xlane.f32.xlu2 %v4844_v45 }
 0x827   :  { %4830 = vadd.xlane.f32.xlu0 %v4829_v8  ;;  %v4596_v29 = vadd.f32 %v4595_v39, %v4524_v1  ;;  %4842 = vadd.xlane.f32.xlu1 %v4841_v55  ;;  %v4838_v1 = vsel %vm105_vm0, %v4688_v36, 0.0  ;;  %v13894_v8 = vld [vmem:[#allocation528_spill] sm:$0xff]  ;;  %v4856_v55 = vsel %vm105_vm0, %v4694_v38, 0.0 }
 0x828   :  { %v4720_v7 = vpop.xlane.xlu2 %4719  ;;  %v4698_v45 = vmul.f32 %v13894_v8, %v7979_v9  ;;  %v13904_v8 = vld [vmem:[#allocation532_spill] sm:$0xff] }
 0x82a   :  { %v4527_v22 = vpop.xlane.xlu0 %4526  ;;  %v4717_v5 = vpop.xlane.xlu1 %4716 }
 0x82b   :  { %v4597_v24 = vadd.f32 %v4596_v29, %v4527_v22  ;;  %v4871_v22 = vsel %vm105_vm0, %v4699_v14, 0.0 }
 0x82d   :  { %v11780_v19 = vadd.f32 %v4597_v24, %v4530_v3  ;;  %4854 = vadd.xlane.f32.xlu2 %v4853_v0  ;;  %v4859_v3 = vsel %vm105_vm0, %v4695_v20, 0.0  ;;  %v13896_v24 = vld [vmem:[#allocation529_spill] sm:$0xff] }
 0x82e   :  { %v4697_v41 = vmul.f32 %v13896_v24, %v13895_v56  ;;  %v13906_v24 = vld [vmem:[#allocation533_spill] sm:$0xff] }
 0x82f   :  { %4839 = vadd.xlane.f32.xlu0 %v4838_v1  ;;  %4851 = vadd.xlane.f32.xlu1 %v4850_v48  ;;  %v4702_v1 = vmul.f32 %v11698_v2, %v13897_v51 }
 0x830   :  { %v4729_v61 = vpop.xlane.xlu2 %4728 }
 0x832   :  { %v4714_v52 = vpop.xlane.xlu0 %4713  ;;  %v4726_v50 = vpop.xlane.xlu1 %4725 }
 0x833   :  { %v4901_v63 = vadd.f32 %v4714_v52, %v4711_v27  ;;  %v13898_v52 = vld [vmem:[#allocation50_spill] sm:$0xff] }
 0x834   :  { %v4701_v28 = vmul.f32 %v13899_v31, %v13898_v52 }
 0x835   :  { %v4902_v62 = vadd.f32 %v4901_v63, %v4717_v5  ;;  %4863 = vadd.xlane.f32.xlu2 %v4862_v21  ;;  %v13900_v21 = vld [vmem:[#allocation51_spill] sm:$0xff] }
 0x837   :  { %4848 = vadd.xlane.f32.xlu0 %v4847_v12  ;;  %v4903_v6 = vadd.f32 %v4902_v62, %v4720_v7  ;;  %4860 = vadd.xlane.f32.xlu1 %v4859_v3  ;;  %v4868_v7 = vsel %vm105_vm0, %v4698_v45, 0.0  ;;  %v4877_v62 = vsel %vm105_vm0, %v4701_v28, 0.0  ;;  %v13908_v28 = vld [vmem:[#allocation60_spill] sm:$0xff] }
 0x838   :  { %v4738_v27 = vpop.xlane.xlu2 %4737 }
 0x83a   :  { %v4723_v47 = vpop.xlane.xlu0 %4722  ;;  %v4735_v39 = vpop.xlane.xlu1 %4734 }
 0x83b   :  { %v4904_v46 = vadd.f32 %v4903_v6, %v4723_v47  ;;  %v13901_v6 = vld [vmem:[#allocation531_spill] sm:$0xff]  ;;  %v13902_v47 = vld [vmem:[#allocation66_spill] sm:$0xff] }
 0x83c   :  { %v4700_v2 = vmul.f32 %v13901_v6, %v13900_v21  ;;  %v4705_v38 = vmul.f32 %v11722_v4, %v13902_v47  ;;  %v13909_v6 = vld [vmem:[#allocation62_spill] sm:$0xff] }
 0x83d   :  { %v4905_v29 = vadd.f32 %v4904_v46, %v4726_v50  ;;  %4872 = vadd.xlane.f32.xlu2 %v4871_v22  ;;  %v4880_v50 = vsel %vm105_vm0, %v4702_v1, 0.0  ;;  %v13907_v1 = vld [vmem:[#allocation70_spill] sm:$0xff] }
 0x83f   :  { %4857 = vadd.xlane.f32.xlu0 %v4856_v55  ;;  %v4906_v36 = vadd.f32 %v4905_v29, %v4729_v61  ;;  %4869 = vadd.xlane.f32.xlu1 %v4868_v7  ;;  %v4865_v61 = vsel %vm105_vm0, %v4697_v41, 0.0  ;;  %v4889_v55 = vsel %vm105_vm0, %v4705_v38, 0.0 }
 0x840   :  { %v4747_v5 = vpop.xlane.xlu2 %4746 }
 0x842   :  { %v4732_v57 = vpop.xlane.xlu0 %4731  ;;  %v4744_v48 = vpop.xlane.xlu1 %4743 }
 0x843   :  { %v4907_v0 = vadd.f32 %v4906_v36, %v4732_v57  ;;  %v13905_v57 = vld [vmem:[#allocation56_spill] sm:$0xff] }
 0x844   :  { %v4703_v4 = vmul.f32 %v13906_v24, %v13905_v57 }
 0x845   :  { %v4908_v63 = vadd.f32 %v4907_v0, %v4735_v39  ;;  %4881 = vadd.xlane.f32.xlu2 %v4880_v50  ;;  %v13903_v39 = vld [vmem:[#allocation55_spill] sm:$0xff]  ;;  %v4708_v0 = vmul.f32 %v11736_v11, %v13907_v1 }
 0x846   :  { %v4704_v45 = vmul.f32 %v13904_v8, %v13903_v39  ;;  %v5772_v11 = vld [vmem:[%s12765_s5 + $0x908] sm:$0xff] }
 0x847   :  { %4866 = vadd.xlane.f32.xlu0 %v4865_v61  ;;  %v4909_v20 = vadd.f32 %v4908_v63, %v4738_v27  ;;  %4878 = vadd.xlane.f32.xlu1 %v4877_v62  ;;  %v4874_v27 = vsel %vm105_vm0, %v4700_v2, 0.0  ;;  %v4707_v63 = vmul.f32 %v11703_v23, %v13908_v28  ;;  %v4898_v50 = vsel %vm105_vm0, %v4708_v0, 0.0 }
 0x848   :  { %v4756_v3 = vpop.xlane.xlu2 %4755  ;;  %v4886_v36 = vsel %vm105_vm0, %v4704_v45, 0.0  ;;  %v4706_v2 = vmul.f32 %v11708_v54, %v13909_v6  ;;  %v5048_v45 = vmul.f32 %v5772_v11, %v7872_v16  ;;  %v5773_v54 = vld [vmem:[%s12765_s5 + $0x910] sm:$0xff] }
 0x849   :  { %v4895_v62 = vsel %vm105_vm0, %v4707_v63, 0.0  ;;  %v13911_v16 = vld [vmem:[#allocation16_spill] sm:$0xff]  ;;  %v5049_v63 = vmul.f32 %v5773_v54, %v7857_v43 }
 0x84a   :  { %v4741_v12 = vpop.xlane.xlu0 %4740  ;;  %v4753_v46 = vpop.xlane.xlu1 %4752  ;;  %v5017_v0 = vmul.f32 %v5773_v54, %v13911_v16 }
 0x84b   :  { %v4910_v14 = vadd.f32 %v4909_v20, %v4741_v12  ;;  %v5771_v12 = vld [vmem:[%s12765_s5 + $0x900] sm:$0xff] }
 0x84c   :  { %v5047_v24 = vmul.f32 %v5771_v12, %v13804_v17  ;;  %v5775_v17 = vld [vmem:[%s12765_s5 + $0x920] sm:$0xff] }
 0x84d   :  { %v4911_v29 = vadd.f32 %v4910_v14, %v4744_v48  ;;  %4890 = vadd.xlane.f32.xlu2 %v4889_v55  ;;  %v13910_v14 = vld [vmem:[#allocation17_spill] sm:$0xff] }
 0x84f   :  { %4875 = vadd.xlane.f32.xlu0 %v4874_v27  ;;  %v4912_v22 = vadd.f32 %v4911_v29, %v4747_v5  ;;  %4887 = vadd.xlane.f32.xlu1 %v4886_v36  ;;  %v4883_v5 = vsel %vm105_vm0, %v4703_v4, 0.0  ;;  %v4892_v27 = vsel %vm105_vm0, %v4706_v2, 0.0  ;;  %v5178_v36 = vsel %vm105_vm0, %v5048_v45, 0.0 }
 0x850   :  { %v4765_v41 = vpop.xlane.xlu2 %4764 }
 0x852   :  { %v4750_v7 = vpop.xlane.xlu0 %4749  ;;  %v4762_v48 = vpop.xlane.xlu1 %4761 }
 0x853   :  { %v4913_v31 = vadd.f32 %v4912_v22, %v4750_v7 }
 0x855   :  { %v4914_v61 = vadd.f32 %v4913_v31, %v4753_v46  ;;  %4899 = vadd.xlane.f32.xlu2 %v4898_v50  ;;  %v5015_v46 = vmul.f32 %v5771_v12, %v13910_v14  ;;  %v13912_v12 = vld [vmem:[#allocation20_spill] sm:$0xff]  ;;  %v5051_v14 = vmul.f32 %v5775_v17, %v7890_v10 }
 0x857   :  { %4884 = vadd.xlane.f32.xlu0 %v4883_v5  ;;  %v4915_v20 = vadd.f32 %v4914_v61, %v4756_v3  ;;  %4896 = vadd.xlane.f32.xlu1 %v4895_v62  ;;  %v5079_v55 = vsel %vm105_vm0, %v5015_v46, 0.0  ;;  %v5085_v5 = vsel %vm105_vm0, %v5017_v0, 0.0  ;;  %v5774_v62 = vld [vmem:[%s12765_s5 + $0x918] sm:$0xff] }
 0x858   :  { %v4774_v38 = vpop.xlane.xlu2 %4773 }
 0x85a   :  { %v4759_v23 = vpop.xlane.xlu0 %4758  ;;  %v4771_v8 = vpop.xlane.xlu1 %4770 }
 0x85b   :  { %v4916_v3 = vadd.f32 %v4915_v20, %v4759_v23  ;;  %v5181_v20 = vsel %vm105_vm0, %v5049_v63, 0.0  ;;  %v5016_v23 = vmul.f32 %v5772_v11, %v13912_v12  ;;  %v5776_v11 = vld [vmem:[%s12765_s5 + $0x928] sm:$0xff] }
 0x85d   :  { %v4917_v29 = vadd.f32 %v4916_v3, %v4762_v48  ;;  %5080 = vadd.xlane.f32.xlu2 %v5079_v55  ;;  %v13913_v3 = vld [vmem:[#allocation19_spill] sm:$0xff] }
 0x85f   :  { %4893 = vadd.xlane.f32.xlu0 %v4892_v27  ;;  %v4918_v22 = vadd.f32 %v4917_v29, %v4765_v41  ;;  %5179 = vadd.xlane.f32.xlu1 %v5178_v36  ;;  %v5175_v41 = vsel %vm105_vm0, %v5047_v24, 0.0  ;;  %v5082_v29 = vsel %vm105_vm0, %v5016_v23, 0.0  ;;  %v5187_v27 = vsel %vm105_vm0, %v5051_v14, 0.0 }
 0x860   :  { %v4783_v4 = vpop.xlane.xlu2 %4782  ;;  %v5050_v36 = vmul.f32 %v5774_v62, %v13168_v42  ;;  %v5778_v42 = vld [vmem:[%s12765_s5 + $0x938] sm:$0xff] }
 0x862   :  { %v4768_v7 = vpop.xlane.xlu0 %4767  ;;  %v4780_v48 = vpop.xlane.xlu1 %4779 }
 0x863   :  { %v4919_v31 = vadd.f32 %v4918_v22, %v4768_v7  ;;  %v13914_v7 = vld [vmem:[#allocation18_spill] sm:$0xff] }
 0x864   :  { %v5020_v24 = vmul.f32 %v5776_v11, %v13914_v7 }
 0x865   :  { %v4920_v61 = vadd.f32 %v4919_v31, %v4771_v8  ;;  %5086 = vadd.xlane.f32.xlu2 %v5085_v5  ;;  %v5018_v8 = vmul.f32 %v5774_v62, %v13913_v3  ;;  %v5052_v31 = vmul.f32 %v5776_v11, %v7880_v35  ;;  %v5777_v5 = vld [vmem:[%s12765_s5 + $0x930] sm:$0xff] }
 0x866   :  { %v5094_v63 = vsel %vm105_vm0, %v5020_v24, 0.0  ;;  %v13920_v24 = vld [vmem:[#allocation47_spill] sm:$0xff] }
 0x867   :  { %5176 = vadd.xlane.f32.xlu0 %v5175_v41  ;;  %v4921_v50 = vadd.f32 %v4920_v61, %v4774_v38  ;;  %5182 = vadd.xlane.f32.xlu1 %v5181_v20  ;;  %v5088_v22 = vsel %vm105_vm0, %v5018_v8, 0.0  ;;  %v5190_v41 = vsel %vm105_vm0, %v5052_v31, 0.0 }
 0x868   :  { %v4792_v2 = vpop.xlane.xlu2 %4791 }
 0x86a   :  { %v4777_v43 = vpop.xlane.xlu0 %4776  ;;  %v4789_v38 = vpop.xlane.xlu1 %4788 }
 0x86b   :  { %v4922_v46 = vadd.f32 %v4921_v50, %v4777_v43  ;;  %v13915_v50 = vld [vmem:[#allocation15_spill] sm:$0xff]  ;;  %v5054_v43 = vmul.f32 %v5778_v42, %v7910_v30 }
 0x86c   :  { %v5019_v20 = vmul.f32 %v5775_v17, %v13915_v50  ;;  %v5779_v17 = vld [vmem:[%s12765_s5 + $0x940] sm:$0xff] }
 0x86d   :  { %v4923_v45 = vadd.f32 %v4922_v46, %v4780_v48  ;;  %5188 = vadd.xlane.f32.xlu2 %v5187_v27  ;;  %v5196_v8 = vsel %vm105_vm0, %v5054_v43, 0.0  ;;  %v5053_v27 = vmul.f32 %v5777_v5, %v7874_v33  ;;  %v5055_v7 = vmul.f32 %v5779_v17, %v7898_v32  ;;  %v5781_v33 = vld [vmem:[%s12765_s5 + $0x950] sm:$0xff]  ;;  %v5780_v32 = vld [vmem:[%s12765_s5 + $0x948] sm:$0xff] }
 0x86e   :  { %v5091_v3 = vsel %vm105_vm0, %v5019_v20, 0.0  ;;  %v5057_v50 = vmul.f32 %v5781_v33, %v7932_v18  ;;  %v13923_v43 = vld [vmem:[#allocation9_spill] sm:$0xff] }
 0x86f   :  { %5083 = vadd.xlane.f32.xlu0 %v5082_v29  ;;  %v4924_v55 = vadd.f32 %v4923_v45, %v4783_v4  ;;  %5089 = vadd.xlane.f32.xlu1 %v5088_v22  ;;  %v5184_v4 = vsel %vm105_vm0, %v5050_v36, 0.0  ;;  %v13917_v22 = vld [vmem:[#allocation21_spill] sm:$0xff] }
 0x870   :  { %v4801_v54 = vpop.xlane.xlu2 %4800  ;;  %v5023_v11 = vmul.f32 %v5779_v17, %v13917_v22  ;;  %v5782_v18 = vld [vmem:[%s12765_s5 + $0x958] sm:$0xff]  ;;  %v5056_v17 = vmul.f32 %v5780_v32, %v13175_v37 }
 0x872   :  { %v4786_v10 = vpop.xlane.xlu0 %4785  ;;  %v4798_v0 = vpop.xlane.xlu1 %4797  ;;  %v5103_v31 = vsel %vm105_vm0, %v5023_v11, 0.0 }
 0x873   :  { %v4925_v16 = vadd.f32 %v4924_v55, %v4786_v10 }
 0x875   :  { %v4926_v48 = vadd.f32 %v4925_v16, %v4789_v38  ;;  %5095 = vadd.xlane.f32.xlu2 %v5094_v63 }
 0x877   :  { %5185 = vadd.xlane.f32.xlu0 %v5184_v4  ;;  %v4927_v61 = vadd.f32 %v4926_v48, %v4792_v2  ;;  %5191 = vadd.xlane.f32.xlu1 %v5190_v41  ;;  %v13916_v2 = vld [vmem:[#allocation23_spill] sm:$0xff]  ;;  %v5199_v48 = vsel %vm105_vm0, %v5055_v7, 0.0  ;;  %v13921_v4 = vld [vmem:[#allocation42_spill] sm:$0xff]  ;;  %v13927_v7 = vld [vmem:[#allocation44_spill] sm:$0xff] }
 0x878   :  { %v4810_v62 = vpop.xlane.xlu2 %4809  ;;  %v5021_v14 = vmul.f32 %v5777_v5, %v13916_v2  ;;  %v13922_v41 = vld [vmem:[#allocation22_spill] sm:$0xff] }
 0x879   :  { %v5022_v5 = vmul.f32 %v5778_v42, %v13922_v41  ;;  %v13925_v42 = vld [vmem:[#allocation41_spill] sm:$0xff]  ;;  %v5783_v41 = vld [vmem:[%s12765_s5 + $0x960] sm:$0xff] }
 0x87a   :  { %v4795_v35 = vpop.xlane.xlu0 %4794  ;;  %v4807_v23 = vpop.xlane.xlu1 %4806  ;;  %v5097_v29 = vsel %vm105_vm0, %v5021_v14, 0.0 }
 0x87b   :  { %v4928_v12 = vadd.f32 %v4927_v61, %v4795_v35  ;;  %v4938_v46 = vadd.f32 %v4810_v62, %v4807_v23  ;;  %v13924_v23 = vld [vmem:[#allocation45_spill] sm:$0xff] }
 0x87d   :  { %v4929_v38 = vadd.f32 %v4928_v12, %v4798_v0  ;;  %5197 = vadd.xlane.f32.xlu2 %v5196_v8  ;;  %v5193_v0 = vsel %vm105_vm0, %v5053_v27, 0.0  ;;  %v5024_v12 = vmul.f32 %v5780_v32, %v13923_v43  ;;  %v13926_v27 = vld [vmem:[#allocation24_spill] sm:$0xff]  ;;  %v13932_v43 = vld [vmem:[#allocation85_spill] sm:$0xff] }
 0x87e   :  { %v5026_v22 = vmul.f32 %v5782_v18, %v13926_v27  ;;  %v5784_v32 = vld [vmem:[%s12765_s5 + $0x968] sm:$0xff] }
 0x87f   :  { %5092 = vadd.xlane.f32.xlu0 %v5091_v3  ;;  %v4930_v45 = vadd.f32 %v4929_v38, %v4801_v54  ;;  %5098 = vadd.xlane.f32.xlu1 %v5097_v29  ;;  %v13919_v54 = vld [vmem:[#allocation43_spill] sm:$0xff]  ;;  %v5100_v38 = vsel %vm105_vm0, %v5022_v5, 0.0  ;;  %v5205_v3 = vsel %vm105_vm0, %v5057_v50, 0.0  ;;  %v13931_v50 = vld [vmem:[#allocation8_spill] sm:$0xff] }
 0x880   :  { %v4819_v55 = vpop.xlane.xlu2 %4818  ;;  %v1941_v16 = vadd.f32 %v13920_v24, %v13919_v54  ;;  %v13936_v27 = vld [vmem:[#allocation48_spill] sm:$0xff] }
 0x882   :  { %v4804_v30 = vpop.xlane.xlu0 %4803  ;;  %v4816_v36 = vpop.xlane.xlu1 %4815  ;;  %v1942_v63 = vadd.f32 %v1941_v16, %v13921_v4  ;;  %v5202_v16 = vsel %vm105_vm0, %v5056_v17, 0.0  ;;  %v5785_v17 = vld [vmem:[%s12765_s5 + $0x970] sm:$0xff] }
 0x883   :  { %v11890_v10 = vadd.f32 %v4930_v45, %v4804_v30  ;;  %v5106_v45 = vsel %vm105_vm0, %v5024_v12, 0.0 }
 0x884   :  { %v1943_v2 = vadd.f32 %v1942_v63, %v13924_v23 }
 0x885   :  { %13918 = vst [vmem:[#allocation7_spill] sm:$0xff] %v11890_v10  ;;  %5104 = vadd.xlane.f32.xlu2 %v5103_v31  ;;  %v13928_v31 = vld [vmem:[#allocation81_spill] sm:$0xff] }
 0x887   :  { %5194 = vadd.xlane.f32.xlu0 %v5193_v0  ;;  %5200 = vadd.xlane.f32.xlu1 %v5199_v48  ;;  %v5112_v0 = vsel %vm105_vm0, %v5026_v22, 0.0  ;;  %v13929_v48 = vld [vmem:[#allocation86_spill] sm:$0xff] }
 0x888   :  { %v4828_v35 = vpop.xlane.xlu2 %4827  ;;  %v1978_v4 = vadd.f32 %v13929_v48, %v13928_v31  ;;  %v5061_v31 = vmul.f32 %v5785_v17, %v7940_v26  ;;  %v13939_v48 = vld [vmem:[#allocation57_spill] sm:$0xff] }
 0x88a   :  { %v4813_v61 = vpop.xlane.xlu0 %4812  ;;  %v4825_v62 = vpop.xlane.xlu1 %4824  ;;  %v1979_v12 = vadd.f32 %v1978_v4, %v13932_v43  ;;  %v13942_v43 = vld [vmem:[#allocation87_spill] sm:$0xff] }
 0x88b   :  { %v4939_v20 = vadd.f32 %v4938_v46, %v4813_v61  ;;  %v1944_v46 = vadd.f32 %v1943_v2, %v13925_v42 }
 0x88d   :  { %v4940_v14 = vadd.f32 %v4939_v20, %v4816_v36  ;;  %5206 = vadd.xlane.f32.xlu2 %v5205_v3  ;;  %v1945_v54 = vadd.f32 %v1944_v46, %v13927_v7  ;;  %v5025_v20 = vmul.f32 %v5781_v33, %v13931_v50  ;;  %v13934_v3 = vld [vmem:[#allocation49_spill] sm:$0xff]  ;;  %v13935_v46 = vld [vmem:[#allocation84_spill] sm:$0xff]  ;;  %v5059_v7 = vmul.f32 %v5783_v41, %v7912_v13 }
 0x88e   :  { %v5217_v13 = vsel %vm105_vm0, %v5061_v31, 0.0 }
 0x88f   :  { %5101 = vadd.xlane.f32.xlu0 %v5100_v38  ;;  %v4941_v8 = vadd.f32 %v4940_v14, %v4819_v55  ;;  %5107 = vadd.xlane.f32.xlu1 %v5106_v45  ;;  %v5058_v55 = vmul.f32 %v5782_v18, %v7918_v44  ;;  %v13930_v44 = vld [vmem:[#allocation52_spill] sm:$0xff]  ;;  %v5109_v18 = vsel %vm105_vm0, %v5025_v20, 0.0  ;;  %v13941_v20 = vld [vmem:[#allocation54_spill] sm:$0xff] }
 0x890   :  { %v4837_v30 = vpop.xlane.xlu2 %4836  ;;  %v1946_v61 = vadd.f32 %v1945_v54, %v13930_v44  ;;  %v13933_v14 = vld [vmem:[#allocation12_spill] sm:$0xff] }
 0x891   :  { %v5208_v37 = vsel %vm105_vm0, %v5058_v55, 0.0  ;;  %v5027_v38 = vmul.f32 %v5783_v41, %v13933_v14  ;;  %v5787_v41 = vld [vmem:[%s12765_s5 + $0x980] sm:$0xff] }
 0x892   :  { %v4822_v29 = vpop.xlane.xlu0 %4821  ;;  %v4834_v36 = vpop.xlane.xlu1 %4833 }
 0x893   :  { %v4942_v11 = vadd.f32 %v4941_v8, %v4822_v29  ;;  %v1947_v8 = vadd.f32 %v1946_v61, %v13934_v3  ;;  %v1980_v29 = vadd.f32 %v1979_v12, %v13935_v46  ;;  %v5211_v61 = vsel %vm105_vm0, %v5059_v7, 0.0  ;;  %v13944_v3 = vld [vmem:[#allocation92_spill] sm:$0xff] }
 0x894   :  { %v5788_v7 = vld [vmem:[%s12765_s5 + $0x988] sm:$0xff] }
 0x895   :  { %v4943_v24 = vadd.f32 %v4942_v11, %v4825_v62  ;;  %5113 = vadd.xlane.f32.xlu2 %v5112_v0  ;;  %v1948_v22 = vadd.f32 %v1947_v8, %v13936_v27  ;;  %v13937_v11 = vld [vmem:[#allocation89_spill] sm:$0xff] }
 0x897   :  { %5203 = vadd.xlane.f32.xlu0 %v5202_v16  ;;  %v4944_v63 = vadd.f32 %v4943_v24, %v4828_v35  ;;  %5209 = vadd.xlane.f32.xlu1 %v5208_v37  ;;  %v5060_v35 = vmul.f32 %v5784_v32, %v7952_v58  ;;  %v5115_v58 = vsel %vm105_vm0, %v5027_v38, 0.0  ;;  %v13938_v24 = vld [vmem:[#allocation10_spill] sm:$0xff]  ;;  %v1949_v4 = vadd.f32 %v1948_v22, %v13939_v48  ;;  %v13950_v48 = vld [vmem:[#allocation13_spill] sm:$0xff] }
 0x898   :  { %v4846_v62 = vpop.xlane.xlu2 %4845  ;;  %v5029_v16 = vmul.f32 %v5785_v17, %v13938_v24  ;;  %v5063_v38 = vmul.f32 %v5787_v41, %v7977_v59  ;;  %v13947_v17 = vld [vmem:[#allocation63_spill] sm:$0xff] }
 0x899   :  { %v5214_v42 = vsel %vm105_vm0, %v5060_v35, 0.0  ;;  %v1950_v26 = vadd.f32 %v1949_v4, %v13941_v20  ;;  %v5786_v35 = vld [vmem:[%s12765_s5 + $0x978] sm:$0xff]  ;;  %v13949_v24 = vld [vmem:[#allocation59_spill] sm:$0xff]  ;;  %v5032_v4 = vmul.f32 %v5788_v7, %v13950_v48 }
 0x89a   :  { %v4831_v5 = vpop.xlane.xlu0 %4830  ;;  %v4843_v2 = vpop.xlane.xlu1 %4842  ;;  %v13953_v20 = vld [vmem:[#allocation58_spill] sm:$0xff] }
 0x89b   :  { %v4945_v23 = vadd.f32 %v4944_v63, %v4831_v5  ;;  %v13940_v63 = vld [vmem:[#allocation88_spill] sm:$0xff]  ;;  %v5121_v5 = vsel %vm105_vm0, %v5029_v16, 0.0  ;;  %v13963_v48 = vld [vmem:[#allocation146_spill] sm:$0xff] }
 0x89d   :  { %v4946_v45 = vadd.f32 %v4945_v23, %v4834_v36  ;;  %5215 = vadd.xlane.f32.xlu2 %v5214_v42  ;;  %v1981_v36 = vadd.f32 %v1980_v29, %v13937_v11  ;;  %v13945_v42 = vld [vmem:[#allocation26_spill] sm:$0xff]  ;;  %v13946_v29 = vld [vmem:[#allocation53_spill] sm:$0xff]  ;;  %v5223_v11 = vsel %vm105_vm0, %v5063_v38, 0.0 }
 0x89e   :  { %v5030_v46 = vmul.f32 %v5786_v35, %v13945_v42  ;;  %v13955_v38 = vld [vmem:[#allocation94_spill] sm:$0xff] }
 0x89f   :  { %5110 = vadd.xlane.f32.xlu0 %v5109_v18  ;;  %v4947_v33 = vadd.f32 %v4946_v45, %v4837_v30  ;;  %5116 = vadd.xlane.f32.xlu1 %v5115_v58  ;;  %v1982_v37 = vadd.f32 %v1981_v36, %v13940_v63  ;;  %v13948_v36 = vld [vmem:[#allocation91_spill] sm:$0xff]  ;;  %v13951_v63 = vld [vmem:[#allocation90_spill] sm:$0xff] }
 0x8a0   :  { %v4855_v54 = vpop.xlane.xlu2 %4854  ;;  %v5124_v59 = vsel %vm105_vm0, %v5030_v46, 0.0 }
 0x8a1   :  { %v1983_v12 = vadd.f32 %v1982_v37, %v13942_v43 }
 0x8a2   :  { %v4840_v55 = vpop.xlane.xlu0 %4839  ;;  %v4852_v30 = vpop.xlane.xlu1 %4851 }
 0x8a3   :  { %v4948_v0 = vadd.f32 %v4947_v33, %v4840_v55  ;;  %v1984_v8 = vadd.f32 %v1983_v12, %v13944_v3  ;;  %v1951_v33 = vadd.f32 %v1950_v26, %v13946_v29  ;;  %v5130_v12 = vsel %vm105_vm0, %v5032_v4, 0.0 }
 0x8a5   :  { %v4949_v44 = vadd.f32 %v4948_v0, %v4843_v2  ;;  %5122 = vadd.xlane.f32.xlu2 %v5121_v5  ;;  %v13943_v2 = vld [vmem:[#allocation11_spill] sm:$0xff]  ;;  %v1952_v27 = vadd.f32 %v1951_v33, %v13947_v17  ;;  %v13952_v5 = vld [vmem:[#allocation97_spill] sm:$0xff] }
 0x8a6   :  { %v5028_v14 = vmul.f32 %v5784_v32, %v13943_v2  ;;  %v1985_v32 = vadd.f32 %v1984_v8, %v13948_v36  ;;  %v13954_v2 = vld [vmem:[#allocation67_spill] sm:$0xff]  ;;  %v13957_v33 = vld [vmem:[#allocation29_spill] sm:$0xff] }
 0x8a7   :  { %5212 = vadd.xlane.f32.xlu0 %v5211_v61  ;;  %v4950_v50 = vadd.f32 %v4949_v44, %v4846_v62  ;;  %5218 = vadd.xlane.f32.xlu1 %v5217_v13  ;;  %v1953_v16 = vadd.f32 %v1952_v27, %v13949_v24  ;;  %v5064_v61 = vmul.f32 %v5788_v7, %v7964_v25  ;;  %v13958_v17 = vld [vmem:[#allocation65_spill] sm:$0xff]  ;;  %v5791_v24 = vld [vmem:[%s12765_s5 + $0x9a0] sm:$0xff] }
 0x8a8   :  { %v4864_v62 = vpop.xlane.xlu2 %4863  ;;  %v5118_v22 = vsel %vm105_vm0, %v5028_v14, 0.0  ;;  %v1986_v37 = vadd.f32 %v1985_v32, %v13951_v63  ;;  %v5789_v14 = vld [vmem:[%s12765_s5 + $0x990] sm:$0xff]  ;;  %v13964_v63 = vld [vmem:[#allocation71_spill] sm:$0xff] }
 0x8a9   :  { %v1954_v26 = vadd.f32 %v1953_v16, %v13953_v20  ;;  %v13961_v16 = vld [vmem:[#allocation64_spill] sm:$0xff]  ;;  %v13967_v20 = vld [vmem:[#allocation115_spill] sm:$0xff] }
 0x8aa   :  { %v4849_v23 = vpop.xlane.xlu0 %4848  ;;  %v4861_v18 = vpop.xlane.xlu1 %4860 }
 0x8ab   :  { %v4951_v45 = vadd.f32 %v4950_v50, %v4849_v23  ;;  %v1987_v50 = vadd.f32 %v1986_v37, %v13952_v5  ;;  %v5790_v23 = vld [vmem:[%s12765_s5 + $0x998] sm:$0xff]  ;;  %v1955_v25 = vadd.f32 %v1954_v26, %v13954_v2  ;;  %v13968_v26 = vld [vmem:[#allocation40_spill] sm:$0xff] }
 0x8ac   :  { %v5066_v42 = vmul.f32 %v5790_v23, %v8001_v49  ;;  %v13969_v2 = vld [vmem:[#allocation145_spill] sm:$0xff] }
 0x8ad   :  { %v4952_v58 = vadd.f32 %v4951_v45, %v4852_v30  ;;  %5224 = vadd.xlane.f32.xlu2 %v5223_v11  ;;  %v5062_v30 = vmul.f32 %v5786_v35, %v7934_v34  ;;  %v5226_v35 = vsel %vm105_vm0, %v5064_v61, 0.0  ;;  %v1988_v3 = vadd.f32 %v1987_v50, %v13955_v38  ;;  %v13956_v45 = vld [vmem:[#allocation25_spill] sm:$0xff]  ;;  %v13966_v50 = vld [vmem:[#allocation99_spill] sm:$0xff] }
 0x8ae   :  { %v1956_v27 = vadd.f32 %v1955_v25, %v13958_v17  ;;  %v13970_v38 = vld [vmem:[#allocation119_spill] sm:$0xff] }
 0x8af   :  { %5119 = vadd.xlane.f32.xlu0 %v5118_v22  ;;  %v4953_v55 = vadd.f32 %v4952_v58, %v4855_v54  ;;  %5125 = vadd.xlane.f32.xlu1 %v5124_v59  ;;  %v5220_v43 = vsel %vm105_vm0, %v5062_v30, 0.0  ;;  %v5033_v58 = vmul.f32 %v5789_v14, %v13957_v33  ;;  %v13959_v22 = vld [vmem:[#allocation93_spill] sm:$0xff]  ;;  %v13960_v59 = vld [vmem:[#allocation100_spill] sm:$0xff]  ;;  %v13962_v30 = vld [vmem:[#allocation147_spill] sm:$0xff] }
 0x8b0   :  { %v4873_v31 = vpop.xlane.xlu2 %4872  ;;  %v1989_v11 = vadd.f32 %v1988_v3, %v13959_v22  ;;  %v2348_v4 = vadd.f32 %v13963_v48, %v13962_v30  ;;  %v13973_v33 = vld [vmem:[#allocation98_spill] sm:$0xff]  ;;  %v13974_v22 = vld [vmem:[#allocation103_spill] sm:$0xff] }
 0x8b1   :  { %v5133_v49 = vsel %vm105_vm0, %v5033_v58, 0.0 }
 0x8b2   :  { %v4858_v0 = vpop.xlane.xlu0 %4857  ;;  %v4870_v54 = vpop.xlane.xlu1 %4869  ;;  %v1990_v7 = vadd.f32 %v1989_v11, %v13960_v59  ;;  %v2349_v25 = vadd.f32 %v2348_v4, %v13969_v2  ;;  %v13979_v4 = vld [vmem:[#allocation32_spill] sm:$0xff] }
 0x8b3   :  { %v4954_v44 = vadd.f32 %v4953_v55, %v4858_v0  ;;  %v5232_v55 = vsel %vm105_vm0, %v5066_v42, 0.0  ;;  %v1957_v0 = vadd.f32 %v1956_v27, %v13961_v16  ;;  %v12026_v27 = vld [vmem:[%s12765_s5 + $0x9b0] sm:$0xff] }
 0x8b5   :  { %v4955_v13 = vadd.f32 %v4954_v44, %v4861_v18  ;;  %5131 = vadd.xlane.f32.xlu2 %v5130_v12  ;;  %v5031_v18 = vmul.f32 %v5787_v41, %v13956_v45  ;;  %v1958_v37 = vadd.f32 %v1957_v0, %v13964_v63  ;;  %v13971_v45 = vld [vmem:[#allocation69_spill] sm:$0xff]  ;;  %v5069_v0 = vmul.f32 %v12026_v27, %v8031_v53 }
 0x8b7   :  { %5221 = vadd.xlane.f32.xlu0 %v5220_v43  ;;  %v4956_v34 = vadd.f32 %v4955_v13, %v4864_v62  ;;  %5227 = vadd.xlane.f32.xlu1 %v5226_v35  ;;  %v5127_v32 = vsel %vm105_vm0, %v5031_v18, 0.0  ;;  %v1991_v13 = vadd.f32 %v1990_v7, %v13966_v50  ;;  %v2311_v43 = vadd.f32 %v13968_v26, %v13967_v20  ;;  %v13983_v50 = vld [vmem:[#allocation102_spill] sm:$0xff]  ;;  %v13984_v20 = vld [vmem:[#allocation117_spill] sm:$0xff] }
 0x8b8   :  { %v4882_v62 = vpop.xlane.xlu2 %4881  ;;  %v5067_v35 = vmul.f32 %v5791_v24, %v13895_v56  ;;  %v1959_v18 = vadd.f32 %v1958_v37, %v13971_v45  ;;  %v13980_v37 = vld [vmem:[#allocation74_spill] sm:$0xff] }
 0x8b9   :  { %v2312_v3 = vadd.f32 %v2311_v43, %v13970_v38  ;;  %v1992_v58 = vadd.f32 %v1991_v13, %v13973_v33  ;;  %v13987_v38 = vld [vmem:[#allocation122_spill] sm:$0xff] }
 0x8ba   :  { %v4867_v8 = vpop.xlane.xlu0 %4866  ;;  %v4879_v29 = vpop.xlane.xlu1 %4878  ;;  %v5235_v56 = vsel %vm105_vm0, %v5067_v35, 0.0  ;;  %v13986_v35 = vld [vmem:[#allocation213_spill] sm:$0xff] }
 0x8bb   :  { %v4957_v46 = vadd.f32 %v4956_v34, %v4867_v8  ;;  %v1993_v11 = vadd.f32 %v1992_v58, %v13974_v22  ;;  %v13991_v58 = vld [vmem:[#allocation212_spill] sm:$0xff] }
 0x8bd   :  { %v4958_v36 = vadd.f32 %v4957_v46, %v4870_v54  ;;  %5233 = vadd.xlane.f32.xlu2 %v5232_v55  ;;  %v5065_v54 = vmul.f32 %v5789_v14, %v7954_v15  ;;  %v13972_v15 = vld [vmem:[#allocation150_spill] sm:$0xff]  ;;  %v13976_v55 = vld [vmem:[#allocation68_spill] sm:$0xff]  ;;  %v1994_v13 = vadd.f32 %v1993_v11, %v13983_v50 }
 0x8be   :  { %v2350_v14 = vadd.f32 %v2349_v25, %v13972_v15  ;;  %v1960_v59 = vadd.f32 %v1959_v18, %v13976_v55  ;;  %v5241_v25 = vsel %vm105_vm0, %v5069_v0, 0.0  ;;  %v5794_v18 = vld [vmem:[%s12765_s5 + $0x9b8] sm:$0xff] }
 0x8bf   :  { %5128 = vadd.xlane.f32.xlu0 %v5127_v32  ;;  %v4959_v41 = vadd.f32 %v4958_v36, %v4873_v31  ;;  %5134 = vadd.xlane.f32.xlu1 %v5133_v49  ;;  %v13965_v31 = vld [vmem:[#allocation27_spill] sm:$0xff]  ;;  %v5229_v42 = vsel %vm105_vm0, %v5065_v54, 0.0  ;;  %v13975_v36 = vld [vmem:[#allocation118_spill] sm:$0xff]  ;;  %v13978_v49 = vld [vmem:[#allocation28_spill] sm:$0xff] }
 0x8c0   :  { %v4891_v61 = vpop.xlane.xlu2 %4890  ;;  %v5035_v5 = vmul.f32 %v5791_v24, %v13965_v31  ;;  %v2313_v32 = vadd.f32 %v2312_v3, %v13975_v36  ;;  %v5034_v24 = vmul.f32 %v5790_v23, %v13978_v49  ;;  %v13981_v54 = vld [vmem:[#allocation209_spill] sm:$0xff]  ;;  %v13982_v31 = vld [vmem:[#allocation208_spill] sm:$0xff]  ;;  %v13992_v11 = vld [vmem:[#allocation30_spill] sm:$0xff]  ;;  %v5070_v49 = vmul.f32 %v5794_v18, %v13900_v21 }
 0x8c1   :  { %v5038_v36 = vmul.f32 %v5794_v18, %v13992_v11  ;;  %v14007_v18 = vld [vmem:[#allocation159_spill] sm:$0xff] }
 0x8c2   :  { %v4876_v44 = vpop.xlane.xlu0 %4875  ;;  %v4888_v34 = vpop.xlane.xlu1 %4887  ;;  %v5139_v46 = vsel %vm105_vm0, %v5035_v5, 0.0  ;;  %v2718_v5 = vadd.f32 %v13982_v31, %v13981_v54  ;;  %v2314_v26 = vadd.f32 %v2313_v32, %v13984_v20  ;;  %v5136_v53 = vsel %vm105_vm0, %v5034_v24, 0.0  ;;  %v13993_v32 = vld [vmem:[#allocation106_spill] sm:$0xff]  ;;  %v13995_v24 = vld [vmem:[#allocation72_spill] sm:$0xff]  ;;  %v14000_v31 = vld [vmem:[#allocation211_spill] sm:$0xff] }
 0x8c3   :  { %v4960_v12 = vadd.f32 %v4959_v41, %v4876_v44  ;;  %v1961_v44 = vadd.f32 %v1960_v59, %v13980_v37  ;;  %v13994_v59 = vld [vmem:[#allocation121_spill] sm:$0xff]  ;;  %v13998_v37 = vld [vmem:[#allocation276_spill] sm:$0xff] }
 0x8c4   :  { %v2719_v2 = vadd.f32 %v2718_v5, %v13986_v35  ;;  %v2315_v3 = vadd.f32 %v2314_v26, %v13987_v38  ;;  %v14001_v20 = vld [vmem:[#allocation105_spill] sm:$0xff]  ;;  %v14003_v35 = vld [vmem:[#allocation151_spill] sm:$0xff] }
 0x8c5   :  { %v4961_v8 = vadd.f32 %v4960_v12, %v4879_v29  ;;  %5140 = vadd.xlane.f32.xlu2 %v5139_v46  ;;  %v5792_v29 = vld [vmem:[%s12765_s5 + $0x9a8] sm:$0xff]  ;;  %v13990_v46 = vld [vmem:[#allocation101_spill] sm:$0xff]  ;;  %v5795_v38 = vld [vmem:[%s12765_s5 + $0x9c0] sm:$0xff] }
 0x8c6   :  { %v5036_v63 = vmul.f32 %v5792_v29, %v13979_v4  ;;  %v13985_v12 = vld [vmem:[#allocation148_spill] sm:$0xff]  ;;  %v1995_v33 = vadd.f32 %v1994_v13, %v13990_v46  ;;  %v5068_v22 = vmul.f32 %v5792_v29, %v7979_v9  ;;  %v13999_v29 = vld [vmem:[#allocation77_spill] sm:$0xff]  ;;  %v5148_v13 = vsel %vm105_vm0, %v5038_v36, 0.0 }
 0x8c7   :  { %5230 = vadd.xlane.f32.xlu0 %v5229_v42  ;;  %v4962_v17 = vadd.f32 %v4961_v8, %v4882_v62  ;;  %5236 = vadd.xlane.f32.xlu1 %v5235_v56  ;;  %v13977_v62 = vld [vmem:[#allocation149_spill] sm:$0xff] }
 0x8c8   :  { %v2351_v7 = vadd.f32 %v2350_v14, %v13977_v62  ;;  %v4900_v16 = vpop.xlane.xlu2 %4899  ;;  %v5142_v45 = vsel %vm105_vm0, %v5036_v63, 0.0  ;;  %v13989_v14 = vld [vmem:[#allocation154_spill] sm:$0xff]  ;;  %v1996_v55 = vadd.f32 %v1995_v33, %v13993_v32  ;;  %v2316_v62 = vadd.f32 %v2315_v3, %v13994_v59  ;;  %v13997_v63 = vld [vmem:[#allocation271_spill] sm:$0xff] }
 0x8c9   :  { %v5238_v50 = vsel %vm105_vm0, %v5068_v22, 0.0  ;;  %v14011_v32 = vld [vmem:[#allocation34_spill] sm:$0xff]  ;;  %v14012_v59 = vld [vmem:[#allocation215_spill] sm:$0xff] }
 0x8ca   :  { %v4885_v41 = vpop.xlane.xlu0 %4884  ;;  %v4897_v48 = vpop.xlane.xlu1 %4896  ;;  %v2352_v23 = vadd.f32 %v2351_v7, %v13985_v12  ;;  %v1997_v26 = vadd.f32 %v1996_v55, %v14001_v20  ;;  %v5039_v55 = vmul.f32 %v5795_v38, %v14011_v32  ;;  %v14022_v20 = vld [vmem:[#allocation279_spill] sm:$0xff] }
 0x8cb   :  { %v4963_v30 = vadd.f32 %v4962_v17, %v4885_v41  ;;  %v2720_v17 = vadd.f32 %v2719_v2, %v13991_v58  ;;  %v14009_v58 = vld [vmem:[#allocation76_spill] sm:$0xff] }
 0x8cc   :  { %v2353_v42 = vadd.f32 %v2352_v23, %v13989_v14  ;;  %v5244_v23 = vsel %vm105_vm0, %v5070_v49, 0.0  ;;  %v14008_v14 = vld [vmem:[#allocation31_spill] sm:$0xff]  ;;  %v14014_v49 = vld [vmem:[#allocation338_spill] sm:$0xff] }
 0x8cd   :  { %v4964_v43 = vadd.f32 %v4963_v30, %v4888_v34  ;;  %5242 = vadd.xlane.f32.xlu2 %v5241_v25  ;;  %v13988_v34 = vld [vmem:[#allocation73_spill] sm:$0xff]  ;;  %v13996_v30 = vld [vmem:[#allocation152_spill] sm:$0xff]  ;;  %v2721_v5 = vadd.f32 %v2720_v17, %v14000_v31 }
 0x8ce   :  { %v1962_v15 = vadd.f32 %v1961_v44, %v13988_v34  ;;  %v2354_v4 = vadd.f32 %v2353_v42, %v13996_v30  ;;  %v3088_v44 = vadd.f32 %v13998_v37, %v13997_v63  ;;  %v5037_v42 = vmul.f32 %v12026_v27, %v14008_v14  ;;  %v14016_v27 = vld [vmem:[#allocation124_spill] sm:$0xff]  ;;  %v14017_v63 = vld [vmem:[#allocation274_spill] sm:$0xff] }
 0x8cf   :  { %5137 = vadd.xlane.f32.xlu0 %v5136_v53  ;;  %v4965_v8 = vadd.f32 %v4964_v43, %v4891_v61  ;;  %5143 = vadd.xlane.f32.xlu1 %v5142_v45  ;;  %v14002_v43 = vld [vmem:[#allocation120_spill] sm:$0xff] }
 0x8d0   :  { %v12058_v61 = vpop.xlane.xlu2 %5080  ;;  %v1963_v0 = vadd.f32 %v1962_v15, %v13995_v24  ;;  %v2317_v21 = vadd.f32 %v2316_v62, %v14002_v43  ;;  %v2355_v2 = vadd.f32 %v2354_v4, %v14003_v35  ;;  %v14004_v53 = vld [vmem:[#allocation216_spill] sm:$0xff]  ;;  %v5145_v31 = vsel %vm105_vm0, %v5037_v42, 0.0  ;;  %v14030_v42 = vld [vmem:[#allocation123_spill] sm:$0xff] }
 0x8d1   :  { %v2722_v25 = vadd.f32 %v2721_v5, %v14004_v53  ;;  %v5151_v43 = vsel %vm105_vm0, %v5039_v55, 0.0 }
 0x8d2   :  { %v4894_v56 = vpop.xlane.xlu0 %4893  ;;  %v5180_v41 = vpop.xlane.xlu1 %5179  ;;  %v1964_v54 = vadd.f32 %v1963_v0, %v13999_v29  ;;  %v2356_v34 = vadd.f32 %v2355_v2, %v14007_v18  ;;  %v14015_v0 = vld [vmem:[#allocation109_spill] sm:$0xff]  ;;  %v14028_v18 = vld [vmem:[#allocation80_spill] sm:$0xff] }
 0x8d3   :  { %v4966_v7 = vadd.f32 %v4965_v8, %v4894_v56  ;;  %v14006_v8 = vld [vmem:[#allocation275_spill] sm:$0xff]  ;;  %v14010_v56 = vld [vmem:[#allocation104_spill] sm:$0xff]  ;;  %v2723_v62 = vadd.f32 %v2722_v25, %v14012_v59  ;;  %v14019_v29 = vld [vmem:[#allocation401_spill] sm:$0xff] }
 0x8d4   :  { %v3089_v45 = vadd.f32 %v3088_v44, %v14006_v8  ;;  %v1965_v17 = vadd.f32 %v1964_v54, %v14009_v58  ;;  %v1998_v22 = vadd.f32 %v1997_v26, %v14010_v56  ;;  %v14018_v44 = vld [vmem:[#allocation156_spill] sm:$0xff]  ;;  %v14024_v2 = vld [vmem:[#allocation337_spill] sm:$0xff]  ;;  %v5071_v58 = vmul.f32 %v5795_v38, %v13898_v52  ;;  %v14037_v52 = vld [vmem:[#allocation162_spill] sm:$0xff] }
 0x8d5   :  { %v4967_v9 = vadd.f32 %v4966_v7, %v4897_v48  ;;  %5149 = vadd.xlane.f32.xlu2 %v5148_v13  ;;  %v12080_v48 = vld [vmem:[%s12765_s5 + $0x9c8] sm:$0xff]  ;;  %v14025_v25 = vld [vmem:[#allocation405_spill] sm:$0xff] }
 0x8d6   :  { %v5072_v33 = vmul.f32 %v12080_v48, %v13897_v51  ;;  %v14013_v7 = vld [vmem:[#allocation339_spill] sm:$0xff]  ;;  %v1999_v30 = vadd.f32 %v1998_v22, %v14015_v0  ;;  %v3090_v37 = vadd.f32 %v3089_v45, %v14017_v63  ;;  %v14027_v8 = vld [vmem:[#allocation468_spill] sm:$0xff]  ;;  %v14032_v22 = vld [vmem:[#allocation221_spill] sm:$0xff] }
 0x8d7   :  { %v12074_v12 = vadd.f32 %v4967_v9, %v4900_v16  ;;  %5239 = vadd.xlane.f32.xlu0 %v5238_v50  ;;  %5245 = vadd.xlane.f32.xlu1 %v5244_v23  ;;  %v14005_v16 = vld [vmem:[#allocation125_spill] sm:$0xff]  ;;  %v3458_v24 = vadd.f32 %v14014_v49, %v14013_v7  ;;  %v2357_v9 = vadd.f32 %v2356_v34, %v14018_v44  ;;  %v14021_v50 = vld [vmem:[#allocation75_spill] sm:$0xff]  ;;  %v14023_v23 = vld [vmem:[#allocation214_spill] sm:$0xff] }
 0x8d8   :  { %v2318_v3 = vadd.f32 %v2317_v21, %v14005_v16  ;;  %v5087_v46 = vpop.xlane.xlu2 %5086  ;;  %v5250_v5 = vsel %vm105_vm0, %v5072_v33, 0.0  ;;  %v1966_v13 = vadd.f32 %v1965_v17, %v14021_v50  ;;  %v3091_v26 = vadd.f32 %v3090_v37, %v14022_v20  ;;  %v5797_v21 = vld [vmem:[%s12765_s5 + $0x9d0] sm:$0xff]  ;;  %v14031_v17 = vld [vmem:[#allocation155_spill] sm:$0xff]  ;;  %v14036_v0 = vld [vmem:[#allocation278_spill] sm:$0xff] }
 0x8d9   :  { %v2724_v35 = vadd.f32 %v2723_v62, %v14023_v23  ;;  %v3459_v53 = vadd.f32 %v3458_v24, %v14024_v2  ;;  %v2358_v56 = vadd.f32 %v2357_v9, %v14031_v17  ;;  %v14034_v62 = vld [vmem:[#allocation33_spill] sm:$0xff]  ;;  %v14035_v49 = vld [vmem:[#allocation128_spill] sm:$0xff]  ;;  %v14039_v9 = vld [vmem:[#allocation467_spill] sm:$0xff] }
 0x8da   :  { %v5177_v15 = vpop.xlane.xlu0 %5176  ;;  %v5183_v36 = vpop.xlane.xlu1 %5182  ;;  %v2319_v4 = vadd.f32 %v2318_v3, %v14016_v27  ;;  %v14026_v3 = vld [vmem:[#allocation463_spill] sm:$0xff]  ;;  %v1967_v34 = vadd.f32 %v1966_v13, %v14028_v18  ;;  %v5041_v7 = vmul.f32 %v5797_v21, %v14034_v62  ;;  %v3092_v27 = vadd.f32 %v3091_v26, %v14036_v0  ;;  %v14038_v37 = vld [vmem:[#allocation404_spill] sm:$0xff]  ;;  %v14042_v13 = vld [vmem:[#allocation218_spill] sm:$0xff] }
 0x8db   :  { %v5308_v11 = vadd.f32 %v5180_v41, %v5177_v15  ;;  %v14020_v41 = vld [vmem:[#allocation400_spill] sm:$0xff]  ;;  %v4198_v45 = vadd.f32 %v14027_v8, %v14026_v3  ;;  %v2359_v38 = vadd.f32 %v2358_v56, %v14037_v52  ;;  %v14045_v2 = vld [vmem:[#allocation277_spill] sm:$0xff]  ;;  %v14048_v18 = vld [vmem:[#allocation403_spill] sm:$0xff] }
 0x8dc   :  { %v3828_v54 = vadd.f32 %v14020_v41, %v14019_v29  ;;  %v14029_v15 = vld [vmem:[#allocation108_spill] sm:$0xff]  ;;  %v2320_v33 = vadd.f32 %v2319_v4, %v14030_v42  ;;  %v5073_v4 = vmul.f32 %v5797_v21, %v13905_v57  ;;  %v14040_v41 = vld [vmem:[#allocation79_spill] sm:$0xff]  ;;  %v5157_v23 = vsel %vm105_vm0, %v5041_v7, 0.0  ;;  %v14047_v8 = vld [vmem:[#allocation161_spill] sm:$0xff] }
 0x8dd   :  { %v12103_v51 = vadd.f32 %v5308_v11, %v5183_v36  ;;  %5251 = vadd.xlane.f32.xlu2 %v5250_v5  ;;  %v2000_v14 = vadd.f32 %v1999_v30, %v14029_v15  ;;  %v2725_v11 = vadd.f32 %v2724_v35, %v14032_v22  ;;  %v14033_v36 = vld [vmem:[#allocation342_spill] sm:$0xff]  ;;  %v4199_v29 = vadd.f32 %v4198_v45, %v14039_v9  ;;  %v14044_v21 = vld [vmem:[#allocation127_spill] sm:$0xff]  ;;  %v14054_v62 = vld [vmem:[#allocation408_spill] sm:$0xff] }
 0x8de   :  { %v3829_v16 = vadd.f32 %v3828_v54, %v14025_v25  ;;  %v3460_v32 = vadd.f32 %v3459_v53, %v14033_v36  ;;  %v2321_v24 = vadd.f32 %v2320_v33, %v14035_v49  ;;  %v1968_v54 = vadd.f32 %v1967_v34, %v14040_v41  ;;  %v12145_v57 = vld [vmem:[%s12765_s5 + $0x9e0] sm:$0xff]  ;;  %v5798_v42 = vld [vmem:[%s12765_s5 + $0x9d8] sm:$0xff] }
 0x8df   :  { %5146 = vadd.xlane.f32.xlu0 %v5145_v31  ;;  %5152 = vadd.xlane.f32.xlu1 %v5151_v43  ;;  %v14041_v31 = vld [vmem:[#allocation107_spill] sm:$0xff]  ;;  %v2726_v20 = vadd.f32 %v2725_v11, %v14042_v13  ;;  %v14043_v43 = vld [vmem:[#allocation341_spill] sm:$0xff]  ;;  %v3093_v53 = vadd.f32 %v3092_v27, %v14045_v2  ;;  %v2360_v45 = vadd.f32 %v2359_v38, %v14047_v8  ;;  %v14049_v15 = vld [vmem:[#allocation466_spill] sm:$0xff] }
 0x8e0   :  { %v5189_v59 = vpop.xlane.xlu2 %5188  ;;  %v3830_v44 = vadd.f32 %v3829_v16, %v14038_v37  ;;  %v2001_v5 = vadd.f32 %v2000_v14, %v14041_v31  ;;  %v3461_v26 = vadd.f32 %v3460_v32, %v14043_v43  ;;  %v2322_v35 = vadd.f32 %v2321_v24, %v14044_v21  ;;  %v14046_v16 = vld [vmem:[#allocation111_spill] sm:$0xff]  ;;  %v14051_v17 = vld [vmem:[#allocation6_spill] sm:$0xff]  ;;  %v14052_v11 = vld [vmem:[#allocation217_spill] sm:$0xff] }
 0x8e1   :  { %v4200_v14 = vadd.f32 %v4199_v29, %v14049_v15  ;;  %v14050_v33 = vld [vmem:[#allocation283_spill] sm:$0xff]  ;;  %v5040_v56 = vmul.f32 %v12080_v48, %v14051_v17  ;;  %v5075_v22 = vmul.f32 %v12145_v57, %v13902_v47  ;;  %v2727_v36 = vadd.f32 %v2726_v20, %v14052_v11  ;;  %v14053_v32 = vld [vmem:[#allocation340_spill] sm:$0xff]  ;;  %v14059_v47 = vld [vmem:[#allocation110_spill] sm:$0xff] }
 0x8e2   :  { %v5084_v55 = vpop.xlane.xlu0 %5083  ;;  %v5090_v63 = vpop.xlane.xlu1 %5089  ;;  %v2002_v3 = vadd.f32 %v2001_v5, %v14046_v16  ;;  %v3831_v34 = vadd.f32 %v3830_v44, %v14048_v18  ;;  %v14055_v49 = vld [vmem:[#allocation471_spill] sm:$0xff]  ;;  %v14058_v37 = vld [vmem:[#allocation36_spill] sm:$0xff]  ;;  %v14065_v21 = vld [vmem:[#allocation165_spill] sm:$0xff] }
 0x8e3   :  { %v5271_v30 = vadd.f32 %v5084_v55, %v12058_v61  ;;  %v5247_v61 = vsel %vm105_vm0, %v5071_v58, 0.0  ;;  %v3094_v58 = vadd.f32 %v3093_v53, %v14050_v33  ;;  %v3462_v55 = vadd.f32 %v3461_v26, %v14053_v32  ;;  %v14060_v29 = vld [vmem:[#allocation160_spill] sm:$0xff]  ;;  %v14063_v20 = vld [vmem:[#allocation95_spill] sm:$0xff]  ;;  %v14064_v26 = vld [vmem:[#allocation281_spill] sm:$0xff] }
 0x8e4   :  { %v3832_v7 = vadd.f32 %v3831_v34, %v14054_v62  ;;  %v4201_v24 = vadd.f32 %v4200_v14, %v14055_v49  ;;  %v5042_v44 = vmul.f32 %v5798_v42, %v14058_v37  ;;  %v2003_v9 = vadd.f32 %v2002_v3, %v14059_v47  ;;  %v14061_v31 = vld [vmem:[#allocation224_spill] sm:$0xff]  ;;  %v14067_v53 = vld [vmem:[#allocation470_spill] sm:$0xff]  ;;  %v14069_v8 = vld [vmem:[#allocation183_spill] sm:$0xff] }
 0x8e5   :  { %v5272_v50 = vadd.f32 %v5271_v30, %v5087_v46  ;;  %5158 = vadd.xlane.f32.xlu2 %v5157_v23  ;;  %v5253_v46 = vsel %vm105_vm0, %v5073_v4, 0.0  ;;  %v14056_v30 = vld [vmem:[#allocation78_spill] sm:$0xff]  ;;  %v2361_v41 = vadd.f32 %v2360_v45, %v14060_v29  ;;  %v2728_v5 = vadd.f32 %v2727_v36, %v14061_v31  ;;  %v14070_v15 = vld [vmem:[#allocation83_spill] sm:$0xff]  ;;  %v14072_v17 = vld [vmem:[#allocation344_spill] sm:$0xff] }
 0x8e6   :  { %v14057_v4 = vld [vmem:[#allocation126_spill] sm:$0xff]  ;;  %v5259_v16 = vsel %vm105_vm0, %v5075_v22, 0.0  ;;  %v5160_v34 = vsel %vm105_vm0, %v5042_v44, 0.0  ;;  %v14071_v33 = vld [vmem:[#allocation223_spill] sm:$0xff]  ;;  %v14076_v49 = vld [vmem:[#allocation164_spill] sm:$0xff] }
 0x8e7   :  { %5248 = vadd.xlane.f32.xlu0 %v5247_v61  ;;  %v5273_v25 = vadd.f32 %v5272_v50, %v5090_v63  ;;  %5254 = vadd.xlane.f32.xlu1 %v5253_v46  ;;  %v1969_v63 = vadd.f32 %v1968_v54, %v14056_v30  ;;  %v2323_v52 = vadd.f32 %v2322_v35, %v14057_v4  ;;  %v14062_v50 = vld [vmem:[#allocation346_spill] sm:$0xff]  ;;  %v5154_v54 = vsel %vm105_vm0, %v5040_v56, 0.0  ;;  %v14066_v35 = vld [vmem:[#allocation407_spill] sm:$0xff]  ;;  %v14078_v4 = vld [vmem:[#allocation469_spill] sm:$0xff] }
 0x8e8   :  { %v5096_v27 = vpop.xlane.xlu2 %5095  ;;  %v3463_v13 = vadd.f32 %v3462_v55, %v14062_v50  ;;  %v3095_v61 = vadd.f32 %v3094_v58, %v14064_v26  ;;  %v3833_v2 = vadd.f32 %v3832_v7, %v14066_v35  ;;  %v4202_v46 = vadd.f32 %v4201_v24, %v14067_v53  ;;  %v14068_v3 = vld [vmem:[#allocation178_spill] sm:$0xff]  ;;  %v14073_v22 = vld [vmem:[#allocation39_spill] sm:$0xff]  ;;  %v14075_v55 = vld [vmem:[#allocation280_spill] sm:$0xff] }
 0x8e9   :  { %v2324_v43 = vadd.f32 %v2323_v52, %v14063_v20  ;;  %v2681_v45 = vadd.f32 %v14069_v8, %v14068_v3  ;;  %v12188_v14 = vadd.f32 %v1969_v63, %v14070_v15  ;;  %v2729_v58 = vadd.f32 %v2728_v5, %v14071_v33  ;;  %v14074_v36 = vld [vmem:[#allocation130_spill] sm:$0xff]  ;;  %v14080_v47 = vld [vmem:[#allocation288_spill] sm:$0xff]  ;;  %v14088_v35 = vld [vmem:[#allocation163_spill] sm:$0xff] }
 0x8ea   :  { %v5186_v0 = vpop.xlane.xlu0 %5185  ;;  %v5192_v48 = vpop.xlane.xlu1 %5191  ;;  %v3464_v56 = vadd.f32 %v3463_v13, %v14072_v17  ;;  %v2004_v11 = vadd.f32 %v2003_v9, %v14073_v22  ;;  %v3096_v62 = vadd.f32 %v3095_v61, %v14075_v55  ;;  %v5074_v7 = vmul.f32 %v5798_v42, %v13903_v39  ;;  %v14079_v37 = vld [vmem:[#allocation182_spill] sm:$0xff]  ;;  %v14082_v42 = vld [vmem:[#allocation343_spill] sm:$0xff]  ;;  %v14083_v13 = vld [vmem:[#allocation413_spill] sm:$0xff] }
 0x8eb   :  { %v5310_v38 = vadd.f32 %v12103_v51, %v5186_v0  ;;  %v2362_v51 = vadd.f32 %v2361_v41, %v14065_v21  ;;  %v2325_v32 = vadd.f32 %v2324_v43, %v14074_v36  ;;  %v14077_v0 = vld [vmem:[#allocation406_spill] sm:$0xff]  ;;  %v4203_v63 = vadd.f32 %v4202_v46, %v14078_v4  ;;  %v14084_v43 = vld [vmem:[#allocation475_spill] sm:$0xff]  ;;  %v14085_v61 = vld [vmem:[#allocation245_spill] sm:$0xff] }
 0x8ec   :  { %v3834_v30 = vadd.f32 %v3833_v2, %v14077_v0  ;;  %v2682_v44 = vadd.f32 %v2681_v45, %v14079_v37  ;;  %v3097_v9 = vadd.f32 %v3096_v62, %v14080_v47  ;;  %v14081_v5 = vld [vmem:[#allocation222_spill] sm:$0xff]  ;;  %v3465_v50 = vadd.f32 %v3464_v56, %v14082_v42  ;;  %v14089_v53 = vld [vmem:[#allocation227_spill] sm:$0xff]  ;;  %v14091_v45 = vld [vmem:[#allocation181_spill] sm:$0xff] }
 0x8ed   :  { %v5311_v23 = vadd.f32 %v5310_v38, %v5189_v59  ;;  %5260 = vadd.xlane.f32.xlu2 %v5259_v16  ;;  %v5800_v59 = vld [vmem:[%s12765_s5 + $0x9e8] sm:$0xff]  ;;  %v2363_v24 = vadd.f32 %v2362_v51, %v14076_v49  ;;  %v2730_v39 = vadd.f32 %v2729_v58, %v14081_v5  ;;  %v4204_v26 = vadd.f32 %v4203_v63, %v14084_v43  ;;  %v14094_v17 = vld [vmem:[#allocation410_spill] sm:$0xff]  ;;  %v14095_v22 = vld [vmem:[#allocation473_spill] sm:$0xff] }
 0x8ee   :  { %v5076_v31 = vmul.f32 %v5800_v59, %v13909_v6  ;;  %v3835_v20 = vadd.f32 %v3834_v30, %v14083_v13  ;;  %v14087_v51 = vld [vmem:[#allocation35_spill] sm:$0xff]  ;;  %v12215_v6 = vld [vmem:[%s12765_s5 + $0x9f8] sm:$0xff]  ;;  %v14093_v33 = vld [vmem:[#allocation168_spill] sm:$0xff] }
 0x8ef   :  { %5155 = vadd.xlane.f32.xlu0 %v5154_v54  ;;  %v5312_v18 = vadd.f32 %v5311_v23, %v5192_v48  ;;  %5161 = vadd.xlane.f32.xlu1 %v5160_v34  ;;  %v5044_v48 = vmul.f32 %v5800_v59, %v13891_v40  ;;  %v14086_v54 = vld [vmem:[#allocation244_spill] sm:$0xff]  ;;  %v5256_v40 = vsel %vm105_vm0, %v5074_v7, 0.0  ;;  %v2364_v2 = vadd.f32 %v2363_v24, %v14088_v35  ;;  %v14090_v16 = vld [vmem:[#allocation351_spill] sm:$0xff]  ;;  %v14092_v59 = vld [vmem:[#allocation285_spill] sm:$0xff] }
 0x8f0   :  { %v5198_v38 = vpop.xlane.xlu2 %5197  ;;  %v3051_v23 = vadd.f32 %v14086_v54, %v14085_v61  ;;  %v2731_v46 = vadd.f32 %v2730_v39, %v14089_v53  ;;  %v3466_v3 = vadd.f32 %v3465_v50, %v14090_v16  ;;  %v2683_v34 = vadd.f32 %v2682_v44, %v14091_v45  ;;  %v5801_v62 = vld [vmem:[%s12765_s5 + $0x9f0] sm:$0xff]  ;;  %v14096_v7 = vld [vmem:[#allocation114_spill] sm:$0xff]  ;;  %v14098_v4 = vld [vmem:[#allocation243_spill] sm:$0xff] }
 0x8f1   :  { %v5166_v8 = vsel %vm105_vm0, %v5044_v48, 0.0  ;;  %v2365_v58 = vadd.f32 %v2364_v2, %v14093_v33  ;;  %v3836_v56 = vadd.f32 %v3835_v20, %v14094_v17  ;;  %v4205_v36 = vadd.f32 %v4204_v26, %v14095_v22  ;;  %v14097_v0 = vld [vmem:[#allocation186_spill] sm:$0xff]  ;;  %v14101_v47 = vld [vmem:[#allocation348_spill] sm:$0xff]  ;;  %v14105_v43 = vld [vmem:[#allocation167_spill] sm:$0xff] }
 0x8f2   :  { %v5093_v52 = vpop.xlane.xlu0 %5092  ;;  %v5099_v41 = vpop.xlane.xlu1 %5098  ;;  %v5078_v55 = vmul.f32 %v12215_v6, %v13907_v1  ;;  %v2005_v49 = vadd.f32 %v2004_v11, %v14096_v7  ;;  %v1651_v24 = vlaneseq  ;;  %v2684_v30 = vadd.f32 %v2683_v34, %v14097_v0  ;;  %v14100_v37 = vld [vmem:[#allocation226_spill] sm:$0xff]  ;;  %v14103_v39 = vld [vmem:[#allocation284_spill] sm:$0xff]  ;;  %v14106_v61 = vld [vmem:[#allocation409_spill] sm:$0xff] }
 0x8f3   :  { %v5274_v29 = vadd.f32 %v5273_v25, %v5093_v52  ;;  %v5043_v25 = vmul.f32 %v12145_v57, %v14087_v51  ;;  %v5262_v57 = vsel %vm105_vm0, %v5076_v31, 0.0  ;;  %v3052_v63 = vadd.f32 %v3051_v23, %v14098_v4  ;;  %v14099_v52 = vld [vmem:[#allocation129_spill] sm:$0xff]  ;;  %v14102_v31 = vld [vmem:[#allocation248_spill] sm:$0xff]  ;;  %v14104_v13 = vld [vmem:[#allocation38_spill] sm:$0xff] }
 0x8f4   :  { %v2326_v48 = vadd.f32 %v2325_v32, %v14099_v52  ;;  %v2732_v44 = vadd.f32 %v2731_v46, %v14100_v37  ;;  %v5045_v20 = vmul.f32 %v5801_v62, %v14104_v13  ;;  %v2366_v26 = vadd.f32 %v2365_v58, %v14105_v43  ;;  %v14107_v54 = vld [vmem:[#allocation472_spill] sm:$0xff]  ;;  %v14111_v53 = vld [vmem:[#allocation307_spill] sm:$0xff] }
 0x8f5   :  { %v5275_v21 = vadd.f32 %v5274_v29, %v5096_v27  ;;  %v3098_v27 = vadd.f32 %v3097_v9, %v14092_v59  ;;  %5167 = vadd.xlane.f32.xlu2 %v5166_v8  ;;  %v3467_v9 = vadd.f32 %v3466_v3, %v14101_v47  ;;  %v5163_v1 = vsel %vm105_vm0, %v5043_v25, 0.0  ;;  %v14109_v25 = vld [vmem:[#allocation291_spill] sm:$0xff]  ;;  %v14110_v2 = vld [vmem:[#allocation308_spill] sm:$0xff]  ;;  %v14122_v47 = vld [vmem:[#allocation230_spill] sm:$0xff] }
 0x8f6   :  { %v3053_v5 = vadd.f32 %v3052_v63, %v14102_v31  ;;  %v3837_v32 = vadd.f32 %v3836_v56, %v14106_v61  ;;  %v4206_v23 = vadd.f32 %v4205_v36, %v14107_v54  ;;  %v3421_v46 = vadd.f32 %v14111_v53, %v14110_v2  ;;  %v14113_v8 = vld [vmem:[#allocation347_spill] sm:$0xff]  ;;  %v14114_v34 = vld [vmem:[#allocation416_spill] sm:$0xff]  ;;  %v14124_v31 = vld [vmem:[#allocation113_spill] sm:$0xff] }
 0x8f7   :  { %5257 = vadd.xlane.f32.xlu0 %v5256_v40  ;;  %v5276_v15 = vadd.f32 %v5275_v21, %v5099_v41  ;;  %5263 = vadd.xlane.f32.xlu1 %v5262_v57  ;;  %v3099_v42 = vadd.f32 %v3098_v27, %v14103_v39  ;;  %v5268_v40 = vsel %vm105_vm0, %v5078_v55, 0.0  ;;  %v14108_v21 = vld [vmem:[#allocation185_spill] sm:$0xff]  ;;  %v3468_v45 = vadd.f32 %v3467_v9, %v14113_v8  ;;  %v14115_v27 = vld [vmem:[#allocation480_spill] sm:$0xff]  ;;  %v14116_v33 = vld [vmem:[#allocation247_spill] sm:$0xff] }
 0x8f8   :  { %v5105_v41 = vpop.xlane.xlu2 %5104  ;;  %v2685_v51 = vadd.f32 %v2684_v30, %v14108_v21  ;;  %v3838_v59 = vadd.f32 %v3837_v32, %v14114_v34  ;;  %v4207_v57 = vadd.f32 %v4206_v23, %v14115_v27  ;;  %v3054_v58 = vadd.f32 %v3053_v5, %v14116_v33  ;;  %v14117_v17 = vld [vmem:[#allocation312_spill] sm:$0xff]  ;;  %v14120_v30 = vld [vmem:[#allocation354_spill] sm:$0xff]  ;;  %v14125_v39 = vld [vmem:[#allocation171_spill] sm:$0xff] }
 0x8f9   :  { %v3100_v35 = vadd.f32 %v3099_v42, %v14109_v25  ;;  %v3422_v56 = vadd.f32 %v3421_v46, %v14117_v17  ;;  %v5169_v36 = vsel %vm105_vm0, %v5045_v20, 0.0  ;;  %v14118_v55 = vld [vmem:[#allocation132_spill] sm:$0xff]  ;;  %v3469_v4 = vadd.f32 %v3468_v45, %v14120_v30  ;;  %v14126_v42 = vld [vmem:[#allocation415_spill] sm:$0xff]  ;;  %v14133_v2 = vld [vmem:[#allocation229_spill] sm:$0xff] }
 0x8fa   :  { %v5195_v29 = vpop.xlane.xlu0 %5194  ;;  %v5201_v50 = vpop.xlane.xlu1 %5200  ;;  %v2327_v7 = vadd.f32 %v2326_v48, %v14118_v55  ;;  %v5077_v63 = vmul.f32 %v5801_v62, %v13908_v28  ;;  %v12261_v52 = vand.u32 127, %v1651_v24  ;;  %v14121_v37 = vld [vmem:[#allocation184_spill] sm:$0xff]  ;;  %v12267_v5 = vadd.f32 %v2005_v49, %v14124_v31  ;;  %v14128_v28 = vld [vmem:[#allocation189_spill] sm:$0xff]  ;;  %v14129_v24 = vld [vmem:[#allocation246_spill] sm:$0xff] }
 0x8fb   :  { %v5313_v11 = vadd.f32 %v5312_v18, %v5195_v29  ;;  %v14112_v18 = vld [vmem:[#allocation225_spill] sm:$0xff]  ;;  %v14123_v29 = vld [vmem:[#allocation290_spill] sm:$0xff]  ;;  %v14130_v61 = vld [vmem:[#allocation311_spill] sm:$0xff] }
 0x8fc   :  { %v2733_v3 = vadd.f32 %v2732_v44, %v14112_v18  ;;  %v2686_v44 = vadd.f32 %v2685_v51, %v14121_v37  ;;  %v3423_v32 = vadd.f32 %v3422_v56, %v14130_v61  ;;  %v14132_v49 = vld [vmem:[#allocation353_spill] sm:$0xff]  ;;  %v5265_v25 = vsel %vm105_vm0, %v5077_v63, 0.0  ;;  %v14134_v46 = vld [vmem:[#allocation251_spill] sm:$0xff]  ;;  %v14136_v45 = vld [vmem:[#allocation170_spill] sm:$0xff] }
 0x8fd   :  { %v5314_v16 = vadd.f32 %v5313_v11, %v5198_v38  ;;  %5269 = vadd.xlane.f32.xlu2 %v5268_v40  ;;  %v14119_v38 = vld [vmem:[#allocation166_spill] sm:$0xff]  ;;  %v3839_v11 = vadd.f32 %v3838_v59, %v14126_v42  ;;  %v14131_v40 = vld [vmem:[#allocation131_spill] sm:$0xff]  ;;  %v3470_v51 = vadd.f32 %v3469_v4, %v14132_v49  ;;  %v14135_v18 = vld [vmem:[#allocation289_spill] sm:$0xff]  ;;  %vm2015_vm6 = vcmp.eq.s32.totalorder %v12261_v52, 0 }
 0x8fe   :  { %v2367_v0 = vadd.f32 %v2366_v26, %v14119_v38  ;;  %v2734_v9 = vadd.f32 %v2733_v3, %v14122_v47  ;;  %v2687_v62 = vadd.f32 %v2686_v44, %v14128_v28  ;;  %v3055_v26 = vadd.f32 %v3054_v58, %v14129_v24  ;;  %v14138_v59 = vld [vmem:[#allocation375_spill] sm:$0xff]  ;;  %v14140_v58 = vld [vmem:[#allocation476_spill] sm:$0xff]  ;;  %v14142_v55 = vld [vmem:[#allocation294_spill] sm:$0xff] }
 0x8ff   :  { %5164 = vadd.xlane.f32.xlu0 %v5163_v1  ;;  %v5315_v22 = vadd.f32 %v5314_v16, %v5201_v50  ;;  %5170 = vadd.xlane.f32.xlu1 %v5169_v36  ;;  %v3101_v1 = vadd.f32 %v3100_v35, %v14123_v29  ;;  %v14127_v50 = vld [vmem:[#allocation477_spill] sm:$0xff]  ;;  %v2328_v21 = vadd.f32 %v2327_v7, %v14131_v40  ;;  %v14141_v56 = vld [vmem:[#allocation188_spill] sm:$0xff]  ;;  %v14148_v47 = vld [vmem:[#allocation483_spill] sm:$0xff]  ;;  %vm2385_vm7 = vcmp.eq.s32.totalorder %v12261_v52, 1 }
 0x900   :  { %v2368_v48 = vadd.f32 %v2367_v0, %v14125_v39  ;;  %v4208_v13 = vadd.f32 %v4207_v57, %v14127_v50  ;;  %v5207_v43 = vpop.xlane.xlu2 %5206  ;;  %v5046_v35 = vmul.f32 %v12215_v6, %v13893_v60  ;;  %v2735_v53 = vadd.f32 %v2734_v9, %v14133_v2  ;;  %v14139_v57 = vld [vmem:[#allocation414_spill] sm:$0xff]  ;;  %v14144_v0 = vld [vmem:[#allocation352_spill] sm:$0xff]  ;;  %v14146_v63 = vld [vmem:[#allocation437_spill] sm:$0xff] }
 0x901   :  { %v3056_v16 = vadd.f32 %v3055_v26, %v14134_v46  ;;  %v3102_v3 = vadd.f32 %v3101_v1, %v14135_v18  ;;  %v3840_v33 = vadd.f32 %v3839_v11, %v14139_v57  ;;  %v2688_v36 = vadd.f32 %v2687_v62, %v14141_v56  ;;  %v14143_v6 = vld [vmem:[#allocation310_spill] sm:$0xff]  ;;  %v14147_v37 = vld [vmem:[#allocation436_spill] sm:$0xff]  ;;  %v14152_v50 = vld [vmem:[#allocation169_spill] sm:$0xff] }
 0x902   :  { %v5102_v20 = vpop.xlane.xlu0 %5101  ;;  %v5108_v23 = vpop.xlane.xlu1 %5107  ;;  %v2369_v34 = vadd.f32 %v2368_v48, %v14136_v45  ;;  %v4209_v17 = vadd.f32 %v4208_v13, %v14140_v58  ;;  %v3424_v7 = vadd.f32 %v3423_v32, %v14143_v6  ;;  %v3471_v30 = vadd.f32 %v3470_v51, %v14144_v0  ;;  %v14149_v29 = vld [vmem:[#allocation228_spill] sm:$0xff]  ;;  %v14150_v31 = vld [vmem:[#allocation250_spill] sm:$0xff]  ;;  %v14151_v48 = vld [vmem:[#allocation315_spill] sm:$0xff] }
 0x903   :  { %v5277_v54 = vadd.f32 %v5276_v15, %v5102_v20  ;;  %v14137_v15 = vld [vmem:[#allocation370_spill] sm:$0xff]  ;;  %v3103_v60 = vadd.f32 %v3102_v3, %v14142_v55  ;;  %v4161_v44 = vadd.f32 %v14147_v37, %v14146_v63  ;;  %v2736_v1 = vadd.f32 %v2735_v53, %v14149_v29  ;;  %v14153_v20 = vld [vmem:[#allocation357_spill] sm:$0xff]  ;;  %v14155_v26 = vld [vmem:[#allocation499_spill] sm:$0xff] }
 0x904   :  { %v3791_v27 = vadd.f32 %v14138_v59, %v14137_v15  ;;  %v4210_v9 = vadd.f32 %v4209_v17, %v14148_v47  ;;  %v3057_v39 = vadd.f32 %v3056_v16, %v14150_v31  ;;  %v3425_v42 = vadd.f32 %v3424_v7, %v14151_v48  ;;  %v14154_v62 = vld [vmem:[#allocation374_spill] sm:$0xff]  ;;  %v14157_v40 = vld [vmem:[#allocation187_spill] sm:$0xff]  ;;  %v14158_v51 = vld [vmem:[#allocation233_spill] sm:$0xff] }
 0x905   :  { %v5278_v8 = vadd.f32 %v5277_v54, %v5105_v41  ;;  %v14145_v41 = vld [vmem:[#allocation419_spill] sm:$0xff]  ;;  %v5172_v11 = vsel %vm105_vm0, %v5046_v35, 0.0  ;;  %v2370_v13 = vadd.f32 %v2369_v34, %v14152_v50  ;;  %v3472_v28 = vadd.f32 %v3471_v30, %v14153_v20  ;;  %v14156_v61 = vld [vmem:[#allocation498_spill] sm:$0xff]  ;;  %v14159_v2 = vld [vmem:[#allocation293_spill] sm:$0xff] }
 0x906   :  { %v3841_v4 = vadd.f32 %v3840_v33, %v14145_v41  ;;  %v3792_v24 = vadd.f32 %v3791_v27, %v14154_v62  ;;  %v4531_v32 = vadd.f32 %v14156_v61, %v14155_v26  ;;  %v2689_v49 = vadd.f32 %v2688_v36, %v14157_v40  ;;  %v14160_v35 = vld [vmem:[#allocation418_spill] sm:$0xff]  ;;  %v14161_v3 = vld [vmem:[#allocation435_spill] sm:$0xff]  ;;  %v14164_v27 = vld [vmem:[#allocation192_spill] sm:$0xff] }
 0x907   :  { %5266 = vadd.xlane.f32.xlu0 %v5265_v25  ;;  %v5279_v38 = vadd.f32 %v5278_v8, %v5108_v23  ;;  %v2737_v25 = vadd.f32 %v2736_v1, %v14158_v51  ;;  %v3104_v53 = vadd.f32 %v3103_v60, %v14159_v2  ;;  %v4162_v8 = vadd.f32 %v4161_v44, %v14161_v3  ;;  %v14162_v45 = vld [vmem:[#allocation482_spill] sm:$0xff]  ;;  %v14163_v15 = vld [vmem:[#allocation503_spill] sm:$0xff]  ;;  %v14165_v33 = vld [vmem:[#allocation249_spill] sm:$0xff] }
 0x908   :  { %v5114_v23 = vpop.xlane.xlu2 %5113  ;;  %v3842_v18 = vadd.f32 %v3841_v4, %v14160_v35  ;;  %v4211_v34 = vadd.f32 %v4210_v9, %v14162_v45  ;;  %v4532_v59 = vadd.f32 %v4531_v32, %v14163_v15  ;;  %v2690_v57 = vadd.f32 %v2689_v49, %v14164_v27  ;;  %v14166_v17 = vld [vmem:[#allocation314_spill] sm:$0xff]  ;;  %v14168_v60 = vld [vmem:[#allocation356_spill] sm:$0xff]  ;;  %v14169_v7 = vld [vmem:[#allocation373_spill] sm:$0xff] }
 0x909   :  { %v3058_v58 = vadd.f32 %v3057_v39, %v14165_v33  ;;  %v3426_v56 = vadd.f32 %v3425_v42, %v14166_v17  ;;  %v14167_v55 = vld [vmem:[#allocation174_spill] sm:$0xff]  ;;  %v3793_v0 = vadd.f32 %v3792_v24, %v14169_v7  ;;  %v14170_v30 = vld [vmem:[#allocation440_spill] sm:$0xff]  ;;  %v14175_v39 = vld [vmem:[#allocation417_spill] sm:$0xff]  ;;  %vm2755_vm8 = vcmp.eq.s32.totalorder %v12261_v52, 2 }
 0x90a   :  { %v5204_v54 = vpop.xlane.xlu0 %5203  ;;  %v5210_v16 = vpop.xlane.xlu1 %5209  ;;  %v2371_v6 = vadd.f32 %v2370_v13, %v14167_v55  ;;  %v4163_v41 = vadd.f32 %v4162_v8, %v14170_v30  ;;  %v14171_v4 = vld [vmem:[#allocation232_spill] sm:$0xff]  ;;  %v14172_v37 = vld [vmem:[#allocation254_spill] sm:$0xff]  ;;  %v14176_v48 = vld [vmem:[#allocation481_spill] sm:$0xff]  ;;  %vm3125_vm9 = vcmp.eq.s32.totalorder %v12261_v52, 3  ;;  %vm3495_vm10 = vcmp.eq.s32.totalorder %v12261_v52, 4 }
 0x90b   :  { %v5316_v46 = vadd.f32 %v5315_v22, %v5204_v54  ;;  %v3473_v22 = vadd.f32 %v3472_v28, %v14168_v60  ;;  %v2738_v63 = vadd.f32 %v2737_v25, %v14171_v4  ;;  %v3059_v44 = vadd.f32 %v3058_v58, %v14172_v37  ;;  %v14173_v47 = vld [vmem:[#allocation292_spill] sm:$0xff]  ;;  %v14174_v1 = vld [vmem:[#allocation378_spill] sm:$0xff]  ;;  %v14179_v62 = vld [vmem:[#allocation191_spill] sm:$0xff] }
 0x90c   :  { %v3105_v9 = vadd.f32 %v3104_v53, %v14173_v47  ;;  %v3794_v31 = vadd.f32 %v3793_v0, %v14174_v1  ;;  %v4212_v42 = vadd.f32 %v4211_v34, %v14176_v48  ;;  %v14177_v50 = vld [vmem:[#allocation502_spill] sm:$0xff]  ;;  %v14178_v20 = vld [vmem:[#allocation96_spill] sm:$0xff]  ;;  %v2691_v24 = vadd.f32 %v2690_v57, %v14179_v62  ;;  %v14180_v26 = vld [vmem:[#allocation297_spill] sm:$0xff] }
 0x90d   :  { %v5317_v36 = vadd.f32 %v5316_v46, %v5207_v43  ;;  %v3843_v43 = vadd.f32 %v3842_v18, %v14175_v39  ;;  %v4533_v13 = vadd.f32 %v4532_v59, %v14177_v50  ;;  %v2329_v28 = vadd.f32 %v2328_v21, %v14178_v20  ;;  %v14181_v32 = vld [vmem:[#allocation313_spill] sm:$0xff]  ;;  %v14182_v40 = vld [vmem:[#allocation355_spill] sm:$0xff]  ;;  %v14185_v53 = vld [vmem:[#allocation486_spill] sm:$0xff] }
 0x90e   :  { %v3106_v61 = vadd.f32 %v3105_v9, %v14180_v26  ;;  %v3427_v54 = vadd.f32 %v3426_v56, %v14181_v32  ;;  %v3474_v49 = vadd.f32 %v3473_v22, %v14182_v40  ;;  %v14184_v25 = vld [vmem:[#allocation439_spill] sm:$0xff]  ;;  %v4213_v46 = vadd.f32 %v4212_v42, %v14185_v53  ;;  %v14187_v21 = vld [vmem:[#allocation253_spill] sm:$0xff]  ;;  %v14188_v45 = vld [vmem:[#allocation318_spill] sm:$0xff] }
 0x90f   :  { %5173 = vadd.xlane.f32.xlu0 %v5172_v11  ;;  %v5318_v29 = vadd.f32 %v5317_v36, %v5210_v16  ;;  %v14183_v11 = vld [vmem:[#allocation422_spill] sm:$0xff]  ;;  %v4164_v2 = vadd.f32 %v4163_v41, %v14184_v25  ;;  %v14186_v18 = vld [vmem:[#allocation231_spill] sm:$0xff]  ;;  %v3060_v8 = vadd.f32 %v3059_v44, %v14187_v21  ;;  %v14189_v27 = vld [vmem:[#allocation173_spill] sm:$0xff]  ;;  %vm3865_vm11 = vcmp.eq.s32.totalorder %v12261_v52, 5 }
 0x910   :  { %v3844_v51 = vadd.f32 %v3843_v43, %v14183_v11  ;;  %v12334_v35 = vpop.xlane.xlu2 %5215  ;;  %v2739_v3 = vadd.f32 %v2738_v63, %v14186_v18  ;;  %v3428_v34 = vadd.f32 %v3427_v54, %v14188_v45  ;;  %v2372_v57 = vadd.f32 %v2371_v6, %v14189_v27  ;;  %v14190_v33 = vld [vmem:[#allocation360_spill] sm:$0xff]  ;;  %v14191_v17 = vld [vmem:[#allocation377_spill] sm:$0xff]  ;;  %v14193_v60 = vld [vmem:[#allocation190_spill] sm:$0xff] }
 0x911   :  { %v3475_v58 = vadd.f32 %v3474_v49, %v14190_v33  ;;  %v3795_v56 = vadd.f32 %v3794_v31, %v14191_v17  ;;  %v14192_v36 = vld [vmem:[#allocation501_spill] sm:$0xff]  ;;  %v2692_v22 = vadd.f32 %v2691_v24, %v14193_v60  ;;  %v14194_v7 = vld [vmem:[#allocation236_spill] sm:$0xff]  ;;  %v14197_v37 = vld [vmem:[#allocation438_spill] sm:$0xff]  ;;  %vm4235_vm12 = vcmp.eq.s32.totalorder %v12261_v52, 6 }
 0x912   :  { %v5111_v16 = vpop.xlane.xlu0 %5110  ;;  %v12339_v59 = vpop.xlane.xlu1 %5116  ;;  %v4534_v55 = vadd.f32 %v4533_v13, %v14192_v36  ;;  %v2740_v0 = vadd.f32 %v2739_v3, %v14194_v7  ;;  %v14195_v30 = vld [vmem:[#allocation296_spill] sm:$0xff]  ;;  %v14196_v63 = vld [vmem:[#allocation421_spill] sm:$0xff]  ;;  %v4165_v44 = vadd.f32 %v4164_v2, %v14197_v37  ;;  %v14199_v9 = vld [vmem:[#allocation506_spill] sm:$0xff]  ;;  %vm4605_vm13 = vcmp.eq.s32.totalorder %v12261_v52, 7 }
 0x913   :  { %v5280_v15 = vadd.f32 %v5279_v38, %v5111_v16  ;;  %v3107_v41 = vadd.f32 %v3106_v61, %v14195_v30  ;;  %v3845_v38 = vadd.f32 %v3844_v51, %v14196_v63  ;;  %v14198_v47 = vld [vmem:[#allocation485_spill] sm:$0xff]  ;;  %v14200_v39 = vld [vmem:[#allocation112_spill] sm:$0xff]  ;;  %v14204_v62 = vld [vmem:[#allocation135_spill] sm:$0xff]  ;;  %vm4975_vm14 = vcmp.eq.s32.totalorder %v12261_v52, 8 }
 0x914   :  { %v4214_v6 = vadd.f32 %v4213_v46, %v14198_v47  ;;  %v4535_v1 = vadd.f32 %v4534_v55, %v14199_v9  ;;  %v2007_v31 = vadd.f32 %v12267_v5, %v14200_v39  ;;  %v14201_v43 = vld [vmem:[#allocation157_spill] sm:$0xff]  ;;  %v14202_v42 = vld [vmem:[#allocation252_spill] sm:$0xff]  ;;  %v14205_v24 = vld [vmem:[#allocation359_spill] sm:$0xff]  ;;  %vm5345_vm15 = vcmp.eq.s32.totalorder %v12261_v52, 9 }
 0x915   :  { %v12348_v4 = vadd.f32 %v5280_v15, %v5114_v23  ;;  %v2693_v48 = vadd.f32 %v2692_v22, %v14201_v43  ;;  %v3061_v50 = vadd.f32 %v3060_v8, %v14202_v42  ;;  %v14203_v13 = vld [vmem:[#allocation317_spill] sm:$0xff]  ;;  %v2330_v23 = vadd.f32 %v2329_v28, %v14204_v62  ;;  %v14206_v61 = vld [vmem:[#allocation376_spill] sm:$0xff]  ;;  %v14207_v54 = vld [vmem:[#allocation443_spill] sm:$0xff] }
 0x916   :  { %v3429_v20 = vadd.f32 %v3428_v34, %v14203_v13  ;;  %v3476_v26 = vadd.f32 %v3475_v58, %v14205_v24  ;;  %v3796_v32 = vadd.f32 %v3795_v56, %v14206_v61  ;;  %v4166_v40 = vadd.f32 %v4165_v44, %v14207_v54  ;;  %v14208_v49 = vld [vmem:[#allocation172_spill] sm:$0xff]  ;;  %v14209_v51 = vld [vmem:[#allocation235_spill] sm:$0xff]  ;;  %v14212_v16 = vld [vmem:[#allocation381_spill] sm:$0xff] }
 0x917   :  { %v2373_v11 = vadd.f32 %v2372_v57, %v14208_v49  ;;  %v2741_v25 = vadd.f32 %v2740_v0, %v14209_v51  ;;  %v14210_v2 = vld [vmem:[#allocation219_spill] sm:$0xff]  ;;  %v14213_v3 = vld [vmem:[#allocation420_spill] sm:$0xff]  ;;  %v14215_v45 = vld [vmem:[#allocation505_spill] sm:$0xff]  ;;  %vm5361_vm0 = vcmask 1041409  }
 0x918   :  { %v3062_v5 = vadd.f32 %v3061_v50, %v14210_v2  ;;  %v14211_v53 = vld [vmem:[#allocation295_spill] sm:$0xff]  ;;  %v3797_v18 = vadd.f32 %v3796_v32, %v14212_v16  ;;  %v3846_v21 = vadd.f32 %v3845_v38, %v14213_v3  ;;  %v14214_v8 = vld [vmem:[#allocation484_spill] sm:$0xff]  ;;  %v4536_v34 = vadd.f32 %v4535_v1, %v14215_v45  ;;  %v12371_v27 = vpop.xlane.xlu2 %5122  ;;  %v14216_v33 = vld [vmem:[#allocation193_spill] sm:$0xff] }
 0x919   :  { %v3108_v46 = vadd.f32 %v3107_v41, %v14211_v53  ;;  %v4215_v28 = vadd.f32 %v4214_v6, %v14214_v8  ;;  %v2694_v58 = vadd.f32 %v2693_v48, %v14216_v33  ;;  %v14217_v57 = vld [vmem:[#allocation300_spill] sm:$0xff]  ;;  %v14219_v22 = vld [vmem:[#allocation358_spill] sm:$0xff]  ;;  %v14220_v0 = vld [vmem:[#allocation425_spill] sm:$0xff] }
 0x91a   :  { %v5213_v15 = vpop.xlane.xlu0 %5212  ;;  %v14218_v56 = vld [vmem:[#allocation316_spill] sm:$0xff]  ;;  %v12378_v60 = vpop.xlane.xlu1 %5218  ;;  %v3477_v7 = vadd.f32 %v3476_v26, %v14219_v22  ;;  %v3847_v30 = vadd.f32 %v3846_v21, %v14220_v0  ;;  %v14221_v41 = vld [vmem:[#allocation442_spill] sm:$0xff]  ;;  %v14222_v38 = vld [vmem:[#allocation489_spill] sm:$0xff] }
 0x91b   :  { %v3109_v17 = vadd.f32 %v3108_v46, %v14217_v57  ;;  %v3430_v36 = vadd.f32 %v3429_v20, %v14218_v56  ;;  %v12376_v55 = vadd.f32 %v5318_v29, %v5213_v15  ;;  %v4167_v63 = vadd.f32 %v4166_v40, %v14221_v41  ;;  %v14223_v44 = vld [vmem:[#allocation177_spill] sm:$0xff]  ;;  %v14224_v6 = vld [vmem:[#allocation234_spill] sm:$0xff]  ;;  %v14225_v1 = vld [vmem:[#allocation256_spill] sm:$0xff] }
 0x91c   :  { %v4216_v37 = vadd.f32 %v4215_v28, %v14222_v38  ;;  %v2374_v47 = vadd.f32 %v2373_v11, %v14223_v44  ;;  %v2742_v9 = vadd.f32 %v2741_v25, %v14224_v6  ;;  %v3063_v39 = vadd.f32 %v3062_v5, %v14225_v1  ;;  %v14226_v43 = vld [vmem:[#allocation321_spill] sm:$0xff]  ;;  %v14227_v29 = vld [vmem:[#allocation116_spill] sm:$0xff]  ;;  %v14228_v50 = vld [vmem:[#allocation363_spill] sm:$0xff] }
 0x91d   :  { %v3431_v48 = vadd.f32 %v3430_v36, %v14226_v43  ;;  %v2008_v42 = vadd.f32 %v2007_v31, %v14227_v29  ;;  %v3478_v13 = vadd.f32 %v3477_v7, %v14228_v50  ;;  %v14229_v20 = vld [vmem:[#allocation380_spill] sm:$0xff]  ;;  %v14231_v61 = vld [vmem:[#allocation134_spill] sm:$0xff]  ;;  %v14232_v54 = vld [vmem:[#allocation153_spill] sm:$0xff] }
 0x91e   :  { %v3798_v62 = vadd.f32 %v3797_v18, %v14229_v20  ;;  %v14230_v24 = vld [vmem:[#allocation504_spill] sm:$0xff]  ;;  %v2331_v32 = vadd.f32 %v2330_v23, %v14231_v61  ;;  %v2695_v40 = vadd.f32 %v2694_v58, %v14232_v54  ;;  %v14233_v49 = vld [vmem:[#allocation239_spill] sm:$0xff]  ;;  %v14236_v53 = vld [vmem:[#allocation441_spill] sm:$0xff] }
 0x91f   :  { %v4537_v26 = vadd.f32 %v4536_v34, %v14230_v24  ;;  %v2743_v11 = vadd.f32 %v2742_v9, %v14233_v49  ;;  %v14234_v51 = vld [vmem:[#allocation299_spill] sm:$0xff]  ;;  %v14235_v2 = vld [vmem:[#allocation424_spill] sm:$0xff]  ;;  %v4168_v46 = vadd.f32 %v4167_v63, %v14236_v53  ;;  %v14238_v3 = vld [vmem:[#allocation509_spill] sm:$0xff]  ;;  %v2009_v58 = vrot.slane %v2008_v42, 4 }
 0x920   :  { %v3110_v25 = vadd.f32 %v3109_v17, %v14234_v51  ;;  %v3848_v5 = vadd.f32 %v3847_v30, %v14235_v2  ;;  %v14237_v16 = vld [vmem:[#allocation488_spill] sm:$0xff]  ;;  %v14240_v28 = vld [vmem:[#allocation195_spill] sm:$0xff]  ;;  %v14243_v57 = vld [vmem:[#allocation362_spill] sm:$0xff]  ;;  %v12409_v30 = vpop.xlane.xlu2 %5224 }
 0x921   :  { %v4217_v31 = vadd.f32 %v4216_v37, %v14237_v16  ;;  %v4538_v21 = vadd.f32 %v4537_v26, %v14238_v3  ;;  %v14239_v8 = vld [vmem:[#allocation176_spill] sm:$0xff]  ;;  %v2696_v45 = vadd.f32 %v2695_v40, %v14240_v28  ;;  %v14241_v34 = vld [vmem:[#allocation255_spill] sm:$0xff]  ;;  %v3479_v56 = vadd.f32 %v3478_v13, %v14243_v57  ;;  %v14245_v22 = vld [vmem:[#allocation446_spill] sm:$0xff] }
 0x922   :  { %v2375_v18 = vadd.f32 %v2374_v47, %v14239_v8  ;;  %v3064_v23 = vadd.f32 %v3063_v39, %v14241_v34  ;;  %v14242_v15 = vld [vmem:[#allocation320_spill] sm:$0xff]  ;;  %v14244_v17 = vld [vmem:[#allocation379_spill] sm:$0xff]  ;;  %v4169_v7 = vadd.f32 %v4168_v46, %v14245_v22  ;;  %v12407_v0 = vpop.xlane.xlu0 %5119  ;;  %v14246_v41 = vld [vmem:[#allocation133_spill] sm:$0xff]  ;;  %v12415_v1 = vpop.xlane.xlu1 %5125 }
 0x923   :  { %v3432_v33 = vadd.f32 %v3431_v48, %v14242_v15  ;;  %v3799_v36 = vadd.f32 %v3798_v62, %v14244_v17  ;;  %v2332_v63 = vadd.f32 %v2331_v32, %v14246_v41  ;;  %v14247_v38 = vld [vmem:[#allocation238_spill] sm:$0xff]  ;;  %v14250_v39 = vld [vmem:[#allocation384_spill] sm:$0xff]  ;;  %v14251_v48 = vld [vmem:[#allocation423_spill] sm:$0xff]  ;;  %v2010_v15 = vadd.f32 %v2009_v58, %v2008_v42 }
 0x924   :  { %v2744_v37 = vadd.f32 %v2743_v11, %v14247_v38  ;;  %v14248_v44 = vld [vmem:[#allocation258_spill] sm:$0xff]  ;;  %v3849_v29 = vadd.f32 %v3848_v5, %v14251_v48  ;;  %v14252_v50 = vld [vmem:[#allocation487_spill] sm:$0xff]  ;;  %v14253_v20 = vld [vmem:[#allocation508_spill] sm:$0xff] }
 0x925   :  { %v3065_v47 = vadd.f32 %v3064_v23, %v14248_v44  ;;  %v14249_v6 = vld [vmem:[#allocation298_spill] sm:$0xff]  ;;  %v3800_v43 = vadd.f32 %v3799_v36, %v14250_v39  ;;  %v4218_v13 = vadd.f32 %v4217_v31, %v14252_v50  ;;  %v4539_v62 = vadd.f32 %v4538_v21, %v14253_v20  ;;  %v14254_v24 = vld [vmem:[#allocation175_spill] sm:$0xff]  ;;  %v14258_v51 = vld [vmem:[#allocation361_spill] sm:$0xff] }
 0x926   :  { %v3111_v9 = vadd.f32 %v3110_v25, %v14249_v6  ;;  %v2376_v26 = vadd.f32 %v2375_v18, %v14254_v24  ;;  %v14255_v61 = vld [vmem:[#allocation194_spill] sm:$0xff]  ;;  %v14256_v54 = vld [vmem:[#allocation303_spill] sm:$0xff]  ;;  %v3480_v25 = vadd.f32 %v3479_v56, %v14258_v51  ;;  %v14259_v2 = vld [vmem:[#allocation428_spill] sm:$0xff]  ;;  %v2011_v51 = vrot.slane %v2010_v15, 2 }
 0x927   :  { %v2697_v32 = vadd.f32 %v2696_v45, %v14255_v61  ;;  %v14257_v49 = vld [vmem:[#allocation319_spill] sm:$0xff]  ;;  %v3850_v53 = vadd.f32 %v3849_v29, %v14259_v2  ;;  %v14260_v46 = vld [vmem:[#allocation445_spill] sm:$0xff]  ;;  %v14262_v8 = vld [vmem:[#allocation180_spill] sm:$0xff] }
 0x928   :  { %v3112_v40 = vadd.f32 %v3111_v9, %v14256_v54  ;;  %v3433_v11 = vadd.f32 %v3432_v33, %v14257_v49  ;;  %v4170_v16 = vadd.f32 %v4169_v7, %v14260_v46  ;;  %v14261_v3 = vld [vmem:[#allocation491_spill] sm:$0xff]  ;;  %v2377_v31 = vadd.f32 %v2376_v26, %v14262_v8  ;;  %v14263_v28 = vld [vmem:[#allocation237_spill] sm:$0xff]  ;;  %v14265_v23 = vld [vmem:[#allocation286_spill] sm:$0xff] }
 0x929   :  { %v4219_v5 = vadd.f32 %v4218_v13, %v14261_v3  ;;  %v2745_v21 = vadd.f32 %v2744_v37, %v14263_v28  ;;  %v14264_v34 = vld [vmem:[#allocation257_spill] sm:$0xff]  ;;  %v14266_v57 = vld [vmem:[#allocation366_spill] sm:$0xff]  ;;  %v14267_v33 = vld [vmem:[#allocation383_spill] sm:$0xff] }
 0x92a   :  { %v3066_v18 = vadd.f32 %v3065_v47, %v14264_v34  ;;  %v3434_v45 = vadd.f32 %v3433_v11, %v14265_v23  ;;  %v3481_v17 = vadd.f32 %v3480_v25, %v14266_v57  ;;  %v3801_v36 = vadd.f32 %v3800_v43, %v14267_v33  ;;  %v14268_v56 = vld [vmem:[#allocation507_spill] sm:$0xff]  ;;  %v14269_v41 = vld [vmem:[#allocation138_spill] sm:$0xff]  ;;  %v14274_v47 = vld [vmem:[#allocation444_spill] sm:$0xff]  ;;  %v12444_v24 = vpop.xlane.xlu0 %5221  ;;  %v12446_v43 = vpop.xlane.xlu2 %5131 }
 0x92b   :  { %v4540_v22 = vadd.f32 %v4539_v62, %v14268_v56  ;;  %v2333_v38 = vadd.f32 %v2332_v63, %v14269_v41  ;;  %v14270_v7 = vld [vmem:[#allocation158_spill] sm:$0xff]  ;;  %v14273_v37 = vld [vmem:[#allocation427_spill] sm:$0xff]  ;;  %v4171_v50 = vadd.f32 %v4170_v16, %v14274_v47  ;;  %v14276_v58 = vld [vmem:[#allocation512_spill] sm:$0xff]  ;;  %v12452_v11 = vpop.xlane.xlu1 %5227 }
 0x92c   :  { %v2698_v44 = vadd.f32 %v2697_v32, %v14270_v7  ;;  %v14271_v6 = vld [vmem:[#allocation242_spill] sm:$0xff]  ;;  %v3851_v29 = vadd.f32 %v3850_v53, %v14273_v37  ;;  %v14277_v62 = vld [vmem:[#allocation179_spill] sm:$0xff]  ;;  %v14279_v32 = vld [vmem:[#allocation220_spill] sm:$0xff] }
 0x92d   :  { %v2746_v9 = vadd.f32 %v2745_v21, %v14271_v6  ;;  %v14272_v39 = vld [vmem:[#allocation302_spill] sm:$0xff]  ;;  %v4541_v20 = vadd.f32 %v4540_v22, %v14276_v58  ;;  %v2378_v63 = vadd.f32 %v2377_v31, %v14277_v62  ;;  %v3067_v54 = vadd.f32 %v3066_v18, %v14279_v32  ;;  %v14281_v25 = vld [vmem:[#allocation365_spill] sm:$0xff]  ;;  %v14283_v16 = vld [vmem:[#allocation411_spill] sm:$0xff] }
 0x92e   :  { %v3113_v48 = vadd.f32 %v3112_v40, %v14272_v39  ;;  %v14275_v13 = vld [vmem:[#allocation490_spill] sm:$0xff]  ;;  %v3482_v2 = vadd.f32 %v3481_v17, %v14281_v25  ;;  %v4172_v3 = vadd.f32 %v4171_v50, %v14283_v16  ;;  %v14285_v28 = vld [vmem:[#allocation241_spill] sm:$0xff]  ;;  %v14291_v7 = vld [vmem:[#allocation511_spill] sm:$0xff]  ;;  %v2012_v25 = vadd.f32 %v2011_v51, %v2010_v15 }
 0x92f   :  { %v4220_v42 = vadd.f32 %v4219_v5, %v14275_v13  ;;  %v14278_v26 = vld [vmem:[#allocation198_spill] sm:$0xff]  ;;  %v14284_v5 = vld [vmem:[#allocation137_spill] sm:$0xff]  ;;  %v2747_v21 = vadd.f32 %v2746_v9, %v14285_v28  ;;  %v4542_v17 = vadd.f32 %v4541_v20, %v14291_v7  ;;  %v14295_v9 = vld [vmem:[#allocation364_spill] sm:$0xff] }
 0x930   :  { %v2699_v61 = vadd.f32 %v2698_v44, %v14278_v26  ;;  %v14280_v49 = vld [vmem:[#allocation322_spill] sm:$0xff]  ;;  %v2334_v8 = vadd.f32 %v2333_v38, %v14284_v5  ;;  %v14286_v31 = vld [vmem:[#allocation261_spill] sm:$0xff]  ;;  %v2379_v44 = vrot.slane %v2378_v63, 4  ;;  %v3483_v50 = vadd.f32 %v3482_v2, %v14295_v9  ;;  %v14296_v13 = vld [vmem:[#allocation431_spill] sm:$0xff] }
 0x931   :  { %v3435_v40 = vadd.f32 %v3434_v45, %v14280_v49  ;;  %v14282_v53 = vld [vmem:[#allocation382_spill] sm:$0xff]  ;;  %v3068_v34 = vadd.f32 %v3067_v54, %v14286_v31  ;;  %v14287_v23 = vld [vmem:[#allocation301_spill] sm:$0xff]  ;;  %v14300_v20 = vld [vmem:[#allocation260_spill] sm:$0xff] }
 0x932   :  { %v3802_v46 = vadd.f32 %v3801_v36, %v14282_v53  ;;  %v3114_v57 = vadd.f32 %v3113_v48, %v14287_v23  ;;  %v14288_v18 = vld [vmem:[#allocation349_spill] sm:$0xff]  ;;  %v14289_v45 = vld [vmem:[#allocation426_spill] sm:$0xff]  ;;  %v14297_v48 = vld [vmem:[#allocation448_spill] sm:$0xff]  ;;  %v12479_v28 = vpop.xlane.xlu0 %5128 }
 0x933   :  { %v3852_v56 = vadd.f32 %v3851_v29, %v14289_v45  ;;  %v14290_v22 = vld [vmem:[#allocation14_spill] sm:$0xff]  ;;  %v14292_v36 = vld [vmem:[#allocation197_spill] sm:$0xff]  ;;  %v4173_v62 = vadd.f32 %v4172_v3, %v14297_v48  ;;  %v14299_v29 = vld [vmem:[#allocation240_spill] sm:$0xff]  ;;  %v3069_v54 = vadd.f32 %v3068_v34, %v14300_v20  ;;  %v12481_v3 = vpop.xlane.xlu2 %5233 }
 0x934   :  { %v3803_v33 = vadd.f32 %v3802_v46, %v14288_v18  ;;  %v4221_v41 = vadd.f32 %v4220_v42, %v14290_v22  ;;  %v2700_v6 = vadd.f32 %v2699_v61, %v14292_v36  ;;  %v14293_v39 = vld [vmem:[#allocation306_spill] sm:$0xff]  ;;  %v2748_v42 = vadd.f32 %v2747_v21, %v14299_v29  ;;  %v14301_v49 = vld [vmem:[#allocation324_spill] sm:$0xff]  ;;  %v14302_v53 = vld [vmem:[#allocation369_spill] sm:$0xff] }
 0x935   :  { %v3115_v37 = vadd.f32 %v3114_v57, %v14293_v39  ;;  %v14294_v38 = vld [vmem:[#allocation282_spill] sm:$0xff]  ;;  %v3853_v58 = vadd.f32 %v3852_v56, %v14296_v13  ;;  %v3484_v46 = vadd.f32 %v3483_v50, %v14302_v53  ;;  %v14305_v31 = vld [vmem:[#allocation136_spill] sm:$0xff]  ;;  %v2380_v57 = vadd.f32 %v2379_v44, %v2378_v63  ;;  %v14307_v45 = vld [vmem:[#allocation305_spill] sm:$0xff]  ;;  %v12486_v56 = vpop.xlane.xlu1 %5134 }
 0x936   :  { %v3436_v47 = vadd.f32 %v3435_v40, %v14294_v38  ;;  %v14298_v26 = vld [vmem:[#allocation494_spill] sm:$0xff]  ;;  %v14303_v40 = vld [vmem:[#allocation385_spill] sm:$0xff]  ;;  %v2335_v23 = vadd.f32 %v2334_v8, %v14305_v31  ;;  %v14306_v18 = vld [vmem:[#allocation196_spill] sm:$0xff] }
 0x937   :  { %v4222_v32 = vadd.f32 %v4221_v41, %v14298_v26  ;;  %v3804_v16 = vadd.f32 %v3803_v33, %v14303_v40  ;;  %v14304_v2 = vld [vmem:[#allocation510_spill] sm:$0xff]  ;;  %v2701_v21 = vadd.f32 %v2700_v6, %v14306_v18  ;;  %v3116_v34 = vadd.f32 %v3115_v37, %v14307_v45  ;;  %v14309_v22 = vld [vmem:[#allocation447_spill] sm:$0xff]  ;;  %v14310_v33 = vld [vmem:[#allocation493_spill] sm:$0xff] }
 0x938   :  { %v3437_v61 = vadd.f32 %v3436_v47, %v14301_v49  ;;  %v4543_v5 = vadd.f32 %v4542_v17, %v14304_v2  ;;  %v14308_v15 = vld [vmem:[#allocation430_spill] sm:$0xff]  ;;  %v4174_v41 = vadd.f32 %v4173_v62, %v14309_v22  ;;  %v14312_v39 = vld [vmem:[#allocation201_spill] sm:$0xff]  ;;  %v2749_v47 = vrot.slane %v2748_v42, 4  ;;  %v14313_v9 = vld [vmem:[#allocation259_spill] sm:$0xff] }
 0x939   :  { %v3854_v51 = vadd.f32 %v3853_v58, %v14308_v15  ;;  %v4223_v7 = vadd.f32 %v4222_v32, %v14310_v33  ;;  %v14311_v17 = vld [vmem:[#allocation478_spill] sm:$0xff]  ;;  %v2702_v38 = vadd.f32 %v2701_v21, %v14312_v39  ;;  %v3070_v8 = vadd.f32 %v3069_v54, %v14313_v9  ;;  %v14314_v63 = vld [vmem:[#allocation323_spill] sm:$0xff]  ;;  %v14315_v50 = vld [vmem:[#allocation368_spill] sm:$0xff] }
 0x93a   :  { %v4544_v36 = vadd.f32 %v4543_v5, %v14311_v17  ;;  %v3438_v44 = vadd.f32 %v3437_v61, %v14314_v63  ;;  %v2013_v6 = vrot.slane %v2012_v25, 1  ;;  %v3485_v37 = vadd.f32 %v3484_v46, %v14315_v50  ;;  %v14316_v13 = vld [vmem:[#allocation345_spill] sm:$0xff]  ;;  %v14317_v26 = vld [vmem:[#allocation450_spill] sm:$0xff]  ;;  %v14319_v32 = vld [vmem:[#allocation264_spill] sm:$0xff] }
 0x93b   :  { %v3805_v48 = vadd.f32 %v3804_v16, %v14316_v13  ;;  %v4175_v58 = vadd.f32 %v4174_v41, %v14317_v26  ;;  %v14318_v29 = vld [vmem:[#allocation141_spill] sm:$0xff]  ;;  %v2381_v20 = vrot.slane %v2380_v57, 2  ;;  %v3071_v49 = vadd.f32 %v3070_v8, %v14319_v32  ;;  %v14320_v53 = vld [vmem:[#allocation304_spill] sm:$0xff]  ;;  %v14321_v2 = vld [vmem:[#allocation387_spill] sm:$0xff] }
 0x93c   :  { %v2336_v62 = vadd.f32 %v2335_v23, %v14318_v29  ;;  %v3117_v40 = vadd.f32 %v3116_v34, %v14320_v53  ;;  %v14322_v31 = vld [vmem:[#allocation429_spill] sm:$0xff]  ;;  %v14323_v18 = vld [vmem:[#allocation492_spill] sm:$0xff]  ;;  %v2750_v16 = vadd.f32 %v2749_v47, %v2748_v42  ;;  %v14327_v33 = vld [vmem:[#allocation287_spill] sm:$0xff] }
 0x93d   :  { %v3806_v5 = vadd.f32 %v3805_v48, %v14321_v2  ;;  %v3855_v54 = vadd.f32 %v3854_v51, %v14322_v31  ;;  %v4224_v61 = vadd.f32 %v4223_v7, %v14323_v18  ;;  %v14324_v21 = vld [vmem:[#allocation513_spill] sm:$0xff]  ;;  %v14325_v46 = vld [vmem:[#allocation200_spill] sm:$0xff]  ;;  %v3439_v23 = vadd.f32 %v3438_v44, %v14327_v33  ;;  %v14328_v17 = vld [vmem:[#allocation367_spill] sm:$0xff]  ;;  %v12512_v51 = vpop.xlane.xlu0 %5230  ;;  %v12514_v7 = vpop.xlane.xlu2 %5140 }
 0x93e   :  { %v4545_v45 = vadd.f32 %v4544_v36, %v14324_v21  ;;  %v2703_v15 = vadd.f32 %v2702_v38, %v14325_v46  ;;  %v14326_v22 = vld [vmem:[#allocation309_spill] sm:$0xff]  ;;  %v3486_v39 = vadd.f32 %v3485_v37, %v14328_v17  ;;  %v14329_v9 = vld [vmem:[#allocation434_spill] sm:$0xff]  ;;  %v14332_v36 = vmov 0.0   ;;  %v14334_v47 = vld [vmem:[#allocation263_spill] sm:$0xff]  ;;  %v12523_v26 = vpop.xlane.xlu1 %5236 }
 0x93f   :  { %v3118_v41 = vadd.f32 %v3117_v40, %v14326_v22  ;;  %v3856_v8 = vadd.f32 %v3855_v54, %v14329_v9  ;;  %v14330_v34 = vld [vmem:[#allocation449_spill] sm:$0xff]  ;;  %v12519_v42 = vsel %vm2015_vm6, 1.0, %v14332_v36  ;;  %v2382_v38 = vadd.f32 %v2381_v20, %v2380_v57  ;;  %v14335_v48 = vld [vmem:[#allocation327_spill] sm:$0xff]  ;;  %v14336_v29 = vld [vmem:[#allocation140_spill] sm:$0xff] }
 0x940   :  { %v4176_v63 = vadd.f32 %v4175_v58, %v14330_v34  ;;  %v14331_v50 = vld [vmem:[#allocation497_spill] sm:$0xff]  ;;  %14333 = vst [vmem:[#allocation37_spill] sm:$0xff] %v12519_v42  ;;  %v3072_v44 = vadd.f32 %v3071_v49, %v14334_v47  ;;  %v3440_v37 = vadd.f32 %v3439_v23, %v14335_v48  ;;  %v2337_v58 = vadd.f32 %v2336_v62, %v14336_v29  ;;  %v14337_v32 = vld [vmem:[#allocation372_spill] sm:$0xff]  ;;  %v14338_v40 = vld [vmem:[#allocation386_spill] sm:$0xff] }
 0x941   :  { %v4225_v13 = vadd.f32 %v4224_v61, %v14331_v50  ;;  %v3487_v53 = vadd.f32 %v3486_v39, %v14337_v32  ;;  %v3807_v2 = vadd.f32 %v3806_v5, %v14338_v40  ;;  %v14339_v31 = vld [vmem:[#allocation474_spill] sm:$0xff]  ;;  %v2014_v18 = vadd.f32 %v2013_v6, %v2012_v25  ;;  %v14340_v61 = vld [vmem:[#allocation199_spill] sm:$0xff]  ;;  %v14341_v57 = vld [vmem:[#allocation433_spill] sm:$0xff] }
 0x942   :  { %v4546_v54 = vadd.f32 %v4545_v45, %v14339_v31  ;;  %v2704_v21 = vadd.f32 %v2703_v15, %v14340_v61  ;;  %v2751_v46 = vrot.slane %v2750_v16, 2  ;;  %v3119_v22 = vrot.slane %v3118_v41, 4  ;;  %v14342_v49 = vld [vmem:[#allocation412_spill] sm:$0xff]  ;;  %v14344_v9 = vld [vmem:[#allocation515_spill] sm:$0xff]  ;;  %v14346_v47 = vld [vmem:[#allocation262_spill] sm:$0xff] }
 0x943   :  { %v3857_v20 = vadd.f32 %v3856_v8, %v14341_v57  ;;  %v4177_v33 = vadd.f32 %v4176_v63, %v14342_v49  ;;  %v14343_v23 = vld [vmem:[#allocation496_spill] sm:$0xff]  ;;  %v2383_v62 = vrot.slane %v2382_v38, 1  ;;  %v3073_v5 = vadd.f32 %v3072_v44, %v14346_v47  ;;  %v14347_v48 = vld [vmem:[#allocation326_spill] sm:$0xff]  ;;  %v14348_v25 = vld [vmem:[#allocation139_spill] sm:$0xff] }
 0x944   :  { %v4226_v17 = vadd.f32 %v4225_v13, %v14343_v23  ;;  %v4547_v34 = vadd.f32 %v4546_v54, %v14344_v9  ;;  %v14345_v50 = vld [vmem:[#allocation204_spill] sm:$0xff]  ;;  %v3441_v45 = vadd.f32 %v3440_v37, %v14347_v48  ;;  %v2338_v6 = vadd.f32 %v2337_v58, %v14348_v25  ;;  %v14349_v15 = vld [vmem:[#allocation371_spill] sm:$0xff]  ;;  %v14350_v32 = vld [vmem:[#allocation350_spill] sm:$0xff] }
 0x945   :  { %v2705_v39 = vadd.f32 %v2704_v21, %v14345_v50  ;;  %v3488_v29 = vadd.f32 %v3487_v53, %v14349_v15  ;;  %v3808_v40 = vadd.f32 %v3807_v2, %v14350_v32  ;;  %v14351_v8 = vld [vmem:[#allocation453_spill] sm:$0xff]  ;;  %v2752_v63 = vadd.f32 %v2751_v46, %v2750_v16  ;;  %v14352_v13 = vld [vmem:[#allocation267_spill] sm:$0xff]  ;;  %v14353_v57 = vld [vmem:[#allocation390_spill] sm:$0xff]  ;;  %v12547_v50 = vpop.xlane.xlu0 %5137  ;;  %v12549_v53 = vpop.xlane.xlu2 %5242 }
 0x946   :  { %v4178_v31 = vadd.f32 %v4177_v33, %v14351_v8  ;;  %v3074_v54 = vadd.f32 %v3073_v5, %v14352_v13  ;;  %v3120_v61 = vadd.f32 %v3119_v22, %v3118_v41  ;;  %v14354_v49 = vld [vmem:[#allocation432_spill] sm:$0xff]  ;;  %v14355_v23 = vld [vmem:[#allocation495_spill] sm:$0xff]  ;;  %v14356_v9 = vld [vmem:[#allocation514_spill] sm:$0xff]  ;;  %v2384_v47 = vadd.f32 %v2383_v62, %v2382_v38  ;;  %v12554_v41 = vpop.xlane.xlu1 %5143 }
 0x947   :  { %v3809_v21 = vadd.f32 %v3808_v40, %v14353_v57  ;;  %v3858_v44 = vadd.f32 %v3857_v20, %v14354_v49  ;;  %v4227_v37 = vadd.f32 %v4226_v17, %v14355_v23  ;;  %v4548_v58 = vadd.f32 %v4547_v34, %v14356_v9  ;;  %v14357_v2 = vld [vmem:[#allocation144_spill] sm:$0xff]  ;;  %v14358_v48 = vld [vmem:[#allocation203_spill] sm:$0xff]  ;;  %v14359_v46 = vld [vmem:[#allocation325_spill] sm:$0xff] }
 0x948   :  { %v2339_v33 = vadd.f32 %v2338_v6, %v14357_v2  ;;  %v2706_v16 = vadd.f32 %v2705_v39, %v14358_v48  ;;  %v3442_v5 = vadd.f32 %v3441_v45, %v14359_v46  ;;  %v2019_v22 = vmul.f32 %v12519_v42, %v2014_v18  ;;  %v14360_v25 = vld [vmem:[#allocation452_spill] sm:$0xff]  ;;  %v14363_v38 = vld [vmem:[#allocation266_spill] sm:$0xff]  ;;  %v14365_v8 = vld [vmem:[#allocation389_spill] sm:$0xff] }
 0x949   :  { %v3489_v20 = vrot.slane %v3488_v29, 4  ;;  %v4179_v17 = vadd.f32 %v4178_v31, %v14360_v25  ;;  %v14361_v15 = vld [vmem:[#allocation500_spill] sm:$0xff]  ;;  %v12562_v32 = vsel %vm2385_vm7, 1.0, %v14332_v36  ;;  %v2753_v6 = vrot.slane %v2752_v63, 1  ;;  %v14364_v39 = vld [vmem:[#allocation330_spill] sm:$0xff]  ;;  %v14366_v18 = vld [vmem:[#allocation479_spill] sm:$0xff] }
 0x94a   :  { %v4228_v34 = vadd.f32 %v4227_v37, %v14361_v15  ;;  %14362 = vst [vmem:[#allocation528_spill] sm:$0xff] %v12562_v32  ;;  %v3075_v62 = vadd.f32 %v3074_v54, %v14363_v38  ;;  %v3443_v40 = vadd.f32 %v3442_v5, %v14364_v39  ;;  %v3121_v45 = vrot.slane %v3120_v61, 2  ;;  %v14367_v23 = vld [vmem:[#allocation143_spill] sm:$0xff]  ;;  %v14368_v9 = vld [vmem:[#allocation202_spill] sm:$0xff] }
 0x94b   :  { %v3810_v13 = vadd.f32 %v3809_v21, %v14365_v8  ;;  %v3859_v57 = vrot.slane %v3858_v44, 4  ;;  %v4549_v49 = vadd.f32 %v4548_v58, %v14366_v18  ;;  %v2340_v31 = vadd.f32 %v2339_v33, %v14367_v23  ;;  %v14369_v46 = vld [vmem:[#allocation451_spill] sm:$0xff]  ;;  %v14370_v15 = vld [vmem:[#allocation518_spill] sm:$0xff]  ;;  %v14372_v8 = vld [vmem:[#allocation265_spill] sm:$0xff] }
 0x94c   :  { %v2389_v37 = vmul.f32 %v12562_v32, %v2384_v47  ;;  %v2707_v2 = vadd.f32 %v2706_v16, %v14368_v9  ;;  %v3490_v48 = vadd.f32 %v3489_v20, %v3488_v29  ;;  %v4180_v25 = vadd.f32 %v4179_v17, %v14369_v46  ;;  %v14371_v38 = vld [vmem:[#allocation207_spill] sm:$0xff]  ;;  %v14373_v58 = vld [vmem:[#allocation329_spill] sm:$0xff]  ;;  %v14374_v23 = vld [vmem:[#allocation388_spill] sm:$0xff] }
 0x94d   :  { %v4229_v54 = vrot.slane %v4228_v34, 4  ;;  %v4550_v5 = vadd.f32 %v4549_v49, %v14370_v15  ;;  %v2754_v21 = vadd.f32 %v2753_v6, %v2752_v63  ;;  %v3076_v42 = vadd.f32 %v3075_v62, %v14372_v8  ;;  %v14375_v16 = vld [vmem:[#allocation456_spill] sm:$0xff]  ;;  %v12579_v10 = vpop.xlane.xlu0 %5239  ;;  %v12581_v29 = vpop.xlane.xlu2 %5149  ;;  %v14376_v20 = vld [vmem:[#allocation142_spill] sm:$0xff]  ;;  %v14383_v8 = vld [vmem:[#allocation269_spill] sm:$0xff] }
 0x94e   :  { %v2708_v39 = vadd.f32 %v2707_v2, %v14371_v38  ;;  %v3444_v18 = vadd.f32 %v3443_v40, %v14373_v58  ;;  %v3122_v33 = vadd.f32 %v3121_v45, %v3120_v61  ;;  %v3811_v47 = vadd.f32 %v3810_v13, %v14374_v23  ;;  %v14377_v2 = vld [vmem:[#allocation270_spill] sm:$0xff]  ;;  %v14378_v40 = vld [vmem:[#allocation393_spill] sm:$0xff] }
 0x94f   :  { %v3860_v32 = vadd.f32 %v3859_v57, %v3858_v44  ;;  %v4181_v9 = vadd.f32 %v4180_v25, %v14375_v16  ;;  %v12584_v17 = vadd.f32 %v2340_v31, %v14376_v20  ;;  %v2391_v49 = vadd.f32 %v2389_v37, %v2019_v22  ;;  %v14379_v13 = vld [vmem:[#allocation517_spill] sm:$0xff]  ;;  %v12590_v57 = vpop.xlane.xlu1 %5245  ;;  %v14380_v46 = vld [vmem:[#allocation206_spill] sm:$0xff]  ;;  %v14381_v22 = vld [vmem:[#allocation328_spill] sm:$0xff] }
 0x950   :  { %v3077_v63 = vadd.f32 %v3076_v42, %v14377_v2  ;;  %v4599_v6 = vrot.slane %v11780_v19, 4  ;;  %v3491_v62 = vrot.slane %v3490_v48, 2  ;;  %v3812_v61 = vadd.f32 %v3811_v47, %v14378_v40  ;;  %v14384_v23 = vld [vmem:[#allocation333_spill] sm:$0xff]  ;;  %v14385_v2 = vld [vmem:[#allocation392_spill] sm:$0xff] }
 0x951   :  { %v4230_v45 = vadd.f32 %v4229_v54, %v4228_v34  ;;  %v4551_v44 = vadd.f32 %v4550_v5, %v14379_v13  ;;  %v12593_v25 = vadd.f32 %v2708_v39, %v14380_v46  ;;  %v12598_v31 = vsel %vm2755_vm8, 1.0, %v14332_v36  ;;  %v14382_v54 = vld [vmem:[#allocation455_spill] sm:$0xff]  ;;  %v14386_v13 = vld [vmem:[#allocation516_spill] sm:$0xff] }
 0x952   :  { %v3445_v42 = vadd.f32 %v3444_v18, %v14381_v22  ;;  %v4969_v37 = vrot.slane %v12074_v12, 4  ;;  %v2759_v15 = vmul.f32 %v12598_v31, %v2754_v21  ;;  %v3123_v38 = vrot.slane %v3122_v33, 1 }
 0x953   :  { %v3861_v34 = vrot.slane %v3860_v32, 2  ;;  %v4182_v5 = vadd.f32 %v4181_v9, %v14382_v54  ;;  %v3078_v58 = vadd.f32 %v3077_v63, %v14383_v8  ;;  %v4600_v47 = vadd.f32 %v4599_v6, %v11780_v19  ;;  %v14387_v6 = vld [vmem:[#allocation454_spill] sm:$0xff]  ;;  %v14390_v8 = vld [vmem:[#allocation391_spill] sm:$0xff] }
 0x954   :  { %v3446_v39 = vadd.f32 %v3445_v42, %v14384_v23  ;;  %v5320_v16 = vadd.f32 %v12376_v55, %v12334_v35  ;;  %v3492_v20 = vadd.f32 %v3491_v62, %v3490_v48  ;;  %v3813_v18 = vadd.f32 %v3812_v61, %v14385_v2  ;;  %v14388_v35 = vld [vmem:[#allocation521_spill] sm:$0xff]  ;;  %v14389_v62 = vld [vmem:[#allocation332_spill] sm:$0xff] }
 0x955   :  { %v4231_v40 = vrot.slane %v4230_v45, 2  ;;  %v4552_v46 = vadd.f32 %v4551_v44, %v14386_v13  ;;  %v4970_v21 = vadd.f32 %v4969_v37, %v12074_v12  ;;  %v5282_v9 = vadd.f32 %v12348_v4, %v12339_v59  ;;  %v12618_v48 = vpop.xlane.xlu0 %5146  ;;  %v14391_v4 = vld [vmem:[#allocation459_spill] sm:$0xff]  ;;  %v14394_v2 = vld [vmem:[#allocation520_spill] sm:$0xff] }
 0x956   :  { %v5321_v63 = vadd.f32 %v5320_v16, %v12378_v60  ;;  %v3124_v22 = vadd.f32 %v3123_v38, %v3122_v33  ;;  %v3862_v19 = vadd.f32 %v3861_v34, %v3860_v32  ;;  %v4183_v42 = vadd.f32 %v4182_v5, %v14387_v6  ;;  %v12625_v32 = vpop.xlane.xlu2 %5251  ;;  %v14392_v38 = vld [vmem:[#allocation268_spill] sm:$0xff] }
 0x957   :  { %v4553_v55 = vadd.f32 %v4552_v46, %v14388_v35  ;;  %v3447_v61 = vadd.f32 %v3446_v39, %v14389_v62  ;;  %v4601_v44 = vrot.slane %v4600_v47, 2  ;;  %v5283_v54 = vadd.f32 %v5282_v9, %v12407_v0  ;;  %v14393_v0 = vld [vmem:[#allocation396_spill] sm:$0xff]  ;;  %v12636_v13 = vpop.xlane.xlu1 %5152 }
 0x958   :  { %v5322_v12 = vadd.f32 %v5321_v63, %v12444_v24  ;;  %v3493_v37 = vrot.slane %v3492_v20, 1  ;;  %v3814_v59 = vadd.f32 %v3813_v18, %v14390_v8  ;;  %v4184_v60 = vadd.f32 %v4183_v42, %v14391_v4  ;;  %v14396_v63 = vld [vmem:[#allocation458_spill] sm:$0xff] }
 0x959   :  { %v4232_v33 = vadd.f32 %v4231_v40, %v4230_v45  ;;  %v3079_v34 = vadd.f32 %v3078_v58, %v14392_v38  ;;  %v2761_v5 = vadd.f32 %v2759_v15, %v2391_v49  ;;  %v12631_v23 = vsel %vm3125_vm9, 1.0, %v14332_v36  ;;  %v14395_v58 = vld [vmem:[#allocation331_spill] sm:$0xff] }
 0x95a   :  { %v4971_v39 = vrot.slane %v4970_v21, 2  ;;  %v3815_v24 = vadd.f32 %v3814_v59, %v14393_v0  ;;  %v3863_v16 = vrot.slane %v3862_v19, 1  ;;  %v4554_v18 = vadd.f32 %v4553_v55, %v14394_v2  ;;  %v14400_v59 = vld [vmem:[#allocation524_spill] sm:$0xff]  ;;  %v14403_v2 = vld [vmem:[#allocation462_spill] sm:$0xff] }
 0x95b   :  { %v3129_v45 = vmul.f32 %v12631_v23, %v3124_v22  ;;  %v4602_v40 = vadd.f32 %v4601_v44, %v4600_v47  ;;  %v5284_v49 = vadd.f32 %v5283_v54, %v12371_v27  ;;  %v5323_v15 = vadd.f32 %v5322_v12, %v12409_v30  ;;  %v14397_v22 = vld [vmem:[#allocation395_spill] sm:$0xff]  ;;  %v14399_v12 = vld [vmem:[#allocation457_spill] sm:$0xff] }
 0x95c   :  { %v3448_v46 = vadd.f32 %v3447_v61, %v14395_v58  ;;  %v3494_v9 = vadd.f32 %v3493_v37, %v3492_v20  ;;  %v4185_v6 = vadd.f32 %v4184_v60, %v14396_v63  ;;  %v4233_v42 = vrot.slane %v4232_v33, 1  ;;  %v14398_v30 = vld [vmem:[#allocation519_spill] sm:$0xff] }
 0x95d   :  { %v12644_v35 = vsel %vm3495_vm10, 1.0, %v14332_v36  ;;  %v4972_v62 = vadd.f32 %v4971_v39, %v4970_v21  ;;  %v5285_v55 = vadd.f32 %v5284_v49, %v12415_v1  ;;  %v5324_v8 = vadd.f32 %v5323_v15, %v12452_v11  ;;  %v12651_v61 = vpop.xlane.xlu0 %5248  ;;  %v14404_v58 = vld [vmem:[#allocation399_spill] sm:$0xff] }
 0x95e   :  { %v3816_v47 = vadd.f32 %v3815_v24, %v14397_v22  ;;  %v3864_v27 = vadd.f32 %v3863_v16, %v3862_v19  ;;  %v4555_v44 = vadd.f32 %v4554_v18, %v14398_v30  ;;  %v4603_v20 = vrot.slane %v4602_v40, 1  ;;  %v14401_v19 = vld [vmem:[#allocation336_spill] sm:$0xff]  ;;  %v14402_v24 = vld [vmem:[#allocation394_spill] sm:$0xff]  ;;  %v12669_v49 = vpop.xlane.xlu2 %5158  ;;  %v14405_v63 = vld [vmem:[#allocation523_spill] sm:$0xff] }
 0x95f   :  { %v5286_v54 = vadd.f32 %v5285_v55, %v12479_v28  ;;  %v5325_v21 = vadd.f32 %v5324_v8, %v12512_v51  ;;  %v3499_v1 = vmul.f32 %v12644_v35, %v3494_v9  ;;  %v4186_v11 = vadd.f32 %v4185_v6, %v14399_v12  ;;  %v14411_v12 = vld [vmem:[#allocation335_spill] sm:$0xff] }
 0x960   :  { %v4234_v37 = vadd.f32 %v4233_v42, %v4232_v33  ;;  %v4556_v4 = vadd.f32 %v4555_v44, %v14400_v59  ;;  %v3131_v60 = vadd.f32 %v3129_v45, %v2761_v5  ;;  %v3449_v38 = vadd.f32 %v3448_v46, %v14401_v19  ;;  %v5255_v42 = vpop.xlane.xlu1 %5254  ;;  %v14412_v59 = vld [vmem:[#allocation398_spill] sm:$0xff] }
 0x961   :  { %v12661_v39 = vsel %vm3865_vm11, 1.0, %v14332_v36  ;;  %v4973_v0 = vrot.slane %v4972_v62, 1  ;;  %v3817_v16 = vadd.f32 %v3816_v47, %v14402_v24  ;;  %v4187_v51 = vadd.f32 %v4186_v11, %v14403_v2  ;;  %v14407_v47 = vld [vmem:[#allocation273_spill] sm:$0xff]  ;;  %v14413_v19 = vld [vmem:[#allocation522_spill] sm:$0xff]  ;;  %v14414_v24 = vld [vmem:[#allocation272_spill] sm:$0xff] }
 0x962   :  { %v3869_v28 = vmul.f32 %v12661_v39, %v3864_v27  ;;  %v12667_v18 = vsel %vm4235_vm12, 1.0, %v14332_v36  ;;  %v4604_v33 = vadd.f32 %v4603_v20, %v4602_v40  ;;  %v5287_v5 = vadd.f32 %v5286_v54, %v12446_v43  ;;  %v14406_v40 = vld [vmem:[#allocation205_spill] sm:$0xff]  ;;  %v14416_v2 = vld [vmem:[#allocation527_spill] sm:$0xff] }
 0x963   :  { %v5326_v45 = vadd.f32 %v5325_v21, %v12481_v3  ;;  %v3501_v15 = vadd.f32 %v3499_v1, %v3131_v60  ;;  %v3818_v46 = vadd.f32 %v3817_v16, %v14404_v58  ;;  %v4239_v9 = vmul.f32 %v12667_v18, %v4234_v37  ;;  %v14408_v27 = vld [vmem:[#allocation461_spill] sm:$0xff]  ;;  %v14409_v21 = vld [vmem:[#allocation82_spill] sm:$0xff]  ;;  %v14415_v16 = vld [vmem:[#allocation460_spill] sm:$0xff] }
 0x964   :  { %v4557_v6 = vadd.f32 %v4556_v4, %v14405_v63  ;;  %v4974_v55 = vadd.f32 %v4973_v0, %v4972_v62  ;;  %v5288_v8 = vadd.f32 %v5287_v5, %v12486_v56  ;;  %v2710_v43 = vadd.f32 %v12593_v25, %v14406_v40  ;;  %v14410_v1 = vld [vmem:[#allocation210_spill] sm:$0xff] }
 0x965   :  { %v5327_v22 = vadd.f32 %v5326_v45, %v12523_v26  ;;  %v3080_v3 = vadd.f32 %v3079_v34, %v14407_v47  ;;  %v4188_v30 = vadd.f32 %v4187_v51, %v14408_v27  ;;  %v12687_v44 = vsel %vm4605_vm13, 1.0, %v14332_v36  ;;  %v5156_v20 = vpop.xlane.xlu0 %5155  ;;  %v14417_v58 = vld [vmem:[#allocation334_spill] sm:$0xff] }
 0x966   :  { %v3871_v54 = vadd.f32 %v3869_v28, %v3501_v15  ;;  %v4609_v62 = vmul.f32 %v12687_v44, %v4604_v33  ;;  %v5289_v56 = vadd.f32 %v5288_v8, %v12547_v50  ;;  %v1971_v25 = vadd.f32 %v12188_v14, %v14409_v21  ;;  %v14420_v27 = vld [vmem:[#allocation402_spill] sm:$0xff] }
 0x967   :  { %v5328_v26 = vadd.f32 %v5327_v22, %v12579_v10  ;;  %v2711_v34 = vadd.f32 %v2710_v43, %v14410_v1  ;;  %v3450_v11 = vadd.f32 %v3449_v38, %v14411_v12  ;;  %v12699_v37 = vsel %vm4975_vm14, 1.0, %v14332_v36  ;;  %v14422_v12 = vld [vmem:[#allocation464_spill] sm:$0xff] }
 0x968   :  { %v3819_v4 = vadd.f32 %v3818_v46, %v14412_v59  ;;  %v4241_v60 = vadd.f32 %v4239_v9, %v3871_v54  ;;  %v4558_v0 = vadd.f32 %v4557_v6, %v14413_v19  ;;  %v4979_v50 = vmul.f32 %v12699_v37, %v4974_v55  ;;  %v14418_v9 = vld [vmem:[#allocation465_spill] sm:$0xff]  ;;  %v5261_v6 = vpop.xlane.xlu2 %5260  ;;  %v14421_v54 = vld [vmem:[#allocation526_spill] sm:$0xff] }
 0x969   :  { %v2342_v10 = vrot.slane %v12584_v17, 4  ;;  %v3081_v14 = vadd.f32 %v3080_v3, %v14414_v24  ;;  %v4189_v28 = vadd.f32 %v4188_v30, %v14415_v16  ;;  %v5290_v33 = vadd.f32 %v5289_v56, %v12514_v7  ;;  %v14419_v55 = vld [vmem:[#allocation397_spill] sm:$0xff]  ;;  %v5162_v3 = vpop.xlane.xlu1 %5161 }
 0x96a   :  { %v4559_v38 = vadd.f32 %v4558_v0, %v14416_v2  ;;  %v4611_v51 = vadd.f32 %v4609_v62, %v4241_v60  ;;  %v5329_v5 = vadd.f32 %v5328_v26, %v12549_v53  ;;  %v1972_v45 = vrot.slane %v1971_v25, 4 }
 0x96b   :  { %v2712_v15 = vrot.slane %v2711_v34, 4  ;;  %v3451_v46 = vadd.f32 %v3450_v11, %v14417_v58  ;;  %v4190_v63 = vadd.f32 %v4189_v28, %v14418_v9  ;;  %v3820_v8 = vadd.f32 %v3819_v4, %v14419_v55  ;;  %v14424_v58 = vld [vmem:[#allocation7_spill] sm:$0xff] }
 0x96c   :  { %v5291_v22 = vadd.f32 %v5290_v33, %v12554_v41  ;;  %v5330_v40 = vadd.f32 %v5329_v5, %v12590_v57  ;;  %v12715_v43 = vadd.f32 %v4979_v50, %v4611_v51  ;;  %v2343_v47 = vadd.f32 %v2342_v10, %v12584_v17  ;;  %v14423_v17 = vld [vmem:[#allocation525_spill] sm:$0xff] }
 0x96d   :  { %v3082_v7 = vrot.slane %v3081_v14, 4  ;;  %v5258_v53 = vpop.xlane.xlu0 %5257  ;;  %v3821_v30 = vadd.f32 %v3820_v8, %v14420_v27  ;;  %v4560_v62 = vadd.f32 %v4559_v38, %v14421_v54  ;;  %v1973_v21 = vadd.f32 %v1972_v45, %v1971_v25 }
 0x96e   :  { %v5292_v56 = vadd.f32 %v5291_v22, %v12618_v48  ;;  %v5331_v26 = vadd.f32 %v5330_v40, %v12651_v61  ;;  %v2713_v1 = vadd.f32 %v2712_v15, %v2711_v34  ;;  %v3452_v41 = vrot.slane %v3451_v46, 4 }
 0x96f   :  { %v4191_v57 = vadd.f32 %v4190_v63, %v14422_v12  ;;  %v2344_v11 = vrot.slane %v2343_v47, 2  ;;  %v3083_v59 = vadd.f32 %v3082_v7, %v3081_v14  ;;  %v3822_v4 = vrot.slane %v3821_v30, 4 }
 0x970   :  { %v4561_v60 = vadd.f32 %v4560_v62, %v14423_v17  ;;  %v5293_v19 = vadd.f32 %v5292_v56, %v12581_v29  ;;  %v5332_v0 = vadd.f32 %v5331_v26, %v12625_v32  ;;  %v1974_v50 = vrot.slane %v1973_v21, 2  ;;  %v5168_v28 = vpop.xlane.xlu2 %5167 }
 0x971   :  { %v2714_v10 = vrot.slane %v2713_v1, 2  ;;  %v3453_v24 = vadd.f32 %v3452_v41, %v3451_v46  ;;  %v4192_v48 = vrot.slane %v4191_v57, 4  ;;  %v2345_v34 = vadd.f32 %v2344_v11, %v2343_v47  ;;  %v5264_v32 = vpop.xlane.xlu1 %5263 }
 0x972   :  { %v5294_v61 = vadd.f32 %v5293_v19, %v12636_v13  ;;  %v5333_v25 = vadd.f32 %v5332_v0, %v5255_v42  ;;  %v3084_v16 = vrot.slane %v3083_v59, 2  ;;  %v3823_v38 = vadd.f32 %v3822_v4, %v3821_v30  ;;  %v14425_v4 = vld [vmem:[#allocation528_spill] sm:$0xff] }
 0x973   :  { %v4562_v14 = vrot.slane %v4561_v60, 4  ;;  %v1975_v5 = vadd.f32 %v1974_v50, %v1973_v21  ;;  %v2715_v45 = vadd.f32 %v2714_v10, %v2713_v1  ;;  %v3454_v29 = vrot.slane %v3453_v24, 2 }
 0x974   :  { %v5295_v51 = vadd.f32 %v5294_v61, %v5156_v20  ;;  %v5334_v33 = vadd.f32 %v5333_v25, %v5258_v53  ;;  %v4193_v15 = vadd.f32 %v4192_v48, %v4191_v57  ;;  %v4932_v9 = vrot.slane %v14424_v58, 4 }
 0x975   :  { %v5165_v2 = vpop.xlane.xlu0 %5164  ;;  %v2346_v46 = vrot.slane %v2345_v34, 1  ;;  %v3085_v63 = vadd.f32 %v3084_v16, %v3083_v59  ;;  %v3824_v55 = vrot.slane %v3823_v38, 2  ;;  %v4563_v13 = vadd.f32 %v4562_v14, %v4561_v60 }
 0x976   :  { %v5296_v42 = vadd.f32 %v5295_v51, %v12669_v49  ;;  %v5335_v8 = vadd.f32 %v5334_v33, %v5261_v6  ;;  %v1976_v22 = vrot.slane %v1975_v5, 1  ;;  %v2716_v40 = vrot.slane %v2715_v45, 1 }
 0x977   :  { %v3455_v47 = vadd.f32 %v3454_v29, %v3453_v24  ;;  %v4194_v7 = vrot.slane %v4193_v15, 2  ;;  %v4933_v20 = vadd.f32 %v4932_v9, %v14424_v58  ;;  %v2347_v30 = vadd.f32 %v2346_v46, %v2345_v34  ;;  %v14426_v24 = vld [vmem:[#allocation37_spill] sm:$0xff] }
 0x978   :  { %v5297_v53 = vadd.f32 %v5296_v42, %v5162_v3  ;;  %v5336_v27 = vadd.f32 %v5335_v8, %v5264_v32  ;;  %v3086_v54 = vrot.slane %v3085_v63, 1  ;;  %v3825_v56 = vadd.f32 %v3824_v55, %v3823_v38  ;;  %v5270_v6 = vpop.xlane.xlu2 %5269 }
 0x979   :  { %v4564_v26 = vrot.slane %v4563_v13, 2  ;;  %v1977_v41 = vadd.f32 %v1976_v22, %v1975_v5  ;;  %v2717_v12 = vadd.f32 %v2716_v40, %v2715_v45  ;;  %v3456_v57 = vrot.slane %v3455_v47, 1  ;;  %v5171_v19 = vpop.xlane.xlu1 %5170 }
 0x97a   :  { %v5298_v21 = vadd.f32 %v5297_v53, %v5165_v2  ;;  %v4195_v49 = vadd.f32 %v4194_v7, %v4193_v15  ;;  %v4934_v11 = vrot.slane %v4933_v20, 2  ;;  %v2388_v17 = vmul.f32 %v14425_v4, %v2347_v30 }
 0x97b   :  { %v3087_v60 = vadd.f32 %v3086_v54, %v3085_v63  ;;  %v3826_v3 = vrot.slane %v3825_v56, 1  ;;  %v4565_v0 = vadd.f32 %v4564_v26, %v4563_v13  ;;  %v2018_v48 = vmul.f32 %v14426_v24, %v1977_v41 }
 0x97c   :  { %v5299_v50 = vadd.f32 %v5298_v21, %v5168_v28  ;;  %v2758_v61 = vmul.f32 %v12598_v31, %v2717_v12  ;;  %v3457_v25 = vadd.f32 %v3456_v57, %v3455_v47  ;;  %v4196_v34 = vrot.slane %v4195_v49, 1 }
 0x97d   :  { %v5267_v62 = vpop.xlane.xlu0 %5266  ;;  %v4935_v16 = vadd.f32 %v4934_v11, %v4933_v20  ;;  %v2390_v14 = vadd.f32 %v2388_v17, %v2018_v48  ;;  %v3128_v51 = vmul.f32 %v12631_v23, %v3087_v60  ;;  %v3827_v5 = vadd.f32 %v3826_v3, %v3825_v56 }
 0x97e   :  { %v5337_v1 = vadd.f32 %v5336_v27, %v5267_v62  ;;  %v5300_v2 = vadd.f32 %v5299_v50, %v5171_v19  ;;  %v4566_v45 = vrot.slane %v4565_v0, 1  ;;  %v3498_v28 = vmul.f32 %v12644_v35, %v3457_v25 }
 0x97f   :  { %v2760_v32 = vadd.f32 %v2758_v61, %v2390_v14  ;;  %v4197_v58 = vadd.f32 %v4196_v34, %v4195_v49  ;;  %v4936_v9 = vrot.slane %v4935_v16, 1  ;;  %v3868_v55 = vmul.f32 %v12661_v39, %v3827_v5 }
 0x980   :  { %v5338_v59 = vadd.f32 %v5337_v1, %v5270_v6  ;;  %v4567_v13 = vadd.f32 %v4566_v45, %v4565_v0  ;;  %v5803_v40 = vsel %vm5345_vm15, 1.0, %v14332_v36  ;;  %v5861_v20 = vmov 2.0  }
 0x981   :  { %v3130_v63 = vadd.f32 %v3128_v51, %v2760_v32  ;;  %v4238_v22 = vmul.f32 %v12667_v18, %v4197_v58  ;;  %v4937_v47 = vadd.f32 %v4936_v9, %v4935_v16  ;;  %5828 = vrcp.f32 %v5861_v20  ;;  %v5822_v18 = vld [vmem:[%s12766_s6] ss:$0 sm:$0xff] }
 0x982   :  { %v5339_v10 = vrot.slane %v5338_v59, 4  ;;  %v4608_v52 = vmul.f32 %v12687_v44, %v4567_v13  ;;  %v5409_v13 = vld [vmem:[%s12767_s7] sm:$0x1] }
 0x983   :  { %v3500_v8 = vadd.f32 %v3498_v28, %v3130_v63  ;;  %v4978_v39 = vmul.f32 %v12699_v37, %v4937_v47 }
 0x984   :  { %v5340_v38 = vadd.f32 %v5339_v10, %v5338_v59 }
 0x985   :  { %v5174_v33 = vpop.xlane.xlu0 %5173  ;;  %v3870_v53 = vadd.f32 %v3868_v55, %v3500_v8 }
 0x986   :  { %v5341_v29 = vrot.slane %v5340_v38, 2  ;;  %v5301_v15 = vadd.f32 %v5300_v2, %v5174_v33 }
 0x987   :  { %v4240_v54 = vadd.f32 %v4238_v22, %v3870_v53  ;;  %v5829_v56 = vpop.eup %5828  ;;  %v5823_v22 = vld [vmem:[%s12768_s8] ss:$0 sm:$0xff] }
 0x988   :  { %v5342_v46 = vadd.f32 %v5341_v29, %v5340_v38  ;;  %v5302_v31 = vrot.slane %v5301_v15, 4  ;;  %v5373_v57 = vmul.f32 2.0, %v5829_v56  ;;  %vm5377_vm2 = vweird.f32 %v5829_v56 }
 0x989   :  { %v4610_v26 = vadd.f32 %v4608_v52, %v4240_v54 }
 0x98a   :  { %v5343_v42 = vrot.slane %v5342_v46, 1  ;;  %v5303_v23 = vadd.f32 %v5302_v31, %v5301_v15  ;;  %v5374_v37 = vsub.f32 1.0, %v5373_v57 }
 0x98b   :  { %v4980_v1 = vadd.f32 %v4978_v39, %v4610_v26 }
 0x98c   :  { %v5344_v7 = vadd.f32 %v5343_v42, %v5342_v46  ;;  %v5304_v35 = vrot.slane %v5303_v23, 2  ;;  %v5375_v4 = vmul.f32 %v5829_v56, %v5374_v37 }
 0x98e   :  { %v5349_v27 = vmul.f32 %v5803_v40, %v5344_v7  ;;  %v5305_v30 = vadd.f32 %v5304_v35, %v5303_v23  ;;  %v5376_v19 = vadd.f32 %v5829_v56, %v5375_v4 }
 0x990   :  { %v5351_v62 = vadd.f32 %v5349_v27, %v12715_v43  ;;  %v5306_v36 = vrot.slane %v5305_v30, 1  ;;  %v5378_v50 = vsel %vm5377_vm2, %v5829_v56, %v5376_v19 }
 0x992   :  { %v5307_v21 = vadd.f32 %v5306_v36, %v5305_v30  ;;  %v5357_v41 = vadd.f32 %v5822_v18, %v5351_v62 }
 0x994   :  { %v5348_v12 = vmul.f32 %v5803_v40, %v5307_v21  ;;  %v5360_v6 = vrot.slane %v5357_v41, 7 }
 0x996   :  { %v5350_v44 = vadd.f32 %v5348_v12, %v4980_v1 }
 0x998   :  { %v5356_v49 = vadd.f32 %v5822_v18, %v5350_v44 }
 0x99a   :  { %v5362_v43 = vsel %vm5361_vm0, %v5360_v6, %v5356_v49 }
 0x99b   :  { %v5365_v11 = vsel %vm5364_vm1, %v5362_v43, 0.0 }
 0x99c   :  { %v5366_v59 = vrot.slane %v5365_v11, 4 }
 0x99e   :  { %v5367_v17 = vadd.f32 %v5366_v59, %v5365_v11 }
 0x9a0   :  { %v5368_v60 = vrot.slane %v5367_v17, 2 }
 0x9a2   :  { %v5369_v3 = vadd.f32 %v5368_v60, %v5367_v17 }
 0x9a4   :  { %v5370_v0 = vrot.slane %v5369_v3, 1 }
 0x9a6   :  { %v5371_v10 = vadd.f32 %v5370_v0, %v5369_v3 }
 0x9a8   :  { %v5379_v24 = vmul.f32 %v5378_v50, %v5371_v10 }
 0x9aa   :  { %v5380_v48 = vperm.slane %v5379_v24, 0 }
 0x9ac   :  { %v5381_v61 = vsub.f32 %v5356_v49, %v5380_v48  ;;  %v5382_v25 = vsub.f32 %v5357_v41, %v5380_v48 }
 0x9ae   :  { %v5384_v34 = vmul.f32 %v5382_v25, %v5382_v25  ;;  %v5383_v16 = vmul.f32 %v5381_v61, %v5381_v61 }
 0x9b0   :  { %v5387_v2 = vrot.slane %v5384_v34, 7 }
 0x9b2   :  { %v5388_v38 = vsel %vm5361_vm0, %v5387_v2, %v5383_v16 }
 0x9b3   :  { %v5390_v14 = vsel %vm5364_vm1, %v5388_v38, 0.0 }
 0x9b4   :  { %v5391_v51 = vrot.slane %v5390_v14, 4 }
 0x9b6   :  { %v5392_v33 = vadd.f32 %v5391_v51, %v5390_v14 }
 0x9b8   :  { %v5393_v5 = vrot.slane %v5392_v33, 2 }
 0x9ba   :  { %v5394_v45 = vadd.f32 %v5393_v5, %v5392_v33 }
 0x9bc   :  { %v5395_v29 = vrot.slane %v5394_v45, 1 }
 0x9be   :  { %v5396_v15 = vadd.f32 %v5395_v29, %v5394_v45 }
 0x9c0   :  { %v5397_v32 = vmul.f32 %v5396_v15, %v5378_v50 }
 0x9c2   :  { %v5398_v28 = vadd.f32 1e-05, %v5397_v32 }
 0x9c4   :  { %5830 = vrsqrt.f32 %v5398_v28  ;;  %vm5405_vm4 = vweird.f32 %v5398_v28 }
 0x9ca   :  { %v5831_v58 = vpop.eup %5830 }
 0x9cb   :  { %v5400_v9 = vmul.f32 %v5831_v58, %v5398_v28  ;;  %vm5406_vm3 = vweird.f32 %v5831_v58 }
 0x9cc   :  { %vm5407_vm5 = vmor %vm5405_vm4, %vm5406_vm3 }
 0x9cd   :  { %v5401_v46 = vmul.f32 %v5831_v58, %v5400_v9 }
 0x9cf   :  { %v5402_v31 = vmul.f32 0.5, %v5401_v46 }
 0x9d1   :  { %v5403_v63 = vsub.f32 1.5, %v5402_v31 }
 0x9d3   :  { %v5404_v55 = vmul.f32 %v5831_v58, %v5403_v63 }
 0x9d5   :  { %v5408_v42 = vsel %vm5407_vm5, %v5831_v58, %v5404_v55 }
 0x9d6   :  { %v5410_v23 = vmul.f32 %v5409_v13, %v5408_v42 }
 0x9d8   :  { %v5411_v8 = vperm.slane %v5410_v23, 0 }
 0x9da   :  { %v5412_v40 = vmul.f32 %v5411_v8, %v5381_v61  ;;  %v5413_v47 = vmul.f32 %v5411_v8, %v5382_v25 }
 0x9dc   :  { %v5419_v7 = vadd.f32 %v5823_v22, %v5413_v47  ;;  %v5418_v35 = vadd.f32 %v5823_v22, %v5412_v40 }
 0x9de   :  { %v5422_v20 = vrot.slane %v5419_v7, 7 }
 0x9e0   :  { %v5423_v53 = vsel %vm5361_vm0, %v5422_v20, %v5418_v35 }
 0x9e1   :  { %5425 = vst.msk [vmem:[#allocation3] sm:$0x3] %vm5364_vm1, %v5423_v53 }
 0x9e2   :  { %5436 = dma.vmem_to_hbm [thread:$0]  %s5432_s14, 32, %s5434_s3, [#allocation4]  }
 0x9e3   :  { %5857 = dma.done.wait [#allocation4], 32  }
 0x9e4   :  { %5858 = vsyncadd [#allocation4], 4294967264 }
 0x9e5   :  { %5441 = vsyncpa [#allocation4], 1 }

</bundles_post_ra>
